<compile_context>
chip_gen: v7x
topology: tpu7x:2x2x1
jax: 0.10.0
libtpu: 0.0.40
codegen_flags: <defaults>
</compile_context>

<pallas_src>
import functools
import math

import jax
import jax.numpy as jnp
from jax import lax
from jax.experimental import pallas as pl
from jax.experimental.pallas import tpu as pltpu

C = 64          # EMAU channel count == last_channel
K = 32          # number of EM bases
STAGES = 3      # EM iterations
NUM_STACKS = 1
VMEM_LIMIT = 32 * 1024 * 1024   # safe scoped limit on v5e/v6e/v7x


# ---------------------------------------------------------------------------
# Fused kernel (one batch element per grid step):
#   EMAU:   conv1(1x1) -> EM x3 -> recon -> ReLU -> conv2(1x1) -> BN -> +idn -> ReLU
#   Heads:  Conv2d(C, hc, 3, pad=1) -> ReLU -> block-diagonal Conv2d(hc, classes, 1)
# ---------------------------------------------------------------------------
def _fused_kernel(x_ref, w1_ref, b1_ref, mu0_ref, w2_ref, scale_ref, shift_ref,
                  wa_ref, ba_ref, wb_ref, bb_ref,
                  out_ref, mu_ref, pad_ref, *, H, W):
    N = H * W
    c = x_ref.shape[-1]

    # ---------------- EMAU ----------------
    idn = x_ref[0]                                                      # (N, C) bf16
    x = jnp.dot(idn, w1_ref[...],
                preferred_element_type=jnp.float32) + b1_ref[...]       # conv1, f32
    x_bf = x.astype(jnp.bfloat16)
    xT_bf = x_bf.T                                                      # hoisted out of EM loop

    def em_step(_, carry):
        mu, _z = carry
        mu_bf = mu.astype(jnp.bfloat16)
        s = jnp.dot(x_bf, mu_bf, preferred_element_type=jnp.float32)    # (N, K)
        s = s - jnp.max(s, axis=-1, keepdims=True)
        e = jnp.exp(s)
        z = e / jnp.sum(e, axis=-1, keepdims=True)                      # softmax over K
        z_n = z / (1e-6 + jnp.sum(z, axis=0, keepdims=True))            # normalize over N
        mu_new = jnp.dot(xT_bf, z_n.astype(jnp.bfloat16),
                         preferred_element_type=jnp.float32)            # (C, K)
        inv_norm = lax.rsqrt(jnp.sum(mu_new * mu_new, axis=0, keepdims=True) + 1e-12)
        return mu_new * inv_norm, z                                     # l2norm over C

    mu0 = mu0_ref[...]
    z0 = jnp.zeros((N, K), jnp.float32)
    mu, z = lax.fori_loop(0, STAGES, em_step, (mu0, z0), unroll=True)
    mu_ref[0] = mu

    # x_recon = mu @ z^T (torch (C,N)) -> channels-last (N, C)
    xr = jnp.einsum('nk,ck->nc', z.astype(jnp.bfloat16), mu.astype(jnp.bfloat16),
                    preferred_element_type=jnp.float32)
    xr = jnp.maximum(xr, 0.0)                                           # ReLU
    y = jnp.dot(xr.astype(jnp.bfloat16), w2_ref[...],
                preferred_element_type=jnp.float32)                     # conv2 (no bias)
    y = y * scale_ref[...] + shift_ref[...]                             # folded BN (eval)
    y = jnp.maximum(y + idn.astype(jnp.float32), 0.0)                   # residual + ReLU

    # ---------------- fused heads (3x3 conv with in-kernel zero halo) ----------------
    pad_ref[...] = jnp.zeros_like(pad_ref)                              # zero border (tiny)
    pad_ref[pl.ds(1, H), pl.ds(1, W), :] = y.astype(jnp.bfloat16).reshape(H, W, c)
    taps = jnp.concatenate(
        [pad_ref[pl.ds(kh, H), pl.ds(kw, W), :].reshape(N, c)
         for kh in range(3) for kw in range(3)],
        axis=-1)                                                        # (N, 9*C) bf16
    h = jnp.maximum(jnp.dot(taps, wa_ref[...],
                            preferred_element_type=jnp.float32) + ba_ref[...], 0.0)
    logits = jnp.dot(h.astype(jnp.bfloat16), wb_ref[...],
                     preferred_element_type=jnp.float32) + bb_ref[...]  # (N, cls_pad)
    out_ref[0] = logits.T                                               # (cls_pad, N): lane-dense


def base_model_forward(x_nchw, emau_params, head_bundle, num_stacks=NUM_STACKS):
    B, c, H, W = x_nchw.shape
    N = H * W
    x_nc = jnp.transpose(x_nchw, (0, 2, 3, 1)).reshape(B, N, c).astype(jnp.bfloat16)
    w1, b1, mu0, w2, scale, shift = emau_params
    wa, ba, wb, bb, head_slices, cls_pad = head_bundle

    out_slab, mu = pl.pallas_call(
        functools.partial(_fused_kernel, H=H, W=W),
        out_shape=(jax.ShapeDtypeStruct((B, cls_pad, N), jnp.float32),
                   jax.ShapeDtypeStruct((B, c, K), jnp.float32)),
        grid_spec=pltpu.PrefetchScalarGridSpec(
            num_scalar_prefetch=0,
            grid=(B,),
            in_specs=[
                pl.BlockSpec((1, N, c), lambda b: (b, 0, 0)),   # x (bf16)
                pl.BlockSpec((c, c), lambda b: (0, 0)),         # w1 (bf16)
                pl.BlockSpec((1, c), lambda b: (0, 0)),         # b1
                pl.BlockSpec((c, K), lambda b: (0, 0)),         # mu0
                pl.BlockSpec((c, c), lambda b: (0, 0)),         # w2 (bf16)
                pl.BlockSpec((1, c), lambda b: (0, 0)),         # bn scale
                pl.BlockSpec((1, c), lambda b: (0, 0)),         # bn shift
                pl.BlockSpec(wa.shape, lambda b: (0, 0)),       # (9*C, HC) bf16
                pl.BlockSpec(ba.shape, lambda b: (0, 0)),       # (1, HC)
                pl.BlockSpec(wb.shape, lambda b: (0, 0)),       # (HC, cls_pad) bf16
                pl.BlockSpec(bb.shape, lambda b: (0, 0)),       # (1, cls_pad)
            ],
            out_specs=[
                pl.BlockSpec((1, cls_pad, N), lambda b: (b, 0, 0)),
                pl.BlockSpec((1, c, K), lambda b: (b, 0, 0)),
            ],
            scratch_shapes=[pltpu.VMEM((H + 2, W + 2, c), jnp.bfloat16)]),
        compiler_params=pltpu.CompilerParams(
            dimension_semantics=("parallel",),
            vmem_limit_bytes=VMEM_LIMIT),
    )(x_nc, w1, b1, mu0, w2, scale, shift, wa, ba, wb, bb)

    # Per-head slice: class axis is on sublanes, N on lanes -> already NCHW after reshape.
    z = {}
    for head, (c0, ncls) in head_slices.items():
        z[head] = out_slab[:, c0:c0 + ncls, :].reshape(B, ncls, H, W)
    out = [z]   # TODO(synk): num_stacks > 1 requires real backbone features per stack.
    return out, mu


# ---------------------------------------------------------------------------
# Deterministic parameter init (mirrors __init__ shapes / init distributions)
# ---------------------------------------------------------------------------
def init_params(key, heads, head_convs, last_channel, prior_bias=-4.6):
    keys = jax.random.split(key, 3 + 2 * len(heads))
    # --- EMAU ---
    std_conv = math.sqrt(2.0 / (1 * 1 * C))                 # n = kh*kw*out_ch
    w1 = (jax.random.normal(keys[0], (C, C), jnp.float32) * std_conv).astype(jnp.bfloat16)
    b1 = jnp.zeros((1, C), jnp.float32)
    w2 = (jax.random.normal(keys[1], (C, C), jnp.float32) * std_conv).astype(jnp.bfloat16)
    mu0 = jax.random.normal(keys[2], (C, K), jnp.float32) * math.sqrt(2.0 / K)
    mu0 = mu0 / (1e-6 + jnp.sqrt(jnp.sum(mu0 * mu0, axis=0, keepdims=True)))
    eps = 1e-5
    gamma = jnp.ones((C,), jnp.float32)
    beta = jnp.zeros((C,), jnp.float32)
    rmean = jnp.zeros((C,), jnp.float32)
    rvar = jnp.ones((C,), jnp.float32)
    inv = gamma / jnp.sqrt(rvar + eps)
    scale = inv.reshape(1, C)
    shift = (beta - rmean * inv).reshape(1, C)
    emau = (w1, b1, mu0, w2, scale, shift)

    # --- fused heads ---
    # TODO(synk): only the len(head_conv)==1 chain (conv3x3 -> ReLU -> conv1x1)
    #             is implemented, which matches the demo/head_convs config.
    hc_total = sum(head_convs[h][0] for h in heads)
    total_cls = sum(heads[h] for h in heads)
    cls_pad = max(8, ((total_cls + 7) // 8) * 8)            # sublane-padded class axis
    wa = jnp.zeros((9, C, hc_total), jnp.float32)           # taps stacked on contraction axis
    wb = jnp.zeros((hc_total, cls_pad), jnp.float32)        # block-diagonal final 1x1
    bb = jnp.zeros((1, cls_pad), jnp.float32)
    head_slices = {}
    h_off, c_off, ki = 0, 0, 3
    for head in heads:
        hc = head_convs[head][0]
        ncls = heads[head]
        wa_h = jax.random.normal(keys[ki], (9, C, hc), jnp.float32) * math.sqrt(2.0 / (9 * C))
        ki += 1
        wb_h = jax.random.normal(keys[ki], (hc, ncls), jnp.float32) * math.sqrt(2.0 / hc)
        ki += 1
        wa = wa.at[:, :, h_off:h_off + hc].set(wa_h)
        wb = wb.at[h_off:h_off + hc, c_off:c_off + ncls].set(wb_h)
        if 'hm' in head:
            bb = bb.at[0, c_off:c_off + ncls].set(prior_bias)     # opt.prior_bias
        head_slices[head] = (c_off, ncls)
        h_off += hc
        c_off += ncls
    ba = jnp.zeros((1, hc_total), jnp.float32)
    wa = wa.reshape(9 * C, hc_total).astype(jnp.bfloat16)    # K=576 contraction layout
    head_bundle = (wa, ba, wb.astype(jnp.bfloat16), bb, head_slices, cls_pad)
    return emau, head_bundle


if __name__ == "__main__":
    heads = {'hm': 2, 'wh': 2}
    head_convs = {'hm': [32], 'wh': [32]}
    B, H, W = 2, 16, 16

    key = jax.random.PRNGKey(0)
    kx, kp = jax.random.split(key)
    x = jax.random.normal(kx, (B, C, H, W), jnp.float32)    # feats[0], NCHW

    emau_params, head_bundle = init_params(kp, heads, head_convs, C)
    out, mu = base_model_forward(x, emau_params, head_bundle)
    jax.block_until_ready((out, mu))

    assert mu.shape == (B, C, K)
    assert bool(jnp.all(jnp.isfinite(mu)))
    for head in heads:
        o = out[0][head]
        assert o.shape == (B, heads[head], H, W)
        assert bool(jnp.all(jnp.isfinite(o)))
    print("KERNEL_OK")
</pallas_src>

<mosaic_0001>
module attributes {stable_mosaic.version = 11 : i64} {
  func.func @_fused_kernel(%arg0: i32, %arg1: memref<1x256x64xbf16, #tpu.memory_space<vmem>>, %arg2: memref<64x64xbf16, #tpu.memory_space<vmem>>, %arg3: memref<1x64xf32, #tpu.memory_space<vmem>>, %arg4: memref<64x32xf32, #tpu.memory_space<vmem>>, %arg5: memref<64x64xbf16, #tpu.memory_space<vmem>>, %arg6: memref<1x64xf32, #tpu.memory_space<vmem>>, %arg7: memref<1x64xf32, #tpu.memory_space<vmem>>, %arg8: memref<576x64xbf16, #tpu.memory_space<vmem>>, %arg9: memref<1x64xf32, #tpu.memory_space<vmem>>, %arg10: memref<64x8xbf16, #tpu.memory_space<vmem>>, %arg11: memref<1x8xf32, #tpu.memory_space<vmem>>, %arg12: memref<1x8x256xf32, #tpu.memory_space<vmem>>, %arg13: memref<1x64x32xf32, #tpu.memory_space<vmem>>, %arg14: memref<18x18x64xbf16, #tpu.memory_space<vmem>>) attributes {dimension_semantics = [#tpu.dimension_semantics<parallel>], iteration_bounds = array<i64: 2>, scalar_prefetch = 0 : i64, scratch_operands = 1 : i64, tpu.core_type = #tpu.core_type<tc>, window_params = [{transform_indices = @transform_0, window_bounds = array<i64: 1, 256, 64>}, {pipeline_mode = #tpu.pipeline_mode<synchronous>, transform_indices = @transform_1, window_bounds = array<i64: 64, 64>}, {pipeline_mode = #tpu.pipeline_mode<synchronous>, transform_indices = @transform_2, window_bounds = array<i64: 1, 64>}, {pipeline_mode = #tpu.pipeline_mode<synchronous>, transform_indices = @transform_3, window_bounds = array<i64: 64, 32>}, {pipeline_mode = #tpu.pipeline_mode<synchronous>, transform_indices = @transform_4, window_bounds = array<i64: 64, 64>}, {pipeline_mode = #tpu.pipeline_mode<synchronous>, transform_indices = @transform_5, window_bounds = array<i64: 1, 64>}, {pipeline_mode = #tpu.pipeline_mode<synchronous>, transform_indices = @transform_6, window_bounds = array<i64: 1, 64>}, {pipeline_mode = #tpu.pipeline_mode<synchronous>, transform_indices = @transform_7, window_bounds = array<i64: 576, 64>}, {pipeline_mode = #tpu.pipeline_mode<synchronous>, transform_indices = @transform_8, window_bounds = array<i64: 1, 64>}, {pipeline_mode = #tpu.pipeline_mode<synchronous>, transform_indices = @transform_9, window_bounds = array<i64: 64, 8>}, {pipeline_mode = #tpu.pipeline_mode<synchronous>, transform_indices = @transform_10, window_bounds = array<i64: 1, 8>}, {transform_indices = @transform_11, window_bounds = array<i64: 1, 8, 256>}, {transform_indices = @transform_12, window_bounds = array<i64: 1, 64, 32>}]} {
    %c0 = arith.constant 0 : index
    %c0_0 = arith.constant 0 : index
    %c0_1 = arith.constant 0 : index
    %0 = vector.load %arg1[%c0, %c0_0, %c0_1] : memref<1x256x64xbf16, #tpu.memory_space<vmem>>, vector<1x256x64xbf16>
    %1 = vector.shape_cast %0 : vector<1x256x64xbf16> to vector<256x64xbf16>
    %c0_2 = arith.constant 0 : index
    %c0_3 = arith.constant 0 : index
    %2 = vector.load %arg2[%c0_2, %c0_3] : memref<64x64xbf16, #tpu.memory_space<vmem>>, vector<64x64xbf16>
    %cst = arith.constant dense<0.000000e+00> : vector<256x64xf32>
    %3 = tpu.matmul %1, %2, %cst {dimension_numbers = #tpu.dot_dimension_numbers<[1], [0], [0], [1], [0, 0, 1, 1], [], []>} : vector<256x64xbf16>, vector<64x64xbf16>, vector<256x64xf32> -> vector<256x64xf32>
    %c0_4 = arith.constant 0 : index
    %c0_5 = arith.constant 0 : index
    %4 = vector.load %arg3[%c0_4, %c0_5] : memref<1x64xf32, #tpu.memory_space<vmem>>, vector<1x64xf32>
    %5 = vector.broadcast %4 : vector<1x64xf32> to vector<256x64xf32>
    %6 = arith.addf %3, %5 : vector<256x64xf32>
    %7 = arith.truncf %6 : vector<256x64xf32> to vector<256x64xbf16>
    %8 = tpu.transpose %7, [1, 0] : vector<256x64xbf16> -> vector<64x256xbf16>
    %c0_6 = arith.constant 0 : index
    %c0_7 = arith.constant 0 : index
    %9 = vector.load %arg4[%c0_6, %c0_7] : memref<64x32xf32, #tpu.memory_space<vmem>>, vector<64x32xf32>
    %cst_8 = arith.constant 0.000000e+00 : f32
    %10 = vector.broadcast %cst_8 : f32 to vector<256x32xf32>
    %c0_i32 = arith.constant 0 : i32
    %11 = arith.truncf %9 : vector<64x32xf32> to vector<64x32xbf16>
    %cst_9 = arith.constant dense<0.000000e+00> : vector<256x32xf32>
    %12 = tpu.matmul %7, %11, %cst_9 {dimension_numbers = #tpu.dot_dimension_numbers<[1], [0], [0], [1], [0, 0, 1, 1], [], []>} : vector<256x64xbf16>, vector<64x32xbf16>, vector<256x32xf32> -> vector<256x32xf32>
    %cst_10 = arith.constant dense<0xFF800000> : vector<256xf32>
    %13 = vector.multi_reduction <maximumf>, %12, %cst_10 [1] : vector<256x32xf32> to vector<256xf32>
    %14 = vector.shape_cast %13 : vector<256xf32> to vector<256x1xf32>
    %15 = vector.broadcast %14 : vector<256x1xf32> to vector<256x32xf32>
    %16 = arith.subf %12, %15 : vector<256x32xf32>
    %17 = math.exp %16 : vector<256x32xf32>
    %cst_11 = arith.constant dense<0.000000e+00> : vector<256xf32>
    %18 = vector.multi_reduction <add>, %17, %cst_11 [1] : vector<256x32xf32> to vector<256xf32>
    %19 = vector.shape_cast %18 : vector<256xf32> to vector<256x1xf32>
    %20 = vector.broadcast %19 : vector<256x1xf32> to vector<256x32xf32>
    %21 = arith.divf %17, %20 : vector<256x32xf32>
    %cst_12 = arith.constant dense<0.000000e+00> : vector<32xf32>
    %22 = vector.multi_reduction <add>, %21, %cst_12 [0] : vector<256x32xf32> to vector<32xf32>
    %23 = vector.shape_cast %22 : vector<32xf32> to vector<1x32xf32>
    %cst_13 = arith.constant 9.99999997E-7 : f32
    %24 = vector.broadcast %cst_13 : f32 to vector<1x32xf32>
    %25 = arith.addf %24, %23 : vector<1x32xf32>
    %26 = vector.broadcast %25 : vector<1x32xf32> to vector<256x32xf32>
    %27 = arith.divf %21, %26 : vector<256x32xf32>
    %28 = arith.truncf %27 : vector<256x32xf32> to vector<256x32xbf16>
    %cst_14 = arith.constant dense<0.000000e+00> : vector<64x32xf32>
    %29 = tpu.matmul %8, %28, %cst_14 {dimension_numbers = #tpu.dot_dimension_numbers<[1], [0], [0], [1], [0, 0, 1, 1], [], []>} : vector<64x256xbf16>, vector<256x32xbf16>, vector<64x32xf32> -> vector<64x32xf32>
    %30 = arith.mulf %29, %29 : vector<64x32xf32>
    %cst_15 = arith.constant dense<0.000000e+00> : vector<32xf32>
    %31 = vector.multi_reduction <add>, %30, %cst_15 [0] : vector<64x32xf32> to vector<32xf32>
    %32 = vector.shape_cast %31 : vector<32xf32> to vector<1x32xf32>
    %cst_16 = arith.constant 9.99999996E-13 : f32
    %33 = vector.broadcast %cst_16 : f32 to vector<1x32xf32>
    %34 = arith.addf %32, %33 : vector<1x32xf32>
    %35 = math.rsqrt %34 : vector<1x32xf32>
    %36 = vector.broadcast %35 : vector<1x32xf32> to vector<64x32xf32>
    %37 = arith.mulf %29, %36 : vector<64x32xf32>
    %c1_i32 = arith.constant 1 : i32
    %38 = arith.truncf %37 : vector<64x32xf32> to vector<64x32xbf16>
    %cst_17 = arith.constant dense<0.000000e+00> : vector<256x32xf32>
    %39 = tpu.matmul %7, %38, %cst_17 {dimension_numbers = #tpu.dot_dimension_numbers<[1], [0], [0], [1], [0, 0, 1, 1], [], []>} : vector<256x64xbf16>, vector<64x32xbf16>, vector<256x32xf32> -> vector<256x32xf32>
    %cst_18 = arith.constant dense<0xFF800000> : vector<256xf32>
    %40 = vector.multi_reduction <maximumf>, %39, %cst_18 [1] : vector<256x32xf32> to vector<256xf32>
    %41 = vector.shape_cast %40 : vector<256xf32> to vector<256x1xf32>
    %42 = vector.broadcast %41 : vector<256x1xf32> to vector<256x32xf32>
    %43 = arith.subf %39, %42 : vector<256x32xf32>
    %44 = math.exp %43 : vector<256x32xf32>
    %cst_19 = arith.constant dense<0.000000e+00> : vector<256xf32>
    %45 = vector.multi_reduction <add>, %44, %cst_19 [1] : vector<256x32xf32> to vector<256xf32>
    %46 = vector.shape_cast %45 : vector<256xf32> to vector<256x1xf32>
    %47 = vector.broadcast %46 : vector<256x1xf32> to vector<256x32xf32>
    %48 = arith.divf %44, %47 : vector<256x32xf32>
    %cst_20 = arith.constant dense<0.000000e+00> : vector<32xf32>
    %49 = vector.multi_reduction <add>, %48, %cst_20 [0] : vector<256x32xf32> to vector<32xf32>
    %50 = vector.shape_cast %49 : vector<32xf32> to vector<1x32xf32>
    %cst_21 = arith.constant 9.99999997E-7 : f32
    %51 = vector.broadcast %cst_21 : f32 to vector<1x32xf32>
    %52 = arith.addf %51, %50 : vector<1x32xf32>
    %53 = vector.broadcast %52 : vector<1x32xf32> to vector<256x32xf32>
    %54 = arith.divf %48, %53 : vector<256x32xf32>
    %55 = arith.truncf %54 : vector<256x32xf32> to vector<256x32xbf16>
    %cst_22 = arith.constant dense<0.000000e+00> : vector<64x32xf32>
    %56 = tpu.matmul %8, %55, %cst_22 {dimension_numbers = #tpu.dot_dimension_numbers<[1], [0], [0], [1], [0, 0, 1, 1], [], []>} : vector<64x256xbf16>, vector<256x32xbf16>, vector<64x32xf32> -> vector<64x32xf32>
    %57 = arith.mulf %56, %56 : vector<64x32xf32>
    %cst_23 = arith.constant dense<0.000000e+00> : vector<32xf32>
    %58 = vector.multi_reduction <add>, %57, %cst_23 [0] : vector<64x32xf32> to vector<32xf32>
    %59 = vector.shape_cast %58 : vector<32xf32> to vector<1x32xf32>
    %cst_24 = arith.constant 9.99999996E-13 : f32
    %60 = vector.broadcast %cst_24 : f32 to vector<1x32xf32>
    %61 = arith.addf %59, %60 : vector<1x32xf32>
    %62 = math.rsqrt %61 : vector<1x32xf32>
    %63 = vector.broadcast %62 : vector<1x32xf32> to vector<64x32xf32>
    %64 = arith.mulf %56, %63 : vector<64x32xf32>
    %c2_i32 = arith.constant 2 : i32
    %65 = arith.truncf %64 : vector<64x32xf32> to vector<64x32xbf16>
    %cst_25 = arith.constant dense<0.000000e+00> : vector<256x32xf32>
    %66 = tpu.matmul %7, %65, %cst_25 {dimension_numbers = #tpu.dot_dimension_numbers<[1], [0], [0], [1], [0, 0, 1, 1], [], []>} : vector<256x64xbf16>, vector<64x32xbf16>, vector<256x32xf32> -> vector<256x32xf32>
    %cst_26 = arith.constant dense<0xFF800000> : vector<256xf32>
    %67 = vector.multi_reduction <maximumf>, %66, %cst_26 [1] : vector<256x32xf32> to vector<256xf32>
    %68 = vector.shape_cast %67 : vector<256xf32> to vector<256x1xf32>
    %69 = vector.broadcast %68 : vector<256x1xf32> to vector<256x32xf32>
    %70 = arith.subf %66, %69 : vector<256x32xf32>
    %71 = math.exp %70 : vector<256x32xf32>
    %cst_27 = arith.constant dense<0.000000e+00> : vector<256xf32>
    %72 = vector.multi_reduction <add>, %71, %cst_27 [1] : vector<256x32xf32> to vector<256xf32>
    %73 = vector.shape_cast %72 : vector<256xf32> to vector<256x1xf32>
    %74 = vector.broadcast %73 : vector<256x1xf32> to vector<256x32xf32>
    %75 = arith.divf %71, %74 : vector<256x32xf32>
    %cst_28 = arith.constant dense<0.000000e+00> : vector<32xf32>
    %76 = vector.multi_reduction <add>, %75, %cst_28 [0] : vector<256x32xf32> to vector<32xf32>
    %77 = vector.shape_cast %76 : vector<32xf32> to vector<1x32xf32>
    %cst_29 = arith.constant 9.99999997E-7 : f32
    %78 = vector.broadcast %cst_29 : f32 to vector<1x32xf32>
    %79 = arith.addf %78, %77 : vector<1x32xf32>
    %80 = vector.broadcast %79 : vector<1x32xf32> to vector<256x32xf32>
    %81 = arith.divf %75, %80 : vector<256x32xf32>
    %82 = arith.truncf %81 : vector<256x32xf32> to vector<256x32xbf16>
    %cst_30 = arith.constant dense<0.000000e+00> : vector<64x32xf32>
    %83 = tpu.matmul %8, %82, %cst_30 {dimension_numbers = #tpu.dot_dimension_numbers<[1], [0], [0], [1], [0, 0, 1, 1], [], []>} : vector<64x256xbf16>, vector<256x32xbf16>, vector<64x32xf32> -> vector<64x32xf32>
    %84 = arith.mulf %83, %83 : vector<64x32xf32>
    %cst_31 = arith.constant dense<0.000000e+00> : vector<32xf32>
    %85 = vector.multi_reduction <add>, %84, %cst_31 [0] : vector<64x32xf32> to vector<32xf32>
    %86 = vector.shape_cast %85 : vector<32xf32> to vector<1x32xf32>
    %cst_32 = arith.constant 9.99999996E-13 : f32
    %87 = vector.broadcast %cst_32 : f32 to vector<1x32xf32>
    %88 = arith.addf %86, %87 : vector<1x32xf32>
    %89 = math.rsqrt %88 : vector<1x32xf32>
    %90 = vector.broadcast %89 : vector<1x32xf32> to vector<64x32xf32>
    %91 = arith.mulf %83, %90 : vector<64x32xf32>
    %c0_33 = arith.constant 0 : index
    %c0_34 = arith.constant 0 : index
    %c0_35 = arith.constant 0 : index
    %92 = vector.load %arg13[%c0_33, %c0_34, %c0_35] : memref<1x64x32xf32, #tpu.memory_space<vmem>>, vector<1x64x32xf32>
    %93 = vector.shape_cast %92 : vector<1x64x32xf32> to vector<64x32xf32>
    %94 = vector.shape_cast %91 : vector<64x32xf32> to vector<1x64x32xf32>
    tpu.vector_store %arg13[%c0_33, %c0_34, %c0_35], %94 {strides = array<i32>} : memref<1x64x32xf32, #tpu.memory_space<vmem>>, vector<1x64x32xf32>,
    %95 = arith.truncf %75 : vector<256x32xf32> to vector<256x32xbf16>
    %96 = arith.truncf %91 : vector<64x32xf32> to vector<64x32xbf16>
    "tpu.trace_start"() <{level = 10 : i32, message = "nk,ck->nc"}> : () -> ()
    %cst_36 = arith.constant dense<0.000000e+00> : vector<256x64xf32>
    %97 = tpu.matmul %95, %96, %cst_36 {dimension_numbers = #tpu.dot_dimension_numbers<[1], [1], [0], [0], [0, 0, 1, 0], [], []>} : vector<256x32xbf16>, vector<64x32xbf16>, vector<256x64xf32> -> vector<256x64xf32>
    "tpu.trace_stop"() : () -> ()
    %cst_37 = arith.constant 0.000000e+00 : f32
    %98 = vector.broadcast %cst_37 : f32 to vector<256x64xf32>
    %99 = arith.maximumf %97, %98 : vector<256x64xf32>
    %100 = arith.truncf %99 : vector<256x64xf32> to vector<256x64xbf16>
    %c0_38 = arith.constant 0 : index
    %c0_39 = arith.constant 0 : index
    %101 = vector.load %arg5[%c0_38, %c0_39] : memref<64x64xbf16, #tpu.memory_space<vmem>>, vector<64x64xbf16>
    %cst_40 = arith.constant dense<0.000000e+00> : vector<256x64xf32>
    %102 = tpu.matmul %100, %101, %cst_40 {dimension_numbers = #tpu.dot_dimension_numbers<[1], [0], [0], [1], [0, 0, 1, 1], [], []>} : vector<256x64xbf16>, vector<64x64xbf16>, vector<256x64xf32> -> vector<256x64xf32>
    %c0_41 = arith.constant 0 : index
    %c0_42 = arith.constant 0 : index
    %103 = vector.load %arg6[%c0_41, %c0_42] : memref<1x64xf32, #tpu.memory_space<vmem>>, vector<1x64xf32>
    %104 = vector.broadcast %103 : vector<1x64xf32> to vector<256x64xf32>
    %105 = arith.mulf %102, %104 : vector<256x64xf32>
    %c0_43 = arith.constant 0 : index
    %c0_44 = arith.constant 0 : index
    %106 = vector.load %arg7[%c0_43, %c0_44] : memref<1x64xf32, #tpu.memory_space<vmem>>, vector<1x64xf32>
    %107 = vector.broadcast %106 : vector<1x64xf32> to vector<256x64xf32>
    %108 = arith.addf %105, %107 : vector<256x64xf32>
    %109 = arith.extf %1 : vector<256x64xbf16> to vector<256x64xf32>
    %110 = arith.addf %108, %109 : vector<256x64xf32>
    %cst_45 = arith.constant 0.000000e+00 : f32
    %111 = vector.broadcast %cst_45 : f32 to vector<256x64xf32>
    %112 = arith.maximumf %110, %111 : vector<256x64xf32>
    %cst_46 = arith.constant 0.000000e+00 : bf16
    %113 = vector.broadcast %cst_46 : bf16 to vector<18x18x64xbf16>
    %c0_47 = arith.constant 0 : index
    %c0_48 = arith.constant 0 : index
    %c0_49 = arith.constant 0 : index
    %114 = vector.load %arg14[%c0_47, %c0_48, %c0_49] : memref<18x18x64xbf16, #tpu.memory_space<vmem>>, vector<18x18x64xbf16>
    tpu.vector_store %arg14[%c0_47, %c0_48, %c0_49], %113 {strides = array<i32>} : memref<18x18x64xbf16, #tpu.memory_space<vmem>>, vector<18x18x64xbf16>,
    %115 = arith.truncf %112 : vector<256x64xf32> to vector<256x64xbf16>
    %116 = vector.shape_cast %115 : vector<256x64xbf16> to vector<16x16x64xbf16>
    %c1 = arith.constant 1 : index
    %c1_50 = arith.constant 1 : index
    %c0_51 = arith.constant 0 : index
    %117 = vector.load %arg14[%c1, %c1_50, %c0_51] : memref<18x18x64xbf16, #tpu.memory_space<vmem>>, vector<16x16x64xbf16>
    tpu.vector_store %arg14[%c1, %c1_50, %c0_51], %116 {strides = array<i32>} : memref<18x18x64xbf16, #tpu.memory_space<vmem>>, vector<16x16x64xbf16>,
    %c0_52 = arith.constant 0 : index
    %c0_53 = arith.constant 0 : index
    %c0_54 = arith.constant 0 : index
    %118 = vector.load %arg14[%c0_52, %c0_53, %c0_54] : memref<18x18x64xbf16, #tpu.memory_space<vmem>>, vector<16x16x64xbf16>
    %119 = vector.shape_cast %118 : vector<16x16x64xbf16> to vector<256x64xbf16>
    %c0_55 = arith.constant 0 : index
    %c1_56 = arith.constant 1 : index
    %c0_57 = arith.constant 0 : index
    %120 = vector.load %arg14[%c0_55, %c1_56, %c0_57] : memref<18x18x64xbf16, #tpu.memory_space<vmem>>, vector<16x16x64xbf16>
    %121 = vector.shape_cast %120 : vector<16x16x64xbf16> to vector<256x64xbf16>
    %c0_58 = arith.constant 0 : index
    %c2 = arith.constant 2 : index
    %c0_59 = arith.constant 0 : index
    %122 = vector.load %arg14[%c0_58, %c2, %c0_59] : memref<18x18x64xbf16, #tpu.memory_space<vmem>>, vector<16x16x64xbf16>
    %123 = vector.shape_cast %122 : vector<16x16x64xbf16> to vector<256x64xbf16>
    %c1_60 = arith.constant 1 : index
    %c0_61 = arith.constant 0 : index
    %c0_62 = arith.constant 0 : index
    %124 = vector.load %arg14[%c1_60, %c0_61, %c0_62] : memref<18x18x64xbf16, #tpu.memory_space<vmem>>, vector<16x16x64xbf16>
    %125 = vector.shape_cast %124 : vector<16x16x64xbf16> to vector<256x64xbf16>
    %c1_63 = arith.constant 1 : index
    %c1_64 = arith.constant 1 : index
    %c0_65 = arith.constant 0 : index
    %126 = vector.load %arg14[%c1_63, %c1_64, %c0_65] : memref<18x18x64xbf16, #tpu.memory_space<vmem>>, vector<16x16x64xbf16>
    %127 = vector.shape_cast %126 : vector<16x16x64xbf16> to vector<256x64xbf16>
    %c1_66 = arith.constant 1 : index
    %c2_67 = arith.constant 2 : index
    %c0_68 = arith.constant 0 : index
    %128 = vector.load %arg14[%c1_66, %c2_67, %c0_68] : memref<18x18x64xbf16, #tpu.memory_space<vmem>>, vector<16x16x64xbf16>
    %129 = vector.shape_cast %128 : vector<16x16x64xbf16> to vector<256x64xbf16>
    %c2_69 = arith.constant 2 : index
    %c0_70 = arith.constant 0 : index
    %c0_71 = arith.constant 0 : index
    %130 = vector.load %arg14[%c2_69, %c0_70, %c0_71] : memref<18x18x64xbf16, #tpu.memory_space<vmem>>, vector<16x16x64xbf16>
    %131 = vector.shape_cast %130 : vector<16x16x64xbf16> to vector<256x64xbf16>
    %c2_72 = arith.constant 2 : index
    %c1_73 = arith.constant 1 : index
    %c0_74 = arith.constant 0 : index
    %132 = vector.load %arg14[%c2_72, %c1_73, %c0_74] : memref<18x18x64xbf16, #tpu.memory_space<vmem>>, vector<16x16x64xbf16>
    %133 = vector.shape_cast %132 : vector<16x16x64xbf16> to vector<256x64xbf16>
    %c2_75 = arith.constant 2 : index
    %c2_76 = arith.constant 2 : index
    %c0_77 = arith.constant 0 : index
    %134 = vector.load %arg14[%c2_75, %c2_76, %c0_77] : memref<18x18x64xbf16, #tpu.memory_space<vmem>>, vector<16x16x64xbf16>
    %135 = vector.shape_cast %134 : vector<16x16x64xbf16> to vector<256x64xbf16>
    %136 = tpu.concatenate %119, %121, %123, %125, %127, %129, %131, %133, %135 in 1 : vector<256x64xbf16>, vector<256x64xbf16>, vector<256x64xbf16>, vector<256x64xbf16>, vector<256x64xbf16>, vector<256x64xbf16>, vector<256x64xbf16>, vector<256x64xbf16>, vector<256x64xbf16> -> vector<256x576xbf16>
    %c0_78 = arith.constant 0 : index
    %c0_79 = arith.constant 0 : index
    %137 = vector.load %arg8[%c0_78, %c0_79] : memref<576x64xbf16, #tpu.memory_space<vmem>>, vector<576x64xbf16>
    %cst_80 = arith.constant dense<0.000000e+00> : vector<256x64xf32>
    %138 = tpu.matmul %136, %137, %cst_80 {dimension_numbers = #tpu.dot_dimension_numbers<[1], [0], [0], [1], [0, 0, 1, 1], [], []>} : vector<256x576xbf16>, vector<576x64xbf16>, vector<256x64xf32> -> vector<256x64xf32>
    %c0_81 = arith.constant 0 : index
    %c0_82 = arith.constant 0 : index
    %139 = vector.load %arg9[%c0_81, %c0_82] : memref<1x64xf32, #tpu.memory_space<vmem>>, vector<1x64xf32>
    %140 = vector.broadcast %139 : vector<1x64xf32> to vector<256x64xf32>
    %141 = arith.addf %138, %140 : vector<256x64xf32>
    %cst_83 = arith.constant 0.000000e+00 : f32
    %142 = vector.broadcast %cst_83 : f32 to vector<256x64xf32>
    %143 = arith.maximumf %141, %142 : vector<256x64xf32>
    %144 = arith.truncf %143 : vector<256x64xf32> to vector<256x64xbf16>
    %c0_84 = arith.constant 0 : index
    %c0_85 = arith.constant 0 : index
    %145 = vector.load %arg10[%c0_84, %c0_85] : memref<64x8xbf16, #tpu.memory_space<vmem>>, vector<64x8xbf16>
    %cst_86 = arith.constant dense<0.000000e+00> : vector<256x8xf32>
    %146 = tpu.matmul %144, %145, %cst_86 {dimension_numbers = #tpu.dot_dimension_numbers<[1], [0], [0], [1], [0, 0, 1, 1], [], []>} : vector<256x64xbf16>, vector<64x8xbf16>, vector<256x8xf32> -> vector<256x8xf32>
    %c0_87 = arith.constant 0 : index
    %c0_88 = arith.constant 0 : index
    %147 = vector.load %arg11[%c0_87, %c0_88] : memref<1x8xf32, #tpu.memory_space<vmem>>, vector<1x8xf32>
    %148 = vector.broadcast %147 : vector<1x8xf32> to vector<256x8xf32>
    %149 = arith.addf %146, %148 : vector<256x8xf32>
    %150 = tpu.transpose %149, [1, 0] : vector<256x8xf32> -> vector<8x256xf32>
    %c0_89 = arith.constant 0 : index
    %c0_90 = arith.constant 0 : index
    %c0_91 = arith.constant 0 : index
    %151 = vector.load %arg12[%c0_89, %c0_90, %c0_91] : memref<1x8x256xf32, #tpu.memory_space<vmem>>, vector<1x8x256xf32>
    %152 = vector.shape_cast %151 : vector<1x8x256xf32> to vector<8x256xf32>
    %153 = vector.shape_cast %150 : vector<8x256xf32> to vector<1x8x256xf32>
    tpu.vector_store %arg12[%c0_89, %c0_90, %c0_91], %153 {strides = array<i32>} : memref<1x8x256xf32, #tpu.memory_space<vmem>>, vector<1x8x256xf32>,
    return
  }
  func.func @transform_0(%arg0: i32) -> (i32, i32, i32) {
    %c0_i32 = arith.constant 0 : i32
    %c0_i32_0 = arith.constant 0 : i32
    %c0_i32_1 = arith.constant 0 : i32
    return %arg0, %c0_i32, %c0_i32_0 : i32, i32, i32
  }
  func.func @transform_1(%arg0: i32) -> (i32, i32) {
    %c0_i32 = arith.constant 0 : i32
    %c0_i32_0 = arith.constant 0 : i32
    %c0_i32_1 = arith.constant 0 : i32
    return %c0_i32, %c0_i32_0 : i32, i32
  }
  func.func @transform_2(%arg0: i32) -> (i32, i32) {
    %c0_i32 = arith.constant 0 : i32
    %c0_i32_0 = arith.constant 0 : i32
    %c0_i32_1 = arith.constant 0 : i32
    return %c0_i32, %c0_i32_0 : i32, i32
  }
  func.func @transform_3(%arg0: i32) -> (i32, i32) {
    %c0_i32 = arith.constant 0 : i32
    %c0_i32_0 = arith.constant 0 : i32
    %c0_i32_1 = arith.constant 0 : i32
    return %c0_i32, %c0_i32_0 : i32, i32
  }
  func.func @transform_4(%arg0: i32) -> (i32, i32) {
    %c0_i32 = arith.constant 0 : i32
    %c0_i32_0 = arith.constant 0 : i32
    %c0_i32_1 = arith.constant 0 : i32
    return %c0_i32, %c0_i32_0 : i32, i32
  }
  func.func @transform_5(%arg0: i32) -> (i32, i32) {
    %c0_i32 = arith.constant 0 : i32
    %c0_i32_0 = arith.constant 0 : i32
    %c0_i32_1 = arith.constant 0 : i32
    return %c0_i32, %c0_i32_0 : i32, i32
  }
  func.func @transform_6(%arg0: i32) -> (i32, i32) {
    %c0_i32 = arith.constant 0 : i32
    %c0_i32_0 = arith.constant 0 : i32
    %c0_i32_1 = arith.constant 0 : i32
    return %c0_i32, %c0_i32_0 : i32, i32
  }
  func.func @transform_7(%arg0: i32) -> (i32, i32) {
    %c0_i32 = arith.constant 0 : i32
    %c0_i32_0 = arith.constant 0 : i32
    %c0_i32_1 = arith.constant 0 : i32
    return %c0_i32, %c0_i32_0 : i32, i32
  }
  func.func @transform_8(%arg0: i32) -> (i32, i32) {
    %c0_i32 = arith.constant 0 : i32
    %c0_i32_0 = arith.constant 0 : i32
    %c0_i32_1 = arith.constant 0 : i32
    return %c0_i32, %c0_i32_0 : i32, i32
  }
  func.func @transform_9(%arg0: i32) -> (i32, i32) {
    %c0_i32 = arith.constant 0 : i32
    %c0_i32_0 = arith.constant 0 : i32
    %c0_i32_1 = arith.constant 0 : i32
    return %c0_i32, %c0_i32_0 : i32, i32
  }
  func.func @transform_10(%arg0: i32) -> (i32, i32) {
    %c0_i32 = arith.constant 0 : i32
    %c0_i32_0 = arith.constant 0 : i32
    %c0_i32_1 = arith.constant 0 : i32
    return %c0_i32, %c0_i32_0 : i32, i32
  }
  func.func @transform_11(%arg0: i32) -> (i32, i32, i32) {
    %c0_i32 = arith.constant 0 : i32
    %c0_i32_0 = arith.constant 0 : i32
    %c0_i32_1 = arith.constant 0 : i32
    return %arg0, %c0_i32, %c0_i32_0 : i32, i32, i32
  }
  func.func @transform_12(%arg0: i32) -> (i32, i32, i32) {
    %c0_i32 = arith.constant 0 : i32
    %c0_i32_0 = arith.constant 0 : i32
    %c0_i32_1 = arith.constant 0 : i32
    return %arg0, %c0_i32, %c0_i32_0 : i32, i32, i32
  }
}

</mosaic_0001>

<bundles_post_ra>
// kernel: tpu_custom_call.1
= control target key start
LH: loop header
LB: loop body
LE: loop exit
PB: predicated region body
PF: predicated region fallthrough
CT: control target
= control target key end

     0   :  { %s14327_s0 = inlined_call_operand.vmem [shape: bf16[2,256,64], index: 0, kind: input, shape index: {}]   ;;  %s14328_s1 = inlined_call_operand.vmem [shape: bf16[64,64], index: 1, kind: input, shape index: {}]   ;;  %s14329_s2 = inlined_call_operand.vmem [shape: f32[1,64], index: 2, kind: input, shape index: {}]   ;;  %s14330_s3 = inlined_call_operand.vmem [shape: f32[64,32], index: 3, kind: input, shape index: {}]   ;;  %s14331_s4 = inlined_call_operand.vmem [shape: bf16[64,64], index: 4, kind: input, shape index: {}]   ;;  %s14332_s5 = inlined_call_operand.vmem [shape: f32[1,64], index: 5, kind: input, shape index: {}]   ;;  %s14333_s6 = inlined_call_operand.vmem [shape: f32[1,64], index: 6, kind: input, shape index: {}]   ;;  %s14334_s7 = inlined_call_operand.vmem [shape: bf16[576,64], index: 7, kind: input, shape index: {}]   ;;  %s14335_s8 = inlined_call_operand.vmem [shape: f32[1,64], index: 8, kind: input, shape index: {}]   ;;  %s14336_s9 = inlined_call_operand.vmem [shape: bf16[64,8], index: 9, kind: input, shape index: {}]   ;;  %s14337_s10 = inlined_call_operand.vmem [shape: f32[1,8], index: 10, kind: input, shape index: {}]   ;;  %s14338_s11 = inlined_call_operand.hbm [shape: f32[2,8,256], index: 11, kind: output, shape index: {0}]   ;;  %s14339_s12 = inlined_call_operand.vmem [shape: f32[2,64,32], index: 12, kind: output, shape index: {1}]  }
   0x1   :  { %14349 = sst [smem:[#allocation14_spill]] %s14327_s0 }
   0x2   :  { %14350 = sst [smem:[#allocation15_spill]] %s14328_s1 }
   0x3   :  { %18 = vsyncpa [#allocation4], 0 }
   0x4   :  { %20 = vsyncpa [#allocation4 + $0x1], 0  ;;  %s10575_s21 = smov 0   ;;  %s10577_s22 = smov 0  }
   0x5   :  { %s10579_s23 = smov 0   ;;  %s10581_s24 = smov 0  }
   0x6 LB: > { %s10596_s25 = sadd.s32 4294967295, %s10505_s24   ;;  %s8407_s26 = sadd.s32 4294967294, %s10505_s24   ;;  %s10505_s24 = sphi %s10581_s24, %s14386_s24   ;;  %s10501_s23 = sphi %s10579_s23, %s14385_s23   ;;  %s10497_s22 = sphi %s10577_s22, %s14384_s22   ;;  %s10493_s21 = sphi %s10575_s21, %s14383_s21  }
   0x7   : > { %s10600_s27 = sadd.s32 1, %s10505_s24   ;;  %s269_s28 = sadd.s32 1, %s10501_s23 }
   0x8   : > { %s266_s29 = ssub.s32 %s10505_s24, %s10600_s27  ;;  %p279_p0 = scmp.ne.s32.totalorder %s10501_s23, %s10497_s22 }
   0x9   : > { %p267_p1 = scmp.eq.s32.totalorder %s266_s29, 0  ;;  %p280_p2 = scmp.eq.s32.totalorder %s10596_s25, 1 }
   0xa   : > { %p285_p3 = scmp.ne.s32.totalorder %s10497_s22, %s10493_s21  ;;  %p286_p4 = scmp.eq.s32.totalorder %s8407_s26, 1 }
   0xb   : > { %s10611_s30 = scalar_select %p267_p1, %s10501_s23, %s269_s28  }
   0xc   : > { %p10613_p5 = por %p280_p2, %p279_p0  ;;  %p10617_p6 = por %p286_p4, %p285_p3 }
   0xd   : > { %p8410_p7 = scmp.ge.s32.totalorder %s10505_s24, 1  ;;  %p368_p8 = scmp.lt.s32.totalorder %s10505_s24, 3 }
   0xf   : > { %p369_p9 = pnand %p8410_p7, %p368_p8 }
  0x11   : > { %372 = sbr.rel (%p369_p9) target bundleno = 4548 (0x11c4), region = 64 }
  0x18   : > { %s14353_s1 = sld [smem:[#allocation15_spill]]  ;;  %p415_p10 = scmp.lt.s32.totalorder %s10596_s25, 1  ;;  %vm577_vm0 = vcmask 523264   ;;  %v835_v6 = vld [vmem:[%s14330_s3] sm:$0xff]  ;;  %v836_v7 = vld [vmem:[%s14330_s3 + $0x8] sm:$0xff]  ;;  %v837_v13 = vld [vmem:[%s14330_s3 + $0x10] sm:$0xff] }
  0x19   : > { %s14354_s0 = sld [smem:[#allocation14_spill]]  ;;  %v843_v12 = vpack.c.bf16 %v836_v7, %v835_v6  ;;  %v838_v14 = vld [vmem:[%s14330_s3 + $0x18] sm:$0xff]  ;;  %v839_v26 = vld [vmem:[%s14330_s3 + $0x20] sm:$0xff]  ;;  %v840_v27 = vld [vmem:[%s14330_s3 + $0x28] sm:$0xff]  ;;  %vm1056_vm1 = vcmask 261120   ;;  %vm3824_vm2 = vcmask 519168  }
  0x1a   : > { %s10631_s19 = scalar_select %p415_p10, %s10596_s25, 1  ;;  %v844_v17 = vpack.c.bf16 %v838_v14, %v837_v13  ;;  %v845_v28 = vpack.c.bf16 %v840_v27, %v839_v26  ;;  %v841_v29 = vld [vmem:[%s14330_s3 + $0x30] sm:$0xff]  ;;  %v842_v30 = vld [vmem:[%s14330_s3 + $0x38] sm:$0xff]  ;;  %v10704_v33 = vld [vmem:[%s14329_s2] ss:$0 sm:$0xff]  ;;  %vm3827_vm3 = vcmask 516096  }
  0x1b   : > { %v846_v31 = vpack.c.bf16 %v842_v30, %v841_v29  ;;  %vm4465_vm4 = vsmask.f32 3328  ;;  %vm4466_vm5 = vsmask.f32 7440  ;;  %s10508_s17 = smov 64   ;;  %vm4916_vm13 = vcmask 1042432  }
  0x1c   : > { %s8842_s28 = sshll.u32 %s10631_s19, 7  ;;  %s8843_s18 = sshll.u32 %s10631_s19, 6  ;;  %vm12565_vm6 = vmor %vm4465_vm4, %vm4466_vm5  ;;  %vm4301_vm7 = vsmask.f32 7938  ;;  %vm3976_vm8 = vsmask.f32 256 }
  0x1d   : > { %vm3977_vm9 = vsmask.f32 4368  ;;  %vm12628_vm10 = vmand %vm3824_vm2, %vm4301_vm7  ;;  %vm4917_vm14 = vcmask 1046532   ;;  %s405_s26 = sand.u32 1, %s10497_s22   ;;  %s8876_s29 = sshll.u32 %s10596_s25, 8 }
  0x1e   : > { %v9754_v0 = vld [vmem:[%s14353_s1] sm:$0xff]   ;;  %v9755_v1 = vld [vmem:[%s14353_s1 + $0x8] sm:$0xff]   ;;  %v9756_v2 = vld [vmem:[%s14353_s1 + $0x10] sm:$0xff]  }
  0x1f   : > { %9381 = vmatprep.subr.bf16.mxu0 %v9754_v0  ;;  %9701 = vmatprep.subr.bf16.mxu1 %v9754_v0  ;;  %s10640_s16 = scalar_lea.vmem %s14354_s0, %s8842_s28  ;;  %v9757_v4 = vld [vmem:[%s14353_s1 + $0x18] sm:$0xff]   ;;  %s424_s28 = scalar_lea.vmem %s14339_s12, %s8843_s18  ;;  %vm12634_vm11 = vmor %vm3976_vm8, %vm3977_vm9 }
  0x20   : > { %9382 = vmatpush3.bf16.msra.mxu0 %v9754_v0  ;;  %9705 = vmatpush3.bf16.msra.mxu1 %v9754_v0  ;;  %v426_v3 = vld [vmem:[%s10640_s16] sm:$0xff]   ;;  %v428_v5 = vld [vmem:[%s10640_s16 + $0x8] sm:$0xff]   ;;  %v430_v8 = vld [vmem:[%s10640_s16 + $0x10] sm:$0xff]   ;;  %s14287_s18 = scalar_lea.hbm %s14338_s11, %s8876_s29 }
  0x21   : > { %9383 = vmatprep.subr.bf16.mxu0 %v9755_v1  ;;  %9702 = vmatprep.subr.bf16.mxu1 %v9755_v1  ;;  %v450_v9 = vld [vmem:[%s10640_s16 + $0x60] sm:$0xff]   ;;  %v452_v10 = vld [vmem:[%s10640_s16 + $0x68] sm:$0xff]   ;;  %v454_v11 = vld [vmem:[%s10640_s16 + $0x70] sm:$0xff]  }
  0x22   : > { %9389 = vmatprep.mubr.msk.bf16.mxu0 %vm577_vm0, %v426_v3  ;;  %9413 = vmatprep.mubr.msk.bf16.mxu1 %vm577_vm0, %v450_v9  ;;  %v432_v15 = vld [vmem:[%s10640_s16 + $0x18] sm:$0xff]   ;;  %v434_v18 = vld [vmem:[%s10640_s16 + $0x20] sm:$0xff]   ;;  %v436_v19 = vld [vmem:[%s10640_s16 + $0x28] sm:$0xff]  }
  0x23   : > { %v456_v16 = vld [vmem:[%s10640_s16 + $0x78] sm:$0xff]   ;;  %v438_v20 = vld [vmem:[%s10640_s16 + $0x30] sm:$0xff]   ;;  %v442_v22 = vld [vmem:[%s10640_s16 + $0x40] sm:$0xff]  }
  0x24   : > { %9384 = vmatpush3.bf16.msra.mxu0 %v9755_v1  ;;  %9706 = vmatpush3.bf16.msra.mxu1 %v9755_v1  ;;  %v440_v21 = vld [vmem:[%s10640_s16 + $0x38] sm:$0xff]   ;;  %v444_v23 = vld [vmem:[%s10640_s16 + $0x48] sm:$0xff]   ;;  %v446_v24 = vld [vmem:[%s10640_s16 + $0x50] sm:$0xff]  }
  0x25   : > { %9385 = vmatprep.subr.bf16.mxu0 %v9756_v2  ;;  %9703 = vmatprep.subr.bf16.mxu1 %v9756_v2  ;;  %v448_v25 = vld [vmem:[%s10640_s16 + $0x58] sm:$0xff]   ;;  %vm12640_vm12 = vmand %vm3827_vm3, %vm3976_vm8 }
  0x26   : > { %vm13029_vm15 = vmor %vm4916_vm13, %vm4917_vm14 }
  0x28   : > { %9386 = vmatpush3.bf16.msra.mxu0 %v9756_v2  ;;  %9707 = vmatpush3.bf16.msra.mxu1 %v9756_v2 }
  0x29   : > { %9387 = vmatprep.subr.bf16.mxu0 %v9757_v4  ;;  %9704 = vmatprep.subr.bf16.mxu1 %v9757_v4 }
  0x2c   : > { %9388 = vmatpush3.bf16.msra.mxu0 %v9757_v4  ;;  %9708 = vmatpush3.bf16.msra.mxu1 %v9757_v4 }
  0x2d   : > { %9421 = vmatprep.subr.bf16.mxu1 %v843_v12 }
  0x2f   : > { %9390 = vmatmul.mubr.msk.bf16.vlgmr.msra.gmra.mrb[0].mxu0 %vm577_vm0, %v428_v5  ;;  %9414 = vmatmul.mubr.msk.bf16.vlgmr.msra.gmra.mrb[0].mxu1 %vm577_vm0, %v452_v10 }
  0x30   : > { %9393 = vmatprep.mubr.msk.bf16.mxu0 %vm577_vm0, %v430_v8  ;;  %9417 = vmatprep.mubr.msk.bf16.mxu1 %vm577_vm0, %v454_v11 }
  0x31   : > { %9422 = vmatpush3.bf16.msra.mxu1 %v843_v12 }
  0x32   : > { %9423 = vmatprep.subr.bf16.mxu1 %v844_v17 }
  0x35   : > { %9424 = vmatpush3.bf16.msra.mxu1 %v844_v17 }
  0x36   : > { %9425 = vmatprep.subr.bf16.mxu1 %v845_v28 }
  0x37   : > { %9394 = vmatmul.mubr.msk.bf16.gmra.mrb[4].mxu0 %vm577_vm0, %v432_v15  ;;  %9418 = vmatmul.mubr.msk.bf16.gmra.mrb[4].mxu1 %vm577_vm0, %v456_v16 }
  0x38   : > { %9397 = vmatprep.mubr.msk.bf16.mxu0 %vm577_vm0, %v434_v18 }
  0x39   : > { %9426 = vmatpush3.bf16.msra.mxu1 %v845_v28 }
  0x3a   : > { %9427 = vmatprep.subr.bf16.mxu1 %v846_v31 }
  0x3d   : > { %9428 = vmatpush3.bf16.msra.mxu1 %v846_v31 }
  0x3f   : > { %9398 = vmatmul.mubr.msk.bf16.gmra.mrb[8].mxu0 %vm577_vm0, %v436_v19 }
  0x40   : > { %9401 = vmatprep.mubr.msk.bf16.mxu0 %vm577_vm0, %v438_v20 }
  0x47   : > { %9402 = vmatmul.mubr.msk.bf16.gmra.mrb[12].mxu0 %vm577_vm0, %v440_v21 }
  0x48   : > { %9405 = vmatprep.mubr.msk.bf16.mxu0 %vm577_vm0, %v442_v22 }
  0x4f   : > { %9406 = vmatmul.mubr.msk.bf16.gmra.mrb[16].mxu0 %vm577_vm0, %v444_v23 }
  0x50   : > { %9409 = vmatprep.mubr.msk.bf16.mxu0 %vm577_vm0, %v446_v24 }
  0x57   : > { %9410 = vmatmul.mubr.msk.bf16.gmra.mrb[20].mxu0 %vm577_vm0, %v448_v25 }
 0x102   : > { %v9391_v32 = vpop.f32.mrb[0].mxu0  ;;  %v9415_v34 = vpop.f32.mrb[0].mxu1 }
 0x103   : > { %v660_v35 = vpop.f32.mrb[1].mxu0  ;;  %v765_v36 = vadd.f32 %v9415_v34, %v10704_v33  ;;  %v756_v37 = vpop.f32.mrb[1].mxu1  ;;  %v669_v41 = vadd.f32 %v9391_v32, %v10704_v33 }
 0x104   : > { %v9392_v38 = vpop.f32.mrb[2].mxu0  ;;  %v757_v39 = vadd.f32 %v10704_v33, %v756_v37  ;;  %v9416_v40 = vpop.f32.mrb[2].mxu1  ;;  %v661_v46 = vadd.f32 %v10704_v33, %v660_v35 }
 0x105   : > { %v672_v42 = vadd.f32 %v9392_v38, %v10704_v33  ;;  %v663_v43 = vpop.f32.mrb[3].mxu0  ;;  %v768_v44 = vadd.f32 %v9416_v40, %v10704_v33  ;;  %v759_v45 = vpop.f32.mrb[3].mxu1 }
 0x106   : > { %v664_v47 = vadd.f32 %v10704_v33, %v663_v43  ;;  %v760_v48 = vadd.f32 %v10704_v33, %v759_v45 }
 0x107   : > { %v10714_v49 = vpack.c.bf16 %v672_v42, %v669_v41  ;;  %v10716_v50 = vpack.c.bf16 %v768_v44, %v765_v36 }
 0x108   : > { %v10718_v51 = vpack.c.bf16 %v664_v47, %v661_v46  ;;  %v10720_v52 = vpack.c.bf16 %v760_v48, %v757_v39 }
 0x109   : > { %14355 = vst [vmem:[#allocation6_spill] sm:$0xff] %v10716_v50 }
 0x10a   : > { %14356 = vst [vmem:[#allocation7_spill] sm:$0xff] %v10718_v51  ;;  %14357 = vst [vmem:[#allocation8_spill] sm:$0xff] %v10720_v52  ;;  %v9395_v53 = vpop.f32.mrb[4].mxu0  ;;  %9429 = vmatprep.mubr.msk.bf16.mxu1 %vm577_vm0, %v10718_v51  ;;  %v9419_v54 = vpop.f32.mrb[4].mxu1 }
 0x10b   : > { %v685_v55 = vadd.f32 %v9395_v53, %v10704_v33  ;;  %v676_v56 = vpop.f32.mrb[5].mxu0  ;;  %9430 = vmatmul.mubr.msk.bf16.vlgmr.msra.gmra.mrb[8].mxu1 %vm577_vm0, %v10714_v49  ;;  %v781_v57 = vadd.f32 %v9419_v54, %v10704_v33  ;;  %v772_v58 = vpop.f32.mrb[5].mxu1 }
 0x10c   : > { %v677_v59 = vadd.f32 %v10704_v33, %v676_v56  ;;  %v9396_v60 = vpop.f32.mrb[6].mxu0  ;;  %v773_v61 = vadd.f32 %v10704_v33, %v772_v58  ;;  %v9420_v62 = vpop.f32.mrb[6].mxu1 }
 0x10d   : > { %v688_v63 = vadd.f32 %v9396_v60, %v10704_v33  ;;  %v679_v0 = vpop.f32.mrb[7].mxu0  ;;  %v784_v1 = vadd.f32 %v9420_v62, %v10704_v33  ;;  %v775_v2 = vpop.f32.mrb[7].mxu1 }
 0x10e   : > { %v680_v3 = vadd.f32 %v10704_v33, %v679_v0  ;;  %v776_v4 = vadd.f32 %v10704_v33, %v775_v2 }
 0x10f   : > { %v10734_v5 = vpack.c.bf16 %v688_v63, %v685_v55  ;;  %v10736_v6 = vpack.c.bf16 %v784_v1, %v781_v57 }
 0x110   : > { %v10738_v7 = vpack.c.bf16 %v680_v3, %v677_v59  ;;  %v10740_v8 = vpack.c.bf16 %v776_v4, %v773_v61 }
 0x111   : > { %14358 = vst [vmem:[#allocation9_spill] sm:$0xff] %v10736_v6 }
 0x112   : > { %14359 = vst [vmem:[#allocation10_spill] sm:$0xff] %v10740_v8  ;;  %v9399_v9 = vpop.f32.mrb[8].mxu0  ;;  %9433 = vmatprep.mubr.msk.bf16.mxu1 %vm577_vm0, %v10738_v7 }
 0x113   : > { %v701_v10 = vadd.f32 %v9399_v9, %v10704_v33  ;;  %v692_v11 = vpop.f32.mrb[9].mxu0  ;;  %9434 = vmatmul.mubr.msk.bf16.gmra.mrb[12].mxu1 %vm577_vm0, %v10734_v5 }
 0x114   : > { %v693_v12 = vadd.f32 %v10704_v33, %v692_v11  ;;  %v9400_v13 = vpop.f32.mrb[10].mxu0 }
 0x115   : > { %v704_v14 = vadd.f32 %v9400_v13, %v10704_v33  ;;  %v695_v15 = vpop.f32.mrb[11].mxu0 }
 0x116   : > { %v696_v16 = vadd.f32 %v10704_v33, %v695_v15 }
 0x117   : > { %v10750_v17 = vpack.c.bf16 %v704_v14, %v701_v10 }
 0x118   : > { %v10752_v18 = vpack.c.bf16 %v696_v16, %v693_v12 }
 0x11a   : > { %v9403_v19 = vpop.f32.mrb[12].mxu0  ;;  %9437 = vmatprep.mubr.msk.bf16.mxu1 %vm577_vm0, %v10752_v18 }
 0x11b   : > { %v717_v20 = vadd.f32 %v9403_v19, %v10704_v33  ;;  %v708_v21 = vpop.f32.mrb[13].mxu0  ;;  %9438 = vmatmul.mubr.msk.bf16.gmra.mrb[16].mxu1 %vm577_vm0, %v10750_v17 }
 0x11c   : > { %v709_v22 = vadd.f32 %v10704_v33, %v708_v21  ;;  %v9404_v23 = vpop.f32.mrb[14].mxu0 }
 0x11d   : > { %v720_v24 = vadd.f32 %v9404_v23, %v10704_v33  ;;  %v711_v25 = vpop.f32.mrb[15].mxu0 }
 0x11e   : > { %v712_v26 = vadd.f32 %v10704_v33, %v711_v25 }
 0x11f   : > { %v10762_v27 = vpack.c.bf16 %v720_v24, %v717_v20 }
 0x120   : > { %v10764_v28 = vpack.c.bf16 %v712_v26, %v709_v22 }
 0x122   : > { %v9407_v29 = vpop.f32.mrb[16].mxu0  ;;  %9441 = vmatprep.mubr.msk.bf16.mxu1 %vm577_vm0, %v10764_v28 }
 0x123   : > { %v733_v30 = vadd.f32 %v9407_v29, %v10704_v33  ;;  %v724_v31 = vpop.f32.mrb[17].mxu0  ;;  %9442 = vmatmul.mubr.msk.bf16.gmra.mrb[20].mxu1 %vm577_vm0, %v10762_v27 }
 0x124   : > { %v725_v32 = vadd.f32 %v10704_v33, %v724_v31  ;;  %v9408_v34 = vpop.f32.mrb[18].mxu0 }
 0x125   : > { %v736_v35 = vadd.f32 %v9408_v34, %v10704_v33  ;;  %v727_v36 = vpop.f32.mrb[19].mxu0 }
 0x126   : > { %v728_v37 = vadd.f32 %v10704_v33, %v727_v36 }
 0x127   : > { %v10774_v38 = vpack.c.bf16 %v736_v35, %v733_v30 }
 0x128   : > { %v10776_v39 = vpack.c.bf16 %v728_v37, %v725_v32 }
 0x129   : > { %14360 = vst [vmem:[#allocation11_spill] sm:$0xff] %v10774_v38 }
 0x12a   : > { %v9411_v40 = vpop.f32.mrb[20].mxu0  ;;  %9445 = vmatprep.mubr.msk.bf16.mxu1 %vm577_vm0, %v10776_v39 }
 0x12b   : > { %v749_v41 = vadd.f32 %v9411_v40, %v10704_v33  ;;  %v740_v42 = vpop.f32.mrb[21].mxu0  ;;  %9446 = vmatmul.mubr.msk.bf16.gmra.mrb[24].mxu1 %vm577_vm0, %v10774_v38 }
 0x12c   : > { %v741_v43 = vadd.f32 %v10704_v33, %v740_v42  ;;  %v9412_v44 = vpop.f32.mrb[22].mxu0 }
 0x12d   : > { %v752_v45 = vadd.f32 %v9412_v44, %v10704_v33  ;;  %v743_v46 = vpop.f32.mrb[23].mxu0 }
 0x12e   : > { %v744_v47 = vadd.f32 %v10704_v33, %v743_v46 }
 0x12f   : > { %v10786_v48 = vpack.c.bf16 %v752_v45, %v749_v41 }
 0x130   : > { %v10788_v53 = vpack.c.bf16 %v744_v47, %v741_v43 }
 0x131   : > { %14361 = vst [vmem:[#allocation12_spill] sm:$0xff] %v10786_v48 }
 0x132   : > { %14362 = vst [vmem:[#allocation13_spill] sm:$0xff] %v10788_v53  ;;  %9449 = vmatprep.mubr.msk.bf16.mxu1 %vm577_vm0, %v10788_v53 }
 0x133   : > { %9450 = vmatmul.mubr.msk.bf16.gmra.mrb[28].mxu1 %vm577_vm0, %v10786_v48 }
 0x134   : > { %9453 = vmatprep.mubr.msk.bf16.mxu1 %vm577_vm0, %v10720_v52 }
 0x13b   : > { %9454 = vmatmul.mubr.msk.bf16.gmra.mrb[32].mxu1 %vm577_vm0, %v10716_v50 }
 0x13c   : > { %9457 = vmatprep.mubr.msk.bf16.mxu1 %vm577_vm0, %v10740_v8 }
 0x143   : > { %9458 = vmatmul.mubr.msk.bf16.gmra.mrb[36].mxu1 %vm577_vm0, %v10736_v6 }
 0x144   : > { %9469 = vmatprep.mubr.msk.bf16.mxu1 %vm577_vm0, %v10718_v51 }
 0x1de   : > { %v10804_v33 = vpop.f32.mrb[8].mxu1 }
 0x1df   : > { %v10806_v54 = vpop.f32.mrb[9].mxu1  ;;  %v1063_v55 = vsel %vm1056_vm1, %v10804_v33, -inf }
 0x1e0   : > { %1064 = vmax.xlane.f32.xlu1 %v1063_v55  ;;  %v10810_v56 = vpop.f32.mrb[10].mxu1  ;;  %v1057_v57 = vsel %vm1056_vm1, %v10806_v54, -inf }
 0x1e1   : > { %1058 = vmax.xlane.f32.xlu0 %v1057_v57  ;;  %v10814_v58 = vpop.f32.mrb[11].mxu1  ;;  %v1066_v59 = vsel %vm1056_vm1, %v10810_v56, -inf }
 0x1e2   : > { %v1060_v60 = vsel %vm1056_vm1, %v10814_v58, -inf }
 0x1e4   : > { %1067 = vmax.xlane.f32.xlu1 %v1066_v59 }
 0x1e5   : > { %1061 = vmax.xlane.f32.xlu0 %v1060_v60 }
 0x1e6   : > { %v10820_v61 = vpop.f32.mrb[12].mxu1 }
 0x1e7   : > { %v10822_v62 = vpop.f32.mrb[13].mxu1  ;;  %v1075_v3 = vsel %vm1056_vm1, %v10820_v61, -inf }
 0x1e8   : > { %v10824_v63 = vpop.f32.mrb[14].mxu1  ;;  %v1069_v0 = vsel %vm1056_vm1, %v10822_v62, -inf }
 0x1e9   : > { %1070 = vmax.xlane.f32.xlu0 %v1069_v0  ;;  %v10828_v1 = vpop.f32.mrb[15].mxu1  ;;  %v1078_v9 = vsel %vm1056_vm1, %v10824_v63, -inf }
 0x1ea   : > { %v1072_v2 = vsel %vm1056_vm1, %v10828_v1, -inf }
 0x1eb   : > { %1073 = vmax.xlane.f32.xlu1 %v1072_v2 }
 0x1ed   : > { %1076 = vmax.xlane.f32.xlu0 %v1075_v3 }
 0x1ee   : > { %v10834_v4 = vpop.f32.mrb[16].mxu1 }
 0x1ef   : > { %1079 = vmax.xlane.f32.xlu1 %v1078_v9  ;;  %v10838_v10 = vpop.f32.mrb[17].mxu1  ;;  %v1087_v15 = vsel %vm1056_vm1, %v10834_v4, -inf }
 0x1f0   : > { %v10840_v11 = vpop.f32.mrb[18].mxu1  ;;  %v1081_v12 = vsel %vm1056_vm1, %v10838_v10, -inf }
 0x1f1   : > { %1082 = vmax.xlane.f32.xlu0 %v1081_v12  ;;  %v10844_v13 = vpop.f32.mrb[19].mxu1  ;;  %v1090_v19 = vsel %vm1056_vm1, %v10840_v11, -inf }
 0x1f2   : > { %v1084_v14 = vsel %vm1056_vm1, %v10844_v13, -inf }
 0x1f3   : > { %1085 = vmax.xlane.f32.xlu1 %v1084_v14 }
 0x1f5   : > { %1088 = vmax.xlane.f32.xlu0 %v1087_v15 }
 0x1f6   : > { %v10850_v16 = vpop.f32.mrb[20].mxu1 }
 0x1f7   : > { %1091 = vmax.xlane.f32.xlu1 %v1090_v19  ;;  %v10854_v20 = vpop.f32.mrb[21].mxu1  ;;  %v1099_v25 = vsel %vm1056_vm1, %v10850_v16, -inf }
 0x1f8   : > { %v10856_v21 = vpop.f32.mrb[22].mxu1  ;;  %v1093_v22 = vsel %vm1056_vm1, %v10854_v20, -inf }
 0x1f9   : > { %1094 = vmax.xlane.f32.xlu0 %v1093_v22  ;;  %v10860_v23 = vpop.f32.mrb[23].mxu1  ;;  %v1102_v29 = vsel %vm1056_vm1, %v10856_v21, -inf }
 0x1fa   : > { %v1096_v24 = vsel %vm1056_vm1, %v10860_v23, -inf }
 0x1fb   : > { %1097 = vmax.xlane.f32.xlu1 %v1096_v24 }
 0x1fd   : > { %1100 = vmax.xlane.f32.xlu0 %v1099_v25 }
 0x1fe   : > { %v10866_v26 = vpop.f32.mrb[24].mxu1 }
 0x1ff   : > { %1103 = vmax.xlane.f32.xlu1 %v1102_v29  ;;  %v10870_v30 = vpop.f32.mrb[25].mxu1  ;;  %v1111_v36 = vsel %vm1056_vm1, %v10866_v26, -inf }
 0x200   : > { %v10872_v31 = vpop.f32.mrb[26].mxu1  ;;  %v1105_v32 = vsel %vm1056_vm1, %v10870_v30, -inf }
 0x201   : > { %1106 = vmax.xlane.f32.xlu0 %v1105_v32  ;;  %v10876_v34 = vpop.f32.mrb[27].mxu1  ;;  %v1114_v40 = vsel %vm1056_vm1, %v10872_v31, -inf }
 0x202   : > { %v1108_v35 = vsel %vm1056_vm1, %v10876_v34, -inf }
 0x203   : > { %1109 = vmax.xlane.f32.xlu1 %v1108_v35 }
 0x205   : > { %1112 = vmax.xlane.f32.xlu0 %v1111_v36 }
 0x206   : > { %v10882_v37 = vpop.f32.mrb[28].mxu1 }
 0x207   : > { %1115 = vmax.xlane.f32.xlu1 %v1114_v40  ;;  %v10886_v41 = vpop.f32.mrb[29].mxu1  ;;  %v1123_v46 = vsel %vm1056_vm1, %v10882_v37, -inf }
 0x208   : > { %v10888_v42 = vpop.f32.mrb[30].mxu1  ;;  %v1117_v43 = vsel %vm1056_vm1, %v10886_v41, -inf }
 0x209   : > { %1118 = vmax.xlane.f32.xlu0 %v1117_v43  ;;  %v10892_v44 = vpop.f32.mrb[31].mxu1  ;;  %v1126_v55 = vsel %vm1056_vm1, %v10888_v42, -inf }
 0x20a   : > { %v1120_v45 = vsel %vm1056_vm1, %v10892_v44, -inf }
 0x20b   : > { %1121 = vmax.xlane.f32.xlu1 %v1120_v45 }
 0x20d   : > { %1124 = vmax.xlane.f32.xlu0 %v1123_v46 }
 0x20e   : > { %v10898_v47 = vpop.f32.mrb[32].mxu1 }
 0x20f   : > { %1127 = vmax.xlane.f32.xlu1 %v1126_v55  ;;  %v10902_v57 = vpop.f32.mrb[33].mxu1  ;;  %v1135_v3 = vsel %vm1056_vm1, %v10898_v47, -inf }
 0x210   : > { %v10904_v59 = vpop.f32.mrb[34].mxu1  ;;  %v1129_v60 = vsel %vm1056_vm1, %v10902_v57, -inf }
 0x211   : > { %1130 = vmax.xlane.f32.xlu0 %v1129_v60  ;;  %v10908_v0 = vpop.f32.mrb[35].mxu1  ;;  %v1138_v12 = vsel %vm1056_vm1, %v10904_v59, -inf }
 0x212   : > { %v1132_v2 = vsel %vm1056_vm1, %v10908_v0, -inf }
 0x213   : > { %1133 = vmax.xlane.f32.xlu1 %v1132_v2 }
 0x215   : > { %1136 = vmax.xlane.f32.xlu0 %v1135_v3 }
 0x216   : > { %v10914_v9 = vpop.f32.mrb[36].mxu1 }
 0x217   : > { %1139 = vmax.xlane.f32.xlu1 %v1138_v12  ;;  %v10918_v14 = vpop.f32.mrb[37].mxu1  ;;  %v1147_v25 = vsel %vm1056_vm1, %v10914_v9, -inf }
 0x218   : > { %v10920_v15 = vpop.f32.mrb[38].mxu1  ;;  %v1141_v19 = vsel %vm1056_vm1, %v10918_v14, -inf }
 0x219   : > { %1142 = vmax.xlane.f32.xlu0 %v1141_v19  ;;  %v10924_v22 = vpop.f32.mrb[39].mxu1  ;;  %v1150_v29 = vsel %vm1056_vm1, %v10920_v15, -inf }
 0x21a   : > { %v1144_v24 = vsel %vm1056_vm1, %v10924_v22, -inf }
 0x21b   : > { %1145 = vmax.xlane.f32.xlu1 %v1144_v24 }
 0x21d   : > { %1148 = vmax.xlane.f32.xlu0 %v1147_v25 }
 0x21f   : > { %1151 = vmax.xlane.f32.xlu1 %v1150_v29 }
 0x26d   : > { %v1065_v32 = vpop.xlane.xlu1 %1064 }
 0x26e   : > { %v1155_v35 = vsub.f32 %v10804_v33, %v1065_v32  ;;  %v1059_v36 = vpop.xlane.xlu0 %1058 }
 0x26f   : > { %v1153_v40 = vsub.f32 %v10806_v54, %v1059_v36 }
 0x270   : > { %v1189_v43 = vmul.f32 1.442695, %v1155_v35 }
 0x271   : > { %v1185_v45 = vmul.f32 1.442695, %v1153_v40  ;;  %v1068_v46 = vpop.xlane.xlu1 %1067 }
 0x272   : > { %v1156_v55 = vsub.f32 %v10810_v56, %v1068_v46  ;;  %v1062_v60 = vpop.xlane.xlu0 %1061 }
 0x273   : > { %9876 = vpow2.f32 %v1185_v45  ;;  %v1154_v2 = vsub.f32 %v10814_v58, %v1062_v60 }
 0x274   : > { %9878 = vpow2.f32 %v1189_v43  ;;  %v1191_v3 = vmul.f32 1.442695, %v1156_v55 }
 0x275   : > { %v1187_v12 = vmul.f32 1.442695, %v1154_v2 }
 0x276   : > { %v1071_v19 = vpop.xlane.xlu0 %1070 }
 0x277   : > { %9880 = vpow2.f32 %v1187_v12  ;;  %v1157_v24 = vsub.f32 %v10822_v62, %v1071_v19 }
 0x278   : > { %v1074_v33 = vpop.xlane.xlu1 %1073  ;;  %9882 = vpow2.f32 %v1191_v3 }
 0x279   : > { %v1193_v25 = vmul.f32 1.442695, %v1157_v24  ;;  %v1158_v54 = vsub.f32 %v10828_v1, %v1074_v33 }
 0x27a   : > { %v1077_v29 = vpop.xlane.xlu0 %1076 }
 0x27b   : > { %9884 = vpow2.f32 %v1193_v25  ;;  %v1195_v32 = vmul.f32 1.442695, %v1158_v54  ;;  %v1159_v56 = vsub.f32 %v10820_v61, %v1077_v29 }
 0x27c   : > { %v1080_v35 = vpop.xlane.xlu1 %1079 }
 0x27d   : > { %v10939_v36 = vpop.eup %9876  ;;  %9886 = vpow2.f32 %v1195_v32  ;;  %v1197_v58 = vmul.f32 1.442695, %v1159_v56  ;;  %v1160_v40 = vsub.f32 %v10824_v63, %v1080_v35 }
 0x27e   : > { %v1083_v43 = vpop.xlane.xlu0 %1082  ;;  %v1249_v62 = vsel %vm1056_vm1, %v10939_v36, 0.0  ;;  %v10944_v45 = vpop.eup %9878 }
 0x27f   : > { %9888 = vpow2.f32 %v1197_v58  ;;  %v1199_v1 = vmul.f32 1.442695, %v1160_v40  ;;  %v1161_v46 = vsub.f32 %v10838_v10, %v1083_v43  ;;  %1250 = vadd.xlane.f32.xlu0 %v1249_v62  ;;  %v1255_v63 = vsel %vm1056_vm1, %v10944_v45, 0.0 }
 0x280   : > { %v1086_v55 = vpop.xlane.xlu1 %1085 }
 0x281   : > { %v10947_v61 = vpop.eup %9880  ;;  %9890 = vpow2.f32 %v1199_v1  ;;  %v1201_v60 = vmul.f32 1.442695, %v1161_v46  ;;  %v1162_v2 = vsub.f32 %v10844_v13, %v1086_v55 }
 0x282   : > { %v1089_v3 = vpop.xlane.xlu0 %1088  ;;  %v1252_v12 = vsel %vm1056_vm1, %v10947_v61, 0.0  ;;  %v10954_v19 = vpop.eup %9882 }
 0x283   : > { %9892 = vpow2.f32 %v1201_v60  ;;  %v1203_v24 = vmul.f32 1.442695, %v1162_v2  ;;  %v1163_v10 = vsub.f32 %v10834_v4, %v1089_v3  ;;  %1256 = vadd.xlane.f32.xlu0 %v1255_v63  ;;  %1253 = vadd.xlane.f32.xlu1 %v1252_v12  ;;  %v1258_v56 = vsel %vm1056_vm1, %v10954_v19, 0.0 }
 0x284   : > { %v1092_v33 = vpop.xlane.xlu1 %1091 }
 0x285   : > { %v10957_v25 = vpop.eup %9884  ;;  %9894 = vpow2.f32 %v1203_v24  ;;  %v1205_v13 = vmul.f32 1.442695, %v1163_v10  ;;  %v1164_v54 = vsub.f32 %v10840_v11, %v1092_v33 }
 0x286   : > { %v1095_v29 = vpop.xlane.xlu0 %1094  ;;  %v1261_v32 = vsel %vm1056_vm1, %v10957_v25, 0.0 }
 0x287   : > { %v10964_v35 = vpop.eup %9886  ;;  %9896 = vpow2.f32 %v1205_v13  ;;  %v1207_v4 = vmul.f32 1.442695, %v1164_v54  ;;  %v1165_v58 = vsub.f32 %v10854_v20, %v1095_v29  ;;  %1262 = vadd.xlane.f32.xlu0 %v1261_v32  ;;  %1259 = vadd.xlane.f32.xlu1 %v1258_v56 }
 0x288   : > { %v1098_v40 = vpop.xlane.xlu1 %1097  ;;  %v1264_v55 = vsel %vm1056_vm1, %v10964_v35, 0.0 }
 0x289   : > { %v10967_v43 = vpop.eup %9888  ;;  %9898 = vpow2.f32 %v1207_v4  ;;  %v1209_v11 = vmul.f32 1.442695, %v1165_v58  ;;  %v1166_v62 = vsub.f32 %v10860_v23, %v1098_v40 }
 0x28a   : > { %v1101_v1 = vpop.xlane.xlu0 %1100  ;;  %v1267_v46 = vsel %vm1056_vm1, %v10967_v43, 0.0 }
 0x28b   : > { %v10974_v60 = vpop.eup %9890  ;;  %9900 = vpow2.f32 %v1209_v11  ;;  %v1211_v20 = vmul.f32 1.442695, %v1166_v62  ;;  %v1167_v2 = vsub.f32 %v10850_v16, %v1101_v1  ;;  %1268 = vadd.xlane.f32.xlu0 %v1267_v46  ;;  %1265 = vadd.xlane.f32.xlu1 %v1264_v55 }
 0x28c   : > { %v1104_v3 = vpop.xlane.xlu1 %1103  ;;  %v1270_v33 = vsel %vm1056_vm1, %v10974_v60, 0.0 }
 0x28d   : > { %v10977_v63 = vpop.eup %9892  ;;  %9902 = vpow2.f32 %v1211_v20  ;;  %v1213_v23 = vmul.f32 1.442695, %v1167_v2  ;;  %v1168_v12 = vsub.f32 %v10856_v21, %v1104_v3 }
 0x28e   : > { %v1107_v24 = vpop.xlane.xlu0 %1106  ;;  %v1273_v10 = vsel %vm1056_vm1, %v10977_v63, 0.0 }
 0x28f   : > { %v10984_v13 = vpop.eup %9894  ;;  %9904 = vpow2.f32 %v1213_v23  ;;  %v1215_v16 = vmul.f32 1.442695, %v1168_v12  ;;  %v1169_v54 = vsub.f32 %v10870_v30, %v1107_v24  ;;  %1274 = vadd.xlane.f32.xlu0 %v1273_v10  ;;  %1271 = vadd.xlane.f32.xlu1 %v1270_v33 }
 0x290   : > { %v1110_v29 = vpop.xlane.xlu1 %1109  ;;  %v1276_v40 = vsel %vm1056_vm1, %v10984_v13, 0.0 }
 0x291   : > { %v10987_v32 = vpop.eup %9896  ;;  %9906 = vpow2.f32 %v1215_v16  ;;  %v1217_v21 = vmul.f32 1.442695, %v1169_v54  ;;  %v1170_v56 = vsub.f32 %v10876_v34, %v1110_v29 }
 0x292   : > { %v1113_v4 = vpop.xlane.xlu0 %1112  ;;  %v1279_v58 = vsel %vm1056_vm1, %v10987_v32, 0.0 }
 0x293   : > { %v10994_v11 = vpop.eup %9898  ;;  %9908 = vpow2.f32 %v1217_v21  ;;  %v1219_v30 = vmul.f32 1.442695, %v1170_v56  ;;  %v1171_v62 = vsub.f32 %v10866_v26, %v1113_v4  ;;  %1280 = vadd.xlane.f32.xlu0 %v1279_v58  ;;  %1277 = vadd.xlane.f32.xlu1 %v1276_v40 }
 0x294   : > { %v1116_v1 = vpop.xlane.xlu1 %1115  ;;  %v1282_v3 = vsel %vm1056_vm1, %v10994_v11, 0.0 }
 0x295   : > { %v10997_v46 = vpop.eup %9900  ;;  %9910 = vpow2.f32 %v1219_v30  ;;  %v1221_v34 = vmul.f32 1.442695, %v1171_v62  ;;  %v1172_v55 = vsub.f32 %v10872_v31, %v1116_v1 }
 0x296   : > { %v1119_v20 = vpop.xlane.xlu0 %1118  ;;  %v1285_v2 = vsel %vm1056_vm1, %v10997_v46, 0.0 }
 0x297   : > { %v11004_v23 = vpop.eup %9902  ;;  %9912 = vpow2.f32 %v1221_v34  ;;  %v1223_v26 = vmul.f32 1.442695, %v1172_v55  ;;  %v1173_v12 = vsub.f32 %v10886_v41, %v1119_v20  ;;  %1286 = vadd.xlane.f32.xlu0 %v1285_v2  ;;  %1283 = vadd.xlane.f32.xlu1 %v1282_v3 }
 0x298   : > { %v1122_v24 = vpop.xlane.xlu1 %1121  ;;  %v1288_v29 = vsel %vm1056_vm1, %v11004_v23, 0.0 }
 0x299   : > { %v11007_v10 = vpop.eup %9904  ;;  %9914 = vpow2.f32 %v1223_v26  ;;  %v1225_v31 = vmul.f32 1.442695, %v1173_v12  ;;  %v1174_v33 = vsub.f32 %v10892_v44, %v1122_v24 }
 0x29a   : > { %v1125_v16 = vpop.xlane.xlu0 %1124  ;;  %v1291_v54 = vsel %vm1056_vm1, %v11007_v10, 0.0 }
 0x29b   : > { %v11014_v21 = vpop.eup %9906  ;;  %9916 = vpow2.f32 %v1225_v31  ;;  %v1227_v41 = vmul.f32 1.442695, %v1174_v33  ;;  %v1175_v56 = vsub.f32 %v10882_v37, %v1125_v16  ;;  %1292 = vadd.xlane.f32.xlu0 %v1291_v54  ;;  %1289 = vadd.xlane.f32.xlu1 %v1288_v29 }
 0x29c   : > { %v1128_v4 = vpop.xlane.xlu1 %1127  ;;  %v1294_v1 = vsel %vm1056_vm1, %v11014_v21, 0.0 }
 0x29d   : > { %v11017_v58 = vpop.eup %9908  ;;  %9918 = vpow2.f32 %v1227_v41  ;;  %v1229_v44 = vmul.f32 1.442695, %v1175_v56  ;;  %v1176_v40 = vsub.f32 %v10888_v42, %v1128_v4 }
 0x29e   : > { %v1131_v30 = vpop.xlane.xlu0 %1130  ;;  %v1297_v62 = vsel %vm1056_vm1, %v11017_v58, 0.0 }
 0x29f   : > { %v11024_v34 = vpop.eup %9910  ;;  %9920 = vpow2.f32 %v1229_v44  ;;  %v1231_v37 = vmul.f32 1.442695, %v1176_v40  ;;  %v1177_v55 = vsub.f32 %v10902_v57, %v1131_v30  ;;  %1298 = vadd.xlane.f32.xlu0 %v1297_v62  ;;  %1295 = vadd.xlane.f32.xlu1 %v1294_v1 }
 0x2a0   : > { %v1134_v20 = vpop.xlane.xlu1 %1133  ;;  %v1300_v24 = vsel %vm1056_vm1, %v11024_v34, 0.0 }
 0x2a1   : > { %v11027_v2 = vpop.eup %9912  ;;  %9922 = vpow2.f32 %v1231_v37  ;;  %v1233_v42 = vmul.f32 1.442695, %v1177_v55  ;;  %v1178_v3 = vsub.f32 %v10908_v0, %v1134_v20 }
 0x2a2   : > { %v1137_v26 = vpop.xlane.xlu0 %1136  ;;  %v1303_v12 = vsel %vm1056_vm1, %v11027_v2, 0.0 }
 0x2a3   : > { %v11034_v31 = vpop.eup %9914  ;;  %9924 = vpow2.f32 %v1233_v42  ;;  %v1235_v57 = vmul.f32 1.442695, %v1178_v3  ;;  %v1179_v33 = vsub.f32 %v10898_v47, %v1137_v26  ;;  %1304 = vadd.xlane.f32.xlu0 %v1303_v12  ;;  %1301 = vadd.xlane.f32.xlu1 %v1300_v24 }
 0x2a4   : > { %v1140_v16 = vpop.xlane.xlu1 %1139  ;;  %v1306_v4 = vsel %vm1056_vm1, %v11034_v31, 0.0 }
 0x2a5   : > { %v11037_v54 = vpop.eup %9916  ;;  %9926 = vpow2.f32 %v1235_v57  ;;  %v1237_v0 = vmul.f32 1.442695, %v1179_v33  ;;  %v1180_v29 = vsub.f32 %v10904_v59, %v1140_v16 }
 0x2a6   : > { %v1143_v41 = vpop.xlane.xlu0 %1142  ;;  %v1309_v56 = vsel %vm1056_vm1, %v11037_v54, 0.0 }
 0x2a7   : > { %v11044_v44 = vpop.eup %9918  ;;  %9928 = vpow2.f32 %v1237_v0  ;;  %v1239_v47 = vmul.f32 1.442695, %v1180_v29  ;;  %v1181_v40 = vsub.f32 %v10918_v14, %v1143_v41  ;;  %1310 = vadd.xlane.f32.xlu0 %v1309_v56  ;;  %1307 = vadd.xlane.f32.xlu1 %v1306_v4 }
 0x2a8   : > { %v1146_v30 = vpop.xlane.xlu1 %1145  ;;  %v1312_v20 = vsel %vm1056_vm1, %v11044_v44, 0.0 }
 0x2a9   : > { %v11047_v62 = vpop.eup %9920  ;;  %9930 = vpow2.f32 %v1239_v47  ;;  %v1241_v59 = vmul.f32 1.442695, %v1181_v40  ;;  %v1182_v1 = vsub.f32 %v10924_v22, %v1146_v30 }
 0x2aa   : > { %v1149_v37 = vpop.xlane.xlu0 %1148  ;;  %v1315_v55 = vsel %vm1056_vm1, %v11047_v62, 0.0 }
 0x2ab   : > { %v11054_v42 = vpop.eup %9922  ;;  %9932 = vpow2.f32 %v1241_v59  ;;  %v1243_v14 = vmul.f32 1.442695, %v1182_v1  ;;  %v1183_v3 = vsub.f32 %v10914_v9, %v1149_v37  ;;  %1316 = vadd.xlane.f32.xlu0 %v1315_v55  ;;  %1313 = vadd.xlane.f32.xlu1 %v1312_v20 }
 0x2ac   : > { %v1152_v26 = vpop.xlane.xlu1 %1151  ;;  %v1318_v33 = vsel %vm1056_vm1, %v11054_v42, 0.0 }
 0x2ad   : > { %v11057_v12 = vpop.eup %9924  ;;  %9934 = vpow2.f32 %v1243_v14  ;;  %v1245_v22 = vmul.f32 1.442695, %v1183_v3  ;;  %v1184_v24 = vsub.f32 %v10920_v15, %v1152_v26 }
 0x2ae   : > { %v1321_v57 = vsel %vm1056_vm1, %v11057_v12, 0.0 }
 0x2af   : > { %v11064_v16 = vpop.eup %9926  ;;  %9936 = vpow2.f32 %v1245_v22  ;;  %v1247_v0 = vmul.f32 1.442695, %v1184_v24  ;;  %1322 = vadd.xlane.f32.xlu0 %v1321_v57  ;;  %1319 = vadd.xlane.f32.xlu1 %v1318_v33 }
 0x2b0   : > { %v1324_v15 = vsel %vm1056_vm1, %v11064_v16, 0.0 }
 0x2b1   : > { %v11066_v9 = vpop.eup %9928  ;;  %9938 = vpow2.f32 %v1247_v0 }
 0x2b2   : > { %v1327_v29 = vsel %vm1056_vm1, %v11066_v9, 0.0 }
 0x2b3   : > { %v11072_v41 = vpop.eup %9930  ;;  %1328 = vadd.xlane.f32.xlu0 %v1327_v29  ;;  %1325 = vadd.xlane.f32.xlu1 %v1324_v15 }
 0x2b4   : > { %v1330_v47 = vsel %vm1056_vm1, %v11072_v41, 0.0 }
 0x2b5   : > { %v11074_v56 = vpop.eup %9932 }
 0x2b6   : > { %v1333_v4 = vsel %vm1056_vm1, %v11074_v56, 0.0 }
 0x2b7   : > { %v11080_v40 = vpop.eup %9934  ;;  %1334 = vadd.xlane.f32.xlu0 %v1333_v4  ;;  %1331 = vadd.xlane.f32.xlu1 %v1330_v47 }
 0x2b8   : > { %v1336_v1 = vsel %vm1056_vm1, %v11080_v40, 0.0 }
 0x2b9   : > { %v11082_v30 = vpop.eup %9936 }
 0x2ba   : > { %v1339_v59 = vsel %vm1056_vm1, %v11082_v30, 0.0 }
 0x2bb   : > { %v11088_v37 = vpop.eup %9938  ;;  %1340 = vadd.xlane.f32.xlu0 %v1339_v59  ;;  %1337 = vadd.xlane.f32.xlu1 %v1336_v1 }
 0x2bc   : > { %v1342_v55 = vsel %vm1056_vm1, %v11088_v37, 0.0 }
 0x2bf   : > { %1343 = vadd.xlane.f32.xlu1 %v1342_v55 }
 0x2e8   : > { %819 = vxpose.xlu0.c.b16.start [1/8] (narrow) %v10776_v39, 64 }
 0x2ec   : > { %820 = vxpose.xlu0.c.b16.cont [2/8] (narrow) %v10774_v38, 64  ;;  %803 = vxpose.xlu1.c.b16.start [1/8] (narrow) %v10718_v51, 64 }
 0x2f0   : > { %821 = vxpose.xlu0.c.b16.cont [3/8] (narrow) %v10788_v53, 64  ;;  %804 = vxpose.xlu1.c.b16.cont [2/8] (narrow) %v10714_v49, 64 }
 0x2f4   : > { %822 = vxpose.xlu0.c.b16.cont [4/8] (narrow) %v10786_v48, 64  ;;  %805 = vxpose.xlu1.c.b16.cont [3/8] (narrow) %v10738_v7, 64 }
 0x2f8   : > { %823 = vxpose.xlu0.c.b16.cont [5/8] (narrow) %v10720_v52, 64  ;;  %806 = vxpose.xlu1.c.b16.cont [4/8] (narrow) %v10734_v5, 64 }
 0x2fc   : > { %824 = vxpose.xlu0.c.b16.cont [6/8] (narrow) %v10716_v50, 64  ;;  %807 = vxpose.xlu1.c.b16.cont [5/8] (narrow) %v10752_v18, 64 }
 0x300   : > { %825 = vxpose.xlu0.c.b16.cont [7/8] (narrow) %v10740_v8, 64  ;;  %808 = vxpose.xlu1.c.b16.cont [6/8] (narrow) %v10750_v17, 64 }
 0x304   : > { %826 = vxpose.xlu0.c.b16.end [8/8] (narrow) %v10736_v6, 64  ;;  %809 = vxpose.xlu1.c.b16.cont [7/8] (narrow) %v10764_v28, 64 }
 0x308   : > { %810 = vxpose.xlu1.c.b16.end [8/8] (narrow) %v10762_v27, 64 }
 0x30c   : > { %v1251_v20 = vpop.xlane.xlu0 %1250 }
 0x30d   : > { %9940 = vrcp.f32 %v1251_v20 }
 0x310   : > { %v1257_v14 = vpop.xlane.xlu0 %1256  ;;  %v1254_v3 = vpop.xlane.xlu1 %1253 }
 0x311   : > { %9942 = vrcp.f32 %v1257_v14 }
 0x312   : > { %9944 = vrcp.f32 %v1254_v3 }
 0x314   : > { %v1263_v26 = vpop.xlane.xlu0 %1262  ;;  %v1260_v22 = vpop.xlane.xlu1 %1259 }
 0x315   : > { %9946 = vrcp.f32 %v1263_v26 }
 0x316   : > { %9948 = vrcp.f32 %v1260_v22 }
 0x317   : > { %v9941_v24 = vpop.eup %9940 }
 0x318   : > { %v1269_v57 = vpop.xlane.xlu0 %1268  ;;  %v1266_v33 = vpop.xlane.xlu1 %1265  ;;  %v11109_v29 = vmul.f32 %v9941_v24, %v10939_v36 }
 0x319   : > { %9950 = vrcp.f32 %v1269_v57 }
 0x31a   : > { %9952 = vrcp.f32 %v1266_v33  ;;  %v1409_v20 = vsel %vm1056_vm1, %v11109_v29, 0.0 }
 0x31b   : > { %v9943_v0 = vpop.eup %9942 }
 0x31c   : > { %v9945_v15 = vpop.eup %9944  ;;  %v1275_v4 = vpop.xlane.xlu0 %1274  ;;  %v11112_v59 = vmul.f32 %v9943_v0, %v10944_v45 }
 0x31d   : > { %v1272_v47 = vpop.xlane.xlu1 %1271  ;;  %v11115_v1 = vmul.f32 %v9945_v15, %v10947_v61  ;;  %9954 = vrcp.f32 %v1275_v4 }
 0x31e   : > { %9956 = vrcp.f32 %v1272_v47  ;;  %v1412_v45 = vsel %vm1056_vm1, %v11112_v59, 0.0 }
 0x31f   : > { %v9947_v55 = vpop.eup %9946  ;;  %v1410_v14 = vsel %vm1056_vm1, %v11115_v1, 0.0 }
 0x320   : > { %v9949_v36 = vpop.eup %9948  ;;  %v1411_v3 = vadd.f32 %v1410_v14, %v1409_v20  ;;  %v1281_v26 = vpop.xlane.xlu0 %1280  ;;  %v11124_v24 = vmul.f32 %v9947_v55, %v10957_v25 }
 0x321   : > { %v1278_v22 = vpop.xlane.xlu1 %1277  ;;  %v11127_v61 = vmul.f32 %v9949_v36, %v10954_v19  ;;  %9958 = vrcp.f32 %v1281_v26 }
 0x322   : > { %v1413_v57 = vadd.f32 %v1412_v45, %v1411_v3  ;;  %9960 = vrcp.f32 %v1278_v22  ;;  %v1416_v14 = vsel %vm1056_vm1, %v11124_v24, 0.0 }
 0x323   : > { %v9951_v33 = vpop.eup %9950  ;;  %v1414_v0 = vsel %vm1056_vm1, %v11127_v61, 0.0 }
 0x324   : > { %v9953_v15 = vpop.eup %9952  ;;  %v1415_v4 = vadd.f32 %v1414_v0, %v1413_v57  ;;  %v1287_v47 = vpop.xlane.xlu0 %1286  ;;  %v11134_v25 = vmul.f32 %v9951_v33, %v10967_v43 }
 0x325   : > { %v1284_v20 = vpop.xlane.xlu1 %1283  ;;  %v11137_v19 = vmul.f32 %v9953_v15, %v10964_v35  ;;  %9962 = vrcp.f32 %v1287_v47 }
 0x326   : > { %v1417_v55 = vadd.f32 %v1416_v14, %v1415_v4  ;;  %9964 = vrcp.f32 %v1284_v20  ;;  %v1420_v0 = vsel %vm1056_vm1, %v11134_v25, 0.0 }
 0x327   : > { %v9955_v36 = vpop.eup %9954  ;;  %v1418_v3 = vsel %vm1056_vm1, %v11137_v19, 0.0 }
 0x328   : > { %v9957_v26 = vpop.eup %9956  ;;  %v1419_v22 = vadd.f32 %v1418_v3, %v1417_v55  ;;  %v1293_v45 = vpop.xlane.xlu0 %1292  ;;  %v11144_v43 = vmul.f32 %v9955_v36, %v10977_v63 }
 0x329   : > { %v1290_v57 = vpop.xlane.xlu1 %1289  ;;  %v11147_v35 = vmul.f32 %v9957_v26, %v10974_v60  ;;  %9966 = vrcp.f32 %v1293_v45 }
 0x32a   : > { %v1421_v33 = vadd.f32 %v1420_v0, %v1419_v22  ;;  %9968 = vrcp.f32 %v1290_v57  ;;  %v1424_v3 = vsel %vm1056_vm1, %v11144_v43, 0.0 }
 0x32b   : > { %v9959_v15 = vpop.eup %9958  ;;  %v1422_v4 = vsel %vm1056_vm1, %v11147_v35, 0.0 }
 0x32c   : > { %v9961_v47 = vpop.eup %9960  ;;  %v1423_v20 = vadd.f32 %v1422_v4, %v1421_v33  ;;  %v1299_v14 = vpop.xlane.xlu0 %1298  ;;  %v11154_v63 = vmul.f32 %v9959_v15, %v10987_v32 }
 0x32d   : > { %v1296_v55 = vpop.xlane.xlu1 %1295  ;;  %v11157_v60 = vmul.f32 %v9961_v47, %v10984_v13  ;;  %9970 = vrcp.f32 %v1299_v14 }
 0x32e   : > { %v1425_v36 = vadd.f32 %v1424_v3, %v1423_v20  ;;  %9972 = vrcp.f32 %v1296_v55  ;;  %v1428_v4 = vsel %vm1056_vm1, %v11154_v63, 0.0 }
 0x32f   : > { %v9963_v26 = vpop.eup %9962  ;;  %v1426_v22 = vsel %vm1056_vm1, %v11157_v60, 0.0 }
 0x330   : > { %v9965_v45 = vpop.eup %9964  ;;  %v1427_v57 = vadd.f32 %v1426_v22, %v1425_v36  ;;  %v1305_v0 = vpop.xlane.xlu0 %1304  ;;  %v11164_v32 = vmul.f32 %v9963_v26, %v10997_v46 }
 0x331   : > { %v1302_v33 = vpop.xlane.xlu1 %1301  ;;  %v11167_v13 = vmul.f32 %v9965_v45, %v10994_v11  ;;  %9974 = vrcp.f32 %v1305_v0 }
 0x332   : > { %v1429_v15 = vadd.f32 %v1428_v4, %v1427_v57  ;;  %9976 = vrcp.f32 %v1302_v33  ;;  %v1432_v22 = vsel %vm1056_vm1, %v11164_v32, 0.0 }
 0x333   : > { %v9967_v47 = vpop.eup %9966  ;;  %v1430_v20 = vsel %vm1056_vm1, %v11167_v13, 0.0 }
 0x334   : > { %v9969_v14 = vpop.eup %9968  ;;  %v1431_v55 = vadd.f32 %v1430_v20, %v1429_v15  ;;  %v1311_v3 = vpop.xlane.xlu0 %1310  ;;  %v11174_v46 = vmul.f32 %v9967_v47, %v11007_v10 }
 0x335   : > { %v1308_v36 = vpop.xlane.xlu1 %1307  ;;  %v11177_v11 = vmul.f32 %v9969_v14, %v11004_v23  ;;  %9978 = vrcp.f32 %v1311_v3 }
 0x336   : > { %v1433_v26 = vadd.f32 %v1432_v22, %v1431_v55  ;;  %9980 = vrcp.f32 %v1308_v36  ;;  %v1436_v20 = vsel %vm1056_vm1, %v11174_v46, 0.0 }
 0x337   : > { %v9971_v45 = vpop.eup %9970  ;;  %v1434_v57 = vsel %vm1056_vm1, %v11177_v11, 0.0 }
 0x338   : > { %v9973_v0 = vpop.eup %9972  ;;  %v1435_v33 = vadd.f32 %v1434_v57, %v1433_v26  ;;  %v1317_v4 = vpop.xlane.xlu0 %1316  ;;  %v11187_v23 = vmul.f32 %v9971_v45, %v11017_v58 }
 0x339   : > { %v1314_v15 = vpop.xlane.xlu1 %1313  ;;  %v11184_v10 = vmul.f32 %v9973_v0, %v11014_v21  ;;  %9982 = vrcp.f32 %v1317_v4 }
 0x33a   : > { %9984 = vrcp.f32 %v1314_v15  ;;  %v1437_v47 = vadd.f32 %v1436_v20, %v1435_v33  ;;  %v1440_v58 = vsel %vm1056_vm1, %v11187_v23, 0.0 }
 0x33b   : > { %v9975_v14 = vpop.eup %9974  ;;  %v1438_v55 = vsel %vm1056_vm1, %v11184_v10, 0.0 }
 0x33c   : > { %v9977_v3 = vpop.eup %9976  ;;  %v1323_v36 = vpop.xlane.xlu0 %1322  ;;  %v1439_v26 = vadd.f32 %v1438_v55, %v1437_v47  ;;  %v11192_v57 = vmul.f32 %v9975_v14, %v11027_v2 }
 0x33d   : > { %v1320_v22 = vpop.xlane.xlu1 %1319  ;;  %9986 = vrcp.f32 %v1323_v36  ;;  %v11195_v21 = vmul.f32 %v9977_v3, %v11024_v34 }
 0x33e   : > { %9988 = vrcp.f32 %v1320_v22  ;;  %v1441_v45 = vadd.f32 %v1440_v58, %v1439_v26  ;;  %v1444_v34 = vsel %vm1056_vm1, %v11192_v57, 0.0 }
 0x33f   : > { %v9979_v0 = vpop.eup %9978  ;;  %v1442_v33 = vsel %vm1056_vm1, %v11195_v21, 0.0 }
 0x340   : > { %v9981_v4 = vpop.eup %9980  ;;  %v1329_v15 = vpop.xlane.xlu0 %1328  ;;  %v1443_v47 = vadd.f32 %v1442_v33, %v1441_v45  ;;  %v11202_v2 = vmul.f32 %v9979_v0, %v11037_v54 }
 0x341   : > { %v1326_v20 = vpop.xlane.xlu1 %1325  ;;  %v11205_v14 = vmul.f32 %v9981_v4, %v11034_v31  ;;  %9990 = vrcp.f32 %v1329_v15 }
 0x342   : > { %9992 = vrcp.f32 %v1326_v20  ;;  %v1445_v55 = vadd.f32 %v1444_v34, %v1443_v47  ;;  %v1448_v54 = vsel %vm1056_vm1, %v11202_v2, 0.0 }
 0x343   : > { %v9983_v3 = vpop.eup %9982  ;;  %v1446_v36 = vsel %vm1056_vm1, %v11205_v14, 0.0 }
 0x344   : > { %v9985_v22 = vpop.eup %9984  ;;  %v1335_v26 = vpop.xlane.xlu0 %1334  ;;  %v1447_v45 = vadd.f32 %v1446_v36, %v1445_v55  ;;  %v11214_v31 = vmul.f32 %v9983_v3, %v11047_v62 }
 0x345   : > { %v1332_v58 = vpop.xlane.xlu1 %1331  ;;  %v11217_v0 = vmul.f32 %v9985_v22, %v11044_v44  ;;  %9994 = vrcp.f32 %v1335_v26 }
 0x346   : > { %9996 = vrcp.f32 %v1332_v58  ;;  %v1449_v33 = vadd.f32 %v1448_v54, %v1447_v45  ;;  %v1452_v36 = vsel %vm1056_vm1, %v11214_v31, 0.0 }
 0x347   : > { %v9987_v4 = vpop.eup %9986  ;;  %v1450_v15 = vsel %vm1056_vm1, %v11217_v0, 0.0 }
 0x348   : > { %v9989_v20 = vpop.eup %9988  ;;  %v1341_v47 = vpop.xlane.xlu0 %1340  ;;  %v1451_v55 = vadd.f32 %v1450_v15, %v1449_v33  ;;  %v11224_v62 = vmul.f32 %v9987_v4, %v11057_v12 }
 0x349   : > { %v1338_v34 = vpop.xlane.xlu1 %1337  ;;  %v11227_v44 = vmul.f32 %v9989_v20, %v11054_v42  ;;  %9998 = vrcp.f32 %v1341_v47 }
 0x34a   : > { %10000 = vrcp.f32 %v1338_v34  ;;  %v1453_v3 = vadd.f32 %v1452_v36, %v1451_v55  ;;  %v1456_v33 = vsel %vm1056_vm1, %v11224_v62, 0.0 }
 0x34b   : > { %v9991_v22 = vpop.eup %9990  ;;  %v1454_v26 = vsel %vm1056_vm1, %v11227_v44, 0.0 }
 0x34c   : > { %v9993_v58 = vpop.eup %9992  ;;  %v1455_v54 = vadd.f32 %v1454_v26, %v1453_v3  ;;  %v11234_v15 = vmul.f32 %v9991_v22, %v11066_v9 }
 0x34d   : > { %v1344_v45 = vpop.xlane.xlu1 %1343  ;;  %v11237_v12 = vmul.f32 %v9993_v58, %v11064_v16 }
 0x34e   : > { %10002 = vrcp.f32 %v1344_v45  ;;  %v1457_v42 = vadd.f32 %v1456_v33, %v1455_v54  ;;  %v11239_v4 = vpop.trf.xlu0  ;;  %v1460_v36 = vsel %vm1056_vm1, %v11234_v15, 0.0 }
 0x34f   : > { %v9995_v20 = vpop.eup %9994  ;;  %v1458_v47 = vsel %vm1056_vm1, %v11237_v12, 0.0  ;;  %1560 = vmatprep.mubr.bf16.mxu0 %v11239_v4 }
 0x350   : > { %v9997_v34 = vpop.eup %9996  ;;  %v1459_v55 = vadd.f32 %v1458_v47, %v1457_v42  ;;  %v11247_v9 = vmul.f32 %v9995_v20, %v11074_v56 }
 0x351   : > { %v11250_v16 = vmul.f32 %v9997_v34, %v11072_v41 }
 0x352   : > { %v1461_v3 = vadd.f32 %v1460_v36, %v1459_v55  ;;  %v1464_v54 = vsel %vm1056_vm1, %v11247_v9, 0.0 }
 0x353   : > { %v9999_v22 = vpop.eup %9998  ;;  %v1462_v26 = vsel %vm1056_vm1, %v11250_v16, 0.0 }
 0x354   : > { %v10001_v58 = vpop.eup %10000  ;;  %v1463_v45 = vadd.f32 %v1462_v26, %v1461_v3  ;;  %v11257_v33 = vmul.f32 %v9999_v22, %v11082_v30 }
 0x355   : > { %v11260_v42 = vmul.f32 %v10001_v58, %v11080_v40 }
 0x356   : > { %v1465_v56 = vadd.f32 %v1464_v54, %v1463_v45  ;;  %v1468_v55 = vsel %vm1056_vm1, %v11257_v33, 0.0 }
 0x357   : > { %v1466_v41 = vsel %vm1056_vm1, %v11260_v42, 0.0 }
 0x358   : > { %v10003_v20 = vpop.eup %10002  ;;  %v1467_v34 = vadd.f32 %v1466_v41, %v1465_v56 }
 0x359   : > { %v11265_v47 = vmul.f32 %v10003_v20, %v11088_v37 }
 0x35a   : > { %v1469_v30 = vadd.f32 %v1468_v55, %v1467_v34 }
 0x35b   : > { %v1470_v36 = vsel %vm1056_vm1, %v11265_v47, 0.0 }
 0x35c   : > { %v1471_v3 = vadd.f32 %v1470_v36, %v1469_v30 }
 0x35e   : > { %v1472_v22 = vrot.slane %v1471_v3, 4 }
 0x360   : > { %v1473_v40 = vadd.f32 %v1472_v22, %v1471_v3 }
 0x362   : > { %v1474_v26 = vrot.slane %v1473_v40, 2 }
 0x364   : > { %v1475_v58 = vadd.f32 %v1474_v26, %v1473_v40 }
 0x366   : > { %v1476_v45 = vrot.slane %v1475_v58, 1 }
 0x368   : > { %v1477_v54 = vadd.f32 %v1476_v45, %v1475_v58 }
 0x36a   : > { %v1478_v51 = vadd.f32 1e-06, %v1477_v54 }
 0x36c   : > { %10004 = vrcp.f32 %v1478_v51 }
 0x376   : > { %v10005_v6 = vpop.eup %10004 }
 0x377   : > { %v1496_v37 = vmul.f32 %v10005_v6, %v11187_v23  ;;  %v1497_v56 = vmul.f32 %v10005_v6, %v11195_v21  ;;  %v1480_v20 = vmul.f32 %v10005_v6, %v11109_v29  ;;  %v1481_v41 = vmul.f32 %v10005_v6, %v11115_v1 }
 0x378   : > { %v1498_v34 = vmul.f32 %v10005_v6, %v11192_v57  ;;  %v1499_v55 = vmul.f32 %v10005_v6, %v11205_v14  ;;  %v1482_v3 = vmul.f32 %v10005_v6, %v11112_v59  ;;  %v1483_v22 = vmul.f32 %v10005_v6, %v11127_v61 }
 0x379   : > { %v1520_v36 = vpack.c.bf16 %v1497_v56, %v1496_v37  ;;  %v1512_v30 = vpack.c.bf16 %v1481_v41, %v1480_v20  ;;  %v1500_v23 = vmul.f32 %v10005_v6, %v11202_v2  ;;  %v1501_v21 = vmul.f32 %v10005_v6, %v11217_v0 }
 0x37a   : > { %v1521_v51 = vpack.c.bf16 %v1499_v55, %v1498_v34  ;;  %v1513_v29 = vpack.c.bf16 %v1483_v22, %v1482_v3  ;;  %v1484_v1 = vmul.f32 %v10005_v6, %v11124_v24  ;;  %v1485_v57 = vmul.f32 %v10005_v6, %v11137_v19 }
 0x37b   : > { %8917 = vmatprep.subr.bf16.mxu0 %v1520_v36  ;;  %v1522_v14 = vpack.c.bf16 %v1501_v21, %v1500_v23  ;;  %v1502_v40 = vmul.f32 %v10005_v6, %v11214_v31  ;;  %v1503_v59 = vmul.f32 %v10005_v6, %v11227_v44  ;;  %v1486_v26 = vmul.f32 %v10005_v6, %v11134_v25 }
 0x37c   : > { %8918 = vmatpush3.bf16.msra.mxu0 %v1512_v30  ;;  %v1514_v61 = vpack.c.bf16 %v1485_v57, %v1484_v1  ;;  %v1487_v2 = vmul.f32 %v10005_v6, %v11147_v35  ;;  %v1504_v58 = vmul.f32 %v10005_v6, %v11224_v62  ;;  %v1505_v45 = vmul.f32 %v10005_v6, %v11237_v12 }
 0x37d   : > { %8919 = vmatprep.subr.bf16.mxu0 %v1521_v51  ;;  %v1523_v0 = vpack.c.bf16 %v1503_v59, %v1502_v40  ;;  %v1488_v19 = vmul.f32 %v10005_v6, %v11144_v43  ;;  %v1489_v31 = vmul.f32 %v10005_v6, %v11157_v60  ;;  %v1506_v54 = vmul.f32 %v10005_v6, %v11234_v15 }
 0x37e   : > { %v1515_v24 = vpack.c.bf16 %v1487_v2, %v1486_v26  ;;  %v1524_v44 = vpack.c.bf16 %v1505_v45, %v1504_v58  ;;  %v1507_v37 = vmul.f32 %v10005_v6, %v11250_v16  ;;  %v1490_v35 = vmul.f32 %v10005_v6, %v11154_v63 }
 0x37f   : > { %v1516_v25 = vpack.c.bf16 %v1489_v31, %v1488_v19  ;;  %v1491_v62 = vmul.f32 %v10005_v6, %v11167_v13  ;;  %v1508_v56 = vmul.f32 %v10005_v6, %v11247_v9  ;;  %v1509_v20 = vmul.f32 %v10005_v6, %v11260_v42 }
 0x380   : > { %8920 = vmatpush3.bf16.msra.mxu0 %v1513_v29  ;;  %v1525_v12 = vpack.c.bf16 %v1507_v37, %v1506_v54  ;;  %v1492_v60 = vmul.f32 %v10005_v6, %v11164_v32  ;;  %v1493_v15 = vmul.f32 %v10005_v6, %v11177_v11  ;;  %v1510_v41 = vmul.f32 %v10005_v6, %v11257_v33  ;;  %v11303_v32 = vpop.trf.xlu1  ;;  %v11305_v11 = vpop.trf.xlu0 }
 0x381   : > { %8921 = vmatprep.subr.bf16.mxu0 %v1522_v14  ;;  %v1517_v43 = vpack.c.bf16 %v1491_v62, %v1490_v35  ;;  %v1526_v16 = vpack.c.bf16 %v1509_v20, %v1508_v56  ;;  %v1511_v34 = vmul.f32 %v10005_v6, %v11265_v47  ;;  %v1494_v13 = vmul.f32 %v10005_v6, %v11174_v46 }
 0x382   : > { %v1518_v63 = vpack.c.bf16 %v1493_v15, %v1492_v60  ;;  %v1495_v9 = vmul.f32 %v10005_v6, %v11184_v10 }
 0x383   : > { %v1527_v42 = vpack.c.bf16 %v1511_v34, %v1510_v41 }
 0x384   : > { %8922 = vmatpush3.bf16.msra.mxu0 %v1514_v61  ;;  %v1519_v55 = vpack.c.bf16 %v1495_v9, %v1494_v13  ;;  %v11309_v33 = vpop.trf.xlu1  ;;  %v11311_v47 = vpop.trf.xlu0 }
 0x385   : > { %8923 = vmatprep.subr.bf16.mxu0 %v1523_v0 }
 0x388   : > { %8924 = vmatpush3.bf16.msra.mxu0 %v1515_v24  ;;  %v11315_v6 = vpop.trf.xlu1  ;;  %v11317_v46 = vpop.trf.xlu0 }
 0x389   : > { %8925 = vmatprep.subr.bf16.mxu0 %v1524_v44 }
 0x38c   : > { %8926 = vmatpush3.bf16.msra.mxu0 %v1516_v25  ;;  %v11321_v10 = vpop.trf.xlu1 }
 0x38d   : > { %8927 = vmatprep.subr.bf16.mxu0 %v1525_v12 }
 0x390   : > { %8928 = vmatpush3.bf16.msra.mxu0 %v1517_v43 }
 0x391   : > { %8929 = vmatprep.subr.bf16.mxu0 %v1526_v16 }
 0x394   : > { %8930 = vmatpush3.bf16.msra.mxu0 %v1518_v63 }
 0x395   : > { %8931 = vmatprep.subr.bf16.mxu0 %v1527_v42 }
 0x398   : > { %8932 = vmatpush3.bf16.msra.mxu0 %v1519_v55 }
 0x39b   : > { %1561 = vmatmul.mubr.bf16.vlgmr.msra.gmra.mrb[24].mxu0 %v11303_v32 }
 0x39c   : > { %1568 = vmatprep.mubr.bf16.mxu0 %v11305_v11 }
 0x3a3   : > { %1569 = vmatmul.mubr.bf16.gmra.mrb[28].mxu0 %v11309_v33 }
 0x3a4   : > { %1576 = vmatprep.mubr.bf16.mxu0 %v11311_v47 }
 0x3ab   : > { %1577 = vmatmul.mubr.bf16.gmra.mrb[32].mxu0 %v11315_v6 }
 0x3ac   : > { %1584 = vmatprep.mubr.bf16.mxu0 %v11317_v46 }
 0x3b3   : > { %1585 = vmatmul.mubr.bf16.gmra.mrb[36].mxu0 %v11321_v10 }
 0x3b4   : > { %2300 = vmatprep.mubr.bf16.mxu0 %v11239_v4 }
 0x46e   : > { %v8933_v36 = vpop.f32.mrb[24].mxu0 }
 0x46f   : > { %v8934_v30 = vpop.f32.mrb[25].mxu0 }
 0x470   : > { %v8935_v3 = vadd.f32 %v8934_v30, %v8933_v36  ;;  %v8936_v22 = vpop.f32.mrb[26].mxu0 }
 0x471   : > { %v8937_v51 = vpop.f32.mrb[27].mxu0 }
 0x472   : > { %v1593_v23 = vmul.f32 %v8935_v3, %v8935_v3  ;;  %v8938_v21 = vadd.f32 %v8937_v51, %v8936_v22 }
 0x474   : > { %v1594_v29 = vmul.f32 %v8938_v21, %v8938_v21  ;;  %v1601_v1 = vsel %vm1056_vm1, %v1593_v23, 0.0 }
 0x476   : > { %v1602_v57 = vsel %vm1056_vm1, %v1594_v29, 0.0  ;;  %v8939_v14 = vpop.f32.mrb[28].mxu0 }
 0x477   : > { %v1603_v40 = vadd.f32 %v1602_v57, %v1601_v1  ;;  %v8940_v59 = vpop.f32.mrb[29].mxu0 }
 0x478   : > { %v8941_v61 = vadd.f32 %v8940_v59, %v8939_v14  ;;  %v8942_v26 = vpop.f32.mrb[30].mxu0 }
 0x479   : > { %v8943_v2 = vpop.f32.mrb[31].mxu0 }
 0x47a   : > { %v1595_v0 = vmul.f32 %v8941_v61, %v8941_v61  ;;  %v8944_v58 = vadd.f32 %v8943_v2, %v8942_v26 }
 0x47c   : > { %v1604_v45 = vsel %vm1056_vm1, %v1595_v0, 0.0  ;;  %v1596_v24 = vmul.f32 %v8944_v58, %v8944_v58 }
 0x47d   : > { %v1605_v19 = vadd.f32 %v1604_v45, %v1603_v40 }
 0x47e   : > { %v1606_v31 = vsel %vm1056_vm1, %v1596_v24, 0.0  ;;  %v8945_v44 = vpop.f32.mrb[32].mxu0 }
 0x47f   : > { %v1607_v54 = vadd.f32 %v1606_v31, %v1605_v19  ;;  %v8946_v37 = vpop.f32.mrb[33].mxu0 }
 0x480   : > { %v8947_v25 = vadd.f32 %v8946_v37, %v8945_v44  ;;  %v8948_v35 = vpop.f32.mrb[34].mxu0 }
 0x481   : > { %v8949_v62 = vpop.f32.mrb[35].mxu0 }
 0x482   : > { %v1597_v12 = vmul.f32 %v8947_v25, %v8947_v25  ;;  %v8950_v56 = vadd.f32 %v8949_v62, %v8948_v35 }
 0x484   : > { %v1608_v20 = vsel %vm1056_vm1, %v1597_v12, 0.0  ;;  %v1598_v43 = vmul.f32 %v8950_v56, %v8950_v56 }
 0x485   : > { %v1609_v60 = vadd.f32 %v1608_v20, %v1607_v54 }
 0x486   : > { %v1610_v15 = vsel %vm1056_vm1, %v1598_v43, 0.0  ;;  %v8951_v16 = vpop.f32.mrb[36].mxu0 }
 0x487   : > { %v1611_v41 = vadd.f32 %v1610_v15, %v1609_v60  ;;  %v8952_v34 = vpop.f32.mrb[37].mxu0 }
 0x488   : > { %v8953_v63 = vadd.f32 %v8952_v34, %v8951_v16  ;;  %v8954_v13 = vpop.f32.mrb[38].mxu0 }
 0x489   : > { %v8955_v9 = vpop.f32.mrb[39].mxu0 }
 0x48a   : > { %v1599_v42 = vmul.f32 %v8953_v63, %v8953_v63  ;;  %v8956_v55 = vadd.f32 %v8955_v9, %v8954_v13 }
 0x48c   : > { %v1612_v36 = vsel %vm1056_vm1, %v1599_v42, 0.0  ;;  %v1600_v30 = vmul.f32 %v8956_v55, %v8956_v55 }
 0x48d   : > { %v1613_v22 = vadd.f32 %v1612_v36, %v1611_v41 }
 0x48e   : > { %v1614_v51 = vsel %vm1056_vm1, %v1600_v30, 0.0 }
 0x48f   : > { %v1615_v23 = vadd.f32 %v1614_v51, %v1613_v22 }
 0x491   : > { %v1616_v29 = vrot.slane %v1615_v23, 4 }
 0x493   : > { %v1617_v1 = vadd.f32 %v1616_v29, %v1615_v23 }
 0x495   : > { %v1618_v57 = vrot.slane %v1617_v1, 2 }
 0x497   : > { %v1619_v14 = vadd.f32 %v1618_v57, %v1617_v1 }
 0x499   : > { %v1620_v40 = vrot.slane %v1619_v14, 1 }
 0x49b   : > { %v1621_v59 = vadd.f32 %v1620_v40, %v1619_v14 }
 0x49d   : > { %v1622_v26 = vadd.f32 1e-12, %v1621_v59 }
 0x49f   : > { %10006 = vrsqrt.f32 %v1622_v26 }
 0x4a9   : > { %v10007_v2 = vpop.eup %10006 }
 0x4aa   : > { %v1631_v0 = vmul.f32 %v10007_v2, %v8956_v55  ;;  %v1624_v45 = vmul.f32 %v10007_v2, %v8935_v3  ;;  %v1625_v24 = vmul.f32 %v10007_v2, %v8938_v21  ;;  %v1626_v19 = vmul.f32 %v10007_v2, %v8941_v61  ;;  %v14363_v3 = vld [vmem:[#allocation9_spill] sm:$0xff] }
 0x4ab   : > { %v1627_v31 = vmul.f32 %v10007_v2, %v8944_v58  ;;  %v1628_v44 = vmul.f32 %v10007_v2, %v8947_v25  ;;  %v1629_v54 = vmul.f32 %v10007_v2, %v8950_v56  ;;  %v1630_v37 = vmul.f32 %v10007_v2, %v8953_v63 }
 0x4ac   : > { %v1632_v35 = vpack.c.bf16 %v1625_v24, %v1624_v45 }
 0x4ad   : > { %v1633_v62 = vpack.c.bf16 %v1627_v31, %v1626_v19  ;;  %v1634_v12 = vpack.c.bf16 %v1629_v54, %v1628_v44  ;;  %v1635_v20 = vpack.c.bf16 %v1631_v0, %v1630_v37 }
 0x4ae   : > { %9461 = vmatprep.subr.bf16.mxu1 %v1632_v35 }
 0x4af   : > { %9462 = vmatpush3.bf16.msra.mxu1 %v1632_v35 }
 0x4b0   : > { %9463 = vmatprep.subr.bf16.mxu1 %v1633_v62 }
 0x4b3   : > { %9464 = vmatpush3.bf16.msra.mxu1 %v1633_v62 }
 0x4b4   : > { %9465 = vmatprep.subr.bf16.mxu1 %v1634_v12 }
 0x4b7   : > { %9466 = vmatpush3.bf16.msra.mxu1 %v1634_v12 }
 0x4b8   : > { %9467 = vmatprep.subr.bf16.mxu1 %v1635_v20 }
 0x4bb   : > { %9468 = vmatpush3.bf16.msra.mxu1 %v1635_v20 }
 0x4be   : > { %9470 = vmatmul.mubr.msk.bf16.vlgmr.msra.gmra.mrb[40].mxu1 %vm577_vm0, %v10714_v49 }
 0x4bf   : > { %9473 = vmatprep.mubr.msk.bf16.mxu1 %vm577_vm0, %v10738_v7 }
 0x4c6   : > { %9474 = vmatmul.mubr.msk.bf16.gmra.mrb[44].mxu1 %vm577_vm0, %v10734_v5 }
 0x4c7   : > { %9477 = vmatprep.mubr.msk.bf16.mxu1 %vm577_vm0, %v10752_v18 }
 0x4ce   : > { %9478 = vmatmul.mubr.msk.bf16.gmra.mrb[48].mxu1 %vm577_vm0, %v10750_v17 }
 0x4cf   : > { %9481 = vmatprep.mubr.msk.bf16.mxu1 %vm577_vm0, %v10764_v28 }
 0x4d6   : > { %9482 = vmatmul.mubr.msk.bf16.gmra.mrb[52].mxu1 %vm577_vm0, %v10762_v27 }
 0x4d7   : > { %9485 = vmatprep.mubr.msk.bf16.mxu1 %vm577_vm0, %v10776_v39 }
 0x4de   : > { %9486 = vmatmul.mubr.msk.bf16.gmra.mrb[56].mxu1 %vm577_vm0, %v10774_v38 }
 0x4df   : > { %9489 = vmatprep.mubr.msk.bf16.mxu1 %vm577_vm0, %v10788_v53 }
 0x4e6   : > { %9490 = vmatmul.mubr.msk.bf16.gmra.mrb[60].mxu1 %vm577_vm0, %v10786_v48 }
 0x4e7   : > { %9493 = vmatprep.mubr.msk.bf16.mxu1 %vm577_vm0, %v10720_v52 }
 0x4ee   : > { %9494 = vmatmul.mubr.msk.bf16.gmra.mrb[64].mxu1 %vm577_vm0, %v10716_v50 }
 0x4ef   : > { %9497 = vmatprep.mubr.msk.bf16.mxu1 %vm577_vm0, %v10740_v8 }
 0x4f6   : > { %9498 = vmatmul.mubr.msk.bf16.gmra.mrb[68].mxu1 %vm577_vm0, %v14363_v3 }
 0x4f7   : > { %3040 = vmatprep.mubr.bf16.mxu1 %v11239_v4 }
 0x591   : > { %v11364_v21 = vpop.f32.mrb[40].mxu1 }
 0x592   : > { %v11366_v61 = vpop.f32.mrb[41].mxu1  ;;  %v1803_v60 = vsel %vm1056_vm1, %v11364_v21, -inf }
 0x593   : > { %v11368_v58 = vpop.f32.mrb[42].mxu1  ;;  %v1797_v25 = vsel %vm1056_vm1, %v11366_v61, -inf }
 0x594   : > { %1798 = vmax.xlane.f32.xlu0 %v1797_v25  ;;  %v11372_v56 = vpop.f32.mrb[43].mxu1  ;;  %v1806_v15 = vsel %vm1056_vm1, %v11368_v58, -inf }
 0x595   : > { %v1800_v43 = vsel %vm1056_vm1, %v11372_v56, -inf }
 0x596   : > { %1801 = vmax.xlane.f32.xlu1 %v1800_v43 }
 0x598   : > { %1804 = vmax.xlane.f32.xlu0 %v1803_v60 }
 0x599   : > { %v11378_v4 = vpop.f32.mrb[44].mxu1 }
 0x59a   : > { %1807 = vmax.xlane.f32.xlu1 %v1806_v15  ;;  %v11382_v16 = vpop.f32.mrb[45].mxu1  ;;  %v1815_v9 = vsel %vm1056_vm1, %v11378_v4, -inf }
 0x59b   : > { %v11384_v41 = vpop.f32.mrb[46].mxu1  ;;  %v1809_v34 = vsel %vm1056_vm1, %v11382_v16, -inf }
 0x59c   : > { %1810 = vmax.xlane.f32.xlu0 %v1809_v34  ;;  %v11388_v63 = vpop.f32.mrb[47].mxu1  ;;  %v1818_v55 = vsel %vm1056_vm1, %v11384_v41, -inf }
 0x59d   : > { %v1812_v13 = vsel %vm1056_vm1, %v11388_v63, -inf }
 0x59e   : > { %1813 = vmax.xlane.f32.xlu1 %v1812_v13 }
 0x5a0   : > { %1816 = vmax.xlane.f32.xlu0 %v1815_v9 }
 0x5a1   : > { %v11394_v42 = vpop.f32.mrb[48].mxu1 }
 0x5a2   : > { %1819 = vmax.xlane.f32.xlu1 %v1818_v55  ;;  %v11398_v36 = vpop.f32.mrb[49].mxu1  ;;  %v1827_v29 = vsel %vm1056_vm1, %v11394_v42, -inf }
 0x5a3   : > { %v11400_v30 = vpop.f32.mrb[50].mxu1  ;;  %v1821_v22 = vsel %vm1056_vm1, %v11398_v36, -inf }
 0x5a4   : > { %1822 = vmax.xlane.f32.xlu0 %v1821_v22  ;;  %v11404_v51 = vpop.f32.mrb[51].mxu1  ;;  %v1830_v57 = vsel %vm1056_vm1, %v11400_v30, -inf }
 0x5a5   : > { %v1824_v23 = vsel %vm1056_vm1, %v11404_v51, -inf }
 0x5a6   : > { %1825 = vmax.xlane.f32.xlu1 %v1824_v23 }
 0x5a8   : > { %1828 = vmax.xlane.f32.xlu0 %v1827_v29 }
 0x5a9   : > { %v11410_v1 = vpop.f32.mrb[52].mxu1 }
 0x5aa   : > { %1831 = vmax.xlane.f32.xlu1 %v1830_v57  ;;  %v11414_v14 = vpop.f32.mrb[53].mxu1  ;;  %v1839_v0 = vsel %vm1056_vm1, %v11410_v1, -inf }
 0x5ab   : > { %v11416_v40 = vpop.f32.mrb[54].mxu1  ;;  %v1833_v59 = vsel %vm1056_vm1, %v11414_v14, -inf }
 0x5ac   : > { %1834 = vmax.xlane.f32.xlu0 %v1833_v59  ;;  %v11420_v26 = vpop.f32.mrb[55].mxu1  ;;  %v1842_v24 = vsel %vm1056_vm1, %v11416_v40, -inf }
 0x5ad   : > { %v1836_v2 = vsel %vm1056_vm1, %v11420_v26, -inf }
 0x5ae   : > { %1837 = vmax.xlane.f32.xlu1 %v1836_v2 }
 0x5b0   : > { %1840 = vmax.xlane.f32.xlu0 %v1839_v0 }
 0x5b1   : > { %v11426_v45 = vpop.f32.mrb[56].mxu1 }
 0x5b2   : > { %1843 = vmax.xlane.f32.xlu1 %v1842_v24  ;;  %v11430_v19 = vpop.f32.mrb[57].mxu1  ;;  %v1851_v35 = vsel %vm1056_vm1, %v11426_v45, -inf }
 0x5b3   : > { %v11432_v31 = vpop.f32.mrb[58].mxu1  ;;  %v1845_v44 = vsel %vm1056_vm1, %v11430_v19, -inf }
 0x5b4   : > { %1846 = vmax.xlane.f32.xlu0 %v1845_v44  ;;  %v11436_v54 = vpop.f32.mrb[59].mxu1  ;;  %v1854_v12 = vsel %vm1056_vm1, %v11432_v31, -inf }
 0x5b5   : > { %v1848_v37 = vsel %vm1056_vm1, %v11436_v54, -inf }
 0x5b6   : > { %1849 = vmax.xlane.f32.xlu1 %v1848_v37 }
 0x5b8   : > { %1852 = vmax.xlane.f32.xlu0 %v1851_v35 }
 0x5b9   : > { %v11442_v62 = vpop.f32.mrb[60].mxu1 }
 0x5ba   : > { %1855 = vmax.xlane.f32.xlu1 %v1854_v12  ;;  %v11446_v20 = vpop.f32.mrb[61].mxu1  ;;  %v1863_v34 = vsel %vm1056_vm1, %v11442_v62, -inf }
 0x5bb   : > { %v11448_v25 = vpop.f32.mrb[62].mxu1  ;;  %v1857_v43 = vsel %vm1056_vm1, %v11446_v20, -inf }
 0x5bc   : > { %1858 = vmax.xlane.f32.xlu0 %v1857_v43  ;;  %v11452_v60 = vpop.f32.mrb[63].mxu1  ;;  %v1866_v9 = vsel %vm1056_vm1, %v11448_v25, -inf }
 0x5bd   : > { %v1860_v15 = vsel %vm1056_vm1, %v11452_v60, -inf }
 0x5be   : > { %1861 = vmax.xlane.f32.xlu1 %v1860_v15 }
 0x5c0   : > { %1864 = vmax.xlane.f32.xlu0 %v1863_v34 }
 0x5c1   : > { %v11458_v13 = vpop.f32.mrb[64].mxu1 }
 0x5c2   : > { %1867 = vmax.xlane.f32.xlu1 %v1866_v9  ;;  %v11462_v55 = vpop.f32.mrb[65].mxu1  ;;  %v1875_v59 = vsel %vm1056_vm1, %v11458_v13, -inf }
 0x5c3   : > { %v11464_v22 = vpop.f32.mrb[66].mxu1  ;;  %v1869_v23 = vsel %vm1056_vm1, %v11462_v55, -inf }
 0x5c4   : > { %1870 = vmax.xlane.f32.xlu0 %v1869_v23  ;;  %v11468_v29 = vpop.f32.mrb[67].mxu1  ;;  %v1878_v0 = vsel %vm1056_vm1, %v11464_v22, -inf }
 0x5c5   : > { %v1872_v57 = vsel %vm1056_vm1, %v11468_v29, -inf }
 0x5c6   : > { %1873 = vmax.xlane.f32.xlu1 %v1872_v57 }
 0x5c8   : > { %1876 = vmax.xlane.f32.xlu0 %v1875_v59 }
 0x5c9   : > { %v11474_v2 = vpop.f32.mrb[68].mxu1 }
 0x5ca   : > { %1879 = vmax.xlane.f32.xlu1 %v1878_v0  ;;  %v11478_v24 = vpop.f32.mrb[69].mxu1  ;;  %v1887_v43 = vsel %vm1056_vm1, %v11474_v2, -inf }
 0x5cb   : > { %v11480_v44 = vpop.f32.mrb[70].mxu1  ;;  %v1881_v37 = vsel %vm1056_vm1, %v11478_v24, -inf }
 0x5cc   : > { %1882 = vmax.xlane.f32.xlu0 %v1881_v37  ;;  %v11484_v35 = vpop.f32.mrb[71].mxu1  ;;  %v1890_v15 = vsel %vm1056_vm1, %v11480_v44, -inf }
 0x5cd   : > { %v1884_v12 = vsel %vm1056_vm1, %v11484_v35, -inf }
 0x5ce   : > { %1885 = vmax.xlane.f32.xlu1 %v1884_v12 }
 0x5d0   : > { %1888 = vmax.xlane.f32.xlu0 %v1887_v43 }
 0x5d2   : > { %1891 = vmax.xlane.f32.xlu1 %v1890_v15 }
 0x621   : > { %v1799_v34 = vpop.xlane.xlu0 %1798 }
 0x622   : > { %v1893_v9 = vsub.f32 %v11366_v61, %v1799_v34 }
 0x623   : > { %v1802_v23 = vpop.xlane.xlu1 %1801 }
 0x624   : > { %v1925_v57 = vmul.f32 1.442695, %v1893_v9  ;;  %v1894_v59 = vsub.f32 %v11372_v56, %v1802_v23 }
 0x625   : > { %v1805_v0 = vpop.xlane.xlu0 %1804 }
 0x626   : > { %10008 = vpow2.f32 %v1925_v57  ;;  %v1927_v37 = vmul.f32 1.442695, %v1894_v59  ;;  %v1895_v12 = vsub.f32 %v11364_v21, %v1805_v0 }
 0x627   : > { %v1808_v3 = vpop.xlane.xlu1 %1807 }
 0x628   : > { %10010 = vpow2.f32 %v1927_v37  ;;  %v1929_v8 = vmul.f32 1.442695, %v1895_v12  ;;  %v1896_v43 = vsub.f32 %v11368_v58, %v1808_v3 }
 0x629   : > { %v1811_v50 = vpop.xlane.xlu0 %1810 }
 0x62a   : > { %10012 = vpow2.f32 %v1929_v8  ;;  %v1931_v15 = vmul.f32 1.442695, %v1896_v43  ;;  %v1897_v52 = vsub.f32 %v11382_v16, %v1811_v50 }
 0x62b   : > { %v1814_v61 = vpop.xlane.xlu1 %1813 }
 0x62c   : > { %10014 = vpow2.f32 %v1931_v15  ;;  %v1933_v34 = vmul.f32 1.442695, %v1897_v52  ;;  %v1898_v56 = vsub.f32 %v11388_v63, %v1814_v61 }
 0x62d   : > { %v1817_v9 = vpop.xlane.xlu0 %1816 }
 0x62e   : > { %10016 = vpow2.f32 %v1933_v34  ;;  %v1935_v23 = vmul.f32 1.442695, %v1898_v56  ;;  %v1899_v21 = vsub.f32 %v11378_v4, %v1817_v9 }
 0x62f   : > { %v1820_v57 = vpop.xlane.xlu1 %1819 }
 0x630   : > { %v11499_v59 = vpop.eup %10008  ;;  %10018 = vpow2.f32 %v1935_v23  ;;  %v1937_v3 = vmul.f32 1.442695, %v1899_v21  ;;  %v1900_v8 = vsub.f32 %v11384_v41, %v1820_v57 }
 0x631   : > { %v1823_v58 = vpop.xlane.xlu0 %1822  ;;  %v1989_v50 = vsel %vm1056_vm1, %v11499_v59, 0.0 }
 0x632   : > { %v11504_v16 = vpop.eup %10010  ;;  %10020 = vpow2.f32 %v1937_v3  ;;  %v1939_v52 = vmul.f32 1.442695, %v1900_v8  ;;  %v1901_v63 = vsub.f32 %v11398_v36, %v1823_v58  ;;  %1990 = vadd.xlane.f32.xlu0 %v1989_v50 }
 0x633   : > { %v1826_v0 = vpop.xlane.xlu1 %1825  ;;  %v1992_v4 = vsel %vm1056_vm1, %v11504_v16, 0.0 }
 0x634   : > { %v11509_v37 = vpop.eup %10012  ;;  %10022 = vpow2.f32 %v1939_v52  ;;  %v1941_v12 = vmul.f32 1.442695, %v1901_v63  ;;  %v1902_v41 = vsub.f32 %v11404_v51, %v1826_v0  ;;  %1993 = vadd.xlane.f32.xlu1 %v1992_v4 }
 0x635   : > { %v1829_v43 = vpop.xlane.xlu0 %1828  ;;  %v1995_v15 = vsel %vm1056_vm1, %v11509_v37, 0.0 }
 0x636   : > { %v11514_v61 = vpop.eup %10014  ;;  %10024 = vpow2.f32 %v1941_v12  ;;  %v1943_v36 = vmul.f32 1.442695, %v1902_v41  ;;  %v1903_v34 = vsub.f32 %v11394_v42, %v1829_v43  ;;  %1996 = vadd.xlane.f32.xlu0 %v1995_v15 }
 0x637   : > { %v1832_v56 = vpop.xlane.xlu1 %1831  ;;  %v1998_v9 = vsel %vm1056_vm1, %v11514_v61, 0.0 }
 0x638   : > { %v11519_v23 = vpop.eup %10016  ;;  %10026 = vpow2.f32 %v1943_v36  ;;  %v1945_v51 = vmul.f32 1.442695, %v1903_v34  ;;  %v1904_v21 = vsub.f32 %v11400_v30, %v1832_v56  ;;  %1999 = vadd.xlane.f32.xlu1 %v1998_v9 }
 0x639   : > { %v1835_v57 = vpop.xlane.xlu0 %1834  ;;  %v2001_v3 = vsel %vm1056_vm1, %v11519_v23, 0.0 }
 0x63a   : > { %v11524_v8 = vpop.eup %10018  ;;  %10028 = vpow2.f32 %v1945_v51  ;;  %v1947_v42 = vmul.f32 1.442695, %v1904_v21  ;;  %v1905_v58 = vsub.f32 %v11414_v14, %v1835_v57  ;;  %2002 = vadd.xlane.f32.xlu0 %v2001_v3 }
 0x63b   : > { %v1838_v50 = vpop.xlane.xlu1 %1837  ;;  %v2004_v52 = vsel %vm1056_vm1, %v11524_v8, 0.0 }
 0x63c   : > { %v11529_v63 = vpop.eup %10020  ;;  %10030 = vpow2.f32 %v1947_v42  ;;  %v1949_v30 = vmul.f32 1.442695, %v1905_v58  ;;  %v1906_v0 = vsub.f32 %v11420_v26, %v1838_v50  ;;  %2005 = vadd.xlane.f32.xlu1 %v2004_v52 }
 0x63d   : > { %v1841_v4 = vpop.xlane.xlu0 %1840  ;;  %v2007_v12 = vsel %vm1056_vm1, %v11529_v63, 0.0 }
 0x63e   : > { %v11534_v41 = vpop.eup %10022  ;;  %10032 = vpow2.f32 %v1949_v30  ;;  %v1951_v14 = vmul.f32 1.442695, %v1906_v0  ;;  %v1907_v43 = vsub.f32 %v11410_v1, %v1841_v4  ;;  %2008 = vadd.xlane.f32.xlu0 %v2007_v12 }
 0x63f   : > { %v1844_v15 = vpop.xlane.xlu1 %1843  ;;  %v2010_v36 = vsel %vm1056_vm1, %v11534_v41, 0.0 }
 0x640   : > { %v11539_v34 = vpop.eup %10024  ;;  %10034 = vpow2.f32 %v1951_v14  ;;  %v1953_v26 = vmul.f32 1.442695, %v1907_v43  ;;  %v1908_v56 = vsub.f32 %v11416_v40, %v1844_v15  ;;  %2011 = vadd.xlane.f32.xlu1 %v2010_v36 }
 0x641   : > { %v1847_v9 = vpop.xlane.xlu0 %1846  ;;  %v2013_v51 = vsel %vm1056_vm1, %v11539_v34, 0.0 }
 0x642   : > { %v11544_v21 = vpop.eup %10026  ;;  %10036 = vpow2.f32 %v1953_v26  ;;  %v1955_v1 = vmul.f32 1.442695, %v1908_v56  ;;  %v1909_v57 = vsub.f32 %v11430_v19, %v1847_v9  ;;  %2014 = vadd.xlane.f32.xlu0 %v2013_v51 }
 0x643   : > { %v1850_v3 = vpop.xlane.xlu1 %1849  ;;  %v2016_v42 = vsel %vm1056_vm1, %v11544_v21, 0.0 }
 0x644   : > { %v11549_v58 = vpop.eup %10028  ;;  %10038 = vpow2.f32 %v1955_v1  ;;  %v1957_v40 = vmul.f32 1.442695, %v1909_v57  ;;  %v1910_v50 = vsub.f32 %v11436_v54, %v1850_v3  ;;  %2017 = vadd.xlane.f32.xlu1 %v2016_v42 }
 0x645   : > { %v1853_v52 = vpop.xlane.xlu0 %1852  ;;  %v2019_v30 = vsel %vm1056_vm1, %v11549_v58, 0.0 }
 0x646   : > { %v11554_v0 = vpop.eup %10030  ;;  %10040 = vpow2.f32 %v1957_v40  ;;  %v1959_v19 = vmul.f32 1.442695, %v1910_v50  ;;  %v1911_v4 = vsub.f32 %v11426_v45, %v1853_v52  ;;  %2020 = vadd.xlane.f32.xlu0 %v2019_v30 }
 0x647   : > { %v1856_v12 = vpop.xlane.xlu1 %1855  ;;  %v2022_v14 = vsel %vm1056_vm1, %v11554_v0, 0.0 }
 0x648   : > { %v11559_v43 = vpop.eup %10032  ;;  %10042 = vpow2.f32 %v1959_v19  ;;  %v1961_v54 = vmul.f32 1.442695, %v1911_v4  ;;  %v1912_v15 = vsub.f32 %v11432_v31, %v1856_v12  ;;  %2023 = vadd.xlane.f32.xlu1 %v2022_v14 }
 0x649   : > { %v1859_v36 = vpop.xlane.xlu0 %1858  ;;  %v2025_v26 = vsel %vm1056_vm1, %v11559_v43, 0.0 }
 0x64a   : > { %v11564_v56 = vpop.eup %10034  ;;  %10044 = vpow2.f32 %v1961_v54  ;;  %v1963_v45 = vmul.f32 1.442695, %v1912_v15  ;;  %v1913_v9 = vsub.f32 %v11446_v20, %v1859_v36  ;;  %2026 = vadd.xlane.f32.xlu0 %v2025_v26 }
 0x64b   : > { %v1862_v51 = vpop.xlane.xlu1 %1861  ;;  %v2028_v1 = vsel %vm1056_vm1, %v11564_v56, 0.0 }
 0x64c   : > { %v11569_v57 = vpop.eup %10036  ;;  %10046 = vpow2.f32 %v1963_v45  ;;  %v1965_v31 = vmul.f32 1.442695, %v1913_v9  ;;  %v1914_v3 = vsub.f32 %v11452_v60, %v1862_v51  ;;  %2029 = vadd.xlane.f32.xlu1 %v2028_v1 }
 0x64d   : > { %v1865_v42 = vpop.xlane.xlu0 %1864  ;;  %v2031_v40 = vsel %vm1056_vm1, %v11569_v57, 0.0 }
 0x64e   : > { %v11574_v50 = vpop.eup %10038  ;;  %10048 = vpow2.f32 %v1965_v31  ;;  %v1967_v20 = vmul.f32 1.442695, %v1914_v3  ;;  %v1915_v52 = vsub.f32 %v11442_v62, %v1865_v42  ;;  %2032 = vadd.xlane.f32.xlu0 %v2031_v40 }
 0x64f   : > { %v1868_v30 = vpop.xlane.xlu1 %1867  ;;  %v2034_v19 = vsel %vm1056_vm1, %v11574_v50, 0.0 }
 0x650   : > { %v11579_v4 = vpop.eup %10040  ;;  %10050 = vpow2.f32 %v1967_v20  ;;  %v1969_v60 = vmul.f32 1.442695, %v1915_v52  ;;  %v1916_v12 = vsub.f32 %v11448_v25, %v1868_v30  ;;  %2035 = vadd.xlane.f32.xlu1 %v2034_v19 }
 0x651   : > { %v1871_v14 = vpop.xlane.xlu0 %1870  ;;  %v2037_v54 = vsel %vm1056_vm1, %v11579_v4, 0.0 }
 0x652   : > { %v11584_v15 = vpop.eup %10042  ;;  %10052 = vpow2.f32 %v1969_v60  ;;  %v1971_v62 = vmul.f32 1.442695, %v1916_v12  ;;  %v1917_v36 = vsub.f32 %v11462_v55, %v1871_v14  ;;  %2038 = vadd.xlane.f32.xlu0 %v2037_v54 }
 0x653   : > { %v1874_v26 = vpop.xlane.xlu1 %1873  ;;  %v2040_v45 = vsel %vm1056_vm1, %v11584_v15, 0.0 }
 0x654   : > { %v11589_v9 = vpop.eup %10044  ;;  %10054 = vpow2.f32 %v1971_v62  ;;  %v1973_v25 = vmul.f32 1.442695, %v1917_v36  ;;  %v1918_v51 = vsub.f32 %v11468_v29, %v1874_v26  ;;  %2041 = vadd.xlane.f32.xlu1 %v2040_v45 }
 0x655   : > { %v1877_v1 = vpop.xlane.xlu0 %1876  ;;  %v2043_v31 = vsel %vm1056_vm1, %v11589_v9, 0.0 }
 0x656   : > { %v11594_v3 = vpop.eup %10046  ;;  %10056 = vpow2.f32 %v1973_v25  ;;  %v1975_v55 = vmul.f32 1.442695, %v1918_v51  ;;  %v1919_v42 = vsub.f32 %v11458_v13, %v1877_v1  ;;  %2044 = vadd.xlane.f32.xlu0 %v2043_v31 }
 0x657   : > { %v1880_v40 = vpop.xlane.xlu1 %1879  ;;  %v2046_v20 = vsel %vm1056_vm1, %v11594_v3, 0.0 }
 0x658   : > { %v11599_v52 = vpop.eup %10048  ;;  %10058 = vpow2.f32 %v1975_v55  ;;  %v1977_v29 = vmul.f32 1.442695, %v1919_v42  ;;  %v1920_v30 = vsub.f32 %v11464_v22, %v1880_v40  ;;  %2047 = vadd.xlane.f32.xlu1 %v2046_v20 }
 0x659   : > { %v1883_v19 = vpop.xlane.xlu0 %1882  ;;  %v2049_v60 = vsel %vm1056_vm1, %v11599_v52, 0.0 }
 0x65a   : > { %v11604_v12 = vpop.eup %10050  ;;  %10060 = vpow2.f32 %v1977_v29  ;;  %v1979_v13 = vmul.f32 1.442695, %v1920_v30  ;;  %v1921_v14 = vsub.f32 %v11478_v24, %v1883_v19  ;;  %2050 = vadd.xlane.f32.xlu0 %v2049_v60 }
 0x65b   : > { %v1886_v54 = vpop.xlane.xlu1 %1885  ;;  %v2052_v62 = vsel %vm1056_vm1, %v11604_v12, 0.0 }
 0x65c   : > { %v11609_v36 = vpop.eup %10052  ;;  %10062 = vpow2.f32 %v1979_v13  ;;  %v1981_v22 = vmul.f32 1.442695, %v1921_v14  ;;  %v1922_v26 = vsub.f32 %v11484_v35, %v1886_v54  ;;  %2053 = vadd.xlane.f32.xlu1 %v2052_v62 }
 0x65d   : > { %v1889_v45 = vpop.xlane.xlu0 %1888  ;;  %v2055_v25 = vsel %vm1056_vm1, %v11609_v36, 0.0 }
 0x65e   : > { %v11614_v51 = vpop.eup %10054  ;;  %10064 = vpow2.f32 %v1981_v22  ;;  %v1983_v24 = vmul.f32 1.442695, %v1922_v26  ;;  %v1923_v1 = vsub.f32 %v11474_v2, %v1889_v45  ;;  %2056 = vadd.xlane.f32.xlu0 %v2055_v25 }
 0x65f   : > { %v1892_v31 = vpop.xlane.xlu1 %1891  ;;  %v2058_v55 = vsel %vm1056_vm1, %v11614_v51, 0.0 }
 0x660   : > { %v11619_v42 = vpop.eup %10056  ;;  %10066 = vpow2.f32 %v1983_v24  ;;  %v1985_v35 = vmul.f32 1.442695, %v1923_v1  ;;  %v1924_v40 = vsub.f32 %v11480_v44, %v1892_v31  ;;  %2059 = vadd.xlane.f32.xlu1 %v2058_v55 }
 0x661   : > { %v2061_v20 = vsel %vm1056_vm1, %v11619_v42, 0.0 }
 0x662   : > { %v11624_v29 = vpop.eup %10058  ;;  %10068 = vpow2.f32 %v1985_v35  ;;  %v1987_v30 = vmul.f32 1.442695, %v1924_v40  ;;  %2062 = vadd.xlane.f32.xlu0 %v2061_v20 }
 0x663   : > { %v2064_v2 = vsel %vm1056_vm1, %v11624_v29, 0.0 }
 0x664   : > { %v11628_v19 = vpop.eup %10060  ;;  %10070 = vpow2.f32 %v1987_v30  ;;  %2065 = vadd.xlane.f32.xlu1 %v2064_v2 }
 0x665   : > { %v2067_v60 = vsel %vm1056_vm1, %v11628_v19, 0.0 }
 0x666   : > { %v11632_v44 = vpop.eup %10062  ;;  %2068 = vadd.xlane.f32.xlu0 %v2067_v60 }
 0x667   : > { %v2070_v13 = vsel %vm1056_vm1, %v11632_v44, 0.0 }
 0x668   : > { %v11636_v14 = vpop.eup %10064  ;;  %2071 = vadd.xlane.f32.xlu1 %v2070_v13 }
 0x669   : > { %v2073_v54 = vsel %vm1056_vm1, %v11636_v14, 0.0 }
 0x66a   : > { %v11640_v62 = vpop.eup %10066  ;;  %2074 = vadd.xlane.f32.xlu0 %v2073_v54 }
 0x66b   : > { %v2076_v22 = vsel %vm1056_vm1, %v11640_v62, 0.0 }
 0x66c   : > { %v11644_v26 = vpop.eup %10068  ;;  %2077 = vadd.xlane.f32.xlu1 %v2076_v22 }
 0x66d   : > { %v2079_v45 = vsel %vm1056_vm1, %v11644_v26, 0.0 }
 0x66e   : > { %v11648_v25 = vpop.eup %10070  ;;  %2080 = vadd.xlane.f32.xlu0 %v2079_v45 }
 0x66f   : > { %v2082_v24 = vsel %vm1056_vm1, %v11648_v25, 0.0 }
 0x670   : > { %2083 = vadd.xlane.f32.xlu1 %v2082_v24 }
 0x6bf   : > { %v1991_v1 = vpop.xlane.xlu0 %1990 }
 0x6c0   : > { %10072 = vrcp.f32 %v1991_v1 }
 0x6c1   : > { %v1994_v31 = vpop.xlane.xlu1 %1993 }
 0x6c2   : > { %10074 = vrcp.f32 %v1994_v31 }
 0x6c3   : > { %v1997_v55 = vpop.xlane.xlu0 %1996 }
 0x6c4   : > { %10076 = vrcp.f32 %v1997_v55 }
 0x6c5   : > { %v2000_v35 = vpop.xlane.xlu1 %1999 }
 0x6c6   : > { %10078 = vrcp.f32 %v2000_v35 }
 0x6c7   : > { %v2003_v40 = vpop.xlane.xlu0 %2002 }
 0x6c8   : > { %10080 = vrcp.f32 %v2003_v40 }
 0x6c9   : > { %v2006_v20 = vpop.xlane.xlu1 %2005 }
 0x6ca   : > { %v10073_v30 = vpop.eup %10072  ;;  %10082 = vrcp.f32 %v2006_v20 }
 0x6cb   : > { %v11653_v2 = vmul.f32 %v10073_v30, %v11499_v59  ;;  %v2009_v60 = vpop.xlane.xlu0 %2008 }
 0x6cc   : > { %v10075_v13 = vpop.eup %10074  ;;  %10084 = vrcp.f32 %v2009_v60 }
 0x6cd   : > { %v11656_v54 = vmul.f32 %v10075_v13, %v11504_v16  ;;  %v2012_v22 = vpop.xlane.xlu1 %2011  ;;  %v2149_v24 = vsel %vm1056_vm1, %v11653_v2, 0.0 }
 0x6ce   : > { %v10077_v45 = vpop.eup %10076  ;;  %10086 = vrcp.f32 %v2012_v22 }
 0x6cf   : > { %v2150_v1 = vsel %vm1056_vm1, %v11656_v54, 0.0  ;;  %v11663_v31 = vmul.f32 %v10077_v45, %v11509_v37  ;;  %v2015_v59 = vpop.xlane.xlu0 %2014 }
 0x6d0   : > { %v10079_v55 = vpop.eup %10078  ;;  %v2151_v35 = vadd.f32 %v2150_v1, %v2149_v24  ;;  %10088 = vrcp.f32 %v2015_v59 }
 0x6d1   : > { %v2152_v16 = vsel %vm1056_vm1, %v11663_v31, 0.0  ;;  %v11668_v40 = vmul.f32 %v10079_v55, %v11514_v61  ;;  %v2018_v20 = vpop.xlane.xlu1 %2017 }
 0x6d2   : > { %v10081_v30 = vpop.eup %10080  ;;  %v2153_v60 = vadd.f32 %v2152_v16, %v2151_v35  ;;  %10090 = vrcp.f32 %v2018_v20 }
 0x6d3   : > { %v2154_v13 = vsel %vm1056_vm1, %v11668_v40, 0.0  ;;  %v11673_v37 = vmul.f32 %v10081_v30, %v11519_v23  ;;  %v2021_v22 = vpop.xlane.xlu0 %2020 }
 0x6d4   : > { %v10083_v45 = vpop.eup %10082  ;;  %v2155_v24 = vadd.f32 %v2154_v13, %v2153_v60  ;;  %10092 = vrcp.f32 %v2021_v22 }
 0x6d5   : > { %v2156_v1 = vsel %vm1056_vm1, %v11673_v37, 0.0  ;;  %v11678_v61 = vmul.f32 %v10083_v45, %v11524_v8  ;;  %v2024_v59 = vpop.xlane.xlu1 %2023 }
 0x6d6   : > { %v10085_v55 = vpop.eup %10084  ;;  %v2157_v35 = vadd.f32 %v2156_v1, %v2155_v24  ;;  %10094 = vrcp.f32 %v2024_v59 }
 0x6d7   : > { %v2158_v16 = vsel %vm1056_vm1, %v11678_v61, 0.0  ;;  %v11683_v23 = vmul.f32 %v10085_v55, %v11529_v63  ;;  %v2027_v20 = vpop.xlane.xlu0 %2026 }
 0x6d8   : > { %v10087_v30 = vpop.eup %10086  ;;  %v2159_v60 = vadd.f32 %v2158_v16, %v2157_v35  ;;  %10096 = vrcp.f32 %v2027_v20 }
 0x6d9   : > { %v2160_v13 = vsel %vm1056_vm1, %v11683_v23, 0.0  ;;  %v11688_v8 = vmul.f32 %v10087_v30, %v11534_v41  ;;  %v2030_v22 = vpop.xlane.xlu1 %2029 }
 0x6da   : > { %v10089_v45 = vpop.eup %10088  ;;  %v2161_v24 = vadd.f32 %v2160_v13, %v2159_v60  ;;  %10098 = vrcp.f32 %v2030_v22 }
 0x6db   : > { %v2162_v1 = vsel %vm1056_vm1, %v11688_v8, 0.0  ;;  %v11693_v63 = vmul.f32 %v10089_v45, %v11539_v34  ;;  %v2033_v59 = vpop.xlane.xlu0 %2032 }
 0x6dc   : > { %v10091_v55 = vpop.eup %10090  ;;  %v2163_v35 = vadd.f32 %v2162_v1, %v2161_v24  ;;  %10100 = vrcp.f32 %v2033_v59 }
 0x6dd   : > { %v2164_v16 = vsel %vm1056_vm1, %v11693_v63, 0.0  ;;  %v11698_v41 = vmul.f32 %v10091_v55, %v11544_v21  ;;  %v2036_v20 = vpop.xlane.xlu1 %2035 }
 0x6de   : > { %v10093_v30 = vpop.eup %10092  ;;  %v2165_v60 = vadd.f32 %v2164_v16, %v2163_v35  ;;  %10102 = vrcp.f32 %v2036_v20 }
 0x6df   : > { %v2166_v13 = vsel %vm1056_vm1, %v11698_v41, 0.0  ;;  %v11703_v34 = vmul.f32 %v10093_v30, %v11549_v58  ;;  %v2039_v22 = vpop.xlane.xlu0 %2038 }
 0x6e0   : > { %v10095_v45 = vpop.eup %10094  ;;  %v2167_v24 = vadd.f32 %v2166_v13, %v2165_v60  ;;  %10104 = vrcp.f32 %v2039_v22 }
 0x6e1   : > { %v2168_v1 = vsel %vm1056_vm1, %v11703_v34, 0.0  ;;  %v11708_v21 = vmul.f32 %v10095_v45, %v11554_v0  ;;  %v2042_v59 = vpop.xlane.xlu1 %2041 }
 0x6e2   : > { %v10097_v55 = vpop.eup %10096  ;;  %v2169_v35 = vadd.f32 %v2168_v1, %v2167_v24  ;;  %10106 = vrcp.f32 %v2042_v59 }
 0x6e3   : > { %v2170_v16 = vsel %vm1056_vm1, %v11708_v21, 0.0  ;;  %v11713_v58 = vmul.f32 %v10097_v55, %v11559_v43  ;;  %v2045_v20 = vpop.xlane.xlu0 %2044 }
 0x6e4   : > { %v10099_v30 = vpop.eup %10098  ;;  %v2171_v60 = vadd.f32 %v2170_v16, %v2169_v35  ;;  %10108 = vrcp.f32 %v2045_v20 }
 0x6e5   : > { %v2172_v13 = vsel %vm1056_vm1, %v11713_v58, 0.0  ;;  %v11718_v0 = vmul.f32 %v10099_v30, %v11564_v56  ;;  %v2048_v22 = vpop.xlane.xlu1 %2047 }
 0x6e6   : > { %v10101_v45 = vpop.eup %10100  ;;  %v2173_v24 = vadd.f32 %v2172_v13, %v2171_v60  ;;  %10110 = vrcp.f32 %v2048_v22 }
 0x6e7   : > { %v2174_v1 = vsel %vm1056_vm1, %v11718_v0, 0.0  ;;  %v11723_v43 = vmul.f32 %v10101_v45, %v11569_v57  ;;  %v2051_v59 = vpop.xlane.xlu0 %2050 }
 0x6e8   : > { %v10103_v55 = vpop.eup %10102  ;;  %v2175_v35 = vadd.f32 %v2174_v1, %v2173_v24  ;;  %10112 = vrcp.f32 %v2051_v59 }
 0x6e9   : > { %v2176_v16 = vsel %vm1056_vm1, %v11723_v43, 0.0  ;;  %v11728_v56 = vmul.f32 %v10103_v55, %v11574_v50  ;;  %v2054_v20 = vpop.xlane.xlu1 %2053 }
 0x6ea   : > { %v10105_v30 = vpop.eup %10104  ;;  %10114 = vrcp.f32 %v2054_v20  ;;  %v2177_v60 = vadd.f32 %v2176_v16, %v2175_v35 }
 0x6eb   : > { %v2057_v13 = vpop.xlane.xlu0 %2056  ;;  %v11731_v22 = vmul.f32 %v10105_v30, %v11579_v4  ;;  %v2178_v57 = vsel %vm1056_vm1, %v11728_v56, 0.0 }
 0x6ec   : > { %v10107_v45 = vpop.eup %10106  ;;  %10116 = vrcp.f32 %v2057_v13  ;;  %v2179_v24 = vadd.f32 %v2178_v57, %v2177_v60 }
 0x6ed   : > { %v2060_v1 = vpop.xlane.xlu1 %2059  ;;  %v11736_v59 = vmul.f32 %v10107_v45, %v11584_v15  ;;  %v2180_v50 = vsel %vm1056_vm1, %v11731_v22, 0.0 }
 0x6ee   : > { %v10109_v55 = vpop.eup %10108  ;;  %10118 = vrcp.f32 %v2060_v1  ;;  %v2181_v35 = vadd.f32 %v2180_v50, %v2179_v24 }
 0x6ef   : > { %v11741_v16 = vmul.f32 %v10109_v55, %v11589_v9  ;;  %v2063_v4 = vpop.xlane.xlu0 %2062  ;;  %v2182_v20 = vsel %vm1056_vm1, %v11736_v59, 0.0 }
 0x6f0   : > { %v10111_v30 = vpop.eup %10110  ;;  %10120 = vrcp.f32 %v2063_v4  ;;  %v2183_v60 = vadd.f32 %v2182_v20, %v2181_v35 }
 0x6f1   : > { %v11746_v13 = vmul.f32 %v10111_v30, %v11594_v3  ;;  %v2066_v15 = vpop.xlane.xlu1 %2065  ;;  %v2184_v57 = vsel %vm1056_vm1, %v11741_v16, 0.0 }
 0x6f2   : > { %v10113_v45 = vpop.eup %10112  ;;  %10122 = vrcp.f32 %v2066_v15  ;;  %v2185_v24 = vadd.f32 %v2184_v57, %v2183_v60 }
 0x6f3   : > { %v2186_v9 = vsel %vm1056_vm1, %v11746_v13, 0.0  ;;  %v11753_v1 = vmul.f32 %v10113_v45, %v11599_v52  ;;  %v2069_v50 = vpop.xlane.xlu0 %2068 }
 0x6f4   : > { %v10115_v55 = vpop.eup %10114  ;;  %10124 = vrcp.f32 %v2069_v50  ;;  %v2187_v35 = vadd.f32 %v2186_v9, %v2185_v24 }
 0x6f5   : > { %v2188_v3 = vsel %vm1056_vm1, %v11753_v1, 0.0  ;;  %v11758_v4 = vmul.f32 %v10115_v55, %v11604_v12  ;;  %v2072_v20 = vpop.xlane.xlu1 %2071 }
 0x6f6   : > { %v10117_v30 = vpop.eup %10116  ;;  %10126 = vrcp.f32 %v2072_v20  ;;  %v2189_v60 = vadd.f32 %v2188_v3, %v2187_v35 }
 0x6f7   : > { %v2190_v15 = vsel %vm1056_vm1, %v11758_v4, 0.0  ;;  %v11763_v52 = vmul.f32 %v10117_v30, %v11609_v36  ;;  %v2075_v57 = vpop.xlane.xlu0 %2074 }
 0x6f8   : > { %v10119_v45 = vpop.eup %10118  ;;  %10128 = vrcp.f32 %v2075_v57  ;;  %v2191_v24 = vadd.f32 %v2190_v15, %v2189_v60 }
 0x6f9   : > { %v2192_v9 = vsel %vm1056_vm1, %v11763_v52, 0.0  ;;  %v11768_v12 = vmul.f32 %v10119_v45, %v11614_v51  ;;  %v2078_v50 = vpop.xlane.xlu1 %2077 }
 0x6fa   : > { %v10121_v55 = vpop.eup %10120  ;;  %10130 = vrcp.f32 %v2078_v50  ;;  %v2193_v35 = vadd.f32 %v2192_v9, %v2191_v24 }
 0x6fb   : > { %v2194_v3 = vsel %vm1056_vm1, %v11768_v12, 0.0  ;;  %v11773_v36 = vmul.f32 %v10121_v55, %v11619_v42  ;;  %v2081_v20 = vpop.xlane.xlu0 %2080 }
 0x6fc   : > { %v10123_v30 = vpop.eup %10122  ;;  %10132 = vrcp.f32 %v2081_v20  ;;  %v2195_v60 = vadd.f32 %v2194_v3, %v2193_v35 }
 0x6fd   : > { %v2196_v15 = vsel %vm1056_vm1, %v11773_v36, 0.0  ;;  %v11778_v51 = vmul.f32 %v10123_v30, %v11624_v29  ;;  %v2084_v57 = vpop.xlane.xlu1 %2083 }
 0x6fe   : > { %v10125_v45 = vpop.eup %10124  ;;  %10134 = vrcp.f32 %v2084_v57  ;;  %v2197_v24 = vadd.f32 %v2196_v15, %v2195_v60 }
 0x6ff   : > { %v2198_v9 = vsel %vm1056_vm1, %v11778_v51, 0.0  ;;  %v11783_v42 = vmul.f32 %v10125_v45, %v11628_v19 }
 0x700   : > { %v10127_v50 = vpop.eup %10126  ;;  %v2199_v55 = vadd.f32 %v2198_v9, %v2197_v24 }
 0x701   : > { %v2200_v35 = vsel %vm1056_vm1, %v11783_v42, 0.0  ;;  %v11788_v3 = vmul.f32 %v10127_v50, %v11632_v44 }
 0x702   : > { %v10129_v29 = vpop.eup %10128  ;;  %v2201_v20 = vadd.f32 %v2200_v35, %v2199_v55 }
 0x703   : > { %v2202_v30 = vsel %vm1056_vm1, %v11788_v3, 0.0  ;;  %v11793_v60 = vmul.f32 %v10129_v29, %v11636_v14 }
 0x704   : > { %v10131_v15 = vpop.eup %10130  ;;  %v2203_v57 = vadd.f32 %v2202_v30, %v2201_v20 }
 0x705   : > { %v2204_v19 = vsel %vm1056_vm1, %v11793_v60, 0.0  ;;  %v11798_v45 = vmul.f32 %v10131_v15, %v11640_v62 }
 0x706   : > { %v10133_v24 = vpop.eup %10132  ;;  %v2205_v9 = vadd.f32 %v2204_v19, %v2203_v57 }
 0x707   : > { %v2206_v44 = vsel %vm1056_vm1, %v11798_v45, 0.0  ;;  %v11803_v50 = vmul.f32 %v10133_v24, %v11644_v26 }
 0x708   : > { %v10135_v55 = vpop.eup %10134  ;;  %v2207_v35 = vadd.f32 %v2206_v44, %v2205_v9 }
 0x709   : > { %v2208_v14 = vsel %vm1056_vm1, %v11803_v50, 0.0  ;;  %v11808_v29 = vmul.f32 %v10135_v55, %v11648_v25 }
 0x70a   : > { %v2209_v20 = vadd.f32 %v2208_v14, %v2207_v35 }
 0x70b   : > { %v2210_v62 = vsel %vm1056_vm1, %v11808_v29, 0.0 }
 0x70c   : > { %v2211_v30 = vadd.f32 %v2210_v62, %v2209_v20 }
 0x70e   : > { %v2212_v15 = vrot.slane %v2211_v30, 4 }
 0x710   : > { %v2213_v57 = vadd.f32 %v2212_v15, %v2211_v30 }
 0x712   : > { %v2214_v19 = vrot.slane %v2213_v57, 2 }
 0x714   : > { %v2215_v48 = vadd.f32 %v2214_v19, %v2213_v57 }
 0x716   : > { %v2216_v53 = vrot.slane %v2215_v48, 1 }
 0x718   : > { %v2217_v26 = vadd.f32 %v2216_v53, %v2215_v48 }
 0x71a   : > { %v2218_v24 = vadd.f32 1e-06, %v2217_v26 }
 0x71c   : > { %10136 = vrcp.f32 %v2218_v24 }
 0x726   : > { %v10137_v9 = vpop.eup %10136 }
 0x727   : > { %v2236_v44 = vmul.f32 %v10137_v9, %v11731_v22  ;;  %v2237_v38 = vmul.f32 %v10137_v9, %v11736_v59  ;;  %v2220_v25 = vmul.f32 %v10137_v9, %v11653_v2  ;;  %v2221_v55 = vmul.f32 %v10137_v9, %v11656_v54 }
 0x728   : > { %v2238_v35 = vmul.f32 %v10137_v9, %v11741_v16  ;;  %v2239_v14 = vmul.f32 %v10137_v9, %v11746_v13  ;;  %v2222_v30 = vmul.f32 %v10137_v9, %v11663_v31  ;;  %v2223_v48 = vmul.f32 %v10137_v9, %v11668_v40 }
 0x729   : > { %v2260_v20 = vpack.c.bf16 %v2237_v38, %v2236_v44  ;;  %v2252_v62 = vpack.c.bf16 %v2221_v55, %v2220_v25  ;;  %v2240_v22 = vmul.f32 %v10137_v9, %v11753_v1  ;;  %v2241_v59 = vmul.f32 %v10137_v9, %v11758_v4 }
 0x72a   : > { %v2261_v53 = vpack.c.bf16 %v2239_v14, %v2238_v35  ;;  %v2253_v2 = vpack.c.bf16 %v2223_v48, %v2222_v30  ;;  %v2224_v54 = vmul.f32 %v10137_v9, %v11673_v37  ;;  %v2225_v16 = vmul.f32 %v10137_v9, %v11678_v61 }
 0x72b   : > { %8977 = vmatprep.subr.bf16.mxu0 %v2260_v20  ;;  %v2262_v13 = vpack.c.bf16 %v2241_v59, %v2240_v22  ;;  %v2242_v38 = vmul.f32 %v10137_v9, %v11763_v52  ;;  %v2243_v31 = vmul.f32 %v10137_v9, %v11768_v12  ;;  %v2226_v15 = vmul.f32 %v10137_v9, %v11683_v23 }
 0x72c   : > { %8978 = vmatpush3.bf16.msra.mxu0 %v2252_v62  ;;  %v2254_v40 = vpack.c.bf16 %v2225_v16, %v2224_v54  ;;  %v2227_v1 = vmul.f32 %v10137_v9, %v11688_v8  ;;  %v2244_v57 = vmul.f32 %v10137_v9, %v11773_v36  ;;  %v2245_v19 = vmul.f32 %v10137_v9, %v11778_v51 }
 0x72d   : > { %8979 = vmatprep.subr.bf16.mxu0 %v2261_v53  ;;  %v2263_v4 = vpack.c.bf16 %v2243_v31, %v2242_v38  ;;  %v2228_v61 = vmul.f32 %v10137_v9, %v11693_v63  ;;  %v2229_v52 = vmul.f32 %v10137_v9, %v11698_v41  ;;  %v2246_v26 = vmul.f32 %v10137_v9, %v11783_v42 }
 0x72e   : > { %v2255_v37 = vpack.c.bf16 %v2227_v1, %v2226_v15  ;;  %v2264_v12 = vpack.c.bf16 %v2245_v19, %v2244_v57  ;;  %v2247_v24 = vmul.f32 %v10137_v9, %v11788_v3  ;;  %v2230_v8 = vmul.f32 %v10137_v9, %v11703_v34 }
 0x72f   : > { %v2256_v23 = vpack.c.bf16 %v2229_v52, %v2228_v61  ;;  %v2231_v36 = vmul.f32 %v10137_v9, %v11708_v21  ;;  %v2248_v44 = vmul.f32 %v10137_v9, %v11793_v60  ;;  %v2249_v25 = vmul.f32 %v10137_v9, %v11798_v45 }
 0x730   : > { %8980 = vmatpush3.bf16.msra.mxu0 %v2253_v2  ;;  %v2265_v51 = vpack.c.bf16 %v2247_v24, %v2246_v26  ;;  %v2232_v41 = vmul.f32 %v10137_v9, %v11713_v58  ;;  %v2233_v42 = vmul.f32 %v10137_v9, %v11718_v0  ;;  %v2250_v55 = vmul.f32 %v10137_v9, %v11803_v50  ;;  %v14364_v58 = vld [vmem:[#allocation7_spill] sm:$0xff] }
 0x731   : > { %8981 = vmatprep.subr.bf16.mxu0 %v2262_v13  ;;  %v2257_v63 = vpack.c.bf16 %v2231_v36, %v2230_v8  ;;  %v2266_v3 = vpack.c.bf16 %v2249_v25, %v2248_v44  ;;  %v2251_v35 = vmul.f32 %v10137_v9, %v11808_v29  ;;  %v2234_v21 = vmul.f32 %v10137_v9, %v11723_v43 }
 0x732   : > { %v2258_v34 = vpack.c.bf16 %v2233_v42, %v2232_v41  ;;  %v2235_v60 = vmul.f32 %v10137_v9, %v11728_v56 }
 0x733   : > { %v2267_v45 = vpack.c.bf16 %v2251_v35, %v2250_v55 }
 0x734   : > { %8982 = vmatpush3.bf16.msra.mxu0 %v2254_v40  ;;  %v2259_v14 = vpack.c.bf16 %v2235_v60, %v2234_v21 }
 0x735   : > { %8983 = vmatprep.subr.bf16.mxu0 %v2263_v4 }
 0x738   : > { %8984 = vmatpush3.bf16.msra.mxu0 %v2255_v37 }
 0x739   : > { %8985 = vmatprep.subr.bf16.mxu0 %v2264_v12 }
 0x73c   : > { %8986 = vmatpush3.bf16.msra.mxu0 %v2256_v23 }
 0x73d   : > { %8987 = vmatprep.subr.bf16.mxu0 %v2265_v51 }
 0x740   : > { %8988 = vmatpush3.bf16.msra.mxu0 %v2257_v63 }
 0x741   : > { %8989 = vmatprep.subr.bf16.mxu0 %v2266_v3 }
 0x744   : > { %8990 = vmatpush3.bf16.msra.mxu0 %v2258_v34 }
 0x745   : > { %8991 = vmatprep.subr.bf16.mxu0 %v2267_v45 }
 0x748   : > { %8992 = vmatpush3.bf16.msra.mxu0 %v2259_v14 }
 0x74b   : > { %2301 = vmatmul.mubr.bf16.vlgmr.msra.gmra.mrb[40].mxu0 %v11303_v32 }
 0x74c   : > { %2308 = vmatprep.mubr.bf16.mxu0 %v11305_v11 }
 0x753   : > { %2309 = vmatmul.mubr.bf16.gmra.mrb[44].mxu0 %v11309_v33 }
 0x754   : > { %2316 = vmatprep.mubr.bf16.mxu0 %v11311_v47 }
 0x75b   : > { %2317 = vmatmul.mubr.bf16.gmra.mrb[48].mxu0 %v11315_v6 }
 0x75c   : > { %2324 = vmatprep.mubr.bf16.mxu0 %v11317_v46 }
 0x763   : > { %2325 = vmatmul.mubr.bf16.gmra.mrb[52].mxu0 %v11321_v10 }
 0x764   : > { %9509 = vmatprep.mubr.msk.bf16.mxu0 %vm577_vm0, %v14364_v58 }
 0x81e   : > { %v8993_v0 = vpop.f32.mrb[40].mxu0 }
 0x81f   : > { %v8994_v43 = vpop.f32.mrb[41].mxu0 }
 0x820   : > { %v8995_v56 = vadd.f32 %v8994_v43, %v8993_v0  ;;  %v8996_v50 = vpop.f32.mrb[42].mxu0 }
 0x821   : > { %v8997_v29 = vpop.f32.mrb[43].mxu0 }
 0x822   : > { %v2333_v9 = vmul.f32 %v8995_v56, %v8995_v56  ;;  %v8998_v20 = vadd.f32 %v8997_v29, %v8996_v50 }
 0x824   : > { %v2334_v62 = vmul.f32 %v8998_v20, %v8998_v20  ;;  %v2341_v30 = vsel %vm1056_vm1, %v2333_v9, 0.0 }
 0x826   : > { %v2342_v48 = vsel %vm1056_vm1, %v2334_v62, 0.0  ;;  %v8999_v53 = vpop.f32.mrb[44].mxu0 }
 0x827   : > { %v2343_v22 = vadd.f32 %v2342_v48, %v2341_v30  ;;  %v9000_v59 = vpop.f32.mrb[45].mxu0 }
 0x828   : > { %v9001_v2 = vadd.f32 %v9000_v59, %v8999_v53  ;;  %v9002_v54 = vpop.f32.mrb[46].mxu0 }
 0x829   : > { %v9003_v16 = vpop.f32.mrb[47].mxu0 }
 0x82a   : > { %v2335_v13 = vmul.f32 %v9001_v2, %v9001_v2  ;;  %v9004_v38 = vadd.f32 %v9003_v16, %v9002_v54 }
 0x82c   : > { %v2344_v31 = vsel %vm1056_vm1, %v2335_v13, 0.0  ;;  %v2336_v40 = vmul.f32 %v9004_v38, %v9004_v38 }
 0x82d   : > { %v2345_v15 = vadd.f32 %v2344_v31, %v2343_v22 }
 0x82e   : > { %v2346_v1 = vsel %vm1056_vm1, %v2336_v40, 0.0  ;;  %v9005_v4 = vpop.f32.mrb[48].mxu0 }
 0x82f   : > { %v2347_v57 = vadd.f32 %v2346_v1, %v2345_v15  ;;  %v9006_v19 = vpop.f32.mrb[49].mxu0 }
 0x830   : > { %v9007_v37 = vadd.f32 %v9006_v19, %v9005_v4  ;;  %v9008_v61 = vpop.f32.mrb[50].mxu0 }
 0x831   : > { %v9009_v52 = vpop.f32.mrb[51].mxu0 }
 0x832   : > { %v2337_v12 = vmul.f32 %v9007_v37, %v9007_v37  ;;  %v9010_v26 = vadd.f32 %v9009_v52, %v9008_v61 }
 0x834   : > { %v2348_v24 = vsel %vm1056_vm1, %v2337_v12, 0.0  ;;  %v2338_v23 = vmul.f32 %v9010_v26, %v9010_v26 }
 0x835   : > { %v2349_v8 = vadd.f32 %v2348_v24, %v2347_v57 }
 0x836   : > { %v2350_v36 = vsel %vm1056_vm1, %v2338_v23, 0.0  ;;  %v9011_v51 = vpop.f32.mrb[52].mxu0 }
 0x837   : > { %v2351_v44 = vadd.f32 %v2350_v36, %v2349_v8  ;;  %v9012_v25 = vpop.f32.mrb[53].mxu0 }
 0x838   : > { %v9013_v63 = vadd.f32 %v9012_v25, %v9011_v51  ;;  %v9014_v41 = vpop.f32.mrb[54].mxu0 }
 0x839   : > { %v9015_v42 = vpop.f32.mrb[55].mxu0 }
 0x83a   : > { %v2339_v3 = vmul.f32 %v9013_v63, %v9013_v63  ;;  %v9016_v55 = vadd.f32 %v9015_v42, %v9014_v41 }
 0x83c   : > { %v2352_v35 = vsel %vm1056_vm1, %v2339_v3, 0.0  ;;  %v2340_v34 = vmul.f32 %v9016_v55, %v9016_v55 }
 0x83d   : > { %v2353_v21 = vadd.f32 %v2352_v35, %v2351_v44 }
 0x83e   : > { %v2354_v60 = vsel %vm1056_vm1, %v2340_v34, 0.0 }
 0x83f   : > { %v2355_v45 = vadd.f32 %v2354_v60, %v2353_v21 }
 0x841   : > { %v2356_v14 = vrot.slane %v2355_v45, 4 }
 0x843   : > { %v2357_v58 = vadd.f32 %v2356_v14, %v2355_v45 }
 0x845   : > { %v2358_v0 = vrot.slane %v2357_v58, 2 }
 0x847   : > { %v2359_v43 = vadd.f32 %v2358_v0, %v2357_v58 }
 0x849   : > { %v2360_v50 = vrot.slane %v2359_v43, 1 }
 0x84b   : > { %v2361_v29 = vadd.f32 %v2360_v50, %v2359_v43 }
 0x84d   : > { %v2362_v9 = vadd.f32 1e-12, %v2361_v29 }
 0x84f   : > { %10138 = vrsqrt.f32 %v2362_v9 }
 0x859   : > { %v10139_v62 = vpop.eup %10138 }
 0x85a   : > { %v2371_v30 = vmul.f32 %v10139_v62, %v9016_v55  ;;  %v2364_v48 = vmul.f32 %v10139_v62, %v8995_v56  ;;  %v2365_v53 = vmul.f32 %v10139_v62, %v8998_v20  ;;  %v2366_v22 = vmul.f32 %v10139_v62, %v9001_v2 }
 0x85b   : > { %v2367_v59 = vmul.f32 %v10139_v62, %v9004_v38  ;;  %v2368_v54 = vmul.f32 %v10139_v62, %v9007_v37  ;;  %v2369_v16 = vmul.f32 %v10139_v62, %v9010_v26  ;;  %v2370_v13 = vmul.f32 %v10139_v62, %v9013_v63 }
 0x85c   : > { %v2372_v31 = vpack.c.bf16 %v2365_v53, %v2364_v48 }
 0x85d   : > { %v2373_v40 = vpack.c.bf16 %v2367_v59, %v2366_v22  ;;  %v2374_v15 = vpack.c.bf16 %v2369_v16, %v2368_v54  ;;  %v2375_v1 = vpack.c.bf16 %v2371_v30, %v2370_v13 }
 0x85e   : > { %9501 = vmatprep.subr.bf16.mxu0 %v2372_v31 }
 0x85f   : > { %9502 = vmatpush3.bf16.msra.mxu0 %v2372_v31 }
 0x860   : > { %9503 = vmatprep.subr.bf16.mxu0 %v2373_v40 }
 0x863   : > { %9504 = vmatpush3.bf16.msra.mxu0 %v2373_v40 }
 0x864   : > { %9505 = vmatprep.subr.bf16.mxu0 %v2374_v15 }
 0x867   : > { %9506 = vmatpush3.bf16.msra.mxu0 %v2374_v15 }
 0x868   : > { %9507 = vmatprep.subr.bf16.mxu0 %v2375_v1 }
 0x86b   : > { %9508 = vmatpush3.bf16.msra.mxu0 %v2375_v1 }
 0x86e   : > { %9510 = vmatmul.mubr.msk.bf16.vlgmr.msra.gmra.mrb[56].mxu0 %vm577_vm0, %v10714_v49  ;;  %v14365_v49 = vld [vmem:[#allocation11_spill] sm:$0xff] }
 0x86f   : > { %9513 = vmatprep.mubr.msk.bf16.mxu0 %vm577_vm0, %v10738_v7  ;;  %v14366_v7 = vld [vmem:[#allocation13_spill] sm:$0xff] }
 0x876   : > { %9514 = vmatmul.mubr.msk.bf16.gmra.mrb[60].mxu0 %vm577_vm0, %v10734_v5  ;;  %v14367_v5 = vld [vmem:[#allocation12_spill] sm:$0xff] }
 0x877   : > { %9517 = vmatprep.mubr.msk.bf16.mxu0 %vm577_vm0, %v10752_v18  ;;  %v14368_v18 = vld [vmem:[#allocation8_spill] sm:$0xff] }
 0x87e   : > { %9518 = vmatmul.mubr.msk.bf16.gmra.mrb[64].mxu0 %vm577_vm0, %v10750_v17  ;;  %v14369_v17 = vld [vmem:[#allocation6_spill] sm:$0xff] }
 0x87f   : > { %9521 = vmatprep.mubr.msk.bf16.mxu0 %vm577_vm0, %v10764_v28  ;;  %v14370_v28 = vld [vmem:[#allocation10_spill] sm:$0xff] }
 0x886   : > { %9522 = vmatmul.mubr.msk.bf16.gmra.mrb[68].mxu0 %vm577_vm0, %v10762_v27  ;;  %v14371_v27 = vld [vmem:[#allocation9_spill] sm:$0xff] }
 0x887   : > { %9525 = vmatprep.mubr.msk.bf16.mxu0 %vm577_vm0, %v10776_v39 }
 0x88e   : > { %9526 = vmatmul.mubr.msk.bf16.gmra.mrb[72].mxu0 %vm577_vm0, %v14365_v49 }
 0x88f   : > { %9529 = vmatprep.mubr.msk.bf16.mxu0 %vm577_vm0, %v14366_v7 }
 0x896   : > { %9530 = vmatmul.mubr.msk.bf16.gmra.mrb[76].mxu0 %vm577_vm0, %v14367_v5 }
 0x897   : > { %9533 = vmatprep.mubr.msk.bf16.mxu0 %vm577_vm0, %v14368_v18 }
 0x89e   : > { %9534 = vmatmul.mubr.msk.bf16.gmra.mrb[80].mxu0 %vm577_vm0, %v14369_v17 }
 0x89f   : > { %9537 = vmatprep.mubr.msk.bf16.mxu0 %vm577_vm0, %v14370_v28 }
 0x8a6   : > { %9538 = vmatmul.mubr.msk.bf16.gmra.mrb[84].mxu0 %vm577_vm0, %v14371_v27 }
 0x941   : > { %v11891_v39 = vpop.f32.mrb[56].mxu0 }
 0x942   : > { %v11893_v56 = vpop.f32.mrb[57].mxu0  ;;  %v2543_v57 = vsel %vm1056_vm1, %v11891_v39, -inf }
 0x943   : > { %v11895_v20 = vpop.f32.mrb[58].mxu0  ;;  %v2537_v2 = vsel %vm1056_vm1, %v11893_v56, -inf }
 0x944   : > { %2538 = vmax.xlane.f32.xlu0 %v2537_v2  ;;  %v11899_v38 = vpop.f32.mrb[59].mxu0  ;;  %v2546_v37 = vsel %vm1056_vm1, %v11895_v20, -inf }
 0x945   : > { %v2540_v4 = vsel %vm1056_vm1, %v11899_v38, -inf }
 0x946   : > { %2541 = vmax.xlane.f32.xlu1 %v2540_v4 }
 0x948   : > { %2544 = vmax.xlane.f32.xlu0 %v2543_v57 }
 0x949   : > { %v11905_v19 = vpop.f32.mrb[60].mxu0 }
 0x94a   : > { %2547 = vmax.xlane.f32.xlu1 %v2546_v37  ;;  %v11909_v61 = vpop.f32.mrb[61].mxu0  ;;  %v2555_v23 = vsel %vm1056_vm1, %v11905_v19, -inf }
 0x94b   : > { %v11911_v52 = vpop.f32.mrb[62].mxu0  ;;  %v2549_v12 = vsel %vm1056_vm1, %v11909_v61, -inf }
 0x94c   : > { %2550 = vmax.xlane.f32.xlu0 %v2549_v12  ;;  %v11915_v26 = vpop.f32.mrb[63].mxu0  ;;  %v2558_v36 = vsel %vm1056_vm1, %v11911_v52, -inf }
 0x94d   : > { %v2552_v24 = vsel %vm1056_vm1, %v11915_v26, -inf }
 0x94e   : > { %2553 = vmax.xlane.f32.xlu1 %v2552_v24 }
 0x950   : > { %2556 = vmax.xlane.f32.xlu0 %v2555_v23 }
 0x951   : > { %v11921_v8 = vpop.f32.mrb[64].mxu0 }
 0x952   : > { %2559 = vmax.xlane.f32.xlu1 %v2558_v36  ;;  %v11925_v51 = vpop.f32.mrb[65].mxu0  ;;  %v2567_v42 = vsel %vm1056_vm1, %v11921_v8, -inf }
 0x953   : > { %v11927_v44 = vpop.f32.mrb[66].mxu0  ;;  %v2561_v25 = vsel %vm1056_vm1, %v11925_v51, -inf }
 0x954   : > { %2562 = vmax.xlane.f32.xlu0 %v2561_v25  ;;  %v11931_v63 = vpop.f32.mrb[67].mxu0  ;;  %v2570_v55 = vsel %vm1056_vm1, %v11927_v44, -inf }
 0x955   : > { %v2564_v41 = vsel %vm1056_vm1, %v11931_v63, -inf }
 0x956   : > { %2565 = vmax.xlane.f32.xlu1 %v2564_v41 }
 0x958   : > { %2568 = vmax.xlane.f32.xlu0 %v2567_v42 }
 0x959   : > { %v11937_v3 = vpop.f32.mrb[68].mxu0 }
 0x95a   : > { %2571 = vmax.xlane.f32.xlu1 %v2570_v55  ;;  %v11941_v35 = vpop.f32.mrb[69].mxu0  ;;  %v2579_v14 = vsel %vm1056_vm1, %v11937_v3, -inf }
 0x95b   : > { %v11943_v34 = vpop.f32.mrb[70].mxu0  ;;  %v2573_v21 = vsel %vm1056_vm1, %v11941_v35, -inf }
 0x95c   : > { %2574 = vmax.xlane.f32.xlu0 %v2573_v21  ;;  %v11947_v60 = vpop.f32.mrb[71].mxu0  ;;  %v2582_v0 = vsel %vm1056_vm1, %v11943_v34, -inf }
 0x95d   : > { %v2576_v45 = vsel %vm1056_vm1, %v11947_v60, -inf }
 0x95e   : > { %2577 = vmax.xlane.f32.xlu1 %v2576_v45 }
 0x960   : > { %2580 = vmax.xlane.f32.xlu0 %v2579_v14 }
 0x961   : > { %v11953_v58 = vpop.f32.mrb[72].mxu0 }
 0x962   : > { %2583 = vmax.xlane.f32.xlu1 %v2582_v0  ;;  %v11957_v43 = vpop.f32.mrb[73].mxu0  ;;  %v2591_v30 = vsel %vm1056_vm1, %v11953_v58, -inf }
 0x963   : > { %v11959_v50 = vpop.f32.mrb[74].mxu0  ;;  %v2585_v29 = vsel %vm1056_vm1, %v11957_v43, -inf }
 0x964   : > { %2586 = vmax.xlane.f32.xlu0 %v2585_v29  ;;  %v11963_v9 = vpop.f32.mrb[75].mxu0  ;;  %v2594_v53 = vsel %vm1056_vm1, %v11959_v50, -inf }
 0x965   : > { %v2588_v62 = vsel %vm1056_vm1, %v11963_v9, -inf }
 0x966   : > { %2589 = vmax.xlane.f32.xlu1 %v2588_v62 }
 0x968   : > { %2592 = vmax.xlane.f32.xlu0 %v2591_v30 }
 0x969   : > { %v11969_v48 = vpop.f32.mrb[76].mxu0 }
 0x96a   : > { %2595 = vmax.xlane.f32.xlu1 %v2594_v53  ;;  %v11973_v22 = vpop.f32.mrb[77].mxu0  ;;  %v2603_v31 = vsel %vm1056_vm1, %v11969_v48, -inf }
 0x96b   : > { %v11975_v59 = vpop.f32.mrb[78].mxu0  ;;  %v2597_v54 = vsel %vm1056_vm1, %v11973_v22, -inf }
 0x96c   : > { %2598 = vmax.xlane.f32.xlu0 %v2597_v54  ;;  %v11979_v16 = vpop.f32.mrb[79].mxu0  ;;  %v2606_v15 = vsel %vm1056_vm1, %v11975_v59, -inf }
 0x96d   : > { %v2600_v13 = vsel %vm1056_vm1, %v11979_v16, -inf }
 0x96e   : > { %2601 = vmax.xlane.f32.xlu1 %v2600_v13 }
 0x970   : > { %2604 = vmax.xlane.f32.xlu0 %v2603_v31 }
 0x971   : > { %v11985_v40 = vpop.f32.mrb[80].mxu0 }
 0x972   : > { %2607 = vmax.xlane.f32.xlu1 %v2606_v15  ;;  %v11989_v1 = vpop.f32.mrb[81].mxu0  ;;  %v2615_v17 = vsel %vm1056_vm1, %v11985_v40, -inf }
 0x973   : > { %v11991_v49 = vpop.f32.mrb[82].mxu0  ;;  %v2609_v7 = vsel %vm1056_vm1, %v11989_v1, -inf }
 0x974   : > { %2610 = vmax.xlane.f32.xlu0 %v2609_v7  ;;  %v11995_v5 = vpop.f32.mrb[83].mxu0  ;;  %v2618_v27 = vsel %vm1056_vm1, %v11991_v49, -inf }
 0x975   : > { %v2612_v18 = vsel %vm1056_vm1, %v11995_v5, -inf }
 0x976   : > { %2613 = vmax.xlane.f32.xlu1 %v2612_v18 }
 0x978   : > { %2616 = vmax.xlane.f32.xlu0 %v2615_v17 }
 0x979   : > { %v12001_v28 = vpop.f32.mrb[84].mxu0 }
 0x97a   : > { %2619 = vmax.xlane.f32.xlu1 %v2618_v27  ;;  %v12005_v2 = vpop.f32.mrb[85].mxu0  ;;  %v2627_v24 = vsel %vm1056_vm1, %v12001_v28, -inf }
 0x97b   : > { %v12007_v4 = vpop.f32.mrb[86].mxu0  ;;  %v2621_v57 = vsel %vm1056_vm1, %v12005_v2, -inf }
 0x97c   : > { %2622 = vmax.xlane.f32.xlu0 %v2621_v57  ;;  %v12011_v37 = vpop.f32.mrb[87].mxu0  ;;  %v2630_v23 = vsel %vm1056_vm1, %v12007_v4, -inf }
 0x97d   : > { %v2624_v12 = vsel %vm1056_vm1, %v12011_v37, -inf }
 0x97e   : > { %2625 = vmax.xlane.f32.xlu1 %v2624_v12 }
 0x980   : > { %2628 = vmax.xlane.f32.xlu0 %v2627_v24 }
 0x982   : > { %2631 = vmax.xlane.f32.xlu1 %v2630_v23 }
 0x9d1   : > { %v2539_v36 = vpop.xlane.xlu0 %2538 }
 0x9d2   : > { %v2633_v25 = vsub.f32 %v11893_v56, %v2539_v36 }
 0x9d3   : > { %v2542_v41 = vpop.xlane.xlu1 %2541 }
 0x9d4   : > { %v2665_v42 = vmul.f32 1.442695, %v2633_v25  ;;  %v2634_v55 = vsub.f32 %v11899_v38, %v2542_v41 }
 0x9d5   : > { %v2545_v21 = vpop.xlane.xlu0 %2544 }
 0x9d6   : > { %10140 = vpow2.f32 %v2665_v42  ;;  %v2667_v45 = vmul.f32 1.442695, %v2634_v55  ;;  %v2635_v14 = vsub.f32 %v11891_v39, %v2545_v21 }
 0x9d7   : > { %v2548_v0 = vpop.xlane.xlu1 %2547 }
 0x9d8   : > { %10142 = vpow2.f32 %v2667_v45  ;;  %v2669_v29 = vmul.f32 1.442695, %v2635_v14  ;;  %v2636_v62 = vsub.f32 %v11895_v20, %v2548_v0 }
 0x9d9   : > { %v2551_v30 = vpop.xlane.xlu0 %2550 }
 0x9da   : > { %10144 = vpow2.f32 %v2669_v29  ;;  %v2671_v53 = vmul.f32 1.442695, %v2636_v62  ;;  %v2637_v54 = vsub.f32 %v11909_v61, %v2551_v30 }
 0x9db   : > { %v2554_v56 = vpop.xlane.xlu1 %2553 }
 0x9dc   : > { %10146 = vpow2.f32 %v2671_v53  ;;  %v2673_v13 = vmul.f32 1.442695, %v2637_v54  ;;  %v2638_v38 = vsub.f32 %v11915_v26, %v2554_v56 }
 0x9dd   : > { %v2557_v31 = vpop.xlane.xlu0 %2556 }
 0x9de   : > { %10148 = vpow2.f32 %v2673_v13  ;;  %v2675_v15 = vmul.f32 1.442695, %v2638_v38  ;;  %v2639_v39 = vsub.f32 %v11905_v19, %v2557_v31 }
 0x9df   : > { %v2560_v7 = vpop.xlane.xlu1 %2559 }
 0x9e0   : > { %v12026_v18 = vpop.eup %10140  ;;  %10150 = vpow2.f32 %v2675_v15  ;;  %v2677_v20 = vmul.f32 1.442695, %v2639_v39  ;;  %v2640_v17 = vsub.f32 %v11911_v52, %v2560_v7 }
 0x9e1   : > { %v2563_v27 = vpop.xlane.xlu0 %2562  ;;  %v2729_v61 = vsel %vm1056_vm1, %v12026_v18, 0.0 }
 0x9e2   : > { %v12031_v57 = vpop.eup %10142  ;;  %10152 = vpow2.f32 %v2677_v20  ;;  %v2679_v26 = vmul.f32 1.442695, %v2640_v17  ;;  %v2641_v12 = vsub.f32 %v11925_v51, %v2563_v27  ;;  %2730 = vadd.xlane.f32.xlu0 %v2729_v61 }
 0x9e3   : > { %v2566_v24 = vpop.xlane.xlu1 %2565  ;;  %v2732_v19 = vsel %vm1056_vm1, %v12031_v57, 0.0 }
 0x9e4   : > { %v12036_v23 = vpop.eup %10144  ;;  %10154 = vpow2.f32 %v2679_v26  ;;  %v2681_v36 = vmul.f32 1.442695, %v2641_v12  ;;  %v2642_v52 = vsub.f32 %v11931_v63, %v2566_v24  ;;  %2733 = vadd.xlane.f32.xlu1 %v2732_v19 }
 0x9e5   : > { %v2569_v25 = vpop.xlane.xlu0 %2568  ;;  %v2735_v41 = vsel %vm1056_vm1, %v12036_v23, 0.0 }
 0x9e6   : > { %v12041_v42 = vpop.eup %10146  ;;  %10156 = vpow2.f32 %v2681_v36  ;;  %v2683_v51 = vmul.f32 1.442695, %v2642_v52  ;;  %v2643_v55 = vsub.f32 %v11921_v8, %v2569_v25  ;;  %2736 = vadd.xlane.f32.xlu0 %v2735_v41 }
 0x9e7   : > { %v2572_v21 = vpop.xlane.xlu1 %2571  ;;  %v2738_v45 = vsel %vm1056_vm1, %v12041_v42, 0.0 }
 0x9e8   : > { %v12046_v14 = vpop.eup %10148  ;;  %10158 = vpow2.f32 %v2683_v51  ;;  %v2685_v63 = vmul.f32 1.442695, %v2643_v55  ;;  %v2644_v0 = vsub.f32 %v11927_v44, %v2572_v21  ;;  %2739 = vadd.xlane.f32.xlu1 %v2738_v45 }
 0x9e9   : > { %v2575_v29 = vpop.xlane.xlu0 %2574  ;;  %v2741_v62 = vsel %vm1056_vm1, %v12046_v14, 0.0 }
 0x9ea   : > { %v12051_v30 = vpop.eup %10150  ;;  %10160 = vpow2.f32 %v2685_v63  ;;  %v2687_v8 = vmul.f32 1.442695, %v2644_v0  ;;  %v2645_v53 = vsub.f32 %v11941_v35, %v2575_v29  ;;  %2742 = vadd.xlane.f32.xlu0 %v2741_v62 }
 0x9eb   : > { %v2578_v54 = vpop.xlane.xlu1 %2577  ;;  %v2744_v56 = vsel %vm1056_vm1, %v12051_v30, 0.0 }
 0x9ec   : > { %v12056_v13 = vpop.eup %10152  ;;  %10162 = vpow2.f32 %v2687_v8  ;;  %v2689_v44 = vmul.f32 1.442695, %v2645_v53  ;;  %v2646_v38 = vsub.f32 %v11947_v60, %v2578_v54  ;;  %2745 = vadd.xlane.f32.xlu1 %v2744_v56 }
 0x9ed   : > { %v2581_v31 = vpop.xlane.xlu0 %2580  ;;  %v2747_v15 = vsel %vm1056_vm1, %v12056_v13, 0.0 }
 0x9ee   : > { %v12061_v39 = vpop.eup %10154  ;;  %10164 = vpow2.f32 %v2689_v44  ;;  %v2691_v35 = vmul.f32 1.442695, %v2646_v38  ;;  %v2647_v7 = vsub.f32 %v11937_v3, %v2581_v31  ;;  %2748 = vadd.xlane.f32.xlu0 %v2747_v15 }
 0x9ef   : > { %v2584_v20 = vpop.xlane.xlu1 %2583  ;;  %v2750_v17 = vsel %vm1056_vm1, %v12061_v39, 0.0 }
 0x9f0   : > { %v12066_v27 = vpop.eup %10156  ;;  %10166 = vpow2.f32 %v2691_v35  ;;  %v2693_v60 = vmul.f32 1.442695, %v2647_v7  ;;  %v2648_v61 = vsub.f32 %v11943_v34, %v2584_v20  ;;  %2751 = vadd.xlane.f32.xlu1 %v2750_v17 }
 0x9f1   : > { %v2587_v26 = vpop.xlane.xlu0 %2586  ;;  %v2753_v12 = vsel %vm1056_vm1, %v12066_v27, 0.0 }
 0x9f2   : > { %v12071_v24 = vpop.eup %10158  ;;  %10168 = vpow2.f32 %v2693_v60  ;;  %v2695_v3 = vmul.f32 1.442695, %v2648_v61  ;;  %v2649_v19 = vsub.f32 %v11957_v43, %v2587_v26  ;;  %2754 = vadd.xlane.f32.xlu0 %v2753_v12 }
 0x9f3   : > { %v2590_v36 = vpop.xlane.xlu1 %2589  ;;  %v2756_v52 = vsel %vm1056_vm1, %v12071_v24, 0.0 }
 0x9f4   : > { %v12076_v25 = vpop.eup %10160  ;;  %10170 = vpow2.f32 %v2695_v3  ;;  %v2697_v34 = vmul.f32 1.442695, %v2649_v19  ;;  %v2650_v41 = vsub.f32 %v11963_v9, %v2590_v36  ;;  %2757 = vadd.xlane.f32.xlu1 %v2756_v52 }
 0x9f5   : > { %v2593_v51 = vpop.xlane.xlu0 %2592  ;;  %v2759_v55 = vsel %vm1056_vm1, %v12076_v25, 0.0 }
 0x9f6   : > { %v12081_v21 = vpop.eup %10162  ;;  %10172 = vpow2.f32 %v2697_v34  ;;  %v2699_v43 = vmul.f32 1.442695, %v2650_v41  ;;  %v2651_v45 = vsub.f32 %v11953_v58, %v2593_v51  ;;  %2760 = vadd.xlane.f32.xlu0 %v2759_v55 }
 0x9f7   : > { %v2596_v63 = vpop.xlane.xlu1 %2595  ;;  %v2762_v0 = vsel %vm1056_vm1, %v12081_v21, 0.0 }
 0x9f8   : > { %v12086_v29 = vpop.eup %10164  ;;  %10174 = vpow2.f32 %v2699_v43  ;;  %v2701_v9 = vmul.f32 1.442695, %v2651_v45  ;;  %v2652_v62 = vsub.f32 %v11959_v50, %v2596_v63  ;;  %2763 = vadd.xlane.f32.xlu1 %v2762_v0 }
 0x9f9   : > { %v2599_v8 = vpop.xlane.xlu0 %2598  ;;  %v2765_v53 = vsel %vm1056_vm1, %v12086_v29, 0.0 }
 0x9fa   : > { %v12091_v54 = vpop.eup %10166  ;;  %10176 = vpow2.f32 %v2701_v9  ;;  %v2703_v58 = vmul.f32 1.442695, %v2652_v62  ;;  %v2653_v56 = vsub.f32 %v11973_v22, %v2599_v8  ;;  %2766 = vadd.xlane.f32.xlu0 %v2765_v53 }
 0x9fb   : > { %v2602_v44 = vpop.xlane.xlu1 %2601  ;;  %v2768_v38 = vsel %vm1056_vm1, %v12091_v54, 0.0 }
 0x9fc   : > { %v12096_v31 = vpop.eup %10168  ;;  %10178 = vpow2.f32 %v2703_v58  ;;  %v2705_v50 = vmul.f32 1.442695, %v2653_v56  ;;  %v2654_v15 = vsub.f32 %v11979_v16, %v2602_v44  ;;  %2769 = vadd.xlane.f32.xlu1 %v2768_v38 }
 0x9fd   : > { %v2605_v35 = vpop.xlane.xlu0 %2604  ;;  %v2771_v7 = vsel %vm1056_vm1, %v12096_v31, 0.0 }
 0x9fe   : > { %v12101_v20 = vpop.eup %10170  ;;  %10180 = vpow2.f32 %v2705_v50  ;;  %v2707_v22 = vmul.f32 1.442695, %v2654_v15  ;;  %v2655_v17 = vsub.f32 %v11969_v48, %v2605_v35  ;;  %2772 = vadd.xlane.f32.xlu0 %v2771_v7 }
 0x9ff   : > { %v2608_v60 = vpop.xlane.xlu1 %2607  ;;  %v2774_v61 = vsel %vm1056_vm1, %v12101_v20, 0.0 }
 0xa00   : > { %v12106_v26 = vpop.eup %10172  ;;  %10182 = vpow2.f32 %v2707_v22  ;;  %v2709_v16 = vmul.f32 1.442695, %v2655_v17  ;;  %v2656_v12 = vsub.f32 %v11975_v59, %v2608_v60  ;;  %2775 = vadd.xlane.f32.xlu1 %v2774_v61 }
 0xa01   : > { %v2611_v3 = vpop.xlane.xlu0 %2610  ;;  %v2777_v19 = vsel %vm1056_vm1, %v12106_v26, 0.0 }
 0xa02   : > { %v12111_v36 = vpop.eup %10174  ;;  %10184 = vpow2.f32 %v2709_v16  ;;  %v2711_v48 = vmul.f32 1.442695, %v2656_v12  ;;  %v2657_v52 = vsub.f32 %v11989_v1, %v2611_v3  ;;  %2778 = vadd.xlane.f32.xlu0 %v2777_v19 }
 0xa03   : > { %v2614_v34 = vpop.xlane.xlu1 %2613  ;;  %v2780_v41 = vsel %vm1056_vm1, %v12111_v36, 0.0 }
 0xa04   : > { %v12116_v51 = vpop.eup %10176  ;;  %10186 = vpow2.f32 %v2711_v48  ;;  %v2713_v59 = vmul.f32 1.442695, %v2657_v52  ;;  %v2658_v55 = vsub.f32 %v11995_v5, %v2614_v34  ;;  %2781 = vadd.xlane.f32.xlu1 %v2780_v41 }
 0xa05   : > { %v2617_v43 = vpop.xlane.xlu0 %2616  ;;  %v2783_v45 = vsel %vm1056_vm1, %v12116_v51, 0.0 }
 0xa06   : > { %v12121_v63 = vpop.eup %10178  ;;  %10188 = vpow2.f32 %v2713_v59  ;;  %v2715_v1 = vmul.f32 1.442695, %v2658_v55  ;;  %v2659_v0 = vsub.f32 %v11985_v40, %v2617_v43  ;;  %2784 = vadd.xlane.f32.xlu0 %v2783_v45 }
 0xa07   : > { %v2620_v9 = vpop.xlane.xlu1 %2619  ;;  %v2786_v62 = vsel %vm1056_vm1, %v12121_v63, 0.0 }
 0xa08   : > { %v12126_v8 = vpop.eup %10180  ;;  %10190 = vpow2.f32 %v2715_v1  ;;  %v2717_v5 = vmul.f32 1.442695, %v2659_v0  ;;  %v2660_v53 = vsub.f32 %v11991_v49, %v2620_v9  ;;  %2787 = vadd.xlane.f32.xlu1 %v2786_v62 }
 0xa09   : > { %v2623_v58 = vpop.xlane.xlu0 %2622  ;;  %v2789_v56 = vsel %vm1056_vm1, %v12126_v8, 0.0 }
 0xa0a   : > { %v12131_v44 = vpop.eup %10182  ;;  %10192 = vpow2.f32 %v2717_v5  ;;  %v2719_v40 = vmul.f32 1.442695, %v2660_v53  ;;  %v2661_v38 = vsub.f32 %v12005_v2, %v2623_v58  ;;  %2790 = vadd.xlane.f32.xlu0 %v2789_v56 }
 0xa0b   : > { %v2626_v50 = vpop.xlane.xlu1 %2625  ;;  %v2792_v15 = vsel %vm1056_vm1, %v12131_v44, 0.0 }
 0xa0c   : > { %v12136_v35 = vpop.eup %10184  ;;  %10194 = vpow2.f32 %v2719_v40  ;;  %v2721_v49 = vmul.f32 1.442695, %v2661_v38  ;;  %v2662_v7 = vsub.f32 %v12011_v37, %v2626_v50  ;;  %2793 = vadd.xlane.f32.xlu1 %v2792_v15 }
 0xa0d   : > { %v2629_v22 = vpop.xlane.xlu0 %2628  ;;  %v2795_v17 = vsel %vm1056_vm1, %v12136_v35, 0.0 }
 0xa0e   : > { %v12141_v60 = vpop.eup %10186  ;;  %10196 = vpow2.f32 %v2721_v49  ;;  %v2723_v2 = vmul.f32 1.442695, %v2662_v7  ;;  %v2663_v61 = vsub.f32 %v12001_v28, %v2629_v22  ;;  %2796 = vadd.xlane.f32.xlu0 %v2795_v17 }
 0xa0f   : > { %v2632_v16 = vpop.xlane.xlu1 %2631  ;;  %v2798_v12 = vsel %vm1056_vm1, %v12141_v60, 0.0 }
 0xa10   : > { %v12146_v3 = vpop.eup %10188  ;;  %10198 = vpow2.f32 %v2723_v2  ;;  %v2725_v37 = vmul.f32 1.442695, %v2663_v61  ;;  %v2664_v19 = vsub.f32 %v12007_v4, %v2632_v16  ;;  %2799 = vadd.xlane.f32.xlu1 %v2798_v12 }
 0xa11   : > { %v2801_v48 = vsel %vm1056_vm1, %v12146_v3, 0.0 }
 0xa12   : > { %v12151_v52 = vpop.eup %10190  ;;  %10200 = vpow2.f32 %v2725_v37  ;;  %v2727_v34 = vmul.f32 1.442695, %v2664_v19  ;;  %2802 = vadd.xlane.f32.xlu0 %v2801_v48 }
 0xa13   : > { %v2804_v28 = vsel %vm1056_vm1, %v12151_v52, 0.0 }
 0xa14   : > { %v12155_v41 = vpop.eup %10192  ;;  %10202 = vpow2.f32 %v2727_v34  ;;  %2805 = vadd.xlane.f32.xlu1 %v2804_v28 }
 0xa15   : > { %v2807_v59 = vsel %vm1056_vm1, %v12155_v41, 0.0 }
 0xa16   : > { %v12159_v4 = vpop.eup %10194  ;;  %2808 = vadd.xlane.f32.xlu0 %v2807_v59 }
 0xa17   : > { %v2810_v55 = vsel %vm1056_vm1, %v12159_v4, 0.0 }
 0xa18   : > { %v12163_v43 = vpop.eup %10196  ;;  %2811 = vadd.xlane.f32.xlu1 %v2810_v55 }
 0xa19   : > { %v2813_v45 = vsel %vm1056_vm1, %v12163_v43, 0.0 }
 0xa1a   : > { %v12167_v1 = vpop.eup %10198  ;;  %2814 = vadd.xlane.f32.xlu0 %v2813_v45 }
 0xa1b   : > { %v2816_v0 = vsel %vm1056_vm1, %v12167_v1, 0.0 }
 0xa1c   : > { %v12171_v9 = vpop.eup %10200  ;;  %2817 = vadd.xlane.f32.xlu1 %v2816_v0 }
 0xa1d   : > { %v2819_v62 = vsel %vm1056_vm1, %v12171_v9, 0.0 }
 0xa1e   : > { %v12175_v5 = vpop.eup %10202  ;;  %2820 = vadd.xlane.f32.xlu0 %v2819_v62 }
 0xa1f   : > { %v2822_v53 = vsel %vm1056_vm1, %v12175_v5, 0.0 }
 0xa20   : > { %2823 = vadd.xlane.f32.xlu1 %v2822_v53 }
 0xa6f   : > { %v2731_v58 = vpop.xlane.xlu0 %2730 }
 0xa70   : > { %10204 = vrcp.f32 %v2731_v58 }
 0xa71   : > { %v2734_v56 = vpop.xlane.xlu1 %2733 }
 0xa72   : > { %10206 = vrcp.f32 %v2734_v56 }
 0xa73   : > { %v2737_v40 = vpop.xlane.xlu0 %2736 }
 0xa74   : > { %10208 = vrcp.f32 %v2737_v40 }
 0xa75   : > { %v2740_v38 = vpop.xlane.xlu1 %2739 }
 0xa76   : > { %10210 = vrcp.f32 %v2740_v38 }
 0xa77   : > { %v2743_v50 = vpop.xlane.xlu0 %2742 }
 0xa78   : > { %10212 = vrcp.f32 %v2743_v50 }
 0xa79   : > { %v2746_v15 = vpop.xlane.xlu1 %2745 }
 0xa7a   : > { %v10205_v49 = vpop.eup %10204  ;;  %10214 = vrcp.f32 %v2746_v15 }
 0xa7b   : > { %v12180_v7 = vmul.f32 %v10205_v49, %v12026_v18  ;;  %v2749_v22 = vpop.xlane.xlu0 %2748 }
 0xa7c   : > { %v10207_v17 = vpop.eup %10206  ;;  %10216 = vrcp.f32 %v2749_v22 }
 0xa7d   : > { %v12183_v2 = vmul.f32 %v10207_v17, %v12031_v57  ;;  %v2752_v61 = vpop.xlane.xlu1 %2751  ;;  %v2889_v12 = vsel %vm1056_vm1, %v12180_v7, 0.0 }
 0xa7e   : > { %v10209_v16 = vpop.eup %10208  ;;  %10218 = vrcp.f32 %v2752_v61 }
 0xa7f   : > { %v2890_v37 = vsel %vm1056_vm1, %v12183_v2, 0.0  ;;  %v12190_v19 = vmul.f32 %v10209_v16, %v12036_v23  ;;  %v2755_v18 = vpop.xlane.xlu0 %2754 }
 0xa80   : > { %v10211_v48 = vpop.eup %10210  ;;  %v2891_v34 = vadd.f32 %v2890_v37, %v2889_v12  ;;  %10220 = vrcp.f32 %v2755_v18 }
 0xa81   : > { %v2892_v57 = vsel %vm1056_vm1, %v12190_v19, 0.0  ;;  %v12195_v28 = vmul.f32 %v10211_v48, %v12041_v42  ;;  %v2758_v59 = vpop.xlane.xlu1 %2757 }
 0xa82   : > { %v10213_v55 = vpop.eup %10212  ;;  %v2893_v45 = vadd.f32 %v2892_v57, %v2891_v34  ;;  %10222 = vrcp.f32 %v2758_v59 }
 0xa83   : > { %v2894_v0 = vsel %vm1056_vm1, %v12195_v28, 0.0  ;;  %v12200_v23 = vmul.f32 %v10213_v55, %v12046_v14  ;;  %v2761_v62 = vpop.xlane.xlu0 %2760 }
 0xa84   : > { %v10215_v53 = vpop.eup %10214  ;;  %v2895_v58 = vadd.f32 %v2894_v0, %v2893_v45  ;;  %10224 = vrcp.f32 %v2761_v62 }
 0xa85   : > { %v2896_v56 = vsel %vm1056_vm1, %v12200_v23, 0.0  ;;  %v12205_v42 = vmul.f32 %v10215_v53, %v12051_v30  ;;  %v2764_v40 = vpop.xlane.xlu1 %2763 }
 0xa86   : > { %v10217_v38 = vpop.eup %10216  ;;  %v2897_v50 = vadd.f32 %v2896_v56, %v2895_v58  ;;  %10226 = vrcp.f32 %v2764_v40 }
 0xa87   : > { %v2898_v15 = vsel %vm1056_vm1, %v12205_v42, 0.0  ;;  %v12210_v14 = vmul.f32 %v10217_v38, %v12056_v13  ;;  %v2767_v49 = vpop.xlane.xlu0 %2766 }
 0xa88   : > { %v10219_v22 = vpop.eup %10218  ;;  %v2899_v17 = vadd.f32 %v2898_v15, %v2897_v50  ;;  %10228 = vrcp.f32 %v2767_v49 }
 0xa89   : > { %v2900_v61 = vsel %vm1056_vm1, %v12210_v14, 0.0  ;;  %v12215_v30 = vmul.f32 %v10219_v22, %v12061_v39  ;;  %v2770_v16 = vpop.xlane.xlu1 %2769 }
 0xa8a   : > { %v10221_v12 = vpop.eup %10220  ;;  %v2901_v37 = vadd.f32 %v2900_v61, %v2899_v17  ;;  %10230 = vrcp.f32 %v2770_v16 }
 0xa8b   : > { %v2902_v18 = vsel %vm1056_vm1, %v12215_v30, 0.0  ;;  %v12220_v13 = vmul.f32 %v10221_v12, %v12066_v27  ;;  %v2773_v48 = vpop.xlane.xlu0 %2772 }
 0xa8c   : > { %v10223_v34 = vpop.eup %10222  ;;  %v2903_v57 = vadd.f32 %v2902_v18, %v2901_v37  ;;  %10232 = vrcp.f32 %v2773_v48 }
 0xa8d   : > { %v2904_v59 = vsel %vm1056_vm1, %v12220_v13, 0.0  ;;  %v12225_v39 = vmul.f32 %v10223_v34, %v12071_v24  ;;  %v2776_v55 = vpop.xlane.xlu1 %2775 }
 0xa8e   : > { %v10225_v45 = vpop.eup %10224  ;;  %v2905_v0 = vadd.f32 %v2904_v59, %v2903_v57  ;;  %10234 = vrcp.f32 %v2776_v55 }
 0xa8f   : > { %v2906_v62 = vsel %vm1056_vm1, %v12225_v39, 0.0  ;;  %v12230_v27 = vmul.f32 %v10225_v45, %v12076_v25  ;;  %v2779_v53 = vpop.xlane.xlu0 %2778 }
 0xa90   : > { %v10227_v58 = vpop.eup %10226  ;;  %v2907_v56 = vadd.f32 %v2906_v62, %v2905_v0  ;;  %10236 = vrcp.f32 %v2779_v53 }
 0xa91   : > { %v2908_v40 = vsel %vm1056_vm1, %v12230_v27, 0.0  ;;  %v12235_v24 = vmul.f32 %v10227_v58, %v12081_v21  ;;  %v2782_v38 = vpop.xlane.xlu1 %2781 }
 0xa92   : > { %v10229_v50 = vpop.eup %10228  ;;  %v2909_v15 = vadd.f32 %v2908_v40, %v2907_v56  ;;  %10238 = vrcp.f32 %v2782_v38 }
 0xa93   : > { %v2910_v49 = vsel %vm1056_vm1, %v12235_v24, 0.0  ;;  %v12240_v25 = vmul.f32 %v10229_v50, %v12086_v29  ;;  %v2785_v22 = vpop.xlane.xlu0 %2784 }
 0xa94   : > { %v10231_v17 = vpop.eup %10230  ;;  %v2911_v61 = vadd.f32 %v2910_v49, %v2909_v15  ;;  %10240 = vrcp.f32 %v2785_v22 }
 0xa95   : > { %v2912_v16 = vsel %vm1056_vm1, %v12240_v25, 0.0  ;;  %v12245_v21 = vmul.f32 %v10231_v17, %v12091_v54  ;;  %v2788_v12 = vpop.xlane.xlu1 %2787 }
 0xa96   : > { %v10233_v37 = vpop.eup %10232  ;;  %v2913_v18 = vadd.f32 %v2912_v16, %v2911_v61  ;;  %10242 = vrcp.f32 %v2788_v12 }
 0xa97   : > { %v2914_v48 = vsel %vm1056_vm1, %v12245_v21, 0.0  ;;  %v12250_v29 = vmul.f32 %v10233_v37, %v12096_v31  ;;  %v2791_v34 = vpop.xlane.xlu0 %2790 }
 0xa98   : > { %v10235_v57 = vpop.eup %10234  ;;  %v2915_v59 = vadd.f32 %v2914_v48, %v2913_v18  ;;  %10244 = vrcp.f32 %v2791_v34 }
 0xa99   : > { %v2916_v55 = vsel %vm1056_vm1, %v12250_v29, 0.0  ;;  %v12255_v54 = vmul.f32 %v10235_v57, %v12101_v20  ;;  %v2794_v45 = vpop.xlane.xlu1 %2793 }
 0xa9a   : > { %v10237_v0 = vpop.eup %10236  ;;  %v2917_v62 = vadd.f32 %v2916_v55, %v2915_v59  ;;  %10246 = vrcp.f32 %v2794_v45 }
 0xa9b   : > { %v2918_v53 = vsel %vm1056_vm1, %v12255_v54, 0.0  ;;  %v2797_v58 = vpop.xlane.xlu0 %2796  ;;  %v12260_v31 = vmul.f32 %v10237_v0, %v12106_v26 }
 0xa9c   : > { %v10239_v56 = vpop.eup %10238  ;;  %v2919_v40 = vadd.f32 %v2918_v53, %v2917_v62  ;;  %10248 = vrcp.f32 %v2797_v58 }
 0xa9d   : > { %v2800_v38 = vpop.xlane.xlu1 %2799  ;;  %v12263_v50 = vmul.f32 %v10239_v56, %v12111_v36  ;;  %v2920_v20 = vsel %vm1056_vm1, %v12260_v31, 0.0 }
 0xa9e   : > { %v10241_v15 = vpop.eup %10240  ;;  %10250 = vrcp.f32 %v2800_v38  ;;  %v2921_v49 = vadd.f32 %v2920_v20, %v2919_v40 }
 0xa9f   : > { %v12268_v22 = vmul.f32 %v10241_v15, %v12116_v51  ;;  %v2803_v17 = vpop.xlane.xlu0 %2802  ;;  %v2922_v26 = vsel %vm1056_vm1, %v12263_v50, 0.0  ;;  %v3128_v61 = vpack.c.bf16 %v12263_v50, %v12260_v31 }
 0xaa0   : > { %v10243_v16 = vpop.eup %10242  ;;  %10252 = vrcp.f32 %v2803_v17  ;;  %v2923_v36 = vadd.f32 %v2922_v26, %v2921_v49 }
 0xaa1   : > { %v2924_v12 = vsel %vm1056_vm1, %v12268_v22, 0.0  ;;  %v12277_v37 = vmul.f32 %v10243_v16, %v12121_v63  ;;  %v2806_v18 = vpop.xlane.xlu1 %2805 }
 0xaa2   : > { %v10245_v48 = vpop.eup %10244  ;;  %10254 = vrcp.f32 %v2806_v18  ;;  %v2925_v51 = vadd.f32 %v2924_v12, %v2923_v36 }
 0xaa3   : > { %v2926_v34 = vsel %vm1056_vm1, %v12277_v37, 0.0  ;;  %v12282_v57 = vmul.f32 %v10245_v48, %v12126_v8  ;;  %v2809_v59 = vpop.xlane.xlu0 %2808  ;;  %v3129_v55 = vpack.c.bf16 %v12277_v37, %v12268_v22 }
 0xaa4   : > { %v10247_v45 = vpop.eup %10246  ;;  %10256 = vrcp.f32 %v2809_v59  ;;  %v2927_v0 = vadd.f32 %v2926_v34, %v2925_v51 }
 0xaa5   : > { %v2928_v63 = vsel %vm1056_vm1, %v12282_v57, 0.0  ;;  %v12289_v62 = vmul.f32 %v10247_v45, %v12131_v44  ;;  %v2812_v53 = vpop.xlane.xlu1 %2811 }
 0xaa6   : > { %v10249_v58 = vpop.eup %10248  ;;  %10258 = vrcp.f32 %v2812_v53  ;;  %v2929_v56 = vadd.f32 %v2928_v63, %v2927_v0 }
 0xaa7   : > { %v2930_v8 = vsel %vm1056_vm1, %v12289_v62, 0.0  ;;  %v12294_v40 = vmul.f32 %v10249_v58, %v12136_v35  ;;  %v2815_v38 = vpop.xlane.xlu0 %2814  ;;  %v3130_v20 = vpack.c.bf16 %v12289_v62, %v12282_v57 }
 0xaa8   : > { %v10251_v15 = vpop.eup %10250  ;;  %10260 = vrcp.f32 %v2815_v38  ;;  %v2931_v49 = vadd.f32 %v2930_v8, %v2929_v56 }
 0xaa9   : > { %v2932_v44 = vsel %vm1056_vm1, %v12294_v40, 0.0  ;;  %v12301_v17 = vmul.f32 %v10251_v15, %v12141_v60  ;;  %v2818_v26 = vpop.xlane.xlu1 %2817 }
 0xaaa   : > { %v10253_v16 = vpop.eup %10252  ;;  %10262 = vrcp.f32 %v2818_v26  ;;  %v2933_v36 = vadd.f32 %v2932_v44, %v2931_v49 }
 0xaab   : > { %v2934_v35 = vsel %vm1056_vm1, %v12301_v17, 0.0  ;;  %v12306_v12 = vmul.f32 %v10253_v16, %v12146_v3  ;;  %v2821_v18 = vpop.xlane.xlu0 %2820  ;;  %v3131_v48 = vpack.c.bf16 %v12301_v17, %v12294_v40 }
 0xaac   : > { %v10255_v51 = vpop.eup %10254  ;;  %10264 = vrcp.f32 %v2821_v18  ;;  %v2935_v34 = vadd.f32 %v2934_v35, %v2933_v36 }
 0xaad   : > { %v2936_v60 = vsel %vm1056_vm1, %v12306_v12, 0.0  ;;  %v12313_v59 = vmul.f32 %v10255_v51, %v12151_v52  ;;  %v2824_v45 = vpop.xlane.xlu1 %2823 }
 0xaae   : > { %v10257_v0 = vpop.eup %10256  ;;  %10266 = vrcp.f32 %v2824_v45  ;;  %v2937_v63 = vadd.f32 %v2936_v60, %v2935_v34 }
 0xaaf   : > { %v2938_v3 = vsel %vm1056_vm1, %v12313_v59, 0.0  ;;  %v12318_v53 = vmul.f32 %v10257_v0, %v12155_v41  ;;  %v3132_v58 = vpack.c.bf16 %v12313_v59, %v12306_v12 }
 0xab0   : > { %v10259_v56 = vpop.eup %10258  ;;  %v2939_v8 = vadd.f32 %v2938_v3, %v2937_v63 }
 0xab1   : > { %v2940_v38 = vsel %vm1056_vm1, %v12318_v53, 0.0  ;;  %v12325_v52 = vmul.f32 %v10259_v56, %v12159_v4 }
 0xab2   : > { %v10261_v15 = vpop.eup %10260  ;;  %v2941_v49 = vadd.f32 %v2940_v38, %v2939_v8 }
 0xab3   : > { %v2942_v44 = vsel %vm1056_vm1, %v12325_v52, 0.0  ;;  %v12330_v26 = vmul.f32 %v10261_v15, %v12163_v43  ;;  %v3133_v41 = vpack.c.bf16 %v12325_v52, %v12318_v53 }
 0xab4   : > { %v10263_v16 = vpop.eup %10262  ;;  %v2943_v36 = vadd.f32 %v2942_v44, %v2941_v49 }
 0xab5   : > { %v2944_v35 = vsel %vm1056_vm1, %v12330_v26, 0.0  ;;  %v12337_v18 = vmul.f32 %v10263_v16, %v12167_v1 }
 0xab6   : > { %v10265_v4 = vpop.eup %10264  ;;  %v2945_v51 = vadd.f32 %v2944_v35, %v2943_v36 }
 0xab7   : > { %v2946_v34 = vsel %vm1056_vm1, %v12337_v18, 0.0  ;;  %v12342_v60 = vmul.f32 %v10265_v4, %v12171_v9  ;;  %v3134_v43 = vpack.c.bf16 %v12337_v18, %v12330_v26 }
 0xab8   : > { %v10267_v45 = vpop.eup %10266  ;;  %v2947_v0 = vadd.f32 %v2946_v34, %v2945_v51 }
 0xab9   : > { %v2948_v63 = vsel %vm1056_vm1, %v12342_v60, 0.0  ;;  %v12349_v3 = vmul.f32 %v10267_v45, %v12175_v5 }
 0xaba   : > { %v2949_v1 = vadd.f32 %v2948_v63, %v2947_v0 }
 0xabb   : > { %v2950_v56 = vsel %vm1056_vm1, %v12349_v3, 0.0 }
 0xabc   : > { %v2951_v9 = vadd.f32 %v2950_v56, %v2949_v1 }
 0xabe   : > { %v2952_v38 = vrot.slane %v2951_v9, 4 }
 0xac0   : > { %v2953_v15 = vadd.f32 %v2952_v38, %v2951_v9 }
 0xac2   : > { %v2954_v49 = vrot.slane %v2953_v15, 2 }
 0xac4   : > { %v2955_v44 = vadd.f32 %v2954_v49, %v2953_v15 }
 0xac6   : > { %v2956_v16 = vrot.slane %v2955_v44, 1 }
 0xac8   : > { %v2957_v36 = vadd.f32 %v2956_v16, %v2955_v44 }
 0xaca   : > { %v2958_v35 = vadd.f32 1e-06, %v2957_v36 }
 0xacc   : > { %10268 = vrcp.f32 %v2958_v35 }
 0xad6   : > { %v10269_v4 = vpop.eup %10268 }
 0xad7   : > { %v2976_v5 = vmul.f32 %v10269_v4, %v12260_v31  ;;  %v2977_v51 = vmul.f32 %v10269_v4, %v12263_v50  ;;  %v2960_v34 = vmul.f32 %v10269_v4, %v12180_v7  ;;  %v2961_v45 = vmul.f32 %v10269_v4, %v12183_v2 }
 0xad8   : > { %v2978_v0 = vmul.f32 %v10269_v4, %v12268_v22  ;;  %v2979_v63 = vmul.f32 %v10269_v4, %v12277_v37  ;;  %v2962_v9 = vmul.f32 %v10269_v4, %v12190_v19  ;;  %v2963_v38 = vmul.f32 %v10269_v4, %v12195_v28 }
 0xad9   : > { %v3000_v1 = vpack.c.bf16 %v2977_v51, %v2976_v5  ;;  %v2992_v56 = vpack.c.bf16 %v2961_v45, %v2960_v34  ;;  %v2980_v49 = vmul.f32 %v10269_v4, %v12282_v57  ;;  %v2981_v44 = vmul.f32 %v10269_v4, %v12289_v62 }
 0xada   : > { %v3001_v15 = vpack.c.bf16 %v2979_v63, %v2978_v0  ;;  %v2993_v16 = vpack.c.bf16 %v2963_v38, %v2962_v9  ;;  %v2964_v36 = vmul.f32 %v10269_v4, %v12200_v23  ;;  %v2965_v35 = vmul.f32 %v10269_v4, %v12205_v42 }
 0xadb   : > { %9037 = vmatprep.subr.bf16.mxu1 %v3000_v1  ;;  %v3002_v8 = vpack.c.bf16 %v2981_v44, %v2980_v49  ;;  %v2982_v5 = vmul.f32 %v10269_v4, %v12294_v40  ;;  %v2983_v51 = vmul.f32 %v10269_v4, %v12301_v17  ;;  %v2966_v45 = vmul.f32 %v10269_v4, %v12210_v14 }
 0xadc   : > { %9038 = vmatpush3.bf16.msra.mxu1 %v2992_v56  ;;  %v2994_v34 = vpack.c.bf16 %v2965_v35, %v2964_v36  ;;  %v2967_v0 = vmul.f32 %v10269_v4, %v12215_v30  ;;  %v2984_v1 = vmul.f32 %v10269_v4, %v12306_v12  ;;  %v2985_v56 = vmul.f32 %v10269_v4, %v12313_v59 }
 0xadd   : > { %9039 = vmatprep.subr.bf16.mxu1 %v3001_v15  ;;  %v3003_v63 = vpack.c.bf16 %v2983_v51, %v2982_v5  ;;  %v2968_v38 = vmul.f32 %v10269_v4, %v12220_v13  ;;  %v2969_v15 = vmul.f32 %v10269_v4, %v12225_v39  ;;  %v2987_v44 = vmul.f32 %v10269_v4, %v12325_v52 }
 0xade   : > { %v2995_v9 = vpack.c.bf16 %v2967_v0, %v2966_v45  ;;  %v3004_v49 = vpack.c.bf16 %v2985_v56, %v2984_v1  ;;  %v2970_v36 = vmul.f32 %v10269_v4, %v12230_v27  ;;  %v2971_v35 = vmul.f32 %v10269_v4, %v12235_v24 }
 0xadf   : > { %v2988_v51 = vmul.f32 %v10269_v4, %v12330_v26  ;;  %v2972_v0 = vmul.f32 %v10269_v4, %v12240_v25  ;;  %v2990_v56 = vmul.f32 %v10269_v4, %v12342_v60 }
 0xae0   : > { %9040 = vmatpush3.bf16.msra.mxu1 %v2993_v16  ;;  %v2996_v16 = vpack.c.bf16 %v2969_v15, %v2968_v38  ;;  %v2997_v45 = vpack.c.bf16 %v2971_v35, %v2970_v36  ;;  %v2974_v15 = vmul.f32 %v10269_v4, %v12250_v29 }
 0xae1   : > { %9041 = vmatprep.subr.bf16.mxu1 %v3002_v8  ;;  %v2986_v8 = vmul.f32 %v10269_v4, %v12318_v53 }
 0xae3   : > { %v3005_v5 = vpack.c.bf16 %v2987_v44, %v2986_v8 }
 0xae4   : > { %9042 = vmatpush3.bf16.msra.mxu1 %v2994_v34  ;;  %v2989_v34 = vmul.f32 %v10269_v4, %v12337_v18 }
 0xae5   : > { %9043 = vmatprep.subr.bf16.mxu1 %v3003_v63  ;;  %v2973_v63 = vmul.f32 %v10269_v4, %v12245_v21 }
 0xae6   : > { %v3006_v1 = vpack.c.bf16 %v2989_v34, %v2988_v51 }
 0xae7   : > { %v2998_v38 = vpack.c.bf16 %v2973_v63, %v2972_v0 }
 0xae8   : > { %9044 = vmatpush3.bf16.msra.mxu1 %v2995_v9  ;;  %v2991_v9 = vmul.f32 %v10269_v4, %v12349_v3 }
 0xae9   : > { %9045 = vmatprep.subr.bf16.mxu1 %v3004_v49  ;;  %v2975_v49 = vmul.f32 %v10269_v4, %v12255_v54  ;;  %v3120_v4 = vpack.c.bf16 %v12183_v2, %v12180_v7 }
 0xaea   : > { %v3007_v8 = vpack.c.bf16 %v2991_v9, %v2990_v56 }
 0xaeb   : > { %v2999_v44 = vpack.c.bf16 %v2975_v49, %v2974_v15 }
 0xaec   : > { %9046 = vmatpush3.bf16.msra.mxu1 %v2996_v16 }
 0xaed   : > { %9047 = vmatprep.subr.bf16.mxu1 %v3005_v5 }
 0xaf0   : > { %9048 = vmatpush3.bf16.msra.mxu1 %v2997_v45 }
 0xaf1   : > { %9049 = vmatprep.subr.bf16.mxu1 %v3006_v1 }
 0xaf4   : > { %9050 = vmatpush3.bf16.msra.mxu1 %v2998_v38 }
 0xaf5   : > { %9051 = vmatprep.subr.bf16.mxu1 %v3007_v8 }
 0xaf8   : > { %9052 = vmatpush3.bf16.msra.mxu1 %v2999_v44 }
 0xafb   : > { %3041 = vmatmul.mubr.bf16.vlgmr.msra.gmra.mrb[72].mxu1 %v11303_v32 }
 0xafc   : > { %3048 = vmatprep.mubr.bf16.mxu1 %v11305_v11 }
 0xb03   : > { %3049 = vmatmul.mubr.bf16.gmra.mrb[76].mxu1 %v11309_v33 }
 0xb04   : > { %3056 = vmatprep.mubr.bf16.mxu1 %v11311_v47 }
 0xb0b   : > { %3057 = vmatmul.mubr.bf16.gmra.mrb[80].mxu1 %v11315_v6 }
 0xb0c   : > { %3064 = vmatprep.mubr.bf16.mxu1 %v11317_v46 }
 0xb13   : > { %3065 = vmatmul.mubr.bf16.gmra.mrb[84].mxu1 %v11321_v10 }
 0xb14   : > { %9549 = vmatprep.mubr.msk.bf16.mxu1 %vm1056_vm1, %v3120_v4 }
 0xbce   : > { %v9053_v16 = vpop.f32.mrb[72].mxu1 }
 0xbcf   : > { %v9054_v36 = vpop.f32.mrb[73].mxu1 }
 0xbd0   : > { %v12397_v32 = vadd.f32 %v9054_v36, %v9053_v16  ;;  %v9056_v11 = vpop.f32.mrb[74].mxu1 }
 0xbd1   : > { %v9057_v35 = vpop.f32.mrb[75].mxu1 }
 0xbd2   : > { %v3073_v33 = vmul.f32 %v12397_v32, %v12397_v32  ;;  %v9058_v47 = vadd.f32 %v9057_v35, %v9056_v11 }
 0xbd4   : > { %v3074_v6 = vmul.f32 %v9058_v47, %v9058_v47  ;;  %v3081_v46 = vsel %vm1056_vm1, %v3073_v33, 0.0 }
 0xbd6   : > { %v3082_v5 = vsel %vm1056_vm1, %v3074_v6, 0.0  ;;  %v9059_v7 = vpop.f32.mrb[76].mxu1 }
 0xbd7   : > { %v3083_v2 = vadd.f32 %v3082_v5, %v3081_v46  ;;  %v9060_v10 = vpop.f32.mrb[77].mxu1 }
 0xbd8   : > { %v9061_v51 = vadd.f32 %v9060_v10, %v9059_v7  ;;  %v9062_v34 = vpop.f32.mrb[78].mxu1  ;;  %v9774_v7 = vld [vmem:[%s14331_s4] sm:$0xff]  }
 0xbd9   : > { %v9063_v45 = vpop.f32.mrb[79].mxu1  ;;  %9581 = vmatprep.subr.bf16.mxu0 %v9774_v7 }
 0xbda   : > { %v3075_v0 = vmul.f32 %v9061_v51, %v9061_v51  ;;  %v9064_v63 = vadd.f32 %v9063_v45, %v9062_v34  ;;  %9582 = vmatpush3.bf16.msra.mxu0 %v9774_v7 }
 0xbdc   : > { %v3084_v1 = vsel %vm1056_vm1, %v3075_v0, 0.0  ;;  %v3076_v56 = vmul.f32 %v9064_v63, %v9064_v63 }
 0xbdd   : > { %v3085_v9 = vadd.f32 %v3084_v1, %v3083_v2  ;;  %v9775_v2 = vld [vmem:[%s14331_s4 + $0x8] sm:$0xff]  }
 0xbde   : > { %v3086_v38 = vsel %vm1056_vm1, %v3076_v56, 0.0  ;;  %v9065_v15 = vpop.f32.mrb[80].mxu1  ;;  %9583 = vmatprep.subr.bf16.mxu0 %v9775_v2 }
 0xbdf   : > { %v3087_v49 = vadd.f32 %v3086_v38, %v3085_v9  ;;  %v9066_v8 = vpop.f32.mrb[81].mxu1  ;;  %9584 = vmatpush3.bf16.msra.mxu0 %v9775_v2 }
 0xbe0   : > { %v9067_v44 = vadd.f32 %v9066_v8, %v9065_v15  ;;  %v9068_v4 = vpop.f32.mrb[82].mxu1 }
 0xbe1   : > { %v9069_v16 = vpop.f32.mrb[83].mxu1 }
 0xbe2   : > { %v3077_v36 = vmul.f32 %v9067_v44, %v9067_v44  ;;  %v9070_v11 = vadd.f32 %v9069_v16, %v9068_v4 }
 0xbe4   : > { %v3088_v35 = vsel %vm1056_vm1, %v3077_v36, 0.0  ;;  %v3078_v33 = vmul.f32 %v9070_v11, %v9070_v11 }
 0xbe5   : > { %v3089_v6 = vadd.f32 %v3088_v35, %v3087_v49 }
 0xbe6   : > { %v3090_v46 = vsel %vm1056_vm1, %v3078_v33, 0.0  ;;  %v9071_v5 = vpop.f32.mrb[84].mxu1 }
 0xbe7   : > { %v3091_v10 = vadd.f32 %v3090_v46, %v3089_v6  ;;  %v9072_v34 = vpop.f32.mrb[85].mxu1 }
 0xbe8   : > { %v9073_v45 = vadd.f32 %v9072_v34, %v9071_v5  ;;  %v9074_v0 = vpop.f32.mrb[86].mxu1 }
 0xbe9   : > { %v9075_v1 = vpop.f32.mrb[87].mxu1 }
 0xbea   : > { %v3079_v56 = vmul.f32 %v9073_v45, %v9073_v45  ;;  %v9076_v9 = vadd.f32 %v9075_v1, %v9074_v0 }
 0xbec   : > { %v3092_v38 = vsel %vm1056_vm1, %v3079_v56, 0.0  ;;  %v3080_v15 = vmul.f32 %v9076_v9, %v9076_v9 }
 0xbed   : > { %v3093_v49 = vadd.f32 %v3092_v38, %v3091_v10 }
 0xbee   : > { %v3094_v8 = vsel %vm1056_vm1, %v3080_v15, 0.0 }
 0xbef   : > { %v3095_v4 = vadd.f32 %v3094_v8, %v3093_v49 }
 0xbf1   : > { %v3096_v16 = vrot.slane %v3095_v4, 4 }
 0xbf3   : > { %v3097_v36 = vadd.f32 %v3096_v16, %v3095_v4  ;;  %v3123_v4 = vpack.c.bf16 %v12215_v30, %v12210_v14  ;;  %v3124_v16 = vpack.c.bf16 %v12225_v39, %v12220_v13  ;;  %v9776_v14 = vld [vmem:[%s14331_s4 + $0x10] sm:$0xff]   ;;  %v9777_v30 = vld [vmem:[%s14331_s4 + $0x18] sm:$0xff]  }
 0xbf4   : > { %9585 = vmatprep.subr.bf16.mxu0 %v9776_v14 }
 0xbf5   : > { %v3098_v35 = vrot.slane %v3097_v36, 2  ;;  %9586 = vmatpush3.bf16.msra.mxu0 %v9776_v14 }
 0xbf6   : > { %9587 = vmatprep.subr.bf16.mxu0 %v9777_v30 }
 0xbf7   : > { %v3099_v33 = vadd.f32 %v3098_v35, %v3097_v36 }
 0xbf9   : > { %v3100_v6 = vrot.slane %v3099_v33, 1  ;;  %9588 = vmatpush3.bf16.msra.mxu0 %v9777_v30 }
 0xbfb   : > { %v3101_v46 = vadd.f32 %v3100_v6, %v3099_v33 }
 0xbfd   : > { %v3102_v5 = vadd.f32 1e-12, %v3101_v46 }
 0xbff   : > { %10270 = vrsqrt.f32 %v3102_v5 }
 0xc09   : > { %v10271_v7 = vpop.eup %10270 }
 0xc0a   : > { %v3110_v34 = vmul.f32 %v10271_v7, %v9073_v45  ;;  %v3111_v10 = vmul.f32 %v10271_v7, %v9076_v9  ;;  %v3104_v2 = vmul.f32 %v10271_v7, %v12397_v32  ;;  %v3105_v0 = vmul.f32 %v10271_v7, %v9058_v47 }
 0xc0b   : > { %v3106_v1 = vmul.f32 %v10271_v7, %v9061_v51  ;;  %v3107_v56 = vmul.f32 %v10271_v7, %v9064_v63  ;;  %v3108_v38 = vmul.f32 %v10271_v7, %v9067_v44  ;;  %v3109_v15 = vmul.f32 %v10271_v7, %v9070_v11 }
 0xc0c   : > { %3118 = vst.msk [vmem:[%s424_s28 + $0x30] sm:$0xff] %vm1056_vm1, %v3110_v34  ;;  %3119 = vst.msk [vmem:[%s424_s28 + $0x38] sm:$0xff] %vm1056_vm1, %v3111_v10  ;;  %v3139_v49 = vpack.c.bf16 %v3111_v10, %v3110_v34  ;;  %v3136_v8 = vpack.c.bf16 %v3105_v0, %v3104_v2  ;;  %v3121_v45 = vpack.c.bf16 %v12195_v28, %v12190_v19 }
 0xc0d   : > { %3112 = vst.msk [vmem:[%s424_s28] sm:$0xff] %vm1056_vm1, %v3104_v2  ;;  %3113 = vst.msk [vmem:[%s424_s28 + $0x8] sm:$0xff] %vm1056_vm1, %v3105_v0  ;;  %v3137_v32 = vpack.c.bf16 %v3107_v56, %v3106_v1  ;;  %v3138_v47 = vpack.c.bf16 %v3109_v15, %v3108_v38  ;;  %v3122_v9 = vpack.c.bf16 %v12205_v42, %v12200_v23 }
 0xc0e   : > { %3114 = vst.msk [vmem:[%s424_s28 + $0x10] sm:$0xff] %vm1056_vm1, %v3106_v1  ;;  %3115 = vst.msk [vmem:[%s424_s28 + $0x18] sm:$0xff] %vm1056_vm1, %v3107_v56  ;;  %9709 = vmatprep.subr.msk.bf16.mxu1 %vm1056_vm1, %v3136_v8  ;;  %v3189_v51 = vsel %vm1056_vm1, %v3136_v8, 0  ;;  %v3198_v11 = vsel %vm1056_vm1, %v3139_v49, 0  ;;  %v3125_v19 = vpack.c.bf16 %v12235_v24, %v12230_v27  ;;  %v3126_v28 = vpack.c.bf16 %v12245_v21, %v12240_v25 }
 0xc0f   : > { %3116 = vst.msk [vmem:[%s424_s28 + $0x20] sm:$0xff] %vm1056_vm1, %v3108_v38  ;;  %3117 = vst.msk [vmem:[%s424_s28 + $0x28] sm:$0xff] %vm1056_vm1, %v3109_v15  ;;  %9542 = vmatpush3.bf16.xpose.msra.mxu1 %v3189_v51  ;;  %v3192_v63 = vsel %vm1056_vm1, %v3137_v32, 0  ;;  %v3195_v44 = vsel %vm1056_vm1, %v3138_v47, 0  ;;  %v3127_v23 = vpack.c.bf16 %v12255_v54, %v12250_v29  ;;  %v14372_v42 = vpack.c.bf16 %v12349_v3, %v12342_v60  ;;  %s8411_s28 = sshll.u32 %s405_s26, 4 }
 0xc10   : > { %9710 = vmatprep.subr.msk.bf16.mxu1 %vm1056_vm1, %v3137_v32  ;;  %s407_s19 = scalar_lea.vmem [#allocation3], %s8411_s28  ;;  %s10509_s28 = smov [#allocation3]  }
 0xc11   : > { %s8320_s0 = sshll.u32 %s407_s19, 4  ;;  %s10447_s25 = sshll.u32 %s10509_s28, 4  ;;  %s14282_s0 = int_to_ptr.vmem [resolvable:$true] %s8320_s0  ;;  %s10448_s25 = int_to_ptr.vmem [resolvable:$false] %s10447_s25 }
 0xc12   : > { %s10443_s20 = scalar_lea.vmem %s14282_s0, 256  ;;  %s10449_s1 = scalar_lea.vmem %s10448_s25, 512 }
 0xc13   : > { %p10444_p11 = scmp.ne.s32.totalorder %s14282_s0, %s10443_s20  ;;  %p10450_p0 = scmp.lt.s32.totalorder %s14282_s0, %s10448_s25 }
 0xc14   : > { %p10451_p1 = scmp.lt.s32.totalorder %s10449_s1, %s10443_s20 }
 0xc15   : > { %p10445_p12 = pnand %p10444_p11, %p10613_p5 }
 0xc16   : > { %p10452_p2 = por %p10451_p1, %p10450_p0 }
 0xc17   : > { %9544 = vmatpush3.bf16.xpose.msra.mxu1 %v3192_v63  ;;  %p10446_p13 = pneg %p10445_p12 }
 0xc18   : > { %9711 = vmatprep.subr.msk.bf16.mxu1 %vm1056_vm1, %v3138_v47 }
 0xc19   : > { %p10453_p3 = pnand %p10452_p2, %p10446_p13 }
 0xc1f   : > { %9546 = vmatpush3.bf16.xpose.msra.mxu1 %v3195_v44 }
 0xc20   : > { %9712 = vmatprep.subr.msk.bf16.mxu1 %vm1056_vm1, %v3139_v49 }
 0xc27   : > { %9548 = vmatpush3.bf16.xpose.msra.mxu1 %v3198_v11 }
 0xc2e   : > { %9550 = vmatmul.mubr.msk.bf16.vlgmr.msra.gmra.mrb[88].mxu1 %vm1056_vm1, %v3121_v45 }
 0xc2f   : > { %9553 = vmatprep.mubr.msk.bf16.mxu1 %vm1056_vm1, %v3122_v9 }
 0xc36   : > { %9554 = vmatmul.mubr.msk.bf16.gmra.mrb[92].mxu1 %vm1056_vm1, %v3123_v4 }
 0xc37   : > { %9557 = vmatprep.mubr.msk.bf16.mxu1 %vm1056_vm1, %v3124_v16 }
 0xc3e   : > { %9558 = vmatmul.mubr.msk.bf16.gmra.mrb[96].mxu1 %vm1056_vm1, %v3125_v19 }
 0xc3f   : > { %9561 = vmatprep.mubr.msk.bf16.mxu1 %vm1056_vm1, %v3126_v28 }
 0xc46   : > { %9562 = vmatmul.mubr.msk.bf16.gmra.mrb[100].mxu1 %vm1056_vm1, %v3127_v23 }
 0xc47   : > { %9565 = vmatprep.mubr.msk.bf16.mxu1 %vm1056_vm1, %v3128_v61 }
 0xc4e   : > { %9566 = vmatmul.mubr.msk.bf16.gmra.mrb[104].mxu1 %vm1056_vm1, %v3129_v55 }
 0xc4f   : > { %9569 = vmatprep.mubr.msk.bf16.mxu1 %vm1056_vm1, %v3130_v20 }
 0xc56   : > { %9570 = vmatmul.mubr.msk.bf16.gmra.mrb[108].mxu1 %vm1056_vm1, %v3131_v48 }
 0xc57   : > { %9573 = vmatprep.mubr.msk.bf16.mxu1 %vm1056_vm1, %v3132_v58 }
 0xc5e   : > { %9574 = vmatmul.mubr.msk.bf16.gmra.mrb[112].mxu1 %vm1056_vm1, %v3133_v41 }
 0xc5f   : > { %9577 = vmatprep.mubr.msk.bf16.mxu1 %vm1056_vm1, %v3134_v43 }
 0xc66   : > { %9578 = vmatmul.mubr.msk.bf16.gmra.mrb[116].mxu1 %vm1056_vm1, %v14372_v42 }
 0xd01   : > { %v9551_v13 = vpop.f32.mrb[88].mxu1 }
 0xd02   : > { %v3234_v39 = vpop.f32.mrb[89].mxu1  ;;  %v3363_v24 = vmax.f32 %v9551_v13, 0.0 }
 0xd03   : > { %v9552_v27 = vpop.f32.mrb[90].mxu1  ;;  %v3361_v29 = vmax.f32 %v3234_v39, 0.0 }
 0xd04   : > { %v3364_v25 = vmax.f32 %v9552_v27, 0.0  ;;  %v3237_v21 = vpop.f32.mrb[91].mxu1 }
 0xd05   : > { %v3362_v54 = vmax.f32 %v3237_v21, 0.0 }
 0xd06   : > { %v3394_v31 = vpack.c.bf16 %v3364_v25, %v3363_v24 }
 0xd07   : > { %v3393_v50 = vpack.c.bf16 %v3362_v54, %v3361_v29 }
 0xd09   : > { %v9555_v22 = vpop.f32.mrb[92].mxu1  ;;  %9589 = vmatprep.mubr.msk.bf16.mxu0 %vm577_vm0, %v3393_v50 }
 0xd0a   : > { %v3250_v61 = vpop.f32.mrb[93].mxu1  ;;  %9590 = vmatmul.mubr.msk.bf16.vlgmr.msra.gmra.mrb[88].mxu0 %vm577_vm0, %v3394_v31  ;;  %v3367_v57 = vmax.f32 %v9555_v22, 0.0 }
 0xd0b   : > { %v9556_v37 = vpop.f32.mrb[94].mxu1  ;;  %v3365_v40 = vmax.f32 %v3250_v61, 0.0 }
 0xd0c   : > { %v3368_v55 = vmax.f32 %v9556_v37, 0.0  ;;  %v3253_v62 = vpop.f32.mrb[95].mxu1 }
 0xd0d   : > { %v3366_v20 = vmax.f32 %v3253_v62, 0.0 }
 0xd0e   : > { %v3396_v17 = vpack.c.bf16 %v3368_v55, %v3367_v57 }
 0xd0f   : > { %v3395_v12 = vpack.c.bf16 %v3366_v20, %v3365_v40  ;;  %v10507_v40 = vmov 0  }
 0xd10   : > { %3832 = vst.msk [vmem:[#allocation2 + $0x18] sm:$0xf] %vm3824_vm2, %v10507_v40  ;;  %3825 = vst.msk [vmem:[#allocation2] sm:$0xf] %vm3824_vm2, %v10507_v40 }
 0xd11   : > { %v9559_v48 = vpop.f32.mrb[96].mxu1  ;;  %9593 = vmatprep.mubr.msk.bf16.mxu0 %vm577_vm0, %v3395_v12  ;;  %3826 = vst.msk [vmem:[#allocation2 + $0x4] sm:$0xf] %vm3824_vm2, %v10507_v40  ;;  %3829 = vst.msk [vmem:[#allocation2 + $0xc] sm:$0xf] %vm3824_vm2, %v10507_v40 }
 0xd12   : > { %v3266_v59 = vpop.f32.mrb[97].mxu1  ;;  %9594 = vmatmul.mubr.msk.bf16.gmra.mrb[92].mxu0 %vm577_vm0, %v3396_v17  ;;  %v3371_v58 = vmax.f32 %v9559_v48, 0.0  ;;  %3830 = vst.msk [vmem:[#allocation2 + $0x10] sm:$0xf] %vm3824_vm2, %v10507_v40  ;;  %3833 = vst.msk [vmem:[#allocation2 + $0x1c] sm:$0xf] %vm3824_vm2, %v10507_v40 }
 0xd13   : > { %v9560_v53 = vpop.f32.mrb[98].mxu1  ;;  %v3369_v41 = vmax.f32 %v3266_v59, 0.0  ;;  %3835 = vst.msk [vmem:[#allocation2 + $0x24] sm:$0xf] %vm3824_vm2, %v10507_v40  ;;  %3836 = vst.msk [vmem:[#allocation2 + $0x28] sm:$0xf] %vm3824_vm2, %v10507_v40 }
 0xd14   : > { %v3372_v52 = vmax.f32 %v9560_v53, 0.0  ;;  %v3269_v26 = vpop.f32.mrb[99].mxu1  ;;  %3838 = vst.msk [vmem:[#allocation2 + $0x30] sm:$0xf] %vm3824_vm2, %v10507_v40  ;;  %3839 = vst.msk [vmem:[#allocation2 + $0x34] sm:$0xf] %vm3824_vm2, %v10507_v40 }
 0xd15   : > { %v3370_v18 = vmax.f32 %v3269_v26, 0.0  ;;  %3841 = vst.msk [vmem:[#allocation2 + $0x3c] sm:$0xf] %vm3824_vm2, %v10507_v40  ;;  %3842 = vst.msk [vmem:[#allocation2 + $0x40] sm:$0xf] %vm3824_vm2, %v10507_v40 }
 0xd16   : > { %v3398_v60 = vpack.c.bf16 %v3372_v52, %v3371_v58  ;;  %3844 = vst.msk [vmem:[#allocation2 + $0x48] sm:$0xf] %vm3824_vm2, %v10507_v40  ;;  %3845 = vst.msk [vmem:[#allocation2 + $0x4c] sm:$0xf] %vm3824_vm2, %v10507_v40 }
 0xd17   : > { %v3397_v43 = vpack.c.bf16 %v3370_v18, %v3369_v41  ;;  %3847 = vst.msk [vmem:[#allocation2 + $0x54] sm:$0xf] %vm3824_vm2, %v10507_v40  ;;  %3848 = vst.msk [vmem:[#allocation2 + $0x58] sm:$0xf] %vm3824_vm2, %v10507_v40  ;;  %v4417_v20 = vld [vmem:[#allocation2] sm:$0xf] }
 0xd18   : > { %3850 = vst.msk [vmem:[#allocation2 + $0x60] sm:$0xf] %vm3824_vm2, %v10507_v40  ;;  %3851 = vst.msk [vmem:[#allocation2 + $0x64] sm:$0xf] %vm3824_vm2, %v10507_v40  ;;  %v4418_v17 = vld [vmem:[#allocation2 + $0x4] sm:$0xf] }
 0xd19   : > { %v9563_v3 = vpop.f32.mrb[100].mxu1  ;;  %9597 = vmatprep.mubr.msk.bf16.mxu0 %vm577_vm0, %v3397_v43  ;;  %3853 = vst.msk [vmem:[#allocation2 + $0x6c] sm:$0xf] %vm3824_vm2, %v10507_v40  ;;  %3854 = vst.msk [vmem:[#allocation2 + $0x70] sm:$0xf] %vm3824_vm2, %v10507_v40  ;;  %v4469_v12 = vshrl.u32 %v4417_v20, 16 }
 0xd1a   : > { %v3282_v36 = vpop.f32.mrb[101].mxu1  ;;  %9598 = vmatmul.mubr.msk.bf16.gmra.mrb[96].mxu0 %vm577_vm0, %v3398_v60  ;;  %v3375_v33 = vmax.f32 %v9563_v3, 0.0  ;;  %3856 = vst.msk [vmem:[#allocation2 + $0x78] sm:$0xf] %vm3824_vm2, %v10507_v40  ;;  %3857 = vst.msk [vmem:[#allocation2 + $0x7c] sm:$0xf] %vm3824_vm2, %v10507_v40 }
 0xd1b   : > { %v9564_v35 = vpop.f32.mrb[102].mxu1  ;;  %v3373_v5 = vmax.f32 %v3282_v36, 0.0  ;;  %3859 = vst.msk [vmem:[#allocation2 + $0x84] sm:$0xf] %vm3824_vm2, %v10507_v40  ;;  %3860 = vst.msk [vmem:[#allocation2 + $0x88] sm:$0xf] %vm3824_vm2, %v10507_v40 }
 0xd1c   : > { %v3376_v6 = vmax.f32 %v9564_v35, 0.0  ;;  %v3285_v46 = vpop.f32.mrb[103].mxu1  ;;  %3862 = vst.msk [vmem:[#allocation2 + $0x90] sm:$0xf] %vm3824_vm2, %v10507_v40  ;;  %3863 = vst.msk [vmem:[#allocation2 + $0x94] sm:$0xf] %vm3824_vm2, %v10507_v40 }
 0xd1d   : > { %v3374_v7 = vmax.f32 %v3285_v46, 0.0  ;;  %3865 = vst.msk [vmem:[#allocation2 + $0x9c] sm:$0xf] %vm3824_vm2, %v10507_v40  ;;  %3866 = vst.msk [vmem:[#allocation2 + $0xa0] sm:$0xf] %vm3824_vm2, %v10507_v40  ;;  %v4472_v48 = vshll.u32 %v4417_v20, 16 }
 0xd1e   : > { %v3400_v34 = vpack.c.bf16 %v3376_v6, %v3375_v33  ;;  %3868 = vst.msk [vmem:[#allocation2 + $0xa8] sm:$0xf] %vm3824_vm2, %v10507_v40  ;;  %3869 = vst.msk [vmem:[#allocation2 + $0xac] sm:$0xf] %vm3824_vm2, %v10507_v40  ;;  %v4478_v59 = vshll.u32 %v4418_v17, 16  ;;  %v4482_v53 = vshrl.u32 %v4418_v17, 16 }
 0xd1f   : > { %v3399_v10 = vpack.c.bf16 %v3374_v7, %v3373_v5  ;;  %3871 = vst.msk [vmem:[#allocation2 + $0xb4] sm:$0xf] %vm3824_vm2, %v10507_v40  ;;  %3872 = vst.msk [vmem:[#allocation2 + $0xb8] sm:$0xf] %vm3824_vm2, %v10507_v40  ;;  %v4471_v58 = vrot.slane %v4469_v12, 4  ;;  %v4474_v52 = vrot.slane %v4472_v48, 5 }
 0xd20   : > { %3874 = vst.msk [vmem:[#allocation2 + $0xc0] sm:$0xf] %vm3824_vm2, %v10507_v40  ;;  %3875 = vst.msk [vmem:[#allocation2 + $0xc4] sm:$0xf] %vm3824_vm2, %v10507_v40  ;;  %v4480_v26 = vrot.slane %v4478_v59, 5  ;;  %v4484_v41 = vrot.slane %v4482_v53, 4 }
 0xd21   : > { %v9567_v2 = vpop.f32.mrb[104].mxu1  ;;  %9601 = vmatprep.mubr.msk.bf16.mxu0 %vm577_vm0, %v3399_v10  ;;  %3877 = vst.msk [vmem:[#allocation2 + $0xcc] sm:$0xf] %vm3824_vm2, %v10507_v40  ;;  %3878 = vst.msk [vmem:[#allocation2 + $0xd0] sm:$0xf] %vm3824_vm2, %v10507_v40  ;;  %v4475_v60 = vor.u32 %v4474_v52, %v4471_v58  ;;  %v12616_v20 = vld [vmem:[%s10640_s16 + $0x38] sm:$0xff]  }
 0xd22   : > { %v3298_v0 = vpop.f32.mrb[105].mxu1  ;;  %9602 = vmatmul.mubr.msk.bf16.gmra.mrb[100].mxu0 %vm577_vm0, %v3400_v34  ;;  %v3379_v56 = vmax.f32 %v9567_v2, 0.0  ;;  %3834 = vst.msk [vmem:[#allocation2 + $0x20] sm:$0x1] %vm3827_vm3, %v10507_v40  ;;  %3828 = vst.msk [vmem:[#allocation2 + $0x8] sm:$0x1] %vm3827_vm3, %v10507_v40  ;;  %v4485_v43 = vor.u32 %v4484_v41, %v4480_v26  ;;  %v3742_v17 = vunpack.c.l.bf16 %v12616_v20 }
 0xd23   : > { %v9568_v1 = vpop.f32.mrb[106].mxu1  ;;  %v3377_v49 = vmax.f32 %v3298_v0, 0.0  ;;  %3831 = vst.msk [vmem:[#allocation2 + $0x14] sm:$0x1] %vm3827_vm3, %v10507_v40  ;;  %3837 = vst.msk [vmem:[#allocation2 + $0x2c] sm:$0x1] %vm3827_vm3, %v10507_v40 }
 0xd24   : > { %v3380_v38 = vmax.f32 %v9568_v1, 0.0  ;;  %v3301_v15 = vpop.f32.mrb[107].mxu1  ;;  %3840 = vst.msk [vmem:[#allocation2 + $0x38] sm:$0x1] %vm3827_vm3, %v10507_v40  ;;  %3843 = vst.msk [vmem:[#allocation2 + $0x44] sm:$0x1] %vm3827_vm3, %v10507_v40 }
 0xd25   : > { %v3378_v8 = vmax.f32 %v3301_v15, 0.0  ;;  %3846 = vst.msk [vmem:[#allocation2 + $0x50] sm:$0x1] %vm3827_vm3, %v10507_v40  ;;  %3849 = vst.msk [vmem:[#allocation2 + $0x5c] sm:$0x1] %vm3827_vm3, %v10507_v40  ;;  %v4476_v36 = vrot.slane %v4475_v60, 4 }
 0xd26   : > { %v3402_v32 = vpack.c.bf16 %v3380_v38, %v3379_v56  ;;  %3852 = vst.msk [vmem:[#allocation2 + $0x68] sm:$0x1] %vm3827_vm3, %v10507_v40  ;;  %3855 = vst.msk [vmem:[#allocation2 + $0x74] sm:$0x1] %vm3827_vm3, %v10507_v40  ;;  %v4486_v33 = vrot.slane %v4485_v43, 4  ;;  %v10272_v1 = vld [vmem:[%s10640_s16 + $0x8] sm:$0xff]  }
 0xd27   : > { %v3401_v47 = vpack.c.bf16 %v3378_v8, %v3377_v49  ;;  %3858 = vst.msk [vmem:[#allocation2 + $0x80] sm:$0x1] %vm3827_vm3, %v10507_v40  ;;  %3861 = vst.msk [vmem:[#allocation2 + $0x8c] sm:$0x1] %vm3827_vm3, %v10507_v40  ;;  %v4481_v46 = vsel %vm12565_vm6, %v4476_v36, %v4480_v26  ;;  %v12577_v34 = vld [vmem:[%s14332_s5] ss:$0 sm:$0xff]  ;;  %v3730_v56 = vunpack.c.l.bf16 %v10272_v1 }
 0xd28   : > { %3864 = vst.msk [vmem:[#allocation2 + $0x98] sm:$0x1] %vm3827_vm3, %v10507_v40  ;;  %3867 = vst.msk [vmem:[#allocation2 + $0xa4] sm:$0x1] %vm3827_vm3, %v10507_v40  ;;  %v12582_v2 = vld [vmem:[%s14333_s6] ss:$0 sm:$0xff] }
 0xd29   : > { %v9571_v51 = vpop.f32.mrb[108].mxu1  ;;  %9605 = vmatprep.mubr.msk.bf16.mxu0 %vm577_vm0, %v3401_v47  ;;  %3870 = vst.msk [vmem:[#allocation2 + $0xb0] sm:$0x1] %vm3827_vm3, %v10507_v40  ;;  %3873 = vst.msk [vmem:[#allocation2 + $0xbc] sm:$0x1] %vm3827_vm3, %v10507_v40  ;;  %v10273_v15 = vld [vmem:[%s10640_s16] sm:$0xff]  }
 0xd2a   : > { %v3314_v63 = vpop.f32.mrb[109].mxu1  ;;  %9606 = vmatmul.mubr.msk.bf16.gmra.mrb[104].mxu0 %vm577_vm0, %v3402_v32  ;;  %v3383_v11 = vmax.f32 %v9571_v51, 0.0  ;;  %3876 = vst.msk [vmem:[#allocation2 + $0xc8] sm:$0x1] %vm3827_vm3, %v10507_v40  ;;  %3879 = vst.msk [vmem:[#allocation2 + $0xd4] sm:$0x1] %vm3827_vm3, %v10507_v40  ;;  %v3728_v49 = vunpack.c.l.bf16 %v10273_v15  ;;  %v3729_v8 = vunpack.c.h.bf16 %v10273_v15 }
 0xd2b   : > { %v9572_v44 = vpop.f32.mrb[110].mxu1  ;;  %v3381_v4 = vmax.f32 %v3314_v63, 0.0  ;;  %v4449_v18 = vld [vmem:[#allocation2 + $0x8] sm:$0x1]  ;;  %v12621_v58 = vld [vmem:[%s10640_s16 + $0x30] sm:$0xff]  }
 0xd2c   : > { %v3384_v45 = vmax.f32 %v9572_v44, 0.0  ;;  %v3317_v9 = vpop.f32.mrb[111].mxu1  ;;  %v4488_v3 = vshll.u32 %v4449_v18, 16  ;;  %v3731_v44 = vunpack.c.h.bf16 %v10272_v1  ;;  %v3740_v52 = vunpack.c.l.bf16 %v12621_v58  ;;  %v4312_v1 = vld [vmem:[#allocation2 + $0x18] sm:$0xf] }
 0xd2d   : > { %v3382_v16 = vmax.f32 %v3317_v9, 0.0 }
 0xd2e   : > { %v3404_v19 = vpack.c.bf16 %v3384_v45, %v3383_v11  ;;  %v4490_v6 = vrot.slane %v4488_v3, 5 }
 0xd2f   : > { %v3403_v28 = vpack.c.bf16 %v3382_v16, %v3381_v4 }
 0xd30   : > { %v4491_v5 = vsel %vm12565_vm6, %v4486_v33, %v4490_v6 }
 0xd31   : > { %v9575_v23 = vpop.f32.mrb[112].mxu1  ;;  %9609 = vmatprep.mubr.msk.bf16.mxu0 %vm577_vm0, %v3403_v28  ;;  %v8635_v7 = vcombine.low %v4481_v46, %v4491_v5 }
 0xd32   : > { %v3330_v42 = vpop.f32.mrb[113].mxu1  ;;  %9610 = vmatmul.mubr.msk.bf16.gmra.mrb[108].mxu0 %vm577_vm0, %v3404_v19  ;;  %v3387_v30 = vmax.f32 %v9575_v23, 0.0  ;;  %v12594_v19 = vld [vmem:[%s10640_s16 + $0x18] sm:$0xff]   ;;  %v12598_v23 = vld [vmem:[%s10640_s16 + $0x10] sm:$0xff]  }
 0xd33   : > { %v9576_v14 = vpop.f32.mrb[114].mxu1  ;;  %v3385_v27 = vmax.f32 %v3330_v42, 0.0  ;;  %6360 = vrot.lane.b32.xlu1 %v8635_v7, %s10508_s17  ;;  %v3734_v28 = vunpack.c.l.bf16 %v12594_v19  ;;  %v3732_v42 = vunpack.c.l.bf16 %v12598_v23 }
 0xd34   : > { %v3388_v13 = vmax.f32 %v9576_v14, 0.0  ;;  %v3333_v39 = vpop.f32.mrb[115].mxu1 }
 0xd35   : > { %v3386_v24 = vmax.f32 %v3333_v39, 0.0  ;;  %v3733_v39 = vunpack.c.h.bf16 %v12598_v23 }
 0xd36   : > { %v3406_v25 = vpack.c.bf16 %v3388_v13, %v3387_v30  ;;  %v3735_v13 = vunpack.c.h.bf16 %v12594_v19 }
 0xd37   : > { %v3405_v21 = vpack.c.bf16 %v3386_v24, %v3385_v27 }
 0xd39   : > { %v9579_v29 = vpop.f32.mrb[116].mxu1  ;;  %9613 = vmatprep.mubr.msk.bf16.mxu0 %vm577_vm0, %v3405_v21 }
 0xd3a   : > { %v3346_v54 = vpop.f32.mrb[117].mxu1  ;;  %9614 = vmatmul.mubr.msk.bf16.gmra.mrb[112].mxu0 %vm577_vm0, %v3406_v25  ;;  %v3391_v50 = vmax.f32 %v9579_v29, 0.0  ;;  %v12605_v25 = vld [vmem:[%s10640_s16 + $0x28] sm:$0xff]   ;;  %v12609_v29 = vld [vmem:[%s10640_s16 + $0x20] sm:$0xff]  }
 0xd3b   : > { %v9580_v31 = vpop.f32.mrb[118].mxu1  ;;  %v3389_v37 = vmax.f32 %v3346_v54, 0.0  ;;  %v3738_v21 = vunpack.c.l.bf16 %v12605_v25  ;;  %v3736_v54 = vunpack.c.l.bf16 %v12609_v29 }
 0xd3c   : > { %v3392_v22 = vmax.f32 %v9580_v31, 0.0  ;;  %v3349_v61 = vpop.f32.mrb[119].mxu1 }
 0xd3d   : > { %v3390_v57 = vmax.f32 %v3349_v61, 0.0  ;;  %v3739_v61 = vunpack.c.h.bf16 %v12605_v25 }
 0xd3e   : > { %v3408_v55 = vpack.c.bf16 %v3392_v22, %v3391_v50 }
 0xd3f   : > { %v3407_v62 = vpack.c.bf16 %v3390_v57, %v3389_v37  ;;  %v3737_v37 = vunpack.c.h.bf16 %v12609_v29 }
 0xd41   : > { %9617 = vmatprep.mubr.msk.bf16.mxu0 %vm577_vm0, %v3407_v62 }
 0xd42   : > { %9618 = vmatmul.mubr.msk.bf16.gmra.mrb[116].mxu0 %vm577_vm0, %v3408_v55 }
 0xddd   : > { %v9591_v10 = vpop.f32.mrb[88].mxu0 }
 0xdde   : > { %v3659_v0 = vmul.f32 %v9591_v10, %v12577_v34  ;;  %v3523_v38 = vpop.f32.mrb[89].mxu0 }
 0xddf   : > { %v3657_v32 = vmul.f32 %v12577_v34, %v3523_v38  ;;  %v9592_v47 = vpop.f32.mrb[90].mxu0 }
 0xde0   : > { %v3698_v51 = vadd.f32 %v12582_v2, %v3659_v0  ;;  %v3660_v63 = vmul.f32 %v9592_v47, %v12577_v34  ;;  %v3526_v11 = vpop.f32.mrb[91].mxu0  ;;  %v4303_v47 = vld [vmem:[#allocation2 + $0xc] sm:$0xf] }
 0xde1   : > { %v3696_v45 = vadd.f32 %v12582_v2, %v3657_v32  ;;  %v3658_v9 = vmul.f32 %v12577_v34, %v3526_v11 }
 0xde2   : > { %v3762_v4 = vadd.f32 %v3730_v56, %v3698_v51  ;;  %v3699_v16 = vadd.f32 %v12582_v2, %v3660_v63 }
 0xde3   : > { %v3760_v14 = vadd.f32 %v3728_v49, %v3696_v45  ;;  %v3697_v30 = vadd.f32 %v12582_v2, %v3658_v9 }
 0xde4   : > { %v3794_v27 = vmax.f32 %v3762_v4, 0.0  ;;  %v3763_v24 = vadd.f32 %v3731_v44, %v3699_v16  ;;  %v4316_v4 = vld [vmem:[#allocation2 + $0x20] sm:$0x1] }
 0xde5   : > { %v3792_v31 = vmax.f32 %v3760_v14, 0.0  ;;  %v3761_v50 = vadd.f32 %v3729_v8, %v3697_v30  ;;  %v9595_v22 = vpop.f32.mrb[92].mxu0 }
 0xde6   : > { %v8846_v57 = vpack.c.bf16 %v3794_v27, %v3794_v27  ;;  %v3795_v55 = vmax.f32 %v3763_v24, 0.0  ;;  %v3663_v62 = vmul.f32 %v9595_v22, %v12577_v34  ;;  %v3539_v40 = vpop.f32.mrb[93].mxu0  ;;  %v4309_v24 = vld [vmem:[#allocation2 + $0x14] sm:$0x1] }
 0xde7   : > { %v8844_v12 = vpack.c.bf16 %v3792_v31, %v3792_v31  ;;  %v3793_v48 = vmax.f32 %v3761_v50, 0.0  ;;  %v3661_v59 = vmul.f32 %v12577_v34, %v3539_v40  ;;  %v9596_v53 = vpop.f32.mrb[94].mxu0 }
 0xde8   : > { %v3997_v26 = vshrl.u32 %v8846_v57, 16  ;;  %v4000_v41 = vshll.u32 %v8846_v57, 16  ;;  %v8847_v18 = vpack.c.bf16 %v3795_v55, %v3795_v55  ;;  %v3702_v60 = vadd.f32 %v12582_v2, %v3663_v62  ;;  %v3542_v43 = vpop.f32.mrb[95].mxu0 }
 0xde9   : > { %v3980_v3 = vshrl.u32 %v8844_v12, 16  ;;  %v3983_v36 = vshll.u32 %v8844_v12, 16  ;;  %v8845_v33 = vpack.c.bf16 %v3793_v48, %v3793_v48  ;;  %v3700_v6 = vadd.f32 %v12582_v2, %v3661_v59 }
 0xdea   : > { %v3999_v46 = vrot.slane %v3997_v26, 7  ;;  %v4005_v5 = vshrl.u32 %v8847_v18, 16  ;;  %v4008_v7 = vshll.u32 %v8847_v18, 16  ;;  %v3766_v10 = vadd.f32 %v3734_v28, %v3702_v60 }
 0xdeb   : > { %v3982_v56 = vrot.slane %v3980_v3, 7  ;;  %v3988_v38 = vshrl.u32 %v8845_v33, 16  ;;  %v3991_v15 = vshll.u32 %v8845_v33, 16  ;;  %v3764_v49 = vadd.f32 %v3732_v42, %v3700_v6 }
 0xdec   : > { %v4002_v8 = vor.u32 %v4000_v41, %v3999_v46  ;;  %v4003_v32 = vrot.slane %v3999_v46, 4  ;;  %v4007_v63 = vrot.slane %v4005_v5, 7  ;;  %v3798_v44 = vmax.f32 %v3766_v10, 0.0 }
 0xded   : > { %v3985_v11 = vor.u32 %v3983_v36, %v3982_v56  ;;  %v3986_v45 = vrot.slane %v3982_v56, 4  ;;  %v3990_v16 = vrot.slane %v3988_v38, 7  ;;  %v3796_v28 = vmax.f32 %v3764_v49, 0.0  ;;  %v9599_v42 = vpop.f32.mrb[96].mxu0 }
 0xdee   : > { %v4313_v14 = vsel %vm12628_vm10, %v4002_v8, %v4312_v1  ;;  %v4010_v30 = vor.u32 %v4008_v7, %v4007_v63  ;;  %v4012_v27 = vrot.slane %v4007_v63, 4  ;;  %v8850_v31 = vpack.c.bf16 %v3798_v44, %v3798_v44  ;;  %v3555_v50 = vpop.f32.mrb[97].mxu0  ;;  %v4326_v7 = vld [vmem:[#allocation2 + $0x30] sm:$0xf]  ;;  %v4319_v8 = vld [vmem:[#allocation2 + $0x24] sm:$0xf] }
 0xdef   : > { %4314 = vst [vmem:[#allocation2 + $0x18] sm:$0xf] %v4313_v14  ;;  %v4304_v22 = vsel %vm12628_vm10, %v3985_v11, %v4303_v47  ;;  %v3993_v57 = vor.u32 %v3991_v15, %v3990_v16  ;;  %v3995_v55 = vrot.slane %v3990_v16, 4  ;;  %v8848_v62 = vpack.c.bf16 %v3796_v28, %v3796_v28  ;;  %v9600_v40 = vpop.f32.mrb[98].mxu0 }
 0xdf0   : > { %4305 = vst [vmem:[#allocation2 + $0xc] sm:$0xf] %v4304_v22  ;;  %v4011_v12 = vsel %vm12634_vm11, %v4003_v32, %v4010_v30  ;;  %v4317_v48 = vsel %vm12640_vm12, %v4012_v27, %v4316_v4  ;;  %v4031_v59 = vshrl.u32 %v8850_v31, 16  ;;  %v4034_v26 = vshll.u32 %v8850_v31, 16  ;;  %v3558_v41 = vpop.f32.mrb[99].mxu0 }
 0xdf1   : > { %4315 = vst.msk [vmem:[#allocation2 + $0x1c] sm:$0xf] %vm3824_vm2, %v4011_v12  ;;  %4318 = vst [vmem:[#allocation2 + $0x20] sm:$0x1] %v4317_v48  ;;  %v3994_v18 = vsel %vm12634_vm11, %v3986_v45, %v3993_v57  ;;  %v4310_v60 = vsel %vm12640_vm12, %v3995_v55, %v4309_v24  ;;  %v4014_v3 = vshrl.u32 %v8848_v62, 16  ;;  %v4017_v36 = vshll.u32 %v8848_v62, 16 }
 0xdf2   : > { %4306 = vst.msk [vmem:[#allocation2 + $0x10] sm:$0xf] %vm3824_vm2, %v3994_v18  ;;  %4311 = vst [vmem:[#allocation2 + $0x14] sm:$0x1] %v4310_v60  ;;  %v12658_v33 = vrot.slane %v4031_v59, 7  ;;  %v3664_v6 = vmul.f32 %v9596_v53, %v12577_v34  ;;  %v3662_v46 = vmul.f32 %v12577_v34, %v3542_v43  ;;  %v3667_v5 = vmul.f32 %v9599_v42, %v12577_v34 }
 0xdf3   : > { %v12663_v10 = vrot.slane %v4014_v3, 7  ;;  %v3665_v1 = vmul.f32 %v12577_v34, %v3555_v50  ;;  %v3668_v56 = vmul.f32 %v9600_v40, %v12577_v34  ;;  %v3666_v38 = vmul.f32 %v12577_v34, %v3558_v41  ;;  %v4330_v3 = vld [vmem:[#allocation2 + $0x38] sm:$0x1] }
 0xdf4   : > { %v4036_v15 = vor.u32 %v4034_v26, %v12658_v33  ;;  %v4037_v49 = vrot.slane %v12658_v33, 4  ;;  %v3703_v53 = vadd.f32 %v12582_v2, %v3664_v6  ;;  %v3701_v43 = vadd.f32 %v12582_v2, %v3662_v46 }
 0xdf5   : > { %v4019_v32 = vor.u32 %v4017_v36, %v12663_v10  ;;  %v4020_v47 = vrot.slane %v12663_v10, 4  ;;  %v3706_v63 = vadd.f32 %v12582_v2, %v3667_v5  ;;  %v3704_v44 = vadd.f32 %v12582_v2, %v3665_v1  ;;  %v9603_v11 = vpop.f32.mrb[100].mxu0  ;;  %v4323_v1 = vld [vmem:[#allocation2 + $0x2c] sm:$0x1] }
 0xdf6   : > { %v4327_v45 = vsel %vm12628_vm10, %v4036_v15, %v4326_v7  ;;  %v3767_v4 = vadd.f32 %v3735_v13, %v3703_v53  ;;  %v3765_v16 = vadd.f32 %v3733_v39, %v3701_v43  ;;  %v3707_v28 = vadd.f32 %v12582_v2, %v3668_v56  ;;  %v3571_v42 = vpop.f32.mrb[101].mxu0  ;;  %v4340_v53 = vld [vmem:[#allocation2 + $0x48] sm:$0xf] }
 0xdf7   : > { %4328 = vst [vmem:[#allocation2 + $0x30] sm:$0xf] %v4327_v45  ;;  %v4320_v14 = vsel %vm12628_vm10, %v4019_v32, %v4319_v8  ;;  %v3770_v30 = vadd.f32 %v3738_v21, %v3706_v63  ;;  %v3768_v27 = vadd.f32 %v3736_v54, %v3704_v44  ;;  %v3705_v24 = vadd.f32 %v12582_v2, %v3666_v38  ;;  %v12690_v19 = vpop.f32.mrb[102].mxu0 }
 0xdf8   : > { %4321 = vst [vmem:[#allocation2 + $0x24] sm:$0xf] %v4320_v14  ;;  %v3799_v23 = vmax.f32 %v3767_v4, 0.0  ;;  %v3797_v13 = vmax.f32 %v3765_v16, 0.0  ;;  %v3771_v39 = vadd.f32 %v3739_v61, %v3707_v28  ;;  %v3671_v31 = vmul.f32 %v9603_v11, %v12577_v34  ;;  %v12695_v50 = vpop.f32.mrb[103].mxu0 }
 0xdf9   : > { %v3802_v22 = vmax.f32 %v3770_v30, 0.0  ;;  %v3800_v57 = vmax.f32 %v3768_v27, 0.0  ;;  %v3769_v21 = vadd.f32 %v3737_v37, %v3705_v24  ;;  %v3669_v54 = vmul.f32 %v12577_v34, %v3571_v42  ;;  %v4333_v28 = vld [vmem:[#allocation2 + $0x3c] sm:$0xf] }
 0xdfa   : > { %v8851_v55 = vpack.c.bf16 %v3799_v23, %v3799_v23  ;;  %v8849_v62 = vpack.c.bf16 %v3797_v13, %v3797_v13  ;;  %v3803_v40 = vmax.f32 %v3771_v39, 0.0  ;;  %v3710_v12 = vadd.f32 %v12582_v2, %v3671_v31 }
 0xdfb   : > { %v8854_v48 = vpack.c.bf16 %v3802_v22, %v3802_v22  ;;  %v8852_v59 = vpack.c.bf16 %v3800_v57, %v3800_v57  ;;  %v3801_v25 = vmax.f32 %v3769_v21, 0.0  ;;  %v3708_v61 = vadd.f32 %v12582_v2, %v3669_v54 }
 0xdfc   : > { %v4039_v26 = vshrl.u32 %v8851_v55, 16  ;;  %v4042_v41 = vshll.u32 %v8851_v55, 16  ;;  %v4022_v18 = vshrl.u32 %v8849_v62, 16  ;;  %v4025_v60 = vshll.u32 %v8849_v62, 16  ;;  %v4344_v62 = vld [vmem:[#allocation2 + $0x50] sm:$0x1] }
 0xdfd   : > { %v4065_v36 = vshrl.u32 %v8854_v48, 16  ;;  %v4068_v29 = vshll.u32 %v8854_v48, 16  ;;  %v4048_v37 = vshrl.u32 %v8852_v59, 16  ;;  %v4051_v6 = vshll.u32 %v8852_v59, 16  ;;  %v12702_v46 = vpop.f32.mrb[104].mxu0 }
 0xdfe   : > { %v4041_v5 = vrot.slane %v4039_v26, 7  ;;  %v4024_v7 = vrot.slane %v4022_v18, 7  ;;  %v8855_v56 = vpack.c.bf16 %v3803_v40, %v3803_v40  ;;  %v8853_v38 = vpack.c.bf16 %v3801_v25, %v3801_v25  ;;  %v12704_v15 = vpop.f32.mrb[105].mxu0  ;;  %v4337_v26 = vld [vmem:[#allocation2 + $0x44] sm:$0x1] }
 0xdff   : > { %v4067_v8 = vrot.slane %v4065_v36, 7  ;;  %v4050_v43 = vrot.slane %v4048_v37, 7  ;;  %v3774_v32 = vadd.f32 %v3742_v17, %v3710_v12  ;;  %v3772_v63 = vadd.f32 %v3740_v52, %v3708_v61  ;;  %v12710_v44 = vpop.f32.mrb[106].mxu0 }
 0xe00   : > { %v4044_v11 = vor.u32 %v4042_v41, %v4041_v5  ;;  %v4046_v45 = vrot.slane %v4041_v5, 4  ;;  %v4027_v4 = vor.u32 %v4025_v60, %v4024_v7  ;;  %v4029_v16 = vrot.slane %v4024_v7, 4  ;;  %v12712_v42 = vpop.f32.mrb[107].mxu0 }
 0xe01   : > { %v4070_v14 = vor.u32 %v4068_v29, %v4067_v8  ;;  %v4053_v30 = vor.u32 %v4051_v6, %v4050_v43  ;;  %v3743_v27 = vunpack.c.h.bf16 %v12616_v20  ;;  %v3741_v10 = vunpack.c.h.bf16 %v12621_v58 }
 0xe02   : > { %v4045_v17 = vsel %vm12634_vm11, %v4037_v49, %v4044_v11  ;;  %v4331_v52 = vsel %vm12640_vm12, %v4046_v45, %v4330_v3  ;;  %v4028_v24 = vsel %vm12634_vm11, %v4020_v47, %v4027_v4  ;;  %v4324_v23 = vsel %vm12640_vm12, %v4029_v16, %v4323_v1  ;;  %v5034_v1 = vld [vmem:[#allocation2 + $0x1c] sm:$0xf]  ;;  %v5033_v45 = vld [vmem:[#allocation2 + $0x18] sm:$0xf]  ;;  %v5032_v4 = vld [vmem:[#allocation2 + $0x10] sm:$0xf] }
 0xe03   : > { %4329 = vst.msk [vmem:[#allocation2 + $0x34] sm:$0xf] %vm3824_vm2, %v4045_v17  ;;  %4332 = vst [vmem:[#allocation2 + $0x38] sm:$0x1] %v4331_v52  ;;  %v4341_v20 = vsel %vm12628_vm10, %v4070_v14, %v4340_v53  ;;  %v4334_v33 = vsel %vm12628_vm10, %v4053_v30, %v4333_v28  ;;  %v4073_v49 = vshrl.u32 %v8855_v56, 16  ;;  %v4071_v13 = vrot.slane %v4067_v8, 4 }
 0xe04   : > { %4322 = vst.msk [vmem:[#allocation2 + $0x28] sm:$0xf] %vm3824_vm2, %v4028_v24  ;;  %4325 = vst [vmem:[#allocation2 + $0x2c] sm:$0x1] %v4324_v23  ;;  %v4056_v47 = vshrl.u32 %v8853_v38, 16  ;;  %v3806_v39 = vmax.f32 %v3774_v32, 0.0  ;;  %v3672_v21 = vmul.f32 %v12690_v19, %v12577_v34  ;;  %v3670_v54 = vmul.f32 %v12577_v34, %v12695_v50 }
 0xe05   : > { %4342 = vst [vmem:[#allocation2 + $0x48] sm:$0xf] %v4341_v20  ;;  %4335 = vst [vmem:[#allocation2 + $0x3c] sm:$0xf] %v4334_v33  ;;  %v3804_v31 = vmax.f32 %v3772_v63, 0.0  ;;  %v4075_v22 = vrot.slane %v4073_v49, 7  ;;  %v8668_v30 = vcombine.low %v5033_v45, %v5034_v1 }
 0xe06   : > { %v4076_v57 = vshll.u32 %v8855_v56, 16  ;;  %v12738_v55 = vpop.f32.mrb[108].mxu0  ;;  %v4058_v40 = vrot.slane %v4056_v47, 7  ;;  %v4059_v12 = vshll.u32 %v8853_v38, 16  ;;  %v8858_v58 = vpack.c.bf16 %v3806_v39, %v3806_v39  ;;  %v4354_v53 = vld [vmem:[#allocation2 + $0x60] sm:$0xf] }
 0xe07   : > { %v8856_v48 = vpack.c.bf16 %v3804_v31, %v3804_v31  ;;  %v12740_v59 = vpop.f32.mrb[109].mxu0  ;;  %v4080_v61 = vrot.slane %v4075_v22, 4  ;;  %v3711_v41 = vadd.f32 %v12582_v2, %v3672_v21  ;;  %v3709_v18 = vadd.f32 %v12582_v2, %v3670_v54  ;;  %v4347_v28 = vld [vmem:[#allocation2 + $0x54] sm:$0xf]  ;;  %v5031_v24 = vld [vmem:[#allocation2 + $0xc] sm:$0xf]  ;;  %6506 = vrot.lane.b32.xlu1 %v8668_v30, %s10508_s17 }
 0xe08   : > { %v4078_v25 = vor.u32 %v4076_v57, %v4075_v22  ;;  %v12744_v19 = vpop.f32.mrb[110].mxu0  ;;  %v4054_v60 = vrot.slane %v4050_v43, 4  ;;  %v4061_v50 = vor.u32 %v4059_v12, %v4058_v40  ;;  %v4063_v3 = vrot.slane %v4058_v40, 4  ;;  %v4351_v1 = vld [vmem:[#allocation2 + $0x5c] sm:$0x1] }
 0xe09   : > { %v4099_v36 = vshrl.u32 %v8858_v58, 16  ;;  %v12746_v29 = vpop.f32.mrb[111].mxu0  ;;  %v4345_v6 = vsel %vm12640_vm12, %v4080_v61, %v4344_v62  ;;  %v4102_v5 = vshll.u32 %v8858_v58, 16  ;;  %v4082_v7 = vshrl.u32 %v8856_v48, 16 }
 0xe0a   : > { %v4079_v37 = vsel %vm12634_vm11, %v4071_v13, %v4078_v25  ;;  %4346 = vst [vmem:[#allocation2 + $0x50] sm:$0x1] %v4345_v6  ;;  %v4062_v56 = vsel %vm12634_vm11, %v4054_v60, %v4061_v50  ;;  %v4338_v38 = vsel %vm12640_vm12, %v4063_v3, %v4337_v26  ;;  %v3775_v43 = vadd.f32 %v3743_v27, %v3711_v41  ;;  %v10280_v27 = vld [vmem:[%s10640_s16 + $0x48] sm:$0xff]   ;;  %v10281_v13 = vld [vmem:[%s10640_s16 + $0x40] sm:$0xff]  }
 0xe0b   : > { %4343 = vst.msk [vmem:[#allocation2 + $0x4c] sm:$0xf] %vm3824_vm2, %v4079_v37  ;;  %v12757_v8 = vrot.slane %v4099_v36, 7  ;;  %4336 = vst.msk [vmem:[#allocation2 + $0x40] sm:$0xf] %vm3824_vm2, %v4062_v56  ;;  %v12760_v32 = vrot.slane %v4082_v7, 7  ;;  %v3773_v11 = vadd.f32 %v3741_v10, %v3709_v18  ;;  %v3746_v23 = vunpack.c.l.bf16 %v10280_v27 }
 0xe0c   : > { %4339 = vst [vmem:[#allocation2 + $0x44] sm:$0x1] %v4338_v38  ;;  %v4085_v63 = vshll.u32 %v8856_v48, 16  ;;  %v3807_v14 = vmax.f32 %v3775_v43, 0.0  ;;  %v8667_v10 = vcombine.low %v5031_v24, %v5032_v4  ;;  %v3744_v47 = vunpack.c.l.bf16 %v10281_v13  ;;  %v4358_v3 = vld [vmem:[#allocation2 + $0x68] sm:$0x1] }
 0xe0d   : > { %v4104_v16 = vor.u32 %v4102_v5, %v12757_v8  ;;  %v3805_v52 = vmax.f32 %v3773_v11, 0.0  ;;  %v12765_v20 = vpop.f32.mrb[112].mxu0  ;;  %v3675_v57 = vmul.f32 %v12702_v46, %v12577_v34  ;;  %v3747_v21 = vunpack.c.h.bf16 %v10280_v27  ;;  %v5036_v4 = vld [vmem:[#allocation2 + $0x28] sm:$0xf] }
 0xe0e   : > { %v4087_v17 = vor.u32 %v4085_v63, %v12760_v32  ;;  %v8859_v49 = vpack.c.bf16 %v3807_v14, %v3807_v14  ;;  %v12771_v39 = vpop.f32.mrb[113].mxu0  ;;  %v4105_v62 = vrot.slane %v12757_v8, 4  ;;  %6504 = vrot.lane.b32.xlu0 %v8667_v10, %s10508_s17  ;;  %v3673_v12 = vmul.f32 %v12577_v34, %v12704_v15 }
 0xe0f   : > { %v4355_v33 = vsel %vm12628_vm10, %v4104_v16, %v4354_v53  ;;  %v8857_v22 = vpack.c.bf16 %v3805_v52, %v3805_v52  ;;  %v12777_v54 = vpop.f32.mrb[114].mxu0  ;;  %v3745_v58 = vunpack.c.h.bf16 %v10281_v13  ;;  %v4088_v25 = vrot.slane %v12760_v32, 4  ;;  %v4419_v52 = vld [vmem:[#allocation2 + $0xc] sm:$0xf]  ;;  %v12815_v13 = vld [vmem:[%s10640_s16 + $0x50] sm:$0xff]  }
 0xe10   : > { %4356 = vst [vmem:[#allocation2 + $0x60] sm:$0xf] %v4355_v33  ;;  %v4348_v31 = vsel %vm12628_vm10, %v4087_v17, %v4347_v28  ;;  %v4107_v40 = vshrl.u32 %v8859_v49, 16  ;;  %v12783_v48 = vpop.f32.mrb[115].mxu0  ;;  %v3714_v46 = vadd.f32 %v12582_v2, %v3675_v57  ;;  %v3676_v26 = vmul.f32 %v12710_v44, %v12577_v34  ;;  %v5035_v33 = vld [vmem:[#allocation2 + $0x24] sm:$0xf] }
 0xe11   : > { %4349 = vst [vmem:[#allocation2 + $0x54] sm:$0xf] %v4348_v31  ;;  %v4090_v61 = vshrl.u32 %v8857_v22, 16  ;;  %v4110_v18 = vshll.u32 %v8859_v49, 16  ;;  %v3712_v60 = vadd.f32 %v12582_v2, %v3673_v12  ;;  %v3674_v50 = vmul.f32 %v12577_v34, %v12712_v42  ;;  %v12811_v49 = vld [vmem:[%s10640_s16 + $0x58] sm:$0xff]  }
 0xe12   : > { %v4109_v41 = vrot.slane %v4107_v40, 7  ;;  %v4093_v36 = vshll.u32 %v8857_v22, 16  ;;  %v3778_v37 = vadd.f32 %v3746_v23, %v3714_v46  ;;  %v3715_v6 = vadd.f32 %v12582_v2, %v3676_v26 }
 0xe13   : > { %v4092_v15 = vrot.slane %v4090_v61, 7  ;;  %v3776_v56 = vadd.f32 %v3744_v47, %v3712_v60  ;;  %v3713_v38 = vadd.f32 %v12582_v2, %v3674_v50  ;;  %v3750_v10 = vunpack.c.l.bf16 %v12811_v49  ;;  %v4368_v60 = vld [vmem:[#allocation2 + $0x78] sm:$0xf] }
 0xe14   : > { %v4112_v5 = vor.u32 %v4110_v18, %v4109_v41  ;;  %v4114_v7 = vrot.slane %v4109_v41, 4  ;;  %v3810_v53 = vmax.f32 %v3778_v37, 0.0  ;;  %v3779_v43 = vadd.f32 %v3747_v21, %v3715_v6  ;;  %v4420_v41 = vld [vmem:[#allocation2 + $0x10] sm:$0xf] }
 0xe15   : > { %v4095_v44 = vor.u32 %v4093_v36, %v4092_v15  ;;  %v4097_v8 = vrot.slane %v4092_v15, 4  ;;  %v12794_v32 = vpop.f32.mrb[116].mxu0  ;;  %v3808_v11 = vmax.f32 %v3776_v56, 0.0  ;;  %v3777_v45 = vadd.f32 %v3745_v58, %v3713_v38 }
 0xe16   : > { %v4113_v42 = vsel %vm12634_vm11, %v4105_v62, %v4112_v5  ;;  %v4359_v63 = vsel %vm12640_vm12, %v4114_v7, %v4358_v3  ;;  %v12800_v16 = vpop.f32.mrb[117].mxu0  ;;  %v8862_v30 = vpack.c.bf16 %v3810_v53, %v3810_v53  ;;  %v3811_v17 = vmax.f32 %v3779_v43, 0.0  ;;  %v4361_v5 = vld [vmem:[#allocation2 + $0x6c] sm:$0xf] }
 0xe17   : > { %4357 = vst.msk [vmem:[#allocation2 + $0x64] sm:$0xf] %vm3824_vm2, %v4113_v42  ;;  %4360 = vst [vmem:[#allocation2 + $0x68] sm:$0x1] %v4359_v63  ;;  %v4096_v28 = vsel %vm12634_vm11, %v4088_v25, %v4095_v44  ;;  %v4352_v14 = vsel %vm12640_vm12, %v4097_v8, %v4351_v1  ;;  %v12807_v24 = vpop.f32.mrb[118].mxu0  ;;  %v8860_v27 = vpack.c.bf16 %v3808_v11, %v3808_v11  ;;  %v3809_v23 = vmax.f32 %v3777_v45, 0.0 }
 0xe18   : > { %4350 = vst.msk [vmem:[#allocation2 + $0x58] sm:$0xf] %vm3824_vm2, %v4096_v28  ;;  %4353 = vst [vmem:[#allocation2 + $0x5c] sm:$0x1] %v4352_v14  ;;  %v3748_v47 = vunpack.c.l.bf16 %v12815_v13  ;;  %v12818_v31 = vpop.f32.mrb[119].mxu0  ;;  %v4133_v22 = vshrl.u32 %v8862_v30, 16  ;;  %v8863_v21 = vpack.c.bf16 %v3811_v17, %v3811_v17  ;;  %v8669_v62 = vcombine.low %v5035_v33, %v5036_v4 }
 0xe19   : > { %v4136_v57 = vshll.u32 %v8862_v30, 16  ;;  %v4116_v40 = vshrl.u32 %v8860_v27, 16  ;;  %v4119_v12 = vshll.u32 %v8860_v27, 16  ;;  %v8861_v58 = vpack.c.bf16 %v3809_v23, %v3809_v23  ;;  %v4372_v44 = vld [vmem:[#allocation2 + $0x80] sm:$0x1] }
 0xe1a   : > { %v4493_v25 = vshrl.u32 %v4419_v52, 16  ;;  %v4135_v61 = vrot.slane %v4133_v22, 7  ;;  %v4141_v46 = vshrl.u32 %v8863_v21, 16  ;;  %v4144_v26 = vshll.u32 %v8863_v21, 16  ;;  %6508 = vrot.lane.b32.xlu0 %v8669_v62, %s10508_s17  ;;  %v4365_v11 = vld [vmem:[#allocation2 + $0x74] sm:$0x1] }
 0xe1b   : > { %v4496_v18 = vshll.u32 %v4419_v52, 16  ;;  %v4118_v50 = vrot.slane %v4116_v40, 7  ;;  %v4124_v3 = vshrl.u32 %v8861_v58, 16  ;;  %v4127_v15 = vshll.u32 %v8861_v58, 16  ;;  %v4450_v45 = vld [vmem:[#allocation2 + $0x14] sm:$0x1] }
 0xe1c   : > { %v4495_v36 = vrot.slane %v4493_v25, 4  ;;  %v4138_v37 = vor.u32 %v4136_v57, %v4135_v61  ;;  %v4139_v6 = vrot.slane %v4135_v61, 4  ;;  %v4143_v7 = vrot.slane %v4141_v46, 7  ;;  %v5038_v40 = vld [vmem:[#allocation2 + $0x34] sm:$0xf] }
 0xe1d   : > { %v4498_v1 = vrot.slane %v4496_v18, 5  ;;  %v4121_v56 = vor.u32 %v4119_v12, %v4118_v50  ;;  %v4122_v38 = vrot.slane %v4118_v50, 4  ;;  %v4126_v8 = vrot.slane %v4124_v3, 7  ;;  %v4421_v18 = vld [vmem:[#allocation2 + $0x18] sm:$0xf] }
 0xe1e   : > { %v4502_v53 = vshll.u32 %v4420_v41, 16  ;;  %v4369_v43 = vsel %vm12628_vm10, %v4138_v37, %v4368_v60  ;;  %v4146_v42 = vor.u32 %v4144_v26, %v4143_v7  ;;  %v4148_v63 = vrot.slane %v4143_v7, 4  ;;  %v5037_v26 = vld [vmem:[#allocation2 + $0x30] sm:$0xf] }
 0xe1f   : > { %v4499_v4 = vor.u32 %v4498_v1, %v4495_v36  ;;  %4370 = vst [vmem:[#allocation2 + $0x78] sm:$0xf] %v4369_v43  ;;  %v4362_v28 = vsel %vm12628_vm10, %v4121_v56, %v4361_v5  ;;  %v4129_v14 = vor.u32 %v4127_v15, %v4126_v8  ;;  %v4131_v30 = vrot.slane %v4126_v8, 4  ;;  %v4422_v15 = vld [vmem:[#allocation2 + $0x1c] sm:$0xf] }
 0xe20   : > { %v4504_v17 = vrot.slane %v4502_v53, 5  ;;  %4363 = vst [vmem:[#allocation2 + $0x6c] sm:$0xf] %v4362_v28  ;;  %v4147_v52 = vsel %vm12634_vm11, %v4139_v6, %v4146_v42  ;;  %v4373_v27 = vsel %vm12640_vm12, %v4148_v63, %v4372_v44  ;;  %v4506_v33 = vshrl.u32 %v4420_v41, 16 }
 0xe21   : > { %v4500_v23 = vrot.slane %v4499_v4, 4  ;;  %4371 = vst.msk [vmem:[#allocation2 + $0x7c] sm:$0xf] %vm3824_vm2, %v4147_v52  ;;  %4374 = vst [vmem:[#allocation2 + $0x80] sm:$0x1] %v4373_v27  ;;  %v4130_v22 = vsel %vm12634_vm11, %v4122_v38, %v4129_v14  ;;  %v4366_v57 = vsel %vm12640_vm12, %v4131_v30, %v4365_v11  ;;  %v4512_v21 = vshll.u32 %v4450_v45, 16 }
 0xe22   : > { %v3679_v62 = vmul.f32 %v12738_v55, %v12577_v34  ;;  %4364 = vst.msk [vmem:[#allocation2 + $0x70] sm:$0xf] %vm3824_vm2, %v4130_v22  ;;  %4367 = vst [vmem:[#allocation2 + $0x74] sm:$0x1] %v4366_v57  ;;  %v4508_v12 = vrot.slane %v4506_v33, 4  ;;  %v3677_v58 = vmul.f32 %v12577_v34, %v12740_v59  ;;  %v3680_v25 = vmul.f32 %v12744_v19, %v12577_v34  ;;  %v12860_v30 = vld [vmem:[%s10640_s16 + $0x60] sm:$0xff]  }
 0xe23   : > { %v3751_v61 = vunpack.c.h.bf16 %v12811_v49  ;;  %v3749_v41 = vunpack.c.h.bf16 %v12815_v13  ;;  %v8670_v3 = vcombine.low %v5037_v26, %v5038_v40  ;;  %v4505_v59 = vsel %vm12565_vm6, %v4500_v23, %v4504_v17  ;;  %v4451_v23 = vld [vmem:[#allocation2 + $0x20] sm:$0x1] }
 0xe24   : > { %v3718_v46 = vadd.f32 %v12582_v2, %v3679_v62  ;;  %v4509_v55 = vor.u32 %v4508_v12, %v4504_v17  ;;  %v3716_v60 = vadd.f32 %v12582_v2, %v3677_v58  ;;  %v3719_v50 = vadd.f32 %v12582_v2, %v3680_v25  ;;  %v4375_v25 = vld [vmem:[#allocation2 + $0x84] sm:$0xf] }
 0xe25   : > { %v4514_v36 = vrot.slane %v4512_v21, 5  ;;  %v3678_v37 = vmul.f32 %v12577_v34, %v12746_v29  ;;  %6510 = vrot.lane.b32.xlu0 %v8670_v3, %s10508_s17  ;;  %v4517_v1 = vshrl.u32 %v4421_v18, 16  ;;  %v4520_v44 = vshll.u32 %v4421_v18, 16  ;;  %v4382_v21 = vld [vmem:[#allocation2 + $0x90] sm:$0xf] }
 0xe26   : > { %v3782_v19 = vadd.f32 %v3750_v10, %v3718_v46  ;;  %v4510_v6 = vrot.slane %v4509_v55, 4  ;;  %v3780_v5 = vadd.f32 %v3748_v47, %v3716_v60  ;;  %v3783_v7 = vadd.f32 %v3751_v61, %v3719_v50 }
 0xe27   : > { %v3717_v38 = vadd.f32 %v12582_v2, %v3678_v37  ;;  %v4526_v8 = vshll.u32 %v4422_v15, 16  ;;  %v4519_v29 = vrot.slane %v4517_v1, 4  ;;  %v4522_v47 = vrot.slane %v4520_v44, 5 }
 0xe28   : > { %v3814_v56 = vmax.f32 %v3782_v19, 0.0  ;;  %v4515_v49 = vsel %vm12565_vm6, %v4510_v6, %v4514_v36  ;;  %v3812_v10 = vmax.f32 %v3780_v5, 0.0  ;;  %v3815_v53 = vmax.f32 %v3783_v7, 0.0  ;;  %v5040_v5 = vld [vmem:[#allocation2 + $0x40] sm:$0xf] }
 0xe29   : > { %v8636_v43 = vcombine.low %v4505_v59, %v4515_v49  ;;  %v3781_v13 = vadd.f32 %v3749_v41, %v3717_v38  ;;  %v4530_v45 = vshrl.u32 %v4422_v15, 16  ;;  %v4523_v14 = vor.u32 %v4522_v47, %v4519_v29  ;;  %v4386_v41 = vld [vmem:[#allocation2 + $0x98] sm:$0x1]  ;;  %v4423_v7 = vld [vmem:[#allocation2 + $0x24] sm:$0xf] }
 0xe2a   : > { %v8866_v42 = vpack.c.bf16 %v3814_v56, %v3814_v56  ;;  %v8864_v63 = vpack.c.bf16 %v3812_v10, %v3812_v10  ;;  %v8867_v11 = vpack.c.bf16 %v3815_v53, %v3815_v53  ;;  %v3752_v17 = vunpack.c.l.bf16 %v12860_v30  ;;  %v4424_v49 = vld [vmem:[#allocation2 + $0x28] sm:$0xf] }
 0xe2b   : > { %6362 = vrot.lane.b32.xlu1 %v8636_v43, %s10508_s17  ;;  %v3813_v28 = vmax.f32 %v3781_v13, 0.0  ;;  %v4528_v33 = vrot.slane %v4526_v8, 5  ;;  %v4532_v40 = vrot.slane %v4530_v45, 4  ;;  %v4524_v55 = vrot.slane %v4523_v14, 4  ;;  %v4379_v8 = vld [vmem:[#allocation2 + $0x8c] sm:$0x1] }
 0xe2c   : > { %v4167_v4 = vshrl.u32 %v8866_v42, 16  ;;  %v4150_v52 = vshrl.u32 %v8864_v63, 16  ;;  %v4175_v27 = vshrl.u32 %v8867_v11, 16  ;;  %v4170_v57 = vshll.u32 %v8866_v42, 16  ;;  %v5039_v42 = vld [vmem:[#allocation2 + $0x3c] sm:$0xf] }
 0xe2d   : > { %v8865_v62 = vpack.c.bf16 %v3813_v28, %v3813_v28  ;;  %v4153_v58 = vshll.u32 %v8864_v63, 16  ;;  %v4178_v46 = vshll.u32 %v8867_v11, 16  ;;  %v4536_v60 = vshll.u32 %v4451_v23, 16  ;;  %v4452_v14 = vld [vmem:[#allocation2 + $0x2c] sm:$0x1] }
 0xe2e   : > { %v4169_v22 = vrot.slane %v4167_v4, 7  ;;  %v4152_v12 = vrot.slane %v4150_v52, 7  ;;  %v4177_v61 = vrot.slane %v4175_v27, 7  ;;  %v4533_v6 = vor.u32 %v4532_v40, %v4528_v33 }
 0xe2f   : > { %v4158_v18 = vshrl.u32 %v8865_v62, 16  ;;  %v4161_v37 = vshll.u32 %v8865_v62, 16  ;;  %v4538_v43 = vrot.slane %v4536_v60, 5  ;;  %v4529_v13 = vsel %vm12565_vm6, %v4524_v55, %v4528_v33 }
 0xe30   : > { %v4172_v26 = vor.u32 %v4170_v57, %v4169_v22  ;;  %v4173_v50 = vrot.slane %v4169_v22, 4  ;;  %v4155_v3 = vor.u32 %v4153_v58, %v4152_v12  ;;  %v4180_v15 = vor.u32 %v4178_v46, %v4177_v61  ;;  %v10285_v22 = vld [vmem:[%s10640_s16 + $0x68] sm:$0xff]   ;;  %v9793_v58 = vld [vmem:[%s14334_s7 + $0x40] sm:$0xff]  }
 0xe31   : > { %v4182_v59 = vrot.slane %v4177_v61, 4  ;;  %v4160_v19 = vrot.slane %v4158_v18, 7  ;;  %v4156_v1 = vrot.slane %v4152_v12, 4  ;;  %v4534_v29 = vrot.slane %v4533_v6, 4  ;;  %9117 = vmatprep.subr.bf16.mxu1 %v9793_v58  ;;  %v4453_v58 = vld [vmem:[#allocation2 + $0x38] sm:$0x1] }
 0xe32   : > { %v4383_v36 = vsel %vm12628_vm10, %v4172_v26, %v4382_v21  ;;  %v4376_v56 = vsel %vm12628_vm10, %v4155_v3, %v4375_v25  ;;  %v4181_v38 = vsel %vm12634_vm11, %v4173_v50, %v4180_v15  ;;  %v8671_v47 = vcombine.low %v5039_v42, %v5040_v5  ;;  %v5041_v15 = vld [vmem:[#allocation2 + $0x48] sm:$0xf] }
 0xe33   : > { %4384 = vst [vmem:[#allocation2 + $0x90] sm:$0xf] %v4383_v36  ;;  %v4387_v44 = vsel %vm12640_vm12, %v4182_v59, %v4386_v41  ;;  %4377 = vst [vmem:[#allocation2 + $0x84] sm:$0xf] %v4376_v56  ;;  %v4163_v10 = vor.u32 %v4161_v37, %v4160_v19  ;;  %v4165_v53 = vrot.slane %v4160_v19, 4  ;;  %v4541_v63 = vshrl.u32 %v4423_v7, 16 }
 0xe34   : > { %4385 = vst.msk [vmem:[#allocation2 + $0x94] sm:$0xf] %vm3824_vm2, %v4181_v38  ;;  %4388 = vst [vmem:[#allocation2 + $0x98] sm:$0x1] %v4387_v44  ;;  %v4544_v11 = vshll.u32 %v4423_v7, 16  ;;  %v4539_v28 = vsel %vm12565_vm6, %v4534_v29, %v4538_v43  ;;  %v4550_v52 = vshll.u32 %v4424_v49, 16  ;;  %6512 = vrot.lane.b32.xlu0 %v8671_v47, %s10508_s17  ;;  %v3754_v57 = vunpack.c.l.bf16 %v10285_v22 }
 0xe35   : > { %v4164_v45 = vsel %vm12634_vm11, %v4156_v1, %v4163_v10  ;;  %v4380_v4 = vsel %vm12640_vm12, %v4165_v53, %v4379_v8  ;;  %v8637_v27 = vcombine.low %v4529_v13, %v4539_v28  ;;  %v4543_v23 = vrot.slane %v4541_v63, 4  ;;  %v5042_v41 = vld [vmem:[#allocation2 + $0x4c] sm:$0xf]  ;;  %v4425_v59 = vld [vmem:[#allocation2 + $0x30] sm:$0xf] }
 0xe36   : > { %4378 = vst.msk [vmem:[#allocation2 + $0x88] sm:$0xf] %vm3824_vm2, %v4164_v45  ;;  %4381 = vst [vmem:[#allocation2 + $0x8c] sm:$0x1] %v4380_v4  ;;  %v4546_v33 = vrot.slane %v4544_v11, 5  ;;  %v4552_v21 = vrot.slane %v4550_v52, 5  ;;  %v3683_v40 = vmul.f32 %v12765_v20, %v12577_v34  ;;  %v3755_v12 = vunpack.c.h.bf16 %v10285_v22 }
 0xe37   : > { %v4554_v62 = vshrl.u32 %v4424_v49, 16  ;;  %6364 = vrot.lane.b32.xlu1 %v8637_v27, %s10508_s17  ;;  %v4560_v61 = vshll.u32 %v4452_v14, 16  ;;  %v3681_v46 = vmul.f32 %v12577_v34, %v12771_v39  ;;  %v3684_v26 = vmul.f32 %v12777_v54, %v12577_v34  ;;  %v9794_v20 = vld [vmem:[%s14334_s7] sm:$0xff]   ;;  %v4426_v29 = vld [vmem:[#allocation2 + $0x34] sm:$0xf] }
 0xe38   : > { %v4547_v25 = vor.u32 %v4546_v33, %v4543_v23  ;;  %v3722_v55 = vadd.f32 %v12582_v2, %v3683_v40  ;;  %v3753_v39 = vunpack.c.h.bf16 %v12860_v30  ;;  %v8672_v19 = vcombine.low %v5041_v15, %v5042_v41  ;;  %9118 = vmatpush3.bf16.msra.mxu1 %v9794_v20  ;;  %v9795_v30 = vld [vmem:[%s14334_s7 + $0x48] sm:$0xff]   ;;  %v9798_v27 = vld [vmem:[%s14334_s7 + $0x50] sm:$0xff]  }
 0xe39   : > { %v4556_v18 = vrot.slane %v4554_v62, 4  ;;  %v3720_v50 = vadd.f32 %v12582_v2, %v3681_v46  ;;  %v3723_v3 = vadd.f32 %v12582_v2, %v3684_v26  ;;  %v4562_v37 = vrot.slane %v4560_v61, 5  ;;  %9119 = vmatprep.subr.bf16.mxu1 %v9795_v30  ;;  %v4396_v33 = vld [vmem:[#allocation2 + $0xa8] sm:$0xf]  ;;  %v4389_v46 = vld [vmem:[#allocation2 + $0x9c] sm:$0xf] }
 0xe3a   : > { %v4548_v60 = vrot.slane %v4547_v25, 4  ;;  %v3786_v54 = vadd.f32 %v3754_v57, %v3722_v55  ;;  %v3682_v7 = vmul.f32 %v12577_v34, %v12783_v48  ;;  %6514 = vrot.lane.b32.xlu0 %v8672_v19, %s10508_s17  ;;  %v4565_v38 = vshrl.u32 %v4425_v59, 16  ;;  %v4400_v26 = vld [vmem:[#allocation2 + $0xb0] sm:$0x1]  ;;  %v12921_v55 = vld [vmem:[%s10640_s16 + $0x78] sm:$0xff]  }
 0xe3b   : > { %v4557_v36 = vor.u32 %v4556_v18, %v4552_v21  ;;  %v3784_v6 = vadd.f32 %v3752_v17, %v3720_v50  ;;  %v3787_v5 = vadd.f32 %v3755_v12, %v3723_v3  ;;  %v4568_v44 = vshll.u32 %v4425_v59, 16  ;;  %v9800_v30 = vld [vmem:[%s14334_s7 + $0x58] sm:$0xff]  }
 0xe3c   : > { %v3818_v56 = vmax.f32 %v3786_v54, 0.0  ;;  %v4553_v8 = vsel %vm12565_vm6, %v4548_v60, %v4552_v21  ;;  %v3721_v53 = vadd.f32 %v12582_v2, %v3682_v7  ;;  %v4567_v17 = vrot.slane %v4565_v38, 4  ;;  %v9796_v2 = vld [vmem:[%s14334_s7 + $0x8] sm:$0xff]   ;;  %v9799_v60 = vld [vmem:[%s14334_s7 + $0x10] sm:$0xff]   ;;  %v4393_v38 = vld [vmem:[#allocation2 + $0xa4] sm:$0x1] }
 0xe3d   : > { %v4558_v1 = vrot.slane %v4557_v36, 4  ;;  %v3816_v49 = vmax.f32 %v3784_v6, 0.0  ;;  %v3819_v10 = vmax.f32 %v3787_v5, 0.0  ;;  %v4570_v43 = vrot.slane %v4568_v44, 5  ;;  %9120 = vmatpush3.bf16.msra.mxu1 %v9796_v2  ;;  %v4428_v36 = vld [vmem:[#allocation2 + $0x40] sm:$0xf] }
 0xe3e   : > { %v8870_v48 = vpack.c.bf16 %v3818_v56, %v3818_v56  ;;  %v3785_v63 = vadd.f32 %v3753_v39, %v3721_v53  ;;  %v4574_v4 = vshll.u32 %v4426_v29, 16  ;;  %v4578_v21 = vshrl.u32 %v4426_v29, 16  ;;  %9121 = vmatprep.subr.bf16.mxu1 %v9798_v27  ;;  %v4427_v39 = vld [vmem:[#allocation2 + $0x3c] sm:$0xf]  ;;  %v5044_v5 = vld [vmem:[#allocation2 + $0x58] sm:$0xf] }
 0xe3f   : > { %v4563_v34 = vsel %vm12565_vm6, %v4558_v1, %v4562_v37  ;;  %v8868_v13 = vpack.c.bf16 %v3816_v49, %v3816_v49  ;;  %v8871_v47 = vpack.c.bf16 %v3819_v10, %v3819_v10  ;;  %v4571_v45 = vor.u32 %v4570_v43, %v4567_v17  ;;  %v5043_v29 = vld [vmem:[#allocation2 + $0x54] sm:$0xf] }
 0xe40   : > { %v8638_v42 = vcombine.low %v4553_v8, %v4563_v34  ;;  %v4201_v11 = vshrl.u32 %v8870_v48, 16  ;;  %v4204_v28 = vshll.u32 %v8870_v48, 16  ;;  %v3817_v57 = vmax.f32 %v3785_v63, 0.0  ;;  %v4454_v48 = vld [vmem:[#allocation2 + $0x44] sm:$0x1] }
 0xe41   : > { %v4184_v14 = vshrl.u32 %v8868_v13, 16  ;;  %v4209_v52 = vshrl.u32 %v8871_v47, 16  ;;  %v4187_v22 = vshll.u32 %v8868_v13, 16  ;;  %v4212_v12 = vshll.u32 %v8871_v47, 16  ;;  %9122 = vmatpush3.bf16.msra.mxu1 %v9799_v60  ;;  %v10289_v60 = vld [vmem:[%s14333_s6] ss:$0 sm:$0xff] }
 0xe42   : > { %6366 = vrot.lane.b32.xlu1 %v8638_v42, %s10508_s17  ;;  %v4203_v23 = vrot.slane %v4201_v11, 7  ;;  %v4572_v25 = vrot.slane %v4571_v45, 4  ;;  %v8869_v41 = vpack.c.bf16 %v3817_v57, %v3817_v57  ;;  %v4576_v18 = vrot.slane %v4574_v4, 5  ;;  %9123 = vmatprep.subr.bf16.mxu1 %v9800_v30  ;;  %v4455_v30 = vld [vmem:[#allocation2 + $0x50] sm:$0x1] }
 0xe43   : > { %v4186_v62 = vrot.slane %v4184_v14, 7  ;;  %v4211_v40 = vrot.slane %v4209_v52, 7  ;;  %v3758_v20 = vunpack.c.l.bf16 %v12921_v55  ;;  %v4580_v37 = vrot.slane %v4578_v21, 4  ;;  %v9801_v14 = vld [vmem:[%s14334_s7 + $0x18] sm:$0xff]  }
 0xe44   : > { %v4206_v61 = vor.u32 %v4204_v28, %v4203_v23  ;;  %v4207_v50 = vrot.slane %v4203_v23, 4  ;;  %v4192_v19 = vshrl.u32 %v8869_v41, 16  ;;  %v4584_v6 = vshll.u32 %v4453_v58, 16 }
 0xe45   : > { %v4189_v3 = vor.u32 %v4187_v22, %v4186_v62  ;;  %v4214_v15 = vor.u32 %v4212_v12, %v4211_v40  ;;  %v4216_v59 = vrot.slane %v4211_v40, 4  ;;  %v4577_v44 = vsel %vm12565_vm6, %v4572_v25, %v4576_v18  ;;  %v5046_v12 = vld [vmem:[#allocation2 + $0x64] sm:$0xf]  ;;  %9124 = vmatpush3.bf16.msra.mxu1 %v9801_v14  ;;  %v10288_v25 = vld [vmem:[%s10640_s16 + $0x70] sm:$0xff]   ;;  %v5640_v14 = vld [vmem:[#allocation2 + $0x18] sm:$0xf] }
 0xe46   : > { %v4397_v54 = vsel %vm12628_vm10, %v4206_v61, %v4396_v33  ;;  %v4190_v8 = vrot.slane %v4186_v62, 4  ;;  %v4194_v49 = vrot.slane %v4192_v19, 7  ;;  %v4195_v10 = vshll.u32 %v8869_v41, 16  ;;  %v10287_v62 = vld [vmem:[%s14332_s5] ss:$0 sm:$0xff] }
 0xe47   : > { %4398 = vst [vmem:[#allocation2 + $0xa8] sm:$0xf] %v4397_v54  ;;  %v4390_v7 = vsel %vm12628_vm10, %v4189_v3, %v4389_v46  ;;  %v4215_v1 = vsel %vm12634_vm11, %v4207_v50, %v4214_v15  ;;  %v4401_v56 = vsel %vm12640_vm12, %v4216_v59, %v4400_v26  ;;  %v4581_v53 = vor.u32 %v4580_v37, %v4576_v18  ;;  %v4429_v3 = vld [vmem:[#allocation2 + $0x48] sm:$0xf] }
 0xe48   : > { %4391 = vst [vmem:[#allocation2 + $0x9c] sm:$0xf] %v4390_v7  ;;  %4399 = vst.msk [vmem:[#allocation2 + $0xac] sm:$0xf] %vm3824_vm2, %v4215_v1  ;;  %v8673_v34 = vcombine.low %v5043_v29, %v5044_v5  ;;  %v4589_v17 = vshrl.u32 %v4427_v39, 16  ;;  %v4592_v43 = vshll.u32 %v4427_v39, 16  ;;  %v4197_v13 = vor.u32 %v4195_v10, %v4194_v49 }
 0xe49   : > { %4402 = vst [vmem:[#allocation2 + $0xb0] sm:$0x1] %v4401_v56  ;;  %v4598_v42 = vshll.u32 %v4428_v36, 16  ;;  %v4199_v47 = vrot.slane %v4194_v49, 4  ;;  %v4582_v63 = vrot.slane %v4581_v53, 4  ;;  %v4586_v11 = vrot.slane %v4584_v6, 5 }
 0xe4a   : > { %6516 = vrot.lane.b32.xlu0 %v8673_v34, %s10508_s17  ;;  %v4591_v45 = vrot.slane %v4589_v17, 4  ;;  %v4594_v4 = vrot.slane %v4592_v43, 5  ;;  %v4602_v28 = vshrl.u32 %v4428_v36, 16  ;;  %v4198_v52 = vsel %vm12634_vm11, %v4190_v8, %v4197_v13  ;;  %v4430_v36 = vld [vmem:[#allocation2 + $0x4c] sm:$0xf]  ;;  %v9803_v5 = vld [vmem:[%s14334_s7 + $0x20] sm:$0xff]  }
 0xe4b   : > { %v4600_v2 = vrot.slane %v4598_v42, 5  ;;  %v4394_v27 = vsel %vm12640_vm12, %v4199_v47, %v4393_v38  ;;  %v4587_v23 = vsel %vm12565_vm6, %v4582_v63, %v4586_v11  ;;  %v4608_v33 = vshll.u32 %v4454_v48, 16  ;;  %4392 = vst.msk [vmem:[#allocation2 + $0xa0] sm:$0xf] %vm3824_vm2, %v4198_v52  ;;  %v9804_v63 = vld [vmem:[%s14334_s7 + $0x68] sm:$0xff]  }
 0xe4c   : > { %4395 = vst [vmem:[#allocation2 + $0xa4] sm:$0x1] %v4394_v27  ;;  %v8639_v22 = vcombine.low %v4577_v44, %v4587_v23  ;;  %v4595_v57 = vor.u32 %v4594_v4, %v4591_v45  ;;  %v4604_v21 = vrot.slane %v4602_v28, 4  ;;  %v3687_v40 = vmul.f32 %v10287_v62, %v12794_v32  ;;  %v5045_v32 = vld [vmem:[#allocation2 + $0x60] sm:$0xf]  ;;  %v9805_v11 = vld [vmem:[%s14334_s7 + $0x28] sm:$0xff]  }
 0xe4d   : > { %v3685_v58 = vmul.f32 %v10287_v62, %v12800_v16  ;;  %v3756_v61 = vunpack.c.l.bf16 %v10288_v25  ;;  %v3688_v46 = vmul.f32 %v10287_v62, %v12807_v24  ;;  %v3759_v26 = vunpack.c.h.bf16 %v12921_v55  ;;  %v9802_v24 = vld [vmem:[%s14334_s7 + $0x60] sm:$0xff]  }
 0xe4e   : > { %6368 = vrot.lane.b32.xlu1 %v8639_v22, %s10508_s17  ;;  %v4596_v41 = vrot.slane %v4595_v57, 4  ;;  %v4605_v18 = vor.u32 %v4604_v21, %v4600_v2  ;;  %v3726_v50 = vadd.f32 %v10289_v60, %v3687_v40  ;;  %v8674_v16 = vcombine.low %v5045_v32, %v5046_v12  ;;  %9125 = vmatprep.subr.bf16.mxu1 %v9802_v24  ;;  %v4410_v57 = vld [vmem:[#allocation2 + $0xc0] sm:$0xf]  ;;  %v9806_v32 = vld [vmem:[%s14334_s7 + $0x70] sm:$0xff]  }
 0xe4f   : > { %v3724_v15 = vadd.f32 %v10289_v60, %v3685_v58  ;;  %v3727_v59 = vadd.f32 %v10289_v60, %v3688_v46  ;;  %v3757_v39 = vunpack.c.h.bf16 %v10288_v25  ;;  %v4610_v37 = vrot.slane %v4608_v33, 5  ;;  %9126 = vmatpush3.bf16.msra.mxu1 %v9803_v5  ;;  %v4403_v58 = vld [vmem:[#allocation2 + $0xb4] sm:$0xf] }
 0xe50   : > { %v4601_v54 = vsel %vm12565_vm6, %v4596_v41, %v4600_v2  ;;  %v4606_v19 = vrot.slane %v4605_v18, 4  ;;  %v3790_v6 = vadd.f32 %v3758_v20, %v3726_v50  ;;  %6518 = vrot.lane.b32.xlu0 %v8674_v16, %s10508_s17  ;;  %v3686_v56 = vmul.f32 %v10287_v62, %v12818_v31  ;;  %9127 = vmatprep.subr.bf16.mxu1 %v9804_v63  ;;  %v4414_v18 = vld [vmem:[#allocation2 + $0xc8] sm:$0x1]  ;;  %v4431_v5 = vld [vmem:[#allocation2 + $0x54] sm:$0xf] }
 0xe51   : > { %v3788_v7 = vadd.f32 %v3756_v61, %v3724_v15  ;;  %v3791_v1 = vadd.f32 %v3759_v26, %v3727_v59  ;;  %v4613_v38 = vshrl.u32 %v4429_v3, 16  ;;  %v4616_v49 = vshll.u32 %v4429_v3, 16  ;;  %v9807_v3 = vld [vmem:[%s14334_s7 + $0x30] sm:$0xff]  }
 0xe52   : > { %v4611_v44 = vsel %vm12565_vm6, %v4606_v19, %v4610_v37  ;;  %v3822_v8 = vmax.f32 %v3790_v6, 0.0  ;;  %v4622_v10 = vshll.u32 %v4430_v36, 16  ;;  %v3725_v29 = vadd.f32 %v10289_v60, %v3686_v56  ;;  %v5672_v6 = vld [vmem:[#allocation2 + $0x20] sm:$0x1] }
 0xe53   : > { %v8640_v55 = vcombine.low %v4601_v54, %v4611_v44  ;;  %v3820_v20 = vmax.f32 %v3788_v7, 0.0  ;;  %v3823_v53 = vmax.f32 %v3791_v1, 0.0  ;;  %v4615_v48 = vrot.slane %v4613_v38, 4  ;;  %9128 = vmatpush3.bf16.msra.mxu1 %v9805_v11 }
 0xe54   : > { %v8874_v34 = vpack.c.bf16 %v3822_v8, %v3822_v8  ;;  %v4618_v17 = vrot.slane %v4616_v49, 5  ;;  %v12978_v43 = vrot.slane %v4622_v10, 5  ;;  %v3789_v13 = vadd.f32 %v3757_v39, %v3725_v29  ;;  %9129 = vmatprep.subr.bf16.mxu1 %v9806_v32 }
 0xe55   : > { %6370 = vrot.lane.b32.xlu1 %v8640_v55, %s10508_s17  ;;  %v8872_v31 = vpack.c.bf16 %v3820_v20, %v3820_v20  ;;  %v8875_v42 = vpack.c.bf16 %v3823_v53, %v3823_v53  ;;  %v4626_v47 = vshrl.u32 %v4430_v36, 16  ;;  %v4632_v28 = vshll.u32 %v4455_v30, 16  ;;  %v5641_v36 = vld [vmem:[#allocation2 + $0x1c] sm:$0xf] }
 0xe56   : > { %v4235_v45 = vshrl.u32 %v8874_v34, 16  ;;  %v4238_v4 = vshll.u32 %v8874_v34, 16  ;;  %v4619_v2 = vor.u32 %v4618_v17, %v4615_v48  ;;  %v3821_v21 = vmax.f32 %v3789_v13, 0.0  ;;  %v4407_v55 = vld [vmem:[#allocation2 + $0xbc] sm:$0x1] }
 0xe57   : > { %v4218_v52 = vshrl.u32 %v8872_v31, 16  ;;  %v4221_v27 = vshll.u32 %v8872_v31, 16  ;;  %v4243_v23 = vshrl.u32 %v8875_v42, 16  ;;  %v4246_v33 = vshll.u32 %v8875_v42, 16  ;;  %9130 = vmatpush3.bf16.msra.mxu1 %v9807_v3 }
 0xe58   : > { %v4237_v22 = vrot.slane %v4235_v45, 7  ;;  %v4620_v62 = vrot.slane %v4619_v2, 4  ;;  %v4628_v40 = vrot.slane %v4626_v47, 4  ;;  %v4634_v61 = vrot.slane %v4632_v28, 5  ;;  %v4456_v47 = vld [vmem:[#allocation2 + $0x5c] sm:$0x1] }
 0xe59   : > { %v4220_v12 = vrot.slane %v4218_v52, 7  ;;  %v4245_v25 = vrot.slane %v4243_v23, 7  ;;  %v5689_v46 = vshrl.u32 %v5640_v14, 16  ;;  %v8873_v60 = vpack.c.bf16 %v3821_v21, %v3821_v21  ;;  %v9808_v2 = vld [vmem:[%s14334_s7 + $0x78] sm:$0xff]  }
 0xe5a   : > { %v4240_v26 = vor.u32 %v4238_v4, %v4237_v22  ;;  %v4241_v41 = vrot.slane %v4237_v22, 4  ;;  %v4625_v50 = vsel %vm12565_vm6, %v4620_v62, %v12978_v43  ;;  %v4629_v37 = vor.u32 %v4628_v40, %v12978_v43  ;;  %v4432_v43 = vld [vmem:[#allocation2 + $0x58] sm:$0xf]  ;;  %v5463_v22 = vld [vmem:[#allocation2 + $0xc] sm:$0xe]  ;;  %9131 = vmatprep.subr.bf16.mxu1 %v9808_v2 }
 0xe5b   : > { %v4223_v15 = vor.u32 %v4221_v27, %v4220_v12  ;;  %v4224_v59 = vrot.slane %v4220_v12, 4  ;;  %v4248_v16 = vor.u32 %v4246_v33, %v4245_v25  ;;  %v4250_v39 = vrot.slane %v4245_v25, 4  ;;  %v9809_v28 = vld [vmem:[%s14334_s7 + $0x38] sm:$0xff]   ;;  %v5048_v12 = vld [vmem:[#allocation2 + $0x70] sm:$0xf] }
 0xe5c   : > { %v4411_v24 = vsel %vm12628_vm10, %v4240_v26, %v4410_v57  ;;  %v4226_v54 = vshrl.u32 %v8873_v60, 16  ;;  %v4229_v19 = vshll.u32 %v8873_v60, 16  ;;  %v5691_v38 = vrot.slane %v5689_v46, 4  ;;  %9132 = vmatpush3.bf16.msra.mxu1 %v9809_v28  ;;  %v5063_v25 = vld [vmem:[#allocation2 + $0x14] sm:$0x1] }
 0xe5d   : > { %4412 = vst [vmem:[#allocation2 + $0xc0] sm:$0xf] %v4411_v24  ;;  %v4404_v7 = vsel %vm12628_vm10, %v4223_v15, %v4403_v58  ;;  %v4249_v1 = vsel %vm12634_vm11, %v4241_v41, %v4248_v16  ;;  %v4415_v56 = vsel %vm12640_vm12, %v4250_v39, %v4414_v18  ;;  %v4630_v8 = vrot.slane %v4629_v37, 4  ;;  %v5047_v60 = vld [vmem:[#allocation2 + $0x6c] sm:$0xf] }
 0xe5e   : > { %4405 = vst [vmem:[#allocation2 + $0xb4] sm:$0xf] %v4404_v7  ;;  %4413 = vst.msk [vmem:[#allocation2 + $0xc4] sm:$0xf] %vm3824_vm2, %v4249_v1  ;;  %v4228_v44 = vrot.slane %v4226_v54, 7  ;;  %v5692_v49 = vshll.u32 %v5640_v14, 16  ;;  %v8675_v3 = vcombine.low %v5047_v60, %v5048_v12 }
 0xe5f   : > { %4416 = vst [vmem:[#allocation2 + $0xc8] sm:$0x1] %v4415_v56  ;;  %v5698_v10 = vshll.u32 %v5641_v36, 16  ;;  %v5702_v20 = vshrl.u32 %v5641_v36, 16  ;;  %v5708_v0 = vshll.u32 %v5672_v6, 16  ;;  %v4637_v53 = vshrl.u32 %v4431_v5, 16 }
 0xe60   : > { %v4640_v29 = vshll.u32 %v4431_v5, 16  ;;  %v4231_v30 = vor.u32 %v4229_v19, %v4228_v44  ;;  %v4233_v34 = vrot.slane %v4228_v44, 4  ;;  %v4635_v48 = vsel %vm12565_vm6, %v4630_v8, %v4634_v61  ;;  %v5642_v61 = vld [vmem:[#allocation2 + $0x24] sm:$0xf]  ;;  %v5673_v39 = vld [vmem:[#allocation2 + $0x2c] sm:$0x1] }
 0xe61   : > { %v5694_v17 = vrot.slane %v5692_v49, 5  ;;  %v8641_v31 = vcombine.low %v4625_v50, %v4635_v48  ;;  %v5700_v42 = vrot.slane %v5698_v10, 5  ;;  %v5704_v13 = vrot.slane %v5702_v20, 4  ;;  %v5643_v50 = vld [vmem:[#allocation2 + $0x28] sm:$0xf] }
 0xe62   : > { %v4232_v63 = vsel %vm12634_vm11, %v4224_v59, %v4231_v30  ;;  %v4408_v11 = vsel %vm12640_vm12, %v4233_v34, %v4407_v55  ;;  %v4639_v4 = vrot.slane %v4637_v53, 4  ;;  %v4642_v14 = vrot.slane %v4640_v29, 5  ;;  %v10290_v59 = vld [vmem:[#allocation2 + $0x10] sm:$0xf]  ;;  %v4433_v49 = vld [vmem:[#allocation2 + $0x60] sm:$0xf] }
 0xe63   : > { %v5695_v45 = vor.u32 %v5694_v17, %v5691_v38  ;;  %4406 = vst.msk [vmem:[#allocation2 + $0xb8] sm:$0xf] %vm3824_vm2, %v4232_v63  ;;  %4409 = vst [vmem:[#allocation2 + $0xbc] sm:$0x1] %v4408_v11  ;;  %6372 = vrot.lane.b32.xlu1 %v8641_v31, %s10508_s17  ;;  %v5705_v51 = vor.u32 %v5704_v13, %v5700_v42  ;;  %v4646_v52 = vshll.u32 %v4432_v43, 16  ;;  %v4650_v9 = vshrl.u32 %v4432_v43, 16 }
 0xe64   : > { %v5710_v23 = vrot.slane %v5708_v0, 5  ;;  %v4656_v33 = vshll.u32 %v4456_v47, 16  ;;  %v4643_v21 = vor.u32 %v4642_v14, %v4639_v4  ;;  %v8587_v15 = vrot.slane %v5463_v22, 9  ;;  %v4434_v53 = vld [vmem:[#allocation2 + $0x64] sm:$0xf] }
 0xe65   : > { %v5696_v27 = vrot.slane %v5695_v45, 4  ;;  %v5706_v57 = vrot.slane %v5705_v51, 4  ;;  %v4648_v62 = vrot.slane %v4646_v52, 5  ;;  %v4652_v40 = vrot.slane %v4650_v9, 4  ;;  %v4457_v29 = vld [vmem:[#allocation2 + $0x68] sm:$0x1] }
 0xe66   : > { %v4644_v26 = vrot.slane %v4643_v21, 4  ;;  %v4658_v18 = vrot.slane %v4656_v33, 5  ;;  %v5529_v16 = vrot.slane %v10290_v59, 5  ;;  %v5532_v24 = vrot.slane %v5063_v25, 5  ;;  %v5464_v28 = vld [vmem:[#allocation2 + $0x18] sm:$0xe] }
 0xe67   : > { %v5701_v58 = vsel %vm12565_vm6, %v5696_v27, %v5700_v42  ;;  %v5711_v46 = vsel %vm12565_vm6, %v5706_v57, %v5710_v23  ;;  %v4653_v41 = vor.u32 %v4652_v40, %v4648_v62  ;;  %v5713_v54 = vshrl.u32 %v5642_v61, 16  ;;  %v13041_v52 = vld [vmem:[#allocation2 + $0x7c] sm:$0xf]  ;;  %v5644_v9 = vld [vmem:[#allocation2 + $0x30] sm:$0xf]  ;;  %v9810_v57 = vld [vmem:[%s14334_s7 + $0xc0] sm:$0xff]  }
 0xe68   : > { %v8731_v32 = vcombine.low %v5701_v58, %v5711_v46  ;;  %v5716_v19 = vshll.u32 %v5642_v61, 16  ;;  %v4649_v37 = vsel %vm12565_vm6, %v4644_v26, %v4648_v62  ;;  %v5531_v5 = vrot.slane %v5529_v16, 4  ;;  %v5645_v22 = vld [vmem:[#allocation2 + $0x34] sm:$0xf]  ;;  %v9811_v21 = vld [vmem:[%s14334_s7 + $0x80] sm:$0xff]   ;;  %v9812_v61 = vld [vmem:[%s14334_s7 + $0xc8] sm:$0xff]   ;;  %9229 = vmatprep.subr.bf16.mxu0 %v9810_v57 }
 0xe69   : > { %v4654_v36 = vrot.slane %v4653_v41, 4  ;;  %v5722_v7 = vshll.u32 %v5643_v50, 16  ;;  %v5726_v1 = vshrl.u32 %v5643_v50, 16  ;;  %v5715_v38 = vrot.slane %v5713_v54, 4  ;;  %v5049_v58 = vld [vmem:[#allocation2 + $0x78] sm:$0xf]  ;;  %9230 = vmatpush3.bf16.msra.mxu0 %v9811_v21 }
 0xe6a   : > { %6776 = vrot.lane.b32.xlu0 %v8731_v32, %s10508_s17  ;;  %v5718_v44 = vrot.slane %v5716_v19, 5  ;;  %v5732_v8 = vshll.u32 %v5673_v39, 16  ;;  %v5533_v55 = vsel %vm13029_vm15, %v5531_v5, %v5532_v24  ;;  %v5530_v30 = vsel %vm13029_vm15, %v8587_v15, %v5529_v16  ;;  %v5064_v25 = vld [vmem:[#allocation2 + $0x20] sm:$0x1]  ;;  %v5674_v50 = vld [vmem:[#allocation2 + $0x38] sm:$0x1]  ;;  %9231 = vmatprep.subr.bf16.mxu0 %v9812_v61 }
 0xe6b   : > { %v4659_v56 = vsel %vm12565_vm6, %v4654_v36, %v4658_v18  ;;  %v5724_v20 = vrot.slane %v5722_v7, 5  ;;  %v5728_v0 = vrot.slane %v5726_v1, 4  ;;  %v8699_v48 = vcombine.low %v5530_v30, %v5533_v55  ;;  %v10291_v18 = vld [vmem:[#allocation2 + $0x1c] sm:$0xf]  ;;  %v9813_v16 = vld [vmem:[%s14334_s7 + $0x88] sm:$0xff]   ;;  %v9815_v30 = vld [vmem:[%s14334_s7 + $0x90] sm:$0xff]  }
 0xe6c   : > { %v8642_v10 = vcombine.low %v4649_v37, %v4659_v56  ;;  %v5719_v34 = vor.u32 %v5718_v44, %v5715_v38  ;;  %v4661_v43 = vshrl.u32 %v4433_v49, 16  ;;  %v4664_v31 = vshll.u32 %v4433_v49, 16  ;;  %v4435_v19 = vld [vmem:[#allocation2 + $0x6c] sm:$0xf]  ;;  %v9814_v37 = vld [vmem:[%s14334_s7 + $0xd0] sm:$0xff]  }
 0xe6d   : > { %v5729_v17 = vor.u32 %v5728_v0, %v5724_v20  ;;  %v4670_v13 = vshll.u32 %v4434_v53, 16  ;;  %v4674_v47 = vshrl.u32 %v4434_v53, 16  ;;  %v4680_v63 = vshll.u32 %v4457_v29, 16  ;;  %v4436_v38 = vld [vmem:[#allocation2 + $0x70] sm:$0xf]  ;;  %9232 = vmatpush3.bf16.msra.mxu0 %v9813_v16 }
 0xe6e   : > { %6374 = vrot.lane.b32.xlu1 %v8642_v10, %s10508_s17  ;;  %6520 = vrot.lane.b32.xlu0 %v8675_v3, %s10508_s17  ;;  %v5720_v42 = vrot.slane %v5719_v34, 4  ;;  %v5734_v45 = vrot.slane %v5732_v8, 5  ;;  %v4663_v4 = vrot.slane %v4661_v43, 4  ;;  %v4666_v2 = vrot.slane %v4664_v31, 5  ;;  %v4458_v55 = vld [vmem:[#allocation2 + $0x74] sm:$0x1] }
 0xe6f   : > { %v5730_v11 = vrot.slane %v5729_v17, 4  ;;  %v4672_v51 = vrot.slane %v4670_v13, 5  ;;  %v4676_v14 = vrot.slane %v4674_v47, 4  ;;  %v4682_v12 = vrot.slane %v4680_v63, 5  ;;  %9233 = vmatprep.subr.bf16.mxu0 %v9814_v37  ;;  %v9816_v31 = vld [vmem:[%s14334_s7 + $0xd8] sm:$0xff]  }
 0xe70   : > { %v5725_v27 = vsel %vm12565_vm6, %v5720_v42, %v5724_v20  ;;  %v4667_v33 = vor.u32 %v4666_v2, %v4663_v4  ;;  %v8676_v26 = vcombine.low %v5049_v58, %v13041_v52  ;;  %v8588_v41 = vrot.slane %v5464_v28, 9  ;;  %v4438_v37 = vld [vmem:[#allocation2 + $0x7c] sm:$0xf] }
 0xe71   : > { %v5735_v23 = vsel %vm12565_vm6, %v5730_v11, %v5734_v45  ;;  %v4677_v40 = vor.u32 %v4676_v14, %v4672_v51  ;;  %v5536_v60 = vrot.slane %v10291_v18, 5  ;;  %v5737_v3 = vshrl.u32 %v5644_v9, 16  ;;  %v5465_v11 = vld [vmem:[#allocation2 + $0x24] sm:$0xe]  ;;  %9234 = vmatpush3.bf16.msra.mxu0 %v9815_v30 }
 0xe72   : > { %6632 = vrot.lane.b32.xlu1 %v8699_v48, %s10508_s17  ;;  %v8732_v62 = vcombine.low %v5725_v27, %v5735_v23  ;;  %v4668_v46 = vrot.slane %v4667_v33, 4  ;;  %v5740_v15 = vshll.u32 %v5644_v9, 16  ;;  %v5746_v59 = vshll.u32 %v5645_v22, 16  ;;  %v5065_v9 = vld [vmem:[#allocation2 + $0x2c] sm:$0x1]  ;;  %v9817_v23 = vld [vmem:[%s14334_s7 + $0x98] sm:$0xff]   ;;  %9235 = vmatprep.subr.bf16.mxu0 %v9816_v31 }
 0xe73   : > { %v4678_v32 = vrot.slane %v4677_v40, 4  ;;  %v5538_v36 = vrot.slane %v5536_v60, 4  ;;  %v5539_v24 = vrot.slane %v5064_v25, 5  ;;  %v5750_v54 = vshrl.u32 %v5645_v22, 16  ;;  %v5646_v27 = vld [vmem:[#allocation2 + $0x3c] sm:$0xf] }
 0xe74   : > { %6778 = vrot.lane.b32.xlu0 %v8732_v62, %s10508_s17  ;;  %v4673_v39 = vsel %vm12565_vm6, %v4668_v46, %v4672_v51  ;;  %v5739_v7 = vrot.slane %v5737_v3, 4  ;;  %v5742_v1 = vrot.slane %v5740_v15, 5  ;;  %v5748_v56 = vrot.slane %v5746_v59, 5  ;;  %v13081_v51 = vld [vmem:[#allocation2 + $0x88] sm:$0xf] }
 0xe75   : > { %v4683_v5 = vsel %vm12565_vm6, %v4678_v32, %v4682_v12  ;;  %v5540_v8 = vsel %vm13029_vm15, %v5538_v36, %v5539_v24  ;;  %v5752_v49 = vrot.slane %v5750_v54, 4  ;;  %v5756_v10 = vshll.u32 %v5674_v50, 16  ;;  %v5051_v62 = vld [vmem:[#allocation2 + $0x84] sm:$0xf]  ;;  %v5647_v40 = vld [vmem:[#allocation2 + $0x40] sm:$0xf]  ;;  %9236 = vmatpush3.bf16.msra.mxu0 %v9817_v23 }
 0xe76   : > { %v8643_v44 = vcombine.low %v4673_v39, %v4683_v5  ;;  %v5537_v20 = vsel %vm13029_vm15, %v8588_v41, %v5536_v60  ;;  %v5743_v0 = vor.u32 %v5742_v1, %v5739_v7  ;;  %v4685_v53 = vshrl.u32 %v4435_v19, 16  ;;  %v9818_v12 = vld [vmem:[%s14334_s7 + $0xe0] sm:$0xff]   ;;  %v10292_v41 = vld [vmem:[#allocation2 + $0x28] sm:$0xf]  ;;  %v4437_v39 = vld [vmem:[#allocation2 + $0x78] sm:$0xf] }
 0xe77   : > { %v4688_v29 = vshll.u32 %v4435_v19, 16  ;;  %v8700_v34 = vcombine.low %v5537_v20, %v5540_v8  ;;  %v5753_v48 = vor.u32 %v5752_v49, %v5748_v56  ;;  %v4694_v17 = vshll.u32 %v4436_v38, 16  ;;  %v5675_v50 = vld [vmem:[#allocation2 + $0x44] sm:$0x1]  ;;  %9237 = vmatprep.subr.bf16.mxu0 %v9818_v12  ;;  %v5466_v31 = vld [vmem:[#allocation2 + $0x30] sm:$0xe] }
 0xe78   : > { %6522 = vrot.lane.b32.xlu0 %v8676_v26, %s10508_s17  ;;  %6376 = vrot.lane.b32.xlu1 %v8643_v44, %s10508_s17  ;;  %v4698_v43 = vshrl.u32 %v4436_v38, 16  ;;  %v5744_v42 = vrot.slane %v5743_v0, 4  ;;  %v4687_v13 = vrot.slane %v4685_v53, 4  ;;  %v4704_v63 = vshll.u32 %v4458_v55, 16  ;;  %v9819_v5 = vld [vmem:[%s14334_s7 + $0xa0] sm:$0xff]   ;;  %v9820_v44 = vld [vmem:[%s14334_s7 + $0xe8] sm:$0xff]  }
 0xe79   : > { %v4690_v47 = vrot.slane %v4688_v29, 5  ;;  %v5754_v45 = vrot.slane %v5753_v48, 4  ;;  %v5758_v4 = vrot.slane %v5756_v10, 5  ;;  %v4696_v2 = vrot.slane %v4694_v17, 5  ;;  %v4459_v10 = vld [vmem:[#allocation2 + $0x80] sm:$0x1]  ;;  %9238 = vmatpush3.bf16.msra.mxu0 %v9819_v5 }
 0xe7a   : > { %v4700_v28 = vrot.slane %v4698_v43, 4  ;;  %v5749_v33 = vsel %vm12565_vm6, %v5744_v42, %v5748_v56  ;;  %v4706_v21 = vrot.slane %v4704_v63, 5  ;;  %v8677_v61 = vcombine.low %v5051_v62, %v13081_v51  ;;  %v9821_v42 = vld [vmem:[%s14334_s7 + $0xa8] sm:$0xff]   ;;  %9239 = vmatprep.subr.bf16.mxu0 %v9820_v44  ;;  %v9823_v12 = vld [vmem:[%s14334_s7 + $0xb0] sm:$0xff]  }
 0xe7b   : > { %v4691_v14 = vor.u32 %v4690_v47, %v4687_v13  ;;  %v5759_v22 = vsel %vm12565_vm6, %v5754_v45, %v5758_v4  ;;  %v8589_v46 = vrot.slane %v5465_v11, 9  ;;  %v5543_v18 = vrot.slane %v10292_v41, 5  ;;  %v9822_v45 = vld [vmem:[%s14334_s7 + $0xf0] sm:$0xff]   ;;  %v5648_v23 = vld [vmem:[#allocation2 + $0x48] sm:$0xf] }
 0xe7c   : > { %6634 = vrot.lane.b32.xlu1 %v8700_v34, %s10508_s17  ;;  %v4701_v57 = vor.u32 %v4700_v28, %v4696_v2  ;;  %v8733_v58 = vcombine.low %v5749_v33, %v5759_v22  ;;  %v5546_v60 = vrot.slane %v5065_v9, 5  ;;  %v5761_v32 = vshrl.u32 %v5646_v27, 16  ;;  %v13118_v28 = vld [vmem:[#allocation2 + $0x94] sm:$0xf]  ;;  %v5649_v33 = vld [vmem:[#allocation2 + $0x4c] sm:$0xf] }
 0xe7d   : > { %v4692_v25 = vrot.slane %v4691_v14, 4  ;;  %v5764_v15 = vshll.u32 %v5646_v27, 16  ;;  %v5770_v59 = vshll.u32 %v5647_v40, 16  ;;  %v5774_v16 = vshrl.u32 %v5647_v40, 16  ;;  %v5066_v14 = vld [vmem:[#allocation2 + $0x38] sm:$0x1]  ;;  %9240 = vmatpush3.bf16.msra.mxu0 %v9821_v42 }
 0xe7e   : > { %v4702_v26 = vrot.slane %v4701_v57, 4  ;;  %6780 = vrot.lane.b32.xlu0 %v8733_v58, %s10508_s17  ;;  %v5544_v24 = vsel %vm13029_vm15, %v8589_v46, %v5543_v18  ;;  %v5545_v54 = vrot.slane %v5543_v18, 4  ;;  %v5763_v19 = vrot.slane %v5761_v32, 4  ;;  %v5053_v40 = vld [vmem:[#allocation2 + $0x90] sm:$0xf]  ;;  %9241 = vmatprep.subr.bf16.mxu0 %v9822_v45  ;;  %v9825_v18 = vld [vmem:[%s14334_s7 + $0xf8] sm:$0xff]  }
 0xe7f   : > { %v4697_v3 = vsel %vm12565_vm6, %v4692_v25, %v4696_v2  ;;  %v5766_v1 = vrot.slane %v5764_v15, 5  ;;  %v5772_v56 = vrot.slane %v5770_v59, 5  ;;  %v5776_v38 = vrot.slane %v5774_v16, 4  ;;  %v5676_v41 = vld [vmem:[#allocation2 + $0x50] sm:$0x1] }
 0xe80   : > { %v4707_v36 = vsel %vm12565_vm6, %v4702_v26, %v4706_v21  ;;  %v5547_v8 = vsel %vm13029_vm15, %v5545_v54, %v5546_v60  ;;  %v5780_v49 = vshll.u32 %v5675_v50, 16  ;;  %v4709_v55 = vshrl.u32 %v4437_v39, 16  ;;  %v4440_v5 = vld [vmem:[#allocation2 + $0x88] sm:$0xf] }
 0xe81   : > { %v8644_v7 = vcombine.low %v4697_v3, %v4707_v36  ;;  %v4712_v20 = vshll.u32 %v4437_v39, 16  ;;  %v8701_v0 = vcombine.low %v5544_v24, %v5547_v8  ;;  %v5767_v53 = vor.u32 %v5766_v1, %v5763_v19  ;;  %v4439_v36 = vld [vmem:[#allocation2 + $0x84] sm:$0xf]  ;;  %9242 = vmatpush3.bf16.msra.mxu0 %v9823_v12  ;;  %v4460_v8 = vld [vmem:[#allocation2 + $0x8c] sm:$0x1] }
 0xe82   : > { %6524 = vrot.lane.b32.xlu0 %v8677_v61, %s10508_s17  ;;  %v5777_v29 = vor.u32 %v5776_v38, %v5772_v56  ;;  %v4718_v30 = vshll.u32 %v4438_v37, 16  ;;  %v5782_v34 = vrot.slane %v5780_v49, 5  ;;  %v4711_v48 = vrot.slane %v4709_v55, 4  ;;  %v10293_v61 = vld [vmem:[#allocation2 + $0x34] sm:$0xf]  ;;  %9243 = vmatprep.subr.bf16.mxu0 %v9825_v18 }
 0xe83   : > { %6378 = vrot.lane.b32.xlu1 %v8644_v7, %s10508_s17  ;;  %v4714_v17 = vrot.slane %v4712_v20, 5  ;;  %v4722_v43 = vshrl.u32 %v4438_v37, 16  ;;  %v5768_v13 = vrot.slane %v5767_v53, 4  ;;  %v4728_v11 = vshll.u32 %v4459_v10, 16  ;;  %v9826_v7 = vld [vmem:[%s14334_s7 + $0xb8] sm:$0xff]  }
 0xe84   : > { %v5778_v47 = vrot.slane %v5777_v29, 4  ;;  %v4720_v63 = vrot.slane %v4718_v30, 5  ;;  %v8678_v58 = vcombine.low %v5053_v40, %v13118_v28  ;;  %v8590_v25 = vrot.slane %v5466_v31, 9  ;;  %v5677_v40 = vld [vmem:[#allocation2 + $0x5c] sm:$0x1] }
 0xe85   : > { %v4715_v4 = vor.u32 %v4714_v17, %v4711_v48  ;;  %v4724_v2 = vrot.slane %v4722_v43, 4  ;;  %v5773_v9 = vsel %vm12565_vm6, %v5768_v13, %v5772_v56  ;;  %v4730_v62 = vrot.slane %v4728_v11, 5  ;;  %9244 = vmatpush3.bf16.msra.mxu0 %v9826_v7  ;;  %v5650_v11 = vld [vmem:[#allocation2 + $0x54] sm:$0xf] }
 0xe86   : > { %v5783_v27 = vsel %vm12565_vm6, %v5778_v47, %v5782_v34  ;;  %v5550_v46 = vrot.slane %v10293_v61, 5  ;;  %v5553_v26 = vrot.slane %v5066_v14, 5  ;;  %v5785_v32 = vshrl.u32 %v5648_v23, 16  ;;  %v13146_v47 = vld [vmem:[#allocation2 + $0xa0] sm:$0xf] }
 0xe87   : > { %6636 = vrot.lane.b32.xlu1 %v8701_v0, %s10508_s17  ;;  %v8734_v22 = vcombine.low %v5773_v9, %v5783_v27  ;;  %v4716_v57 = vrot.slane %v4715_v4, 4  ;;  %v4725_v21 = vor.u32 %v4724_v2, %v4720_v63  ;;  %v5788_v3 = vshll.u32 %v5648_v23, 16  ;;  %v5055_v9 = vld [vmem:[#allocation2 + $0x9c] sm:$0xf]  ;;  %v5067_v27 = vld [vmem:[#allocation2 + $0x44] sm:$0x1] }
 0xe88   : > { %v5551_v15 = vsel %vm13029_vm15, %v8590_v25, %v5550_v46  ;;  %v5552_v59 = vrot.slane %v5550_v46, 4  ;;  %v5794_v16 = vshll.u32 %v5649_v33, 16  ;;  %v5798_v39 = vshrl.u32 %v5649_v33, 16  ;;  %v5651_v23 = vld [vmem:[#allocation2 + $0x58] sm:$0xf]  ;;  %v13157_v46 = vld [vmem:[%s14334_s7 + $0x100] sm:$0xff]  }
 0xe89   : > { %6782 = vrot.lane.b32.xlu0 %v8734_v22, %s10508_s17  ;;  %v4721_v60 = vsel %vm12565_vm6, %v4716_v57, %v4720_v63  ;;  %v4726_v50 = vrot.slane %v4725_v21, 4  ;;  %v5787_v54 = vrot.slane %v5785_v32, 4  ;;  %v5790_v19 = vrot.slane %v5788_v3, 5  ;;  %v5467_v63 = vld [vmem:[#allocation2 + $0x3c] sm:$0xe]  ;;  %9621 = vmatprep.subr.bf16.mxu1 %v13157_v46 }
 0xe8a   : > { %v5804_v37 = vshll.u32 %v5676_v41, 16  ;;  %v5554_v56 = vsel %vm13029_vm15, %v5552_v59, %v5553_v26  ;;  %v5796_v38 = vrot.slane %v5794_v16, 5  ;;  %v5800_v44 = vrot.slane %v5798_v39, 4  ;;  %v10294_v21 = vld [vmem:[#allocation2 + $0x40] sm:$0xf] }
 0xe8b   : > { %v4731_v24 = vsel %vm12565_vm6, %v4726_v50, %v4730_v62  ;;  %v8702_v49 = vcombine.low %v5551_v15, %v5554_v56  ;;  %v5791_v10 = vor.u32 %v5790_v19, %v5787_v54  ;;  %v4733_v55 = vshrl.u32 %v4439_v36, 16  ;;  %v4441_v50 = vld [vmem:[#allocation2 + $0x90] sm:$0xf]  ;;  %v4442_v16 = vld [vmem:[#allocation2 + $0x94] sm:$0xf] }
 0xe8c   : > { %v8645_v1 = vcombine.low %v4721_v60, %v4731_v24  ;;  %v5801_v20 = vor.u32 %v5800_v44, %v5796_v38  ;;  %v4736_v0 = vshll.u32 %v4439_v36, 16  ;;  %v4742_v53 = vshll.u32 %v4440_v5, 16  ;;  %v4461_v19 = vld [vmem:[#allocation2 + $0x98] sm:$0x1] }
 0xe8d   : > { %6526 = vrot.lane.b32.xlu0 %v8678_v58, %s10508_s17  ;;  %v4746_v29 = vshrl.u32 %v4440_v5, 16  ;;  %v5792_v30 = vrot.slane %v5791_v10, 4  ;;  %v5806_v34 = vrot.slane %v5804_v37, 5  ;;  %v4735_v48 = vrot.slane %v4733_v55, 4 }
 0xe8e   : > { %6380 = vrot.lane.b32.xlu1 %v8645_v1, %s10508_s17  ;;  %v4752_v17 = vshll.u32 %v4460_v8, 16  ;;  %v5802_v43 = vrot.slane %v5801_v20, 4  ;;  %v4738_v31 = vrot.slane %v4736_v0, 5  ;;  %v4744_v42 = vrot.slane %v4742_v53, 5 }
 0xe8f   : > { %v4748_v13 = vrot.slane %v4746_v29, 4  ;;  %v5797_v45 = vsel %vm12565_vm6, %v5792_v30, %v5796_v38  ;;  %v8679_v57 = vcombine.low %v5055_v9, %v13146_v47  ;;  %v5557_v62 = vrot.slane %v10294_v21, 5  ;;  %v10296_v21 = vld [vmem:[#allocation2 + $0x4c] sm:$0xf] }
 0xe90   : > { %v5807_v4 = vsel %vm12565_vm6, %v5802_v43, %v5806_v34  ;;  %v4739_v2 = vor.u32 %v4738_v31, %v4735_v48  ;;  %v4754_v22 = vrot.slane %v4752_v17, 5  ;;  %v8591_v25 = vrot.slane %v5467_v63, 9  ;;  %v13171_v34 = vld [vmem:[#allocation2 + $0xac] sm:$0xf]  ;;  %v13173_v48 = vld [vmem:[#allocation2 + $0x18] sm:$0xf] }
 0xe91   : > { %v4749_v14 = vor.u32 %v4748_v13, %v4744_v42  ;;  %v8735_v33 = vcombine.low %v5797_v45, %v5807_v4  ;;  %v5809_v61 = vshrl.u32 %v5650_v11, 16  ;;  %v5559_v26 = vrot.slane %v5557_v62, 4  ;;  %v5652_v45 = vld [vmem:[#allocation2 + $0x60] sm:$0xf]  ;;  %v5653_v4 = vld [vmem:[#allocation2 + $0x64] sm:$0xf] }
 0xe92   : > { %6638 = vrot.lane.b32.xlu1 %v8702_v49, %s10508_s17  ;;  %v4740_v12 = vrot.slane %v4739_v2, 4  ;;  %v5560_v41 = vrot.slane %v5067_v27, 5  ;;  %v5812_v18 = vshll.u32 %v5650_v11, 16  ;;  %v5818_v60 = vshll.u32 %v5651_v23, 16  ;;  %v5057_v11 = vld [vmem:[#allocation2 + $0xa8] sm:$0xf] }
 0xe93   : > { %v4750_v58 = vrot.slane %v4749_v14, 4  ;;  %6784 = vrot.lane.b32.xlu0 %v8735_v33, %s10508_s17  ;;  %v5811_v15 = vrot.slane %v5809_v61, 4  ;;  %v5822_v59 = vshrl.u32 %v5651_v23, 16  ;;  %v5558_v37 = vsel %vm13029_vm15, %v8591_v25, %v5557_v62  ;;  %v5068_v23 = vld [vmem:[#allocation2 + $0x50] sm:$0x1] }
 0xe94   : > { %v4745_v32 = vsel %vm12565_vm6, %v4740_v12, %v4744_v42  ;;  %v5561_v36 = vsel %vm13029_vm15, %v5559_v26, %v5560_v41  ;;  %v5814_v24 = vrot.slane %v5812_v18, 5  ;;  %v5820_v54 = vrot.slane %v5818_v60, 5  ;;  %v5468_v42 = vld [vmem:[#allocation2 + $0x48] sm:$0xe]  ;;  %v4443_v61 = vld [vmem:[#allocation2 + $0x9c] sm:$0xf] }
 0xe95   : > { %v4755_v3 = vsel %vm12565_vm6, %v4750_v58, %v4754_v22  ;;  %v5824_v5 = vrot.slane %v5822_v59, 4  ;;  %v5828_v7 = vshll.u32 %v5677_v40, 16  ;;  %v4757_v1 = vshrl.u32 %v4441_v50, 16 }
 0xe96   : > { %v8646_v39 = vcombine.low %v4745_v32, %v4755_v3  ;;  %v5815_v56 = vor.u32 %v5814_v24, %v5811_v15  ;;  %v4760_v38 = vshll.u32 %v4441_v50, 16  ;;  %v4766_v44 = vshll.u32 %v4442_v16, 16  ;;  %v5678_v50 = vld [vmem:[#allocation2 + $0x68] sm:$0x1]  ;;  %v4444_v32 = vld [vmem:[#allocation2 + $0xa0] sm:$0xf] }
 0xe97   : > { %6528 = vrot.lane.b32.xlu0 %v8679_v57, %s10508_s17  ;;  %v4770_v8 = vshrl.u32 %v4442_v16, 16  ;;  %v8703_v49 = vcombine.low %v5558_v37, %v5561_v36  ;;  %v5825_v10 = vor.u32 %v5824_v5, %v5820_v54  ;;  %v4759_v55 = vrot.slane %v4757_v1, 4 }
 0xe98   : > { %6382 = vrot.lane.b32.xlu1 %v8646_v39, %s10508_s17  ;;  %v4776_v20 = vshll.u32 %v4461_v19, 16  ;;  %v5816_v0 = vrot.slane %v5815_v56, 4  ;;  %v4762_v53 = vrot.slane %v4760_v38, 5  ;;  %v4768_v29 = vrot.slane %v4766_v44, 5 }
 0xe99   : > { %v4772_v30 = vrot.slane %v4770_v8, 4  ;;  %v5104_v17 = vshrl.u32 %v13173_v48, 16  ;;  %v5826_v43 = vrot.slane %v5825_v10, 4  ;;  %v5830_v31 = vrot.slane %v5828_v7, 5 }
 0xe9a   : > { %v4763_v13 = vor.u32 %v4762_v53, %v4759_v55  ;;  %v5821_v2 = vsel %vm12565_vm6, %v5816_v0, %v5820_v54  ;;  %v4778_v9 = vrot.slane %v4776_v20, 5  ;;  %v8680_v27 = vcombine.low %v5057_v11, %v13171_v34  ;;  %v4462_v54 = vld [vmem:[#allocation2 + $0xa4] sm:$0x1]  ;;  %v5654_v11 = vld [vmem:[#allocation2 + $0x6c] sm:$0xf] }
 0xe9b   : > { %v4773_v63 = vor.u32 %v4772_v30, %v4768_v29  ;;  %v5831_v14 = vsel %vm12565_vm6, %v5826_v43, %v5830_v31  ;;  %v5564_v62 = vrot.slane %v10296_v21, 5  ;;  %v8592_v40 = vrot.slane %v5468_v42, 9  ;;  %v13194_v30 = vld [vmem:[#allocation2 + $0xb8] sm:$0xf]  ;;  %v13198_v31 = vld [vmem:[#allocation2 + $0xc] sm:$0xf] }
 0xe9c   : > { %6640 = vrot.lane.b32.xlu1 %v8703_v49, %s10508_s17  ;;  %v8736_v33 = vcombine.low %v5821_v2, %v5831_v14  ;;  %v4764_v22 = vrot.slane %v4763_v13, 4  ;;  %v5833_v12 = vshrl.u32 %v5652_v45, 16  ;;  %v5836_v58 = vshll.u32 %v5652_v45, 16  ;;  %v5655_v21 = vld [vmem:[#allocation2 + $0x70] sm:$0xf] }
 0xe9d   : > { %v4774_v57 = vrot.slane %v4773_v63, 4  ;;  %v5842_v25 = vshll.u32 %v5653_v4, 16  ;;  %v5566_v18 = vrot.slane %v5564_v62, 4  ;;  %v5567_v60 = vrot.slane %v5068_v23, 5 }
 0xe9e   : > { %6786 = vrot.lane.b32.xlu0 %v8736_v33, %s10508_s17  ;;  %v4769_v26 = vsel %vm12565_vm6, %v4764_v22, %v4768_v29  ;;  %v5565_v15 = vsel %vm13029_vm15, %v8592_v40, %v5564_v62  ;;  %v5835_v59 = vrot.slane %v5833_v12, 4  ;;  %v5838_v16 = vrot.slane %v5836_v58, 5  ;;  %v10298_v22 = vld [vmem:[#allocation2 + $0x58] sm:$0xf]  ;;  %v5469_v12 = vld [vmem:[#allocation2 + $0x54] sm:$0xe] }
 0xe9f   : > { %v4779_v41 = vsel %vm12565_vm6, %v4774_v57, %v4778_v9  ;;  %v5568_v39 = vsel %vm13029_vm15, %v5566_v18, %v5567_v60  ;;  %v5844_v36 = vrot.slane %v5842_v25, 5  ;;  %v5846_v24 = vshrl.u32 %v5653_v4, 16  ;;  %v5059_v9 = vld [vmem:[#allocation2 + $0xb4] sm:$0xf] }
 0xea0   : > { %v8647_v3 = vcombine.low %v4769_v26, %v4779_v41  ;;  %v4781_v19 = vshrl.u32 %v4443_v61, 16  ;;  %v5839_v37 = vor.u32 %v5838_v16, %v5835_v59  ;;  %v5852_v5 = vshll.u32 %v5678_v50, 16  ;;  %v5679_v60 = vld [vmem:[#allocation2 + $0x74] sm:$0x1]  ;;  %v4445_v50 = vld [vmem:[#allocation2 + $0xa8] sm:$0xf] }
 0xea1   : > { %v4784_v7 = vshll.u32 %v4443_v61, 16  ;;  %v4790_v1 = vshll.u32 %v4444_v32, 16  ;;  %v8704_v56 = vcombine.low %v5565_v15, %v5568_v39  ;;  %v5848_v38 = vrot.slane %v5846_v24, 4  ;;  %v4446_v16 = vld [vmem:[#allocation2 + $0xac] sm:$0xf] }
 0xea2   : > { %6384 = vrot.lane.b32.xlu1 %v8647_v3, %s10508_s17  ;;  %6530 = vrot.lane.b32.xlu0 %v8680_v27, %s10508_s17  ;;  %v4783_v44 = vrot.slane %v4781_v19, 4  ;;  %v4794_v8 = vshrl.u32 %v4444_v32, 16  ;;  %v5840_v49 = vrot.slane %v5839_v37, 4  ;;  %v4800_v20 = vshll.u32 %v4462_v54, 16  ;;  %v5069_v27 = vld [vmem:[#allocation2 + $0x5c] sm:$0x1] }
 0xea3   : > { %v4786_v10 = vrot.slane %v4784_v7, 5  ;;  %v4792_v55 = vrot.slane %v4790_v1, 5  ;;  %v5107_v0 = vshll.u32 %v13173_v48, 16  ;;  %v5849_v53 = vor.u32 %v5848_v38, %v5844_v36  ;;  %v4463_v19 = vld [vmem:[#allocation2 + $0xb0] sm:$0x1] }
 0xea4   : > { %v4796_v29 = vrot.slane %v4794_v8, 4  ;;  %v13196_v43 = vrot.slane %v5104_v17, 4  ;;  %v5080_v42 = vshrl.u32 %v13198_v31, 16  ;;  %v5083_v13 = vshll.u32 %v13198_v31, 16 }
 0xea5   : > { %v4787_v63 = vor.u32 %v4786_v10, %v4783_v44  ;;  %v5845_v45 = vsel %vm12565_vm6, %v5840_v49, %v5844_v36  ;;  %v5850_v4 = vrot.slane %v5849_v53, 4  ;;  %v5854_v2 = vrot.slane %v5852_v5, 5 }
 0xea6   : > { %6642 = vrot.lane.b32.xlu1 %v8704_v56, %s10508_s17  ;;  %v4797_v14 = vor.u32 %v4796_v29, %v4792_v55  ;;  %v4802_v23 = vrot.slane %v4800_v20, 5  ;;  %v8681_v33 = vcombine.low %v5059_v9, %v13194_v30  ;;  %v5571_v57 = vrot.slane %v10298_v22, 5  ;;  %v13215_v56 = vpop.permute.xlu1 %6360  ;;  %v13220_v29 = vpop.permute.xlu0 %6504 }
 0xea7   : > { %v4788_v17 = vrot.slane %v4787_v63, 4  ;;  %v5855_v62 = vsel %vm12565_vm6, %v5850_v4, %v5854_v2  ;;  %v5857_v58 = vshrl.u32 %v5654_v11, 16  ;;  %v5860_v25 = vshll.u32 %v5654_v11, 16  ;;  %v13223_v2 = vld [vmem:[#allocation2 + $0xc4] sm:$0xf] }
 0xea8   : > { %v4798_v40 = vrot.slane %v4797_v14, 4  ;;  %v8737_v61 = vcombine.low %v5845_v45, %v5855_v62  ;;  %v5573_v41 = vrot.slane %v5571_v57, 4  ;;  %v5574_v18 = vrot.slane %v5069_v27, 5  ;;  %v5470_v14 = vld [vmem:[#allocation2 + $0x60] sm:$0xe] }
 0xea9   : > { %v4793_v26 = vsel %vm12565_vm6, %v4788_v17, %v4792_v55  ;;  %v5859_v3 = vrot.slane %v5857_v58, 4  ;;  %v5862_v15 = vrot.slane %v5860_v25, 5  ;;  %v5866_v59 = vshll.u32 %v5655_v21, 16  ;;  %v5070_v17 = vld [vmem:[#allocation2 + $0x68] sm:$0x1] }
 0xeaa   : > { %v4803_v32 = vsel %vm12565_vm6, %v4798_v40, %v4802_v23  ;;  %6788 = vrot.lane.b32.xlu0 %v8737_v61, %s10508_s17  ;;  %v8593_v36 = vrot.slane %v5469_v12, 9  ;;  %v5575_v24 = vsel %vm13029_vm15, %v5573_v41, %v5574_v18  ;;  %v5870_v54 = vshrl.u32 %v5655_v21, 16  ;;  %v5656_v23 = vld [vmem:[#allocation2 + $0x78] sm:$0xf]  ;;  %v10299_v25 = vld [vmem:[#allocation2 + $0x64] sm:$0xf]  ;;  %v13229_v41 = vpop.permute.xlu1 %6506  ;;  %v13231_v18 = vpop.permute.xlu0 %6508 }
 0xeab   : > { %v8648_v39 = vcombine.low %v4793_v26, %v4803_v32  ;;  %v5863_v37 = vor.u32 %v5862_v15, %v5859_v3  ;;  %v5868_v5 = vrot.slane %v5866_v59, 5  ;;  %v5876_v7 = vshll.u32 %v5679_v60, 16  ;;  %v5657_v26 = vld [vmem:[#allocation2 + $0x7c] sm:$0xf]  ;;  %v5680_v3 = vld [vmem:[#allocation2 + $0x80] sm:$0x1] }
 0xeac   : > { %v4805_v1 = vshrl.u32 %v4445_v50, 16  ;;  %v5572_v38 = vsel %vm13029_vm15, %v8593_v36, %v5571_v57  ;;  %v5872_v44 = vrot.slane %v5870_v54, 4  ;;  %v4808_v8 = vshll.u32 %v4445_v50, 16 }
 0xead   : > { %6386 = vrot.lane.b32.xlu1 %v8648_v39, %s10508_s17  ;;  %v4814_v49 = vshll.u32 %v4446_v16, 16  ;;  %v5864_v10 = vrot.slane %v5863_v37, 4  ;;  %v4818_v20 = vshrl.u32 %v4446_v16, 16  ;;  %v4824_v53 = vshll.u32 %v4463_v19, 16 }
 0xeae   : > { %v4807_v55 = vrot.slane %v4805_v1, 4  ;;  %6532 = vrot.lane.b32.xlu0 %v8681_v33, %s10508_s17  ;;  %v8705_v63 = vcombine.low %v5572_v38, %v5575_v24  ;;  %v5873_v11 = vor.u32 %v5872_v44, %v5868_v5  ;;  %v4810_v45 = vrot.slane %v4808_v8, 5  ;;  %v5061_v33 = vld [vmem:[#allocation2 + $0xc0] sm:$0xf]  ;;  %v4448_v8 = vld [vmem:[#allocation2 + $0xb8] sm:$0xf] }
 0xeaf   : > { %v4816_v4 = vrot.slane %v4814_v49, 5  ;;  %v5878_v9 = vrot.slane %v5876_v7, 5  ;;  %v4820_v27 = vrot.slane %v4818_v20, 4  ;;  %v5869_v22 = vsel %vm12565_vm6, %v5864_v10, %v5868_v5  ;;  %v4447_v5 = vld [vmem:[#allocation2 + $0xb4] sm:$0xf]  ;;  %v13244_v10 = vpop.permute.xlu1 %6362 }
 0xeb0   : > { %v5874_v57 = vrot.slane %v5873_v11, 4  ;;  %v4811_v21 = vor.u32 %v4810_v45, %v4807_v55  ;;  %v4826_v62 = vrot.slane %v4824_v53, 5  ;;  %v8682_v12 = vcombine.low %v5061_v33, %v13223_v2  ;;  %v4464_v49 = vld [vmem:[#allocation2 + $0xbc] sm:$0x1]  ;;  %v5658_v11 = vld [vmem:[#allocation2 + $0x84] sm:$0xf] }
 0xeb1   : > { %6644 = vrot.lane.b32.xlu1 %v8705_v63, %s10508_s17  ;;  %v4821_v40 = vor.u32 %v4820_v27, %v4816_v4  ;;  %v8594_v58 = vrot.slane %v5470_v14, 9  ;;  %v5578_v61 = vrot.slane %v10299_v25, 5  ;;  %v5581_v32 = vrot.slane %v5070_v17, 5  ;;  %v13246_v27 = vpop.permute.xlu0 %6510 }
 0xeb2   : > { %v5879_v60 = vsel %vm12565_vm6, %v5874_v57, %v5878_v9  ;;  %v4812_v50 = vrot.slane %v4811_v21, 4  ;;  %v5881_v15 = vshrl.u32 %v5656_v23, 16  ;;  %v5884_v19 = vshll.u32 %v5656_v23, 16 }
 0xeb3   : > { %v8738_v59 = vcombine.low %v5869_v22, %v5879_v60  ;;  %v4822_v16 = vrot.slane %v4821_v40, 4  ;;  %v5579_v39 = vsel %vm13029_vm15, %v8594_v58, %v5578_v61  ;;  %v5580_v36 = vrot.slane %v5578_v61, 4  ;;  %v5659_v40 = vld [vmem:[#allocation2 + $0x88] sm:$0xf] }
 0xeb4   : > { %v4817_v24 = vsel %vm12565_vm6, %v4812_v50, %v4816_v4  ;;  %v5883_v54 = vrot.slane %v5881_v15, 4  ;;  %v5890_v37 = vshll.u32 %v5657_v26, 16  ;;  %v5894_v38 = vshrl.u32 %v5657_v26, 16  ;;  %v5681_v50 = vld [vmem:[#allocation2 + $0x8c] sm:$0x1] }
 0xeb5   : > { %6790 = vrot.lane.b32.xlu0 %v8738_v59, %s10508_s17  ;;  %v4827_v7 = vsel %vm12565_vm6, %v4822_v16, %v4826_v62  ;;  %v5582_v1 = vsel %vm13029_vm15, %v5580_v36, %v5581_v32  ;;  %v5900_v44 = vshll.u32 %v5680_v3, 16  ;;  %v5886_v53 = vrot.slane %v5884_v19, 5  ;;  %v13250_v16 = vpop.permute.xlu1 %6364 }
 0xeb6   : > { %v8649_v55 = vcombine.low %v4817_v24, %v4827_v7  ;;  %v8706_v20 = vcombine.low %v5579_v39, %v5582_v1  ;;  %v5892_v63 = vrot.slane %v5890_v37, 5  ;;  %v5896_v45 = vrot.slane %v5894_v38, 4  ;;  %v5071_v1 = vld [vmem:[#allocation2 + $0x74] sm:$0x1]  ;;  %v13257_v38 = vpop.permute.xlu0 %6512 }
 0xeb7   : > { %v5902_v4 = vrot.slane %v5900_v44, 5  ;;  %v4829_v14 = vshrl.u32 %v4447_v5, 16  ;;  %v4832_v9 = vshll.u32 %v4447_v5, 16  ;;  %v5887_v17 = vor.u32 %v5886_v53, %v5883_v54  ;;  %v5471_v54 = vld [vmem:[#allocation2 + $0x6c] sm:$0xe] }
 0xeb8   : > { %6388 = vrot.lane.b32.xlu1 %v8649_v55, %s10508_s17  ;;  %v4838_v23 = vshll.u32 %v4448_v8, 16  ;;  %v4842_v22 = vshrl.u32 %v4448_v8, 16  ;;  %v4848_v57 = vshll.u32 %v4464_v49, 16  ;;  %v5897_v21 = vor.u32 %v5896_v45, %v5892_v63 }
 0xeb9   : > { %6534 = vrot.lane.b32.xlu0 %v8682_v12, %s10508_s17  ;;  %v4831_v62 = vrot.slane %v4829_v14, 4  ;;  %v4834_v33 = vrot.slane %v4832_v9, 5  ;;  %v5905_v58 = vshrl.u32 %v5658_v11, 16  ;;  %v5888_v25 = vrot.slane %v5887_v17, 4  ;;  %v5661_v14 = vld [vmem:[#allocation2 + $0x94] sm:$0xf] }
 0xeba   : > { %v4840_v61 = vrot.slane %v4838_v23, 5  ;;  %v4844_v26 = vrot.slane %v4842_v22, 4  ;;  %v4850_v60 = vrot.slane %v4848_v57, 5  ;;  %v5898_v32 = vrot.slane %v5897_v21, 4  ;;  %v10300_v17 = vld [vmem:[#allocation2 + $0x70] sm:$0xf] }
 0xebb   : > { %v4835_v3 = vor.u32 %v4834_v33, %v4831_v62  ;;  %v5907_v15 = vrot.slane %v5905_v58, 4  ;;  %v5908_v59 = vshll.u32 %v5658_v11, 16  ;;  %v5893_v12 = vsel %vm12565_vm6, %v5888_v25, %v5892_v63  ;;  %v5682_v62 = vld [vmem:[#allocation2 + $0x98] sm:$0x1]  ;;  %v13264_v58 = vpop.permute.xlu1 %6366 }
 0xebc   : > { %6646 = vrot.lane.b32.xlu1 %v8706_v20, %s10508_s17  ;;  %v4845_v39 = vor.u32 %v4844_v26, %v4840_v61  ;;  %v5914_v36 = vshll.u32 %v5659_v40, 16  ;;  %v5918_v24 = vshrl.u32 %v5659_v40, 16  ;;  %v5903_v19 = vsel %vm12565_vm6, %v5898_v32, %v5902_v4  ;;  %v5660_v20 = vld [vmem:[#allocation2 + $0x90] sm:$0xf]  ;;  %v5472_v32 = vld [vmem:[#allocation2 + $0x78] sm:$0xe] }
 0xebd   : > { %v4836_v37 = vrot.slane %v4835_v3, 4  ;;  %v5910_v5 = vrot.slane %v5908_v59, 5  ;;  %v5924_v7 = vshll.u32 %v5681_v50, 16  ;;  %v8739_v44 = vcombine.low %v5893_v12, %v5903_v19  ;;  %v5072_v12 = vld [vmem:[#allocation2 + $0x80] sm:$0x1] }
 0xebe   : > { %v4846_v8 = vrot.slane %v4845_v39, 4  ;;  %v5916_v49 = vrot.slane %v5914_v36, 5  ;;  %v5920_v55 = vrot.slane %v5918_v24, 4  ;;  %v8595_v45 = vrot.slane %v5471_v54, 9  ;;  %v13271_v39 = vpop.permute.xlu0 %6514 }
 0xebf   : > { %v4841_v53 = vsel %vm12565_vm6, %v4836_v37, %v4840_v61  ;;  %v5911_v63 = vor.u32 %v5910_v5, %v5907_v15  ;;  %v5926_v11 = vrot.slane %v5924_v7, 5  ;;  %6792 = vrot.lane.b32.xlu0 %v8739_v44, %s10508_s17  ;;  %v5585_v23 = vrot.slane %v10300_v17, 5  ;;  %v5662_v37 = vld [vmem:[#allocation2 + $0x9c] sm:$0xf] }
 0xec0   : > { %v4851_v4 = vsel %vm12565_vm6, %v4846_v8, %v4850_v60  ;;  %v5921_v9 = vor.u32 %v5920_v55, %v5916_v49  ;;  %v5588_v22 = vrot.slane %v5071_v1, 5  ;;  %v5929_v33 = vshrl.u32 %v5660_v20, 16  ;;  %v5663_v8 = vld [vmem:[#allocation2 + $0xa0] sm:$0xf] }
 0xec1   : > { %v8650_v57 = vcombine.low %v4841_v53, %v4851_v4  ;;  %v5912_v21 = vrot.slane %v5911_v63, 4  ;;  %v5932_v40 = vshll.u32 %v5660_v20, 16  ;;  %v5586_v61 = vsel %vm13029_vm15, %v8595_v45, %v5585_v23  ;;  %v5683_v45 = vld [vmem:[#allocation2 + $0xa4] sm:$0x1] }
 0xec2   : > { %v5922_v25 = vrot.slane %v5921_v9, 4  ;;  %v5587_v26 = vrot.slane %v5585_v23, 4  ;;  %v5938_v50 = vshll.u32 %v5661_v14, 16  ;;  %v5931_v3 = vrot.slane %v5929_v33, 4  ;;  %v13280_v9 = vpop.permute.xlu1 %6368 }
 0xec3   : > { %6390 = vrot.lane.b32.xlu1 %v8650_v57, %s10508_s17  ;;  %v5917_v60 = vsel %vm12565_vm6, %v5912_v21, %v5916_v49  ;;  %v5934_v15 = vrot.slane %v5932_v40, 5  ;;  %v5942_v59 = vshrl.u32 %v5661_v14, 16  ;;  %v5948_v19 = vshll.u32 %v5682_v62, 16  ;;  %v5473_v21 = vld [vmem:[#allocation2 + $0x84] sm:$0xe] }
 0xec4   : > { %v5927_v36 = vsel %vm12565_vm6, %v5922_v25, %v5926_v11  ;;  %v5589_v24 = vsel %vm13029_vm15, %v5587_v26, %v5588_v22  ;;  %v5940_v54 = vrot.slane %v5938_v50, 5  ;;  %v8596_v55 = vrot.slane %v5472_v32, 9  ;;  %v5073_v25 = vld [vmem:[#allocation2 + $0x8c] sm:$0x1] }
 0xec5   : > { %v8740_v5 = vcombine.low %v5917_v60, %v5927_v36  ;;  %v8707_v7 = vcombine.low %v5586_v61, %v5589_v24  ;;  %v5935_v1 = vor.u32 %v5934_v15, %v5931_v3  ;;  %v5944_v44 = vrot.slane %v5942_v59, 4  ;;  %v13286_v61 = vpop.permute.xlu0 %6516  ;;  %v5664_v3 = vld [vmem:[#allocation2 + $0xa8] sm:$0xf] }
 0xec6   : > { %v5950_v49 = vrot.slane %v5948_v19, 5  ;;  %v5592_v20 = vrot.slane %v13041_v52, 5  ;;  %v5595_v53 = vrot.slane %v5072_v12, 5  ;;  %v5953_v14 = vshrl.u32 %v5662_v37, 16 }
 0xec7   : > { %6794 = vrot.lane.b32.xlu0 %v8740_v5, %s10508_s17  ;;  %6648 = vrot.lane.b32.xlu1 %v8707_v7, %s10508_s17  ;;  %v5936_v63 = vrot.slane %v5935_v1, 4  ;;  %v5945_v11 = vor.u32 %v5944_v44, %v5940_v54  ;;  %v5956_v4 = vshll.u32 %v5662_v37, 16  ;;  %v5962_v22 = vshll.u32 %v5663_v8, 16  ;;  %v5665_v5 = vld [vmem:[#allocation2 + $0xac] sm:$0xf] }
 0xec8   : > { %v5593_v17 = vsel %vm13029_vm15, %v8596_v55, %v5592_v20  ;;  %v5594_v23 = vrot.slane %v5592_v20, 4  ;;  %v5966_v57 = vshrl.u32 %v5663_v8, 16  ;;  %v5955_v33 = vrot.slane %v5953_v14, 4  ;;  %v10301_v44 = vld [vmem:[#allocation2] sm:$0xf] }
 0xec9   : > { %v5941_v52 = vsel %vm12565_vm6, %v5936_v63, %v5940_v54  ;;  %v5946_v62 = vrot.slane %v5945_v11, 4  ;;  %v5958_v40 = vrot.slane %v5956_v4, 5  ;;  %v5964_v50 = vrot.slane %v5962_v22, 5  ;;  %v10302_v8 = vld [vmem:[#allocation2 + $0x4] sm:$0xf] }
 0xeca   : > { %v5596_v26 = vsel %vm13029_vm15, %v5594_v23, %v5595_v53  ;;  %v5968_v32 = vrot.slane %v5966_v57, 4  ;;  %v5972_v60 = vshll.u32 %v5683_v45, 16  ;;  %v8597_v36 = vrot.slane %v5473_v21, 9  ;;  %v13294_v53 = vpop.permute.xlu1 %6370  ;;  %v5684_v45 = vld [vmem:[#allocation2 + $0xb0] sm:$0x1]  ;;  %v13305_v57 = vpop.permute.xlu0 %6518 }
 0xecb   : > { %v5951_v15 = vsel %vm12565_vm6, %v5946_v62, %v5950_v49  ;;  %v8708_v59 = vcombine.low %v5593_v17, %v5596_v26  ;;  %v5959_v12 = vor.u32 %v5958_v40, %v5955_v33  ;;  %v5599_v37 = vrot.slane %v13081_v51, 5  ;;  %v5474_v22 = vld [vmem:[#allocation2 + $0x90] sm:$0xe]  ;;  %v5074_v40 = vld [vmem:[#allocation2 + $0x98] sm:$0x1] }
 0xecc   : > { %v8741_v24 = vcombine.low %v5941_v52, %v5951_v15  ;;  %v5969_v54 = vor.u32 %v5968_v32, %v5964_v50  ;;  %v5974_v19 = vrot.slane %v5972_v60, 5  ;;  %v5602_v1 = vrot.slane %v5073_v25, 5  ;;  %v4852_v25 = vld [vmem:[#allocation2] sm:$0xe] }
 0xecd   : > { %6650 = vrot.lane.b32.xlu1 %v8708_v59, %s10508_s17  ;;  %v5960_v7 = vrot.slane %v5959_v12, 4  ;;  %v8619_v55 = vcombine.low %v10301_v44, %v10302_v8  ;;  %v5977_v20 = vshrl.u32 %v5664_v3, 16  ;;  %v5600_v63 = vsel %vm13029_vm15, %v8597_v36, %v5599_v37  ;;  %v5666_v12 = vld [vmem:[#allocation2 + $0xb4] sm:$0xf] }
 0xece   : > { %6796 = vrot.lane.b32.xlu0 %v8741_v24, %s10508_s17  ;;  %v5970_v49 = vrot.slane %v5969_v54, 4  ;;  %v5601_v11 = vrot.slane %v5599_v37, 4  ;;  %v5980_v51 = vshll.u32 %v5664_v3, 16  ;;  %v5986_v23 = vshll.u32 %v5665_v5, 16 }
 0xecf   : > { %v5965_v14 = vsel %vm12565_vm6, %v5960_v7, %v5964_v50  ;;  %v13303_v4 = vsel %vm577_vm0, %v8619_v55, %v13215_v56  ;;  %v5979_v17 = vrot.slane %v5977_v20, 4  ;;  %v5990_v33 = vshrl.u32 %v5665_v5, 16  ;;  %v5667_v55 = vld [vmem:[#allocation2 + $0xb8] sm:$0xf] }
 0xed0   : > { %v5975_v21 = vsel %vm12565_vm6, %v5970_v49, %v5974_v19  ;;  %v5603_v52 = vsel %vm13029_vm15, %v5601_v11, %v5602_v1  ;;  %v5982_v62 = vrot.slane %v5980_v51, 5  ;;  %v5988_v32 = vrot.slane %v5986_v23, 5  ;;  %v10303_v49 = vld [vmem:[#allocation2 + $0x8] sm:$0x1] }
 0xed1   : > { %v8742_v26 = vcombine.low %v5965_v14, %v5975_v21  ;;  %v8709_v50 = vcombine.low %v5600_v63, %v5603_v52  ;;  %v5996_v56 = vshll.u32 %v5684_v45, 16  ;;  %v5992_v3 = vrot.slane %v5990_v33, 4 }
 0xed2   : > { %v5983_v60 = vor.u32 %v5982_v62, %v5979_v17  ;;  %v8598_v15 = vrot.slane %v5474_v22, 9  ;;  %v5606_v59 = vrot.slane %v13118_v28, 5  ;;  %v5609_v24 = vrot.slane %v5074_v40, 5  ;;  %v5685_v17 = vld [vmem:[#allocation2 + $0xbc] sm:$0x1] }
 0xed3   : > { %6798 = vrot.lane.b32.xlu0 %v8742_v26, %s10508_s17  ;;  %6652 = vrot.lane.b32.xlu1 %v8709_v50, %s10508_s17  ;;  %v5998_v36 = vrot.slane %v5996_v56, 5  ;;  %v8571_v54 = vrot.slane %v4852_v25, 9  ;;  %v4921_v19 = vrot.slane %v10302_v8, 5  ;;  %v5993_v7 = vor.u32 %v5992_v3, %v5988_v32  ;;  %v5475_v22 = vld [vmem:[#allocation2 + $0x9c] sm:$0xe] }
 0xed4   : > { %v5984_v5 = vrot.slane %v5983_v60, 4  ;;  %v5607_v1 = vsel %vm13029_vm15, %v8598_v15, %v5606_v59  ;;  %v5608_v44 = vrot.slane %v5606_v59, 4  ;;  %v4924_v63 = vrot.slane %v10303_v49, 5  ;;  %v4853_v56 = vld [vmem:[#allocation2 + $0xc] sm:$0xe] }
 0xed5   : > { %v13314_v37 = vpop.permute.xlu1 %6372  ;;  %v4922_v28 = vsel %vm13029_vm15, %v8571_v54, %v4921_v19  ;;  %v4923_v20 = vrot.slane %v4921_v19, 4  ;;  %v6001_v11 = vshrl.u32 %v5666_v12, 16  ;;  %v5994_v51 = vrot.slane %v5993_v7, 4  ;;  %v9839_v7 = vld [vmem:[%s14334_s7 + $0x108] sm:$0xff]  }
 0xed6   : > { %v5989_v8 = vsel %vm12565_vm6, %v5984_v5, %v5988_v32  ;;  %v5610_v14 = vsel %vm13029_vm15, %v5608_v44, %v5609_v24  ;;  %v6004_v23 = vshll.u32 %v5666_v12, 16  ;;  %v6010_v33 = vshll.u32 %v5667_v55, 16  ;;  %v5075_v32 = vld [vmem:[#allocation2 + $0xa4] sm:$0x1]  ;;  %v5668_v5 = vld [vmem:[#allocation2 + $0xc0] sm:$0xf] }
 0xed7   : > { %v8710_v21 = vcombine.low %v5607_v1, %v5610_v14  ;;  %v4925_v52 = vsel %vm13029_vm15, %v4923_v20, %v4924_v63  ;;  %v6003_v62 = vrot.slane %v6001_v11, 4  ;;  %v5999_v40 = vsel %vm12565_vm6, %v5994_v51, %v5998_v36 }
 0xed8   : > { %v8651_v25 = vcombine.low %v4922_v28, %v4925_v52  ;;  %v6006_v26 = vrot.slane %v6004_v23, 5  ;;  %v6014_v50 = vshrl.u32 %v5667_v55, 16  ;;  %v8743_v60 = vcombine.low %v5989_v8, %v5999_v40  ;;  %v13340_v28 = vld [vmem:[#allocation2 + $0x10] sm:$0xf]  ;;  %v5669_v8 = vld [vmem:[#allocation2 + $0xc4] sm:$0xf] }
 0xed9   : > { %6654 = vrot.lane.b32.xlu1 %v8710_v21, %s10508_s17  ;;  %v6012_v3 = vrot.slane %v6010_v33, 5  ;;  %v6020_v15 = vshll.u32 %v5685_v17, 16  ;;  %v8599_v59 = vrot.slane %v5475_v22, 9  ;;  %v5613_v36 = vrot.slane %v13146_v47, 5  ;;  %v10305_v17 = vld [vmem:[#allocation2 + $0x14] sm:$0x1] }
 0xeda   : > { %v6922_v24 = vsel %vm577_vm0, %v8651_v25, %v13220_v29  ;;  %v6007_v54 = vor.u32 %v6006_v26, %v6003_v62  ;;  %v6016_v19 = vrot.slane %v6014_v50, 4  ;;  %6800 = vrot.lane.b32.xlu0 %v8743_v60, %s10508_s17  ;;  %v5616_v44 = vrot.slane %v5075_v32, 5  ;;  %v5686_v33 = vld [vmem:[#allocation2 + $0xc8] sm:$0x1] }
 0xedb   : > { %7487 = vmatprep.mubr.bf16.mxu1 %v6922_v24  ;;  %v6022_v1 = vrot.slane %v6020_v15, 5  ;;  %v8572_v55 = vrot.slane %v4853_v56, 9  ;;  %v4928_v20 = vrot.slane %v13340_v28, 5  ;;  %v5614_v47 = vsel %vm13029_vm15, %v8599_v59, %v5613_v36  ;;  %v5476_v59 = vld [vmem:[#allocation2 + $0xa8] sm:$0xe] }
 0xedc   : > { %v13320_v45 = vpop.permute.xlu0 %6776  ;;  %v6008_v49 = vrot.slane %v6007_v54, 4  ;;  %v6017_v63 = vor.u32 %v6016_v19, %v6012_v3  ;;  %v5615_v11 = vrot.slane %v5613_v36, 4  ;;  %7488 = vmatmul.mubr.bf16.vlgmr.msra.gmra.mrb[120].mxu1 %v13303_v4  ;;  %v4931_v23 = vrot.slane %v10305_v17, 5  ;;  %v9848_v4 = vld [vmem:[%s14334_s7 + $0x110] sm:$0xff]  }
 0xedd   : > { %v4929_v51 = vsel %vm13029_vm15, %v8572_v55, %v4928_v20  ;;  %v4930_v14 = vrot.slane %v4928_v20, 4  ;;  %v6025_v22 = vshrl.u32 %v5668_v5, 16  ;;  %9622 = vmatpush3.bf16.msra.mxu1 %v13157_v46  ;;  %v6028_v40 = vshll.u32 %v5668_v5, 16  ;;  %v5076_v5 = vld [vmem:[#allocation2 + $0xb0] sm:$0x1] }
 0xede   : > { %v6013_v21 = vsel %vm12565_vm6, %v6008_v49, %v6012_v3  ;;  %v6018_v52 = vrot.slane %v6017_v63, 4  ;;  %v5617_v62 = vsel %vm13029_vm15, %v5615_v11, %v5616_v44  ;;  %9623 = vmatprep.subr.bf16.mxu1 %v9839_v7  ;;  %v6034_v46 = vshll.u32 %v5669_v8, 16  ;;  %v5077_v63 = vld [vmem:[#allocation2 + $0xbc] sm:$0x1] }
 0xedf   : > { %v8711_v25 = vcombine.low %v5614_v47, %v5617_v62  ;;  %v4932_v26 = vsel %vm13029_vm15, %v4930_v14, %v4931_v23  ;;  %v6027_v50 = vrot.slane %v6025_v22, 4  ;;  %v6030_v3 = vrot.slane %v6028_v40, 5  ;;  %v13377_v47 = vld [vmem:[#allocation2 + $0x24] sm:$0xf]  ;;  %v10307_v62 = vld [vmem:[#allocation2 + $0xc] sm:$0xf] }
 0xee0   : > { %v13331_v12 = vpop.permute.xlu1 %6374  ;;  %v13343_v29 = vpop.permute.xlu0 %6520  ;;  %v6023_v56 = vsel %vm12565_vm6, %v6018_v52, %v6022_v1  ;;  %v8652_v60 = vcombine.low %v4929_v51, %v4932_v26  ;;  %v6038_v15 = vshrl.u32 %v5669_v8, 16  ;;  %v13366_v24 = vrot.slane %v5080_v42, 4  ;;  %v9851_v42 = vld [vmem:[%s14334_s7 + $0x118] sm:$0xff]  }
 0xee1   : > { %v8744_v54 = vcombine.low %v6013_v21, %v6023_v56  ;;  %6656 = vrot.lane.b32.xlu1 %v8711_v25, %s10508_s17  ;;  %v6036_v19 = vrot.slane %v6034_v46, 5  ;;  %v6044_v36 = vshll.u32 %v5686_v33, 16  ;;  %9624 = vmatpush3.bf16.msra.mxu1 %v9839_v7  ;;  %v6031_v55 = vor.u32 %v6030_v3, %v6027_v50  ;;  %v5477_v7 = vld [vmem:[#allocation2 + $0xb4] sm:$0xe]  ;;  %v4854_v40 = vld [vmem:[#allocation2 + $0x18] sm:$0xe] }
 0xee2   : > { %v6926_v1 = vsel %vm577_vm0, %v8652_v60, %v13229_v41  ;;  %v6040_v20 = vrot.slane %v6038_v15, 4  ;;  %v5620_v49 = vrot.slane %v13171_v34, 5  ;;  %9625 = vmatprep.subr.bf16.mxu1 %v9848_v4  ;;  %v5128_v11 = vshrl.u32 %v13377_v47, 16  ;;  %v10308_v3 = vld [vmem:[#allocation2 + $0x1c] sm:$0xf] }
 0xee3   : > { %v5131_v8 = vshll.u32 %v13377_v47, 16  ;;  %6802 = vrot.lane.b32.xlu0 %v8744_v54, %s10508_s17  ;;  %7495 = vmatprep.mubr.bf16.mxu1 %v6926_v1  ;;  %v8600_v41 = vrot.slane %v5476_v59, 9  ;;  %v5627_v51 = vrot.slane %v13194_v30, 5  ;;  %v6032_v34 = vrot.slane %v6031_v55, 4  ;;  %v5478_v59 = vld [vmem:[#allocation2 + $0xc0] sm:$0xe] }
 0xee4   : > { %v13360_v32 = vpop.permute.xlu1 %6632  ;;  %v6041_v14 = vor.u32 %v6040_v20, %v6036_v19  ;;  %v5622_v17 = vrot.slane %v5620_v49, 4  ;;  %v5623_v23 = vrot.slane %v5076_v5, 5  ;;  %v6046_v22 = vrot.slane %v6044_v36, 5  ;;  %v5078_v55 = vld [vmem:[#allocation2 + $0xc8] sm:$0x1] }
 0xee5   : > { %v5629_v21 = vrot.slane %v5627_v51, 4  ;;  %v5630_v52 = vrot.slane %v5077_v63, 5  ;;  %v8620_v33 = vcombine.low %v10307_v62, %v13340_v28  ;;  %9626 = vmatpush3.bf16.msra.mxu1 %v9848_v4  ;;  %v5621_v50 = vsel %vm13029_vm15, %v8600_v41, %v5620_v49  ;;  %v10309_v49 = vld [vmem:[#allocation2 + $0x20] sm:$0x1] }
 0xee6   : > { %v13369_v44 = vpop.permute.xlu0 %6778  ;;  %v6042_v26 = vrot.slane %v6041_v14, 4  ;;  %v5624_v30 = vsel %vm13029_vm15, %v5622_v17, %v5623_v23  ;;  %v8601_v46 = vrot.slane %v5477_v7, 9  ;;  %9627 = vmatprep.subr.bf16.mxu1 %v9851_v42  ;;  %v4935_v15 = vrot.slane %v10308_v3, 5  ;;  %v4855_v7 = vld [vmem:[#allocation2 + $0x24] sm:$0xe] }
 0xee7   : > { %v8712_v56 = vcombine.low %v5621_v50, %v5624_v30  ;;  %v5631_v60 = vsel %vm13029_vm15, %v5629_v21, %v5630_v52  ;;  %v6862_v28 = vsel %vm577_vm0, %v8620_v33, %v13244_v10  ;;  %v6037_v54 = vsel %vm12565_vm6, %v6032_v34, %v6036_v19  ;;  %v13406_v17 = vld [vmem:[#allocation2 + $0x28] sm:$0xf]  ;;  %v10311_v52 = vld [vmem:[#allocation2 + $0x18] sm:$0xf] }
 0xee8   : > { %v6047_v36 = vsel %vm12565_vm6, %v6042_v26, %v6046_v22  ;;  %v5628_v5 = vsel %vm13029_vm15, %v8601_v46, %v5627_v51  ;;  %7496 = vmatmul.mubr.bf16.gmra.mrb[124].mxu1 %v6862_v28  ;;  %v8573_v1 = vrot.slane %v4854_v40, 9  ;;  %v4937_v10 = vrot.slane %v4935_v15, 4  ;;  %v10312_v26 = vld [vmem:[#allocation2 + $0x2c] sm:$0x1] }
 0xee9   : > { %v8745_v20 = vcombine.low %v6037_v54, %v6047_v36  ;;  %6658 = vrot.lane.b32.xlu1 %v8712_v56, %s10508_s17  ;;  %v4938_v63 = vrot.slane %v10309_v49, 5  ;;  %v5634_v41 = vrot.slane %v13223_v2, 5  ;;  %9628 = vmatpush3.bf16.msra.mxu1 %v9851_v42  ;;  %v8713_v19 = vcombine.low %v5628_v5, %v5631_v60  ;;  %v13421_v60 = vld [vmem:[#allocation2 + $0x34] sm:$0xf]  ;;  %v4856_v54 = vld [vmem:[#allocation2 + $0x30] sm:$0xe] }
 0xeea   : > { %v13384_v25 = vpop.permute.xlu1 %6376  ;;  %v13394_v4 = vpop.permute.xlu0 %6522  ;;  %v4936_v34 = vsel %vm13029_vm15, %v8573_v1, %v4935_v15  ;;  %v8602_v14 = vrot.slane %v5478_v59, 9  ;;  %v4942_v51 = vrot.slane %v13406_v17, 5  ;;  %v5637_v2 = vrot.slane %v5078_v55, 5  ;;  %v10314_v55 = vld [vmem:[#allocation2 + $0x38] sm:$0x1] }
 0xeeb   : > { %6804 = vrot.lane.b32.xlu0 %v8745_v20, %s10508_s17  ;;  %v4939_v22 = vsel %vm13029_vm15, %v4937_v10, %v4938_v63  ;;  %v5636_v21 = vrot.slane %v5634_v41, 4  ;;  %v8621_v42 = vcombine.low %v10311_v52, %v10308_v3  ;;  %v8574_v33 = vrot.slane %v4855_v7, 9  ;;  %v10315_v49 = vld [vmem:[#allocation2 + $0x18] sm:$0xf]  ;;  %v13446_v63 = vld [vmem:[#allocation2 + $0x1c] sm:$0xf] }
 0xeec   : > { %v8653_v62 = vcombine.low %v4936_v34, %v4939_v22  ;;  %v4944_v40 = vrot.slane %v4942_v51, 4  ;;  %v4945_v50 = vrot.slane %v10312_v26, 5  ;;  %v5085_v30 = vrot.slane %v5083_v13, 5  ;;  %v13466_v52 = vld [vmem:[#allocation2 + $0x3c] sm:$0xf] }
 0xeed   : > { %6660 = vrot.lane.b32.xlu1 %v8713_v19, %s10508_s17  ;;  %v5635_v46 = vsel %vm13029_vm15, %v8602_v14, %v5634_v41  ;;  %v5638_v56 = vsel %vm13029_vm15, %v5636_v21, %v5637_v2  ;;  %v4949_v28 = vrot.slane %v13421_v60, 5  ;;  %v6866_v31 = vsel %vm577_vm0, %v8621_v42, %v13250_v16  ;;  %v13451_v19 = vld [vmem:[#allocation2 + $0x30] sm:$0xf] }
 0xeee   : > { %v13409_v23 = vpop.permute.xlu1 %6634  ;;  %v6930_v15 = vsel %vm577_vm0, %v8653_v62, %v13231_v18  ;;  %v4943_v13 = vsel %vm13029_vm15, %v8574_v33, %v4942_v51  ;;  %v4946_v59 = vsel %vm13029_vm15, %v4944_v40, %v4945_v50  ;;  %v8714_v36 = vcombine.low %v5635_v46, %v5638_v56  ;;  %v13462_v51 = vld [vmem:[#allocation2 + $0x40] sm:$0xf]  ;;  %v5671_v2 = vld [vmem:[#allocation2 + $0xd0] sm:$0xf] }
 0xeef   : > { %7503 = vmatprep.mubr.bf16.mxu1 %v6930_v15  ;;  %v8654_v5 = vcombine.low %v4943_v13, %v4946_v59  ;;  %v4951_v1 = vrot.slane %v4949_v28, 4  ;;  %v4952_v20 = vrot.slane %v10314_v55, 5  ;;  %v13436_v10 = vrot.slane %v5107_v0, 5  ;;  %v10320_v62 = vld [vmem:[#allocation2 + $0x10] sm:$0xf] }
 0xef0   : > { %v13424_v3 = vpop.permute.xlu0 %6780  ;;  %v13440_v18 = vrot.slane %v5128_v11, 4  ;;  %v13444_v16 = vrot.slane %v5131_v8, 5  ;;  %7504 = vmatmul.mubr.bf16.gmra.mrb[128].mxu1 %v6866_v31  ;;  %v8715_v41 = vcombine.low %v10315_v49, %v13446_v63  ;;  %v5152_v48 = vshrl.u32 %v13451_v19, 16  ;;  %v5670_v8 = vld [vmem:[#allocation2 + $0xcc] sm:$0xf] }
 0xef1   : > { %6662 = vrot.lane.b32.xlu1 %v8714_v36, %s10508_s17  ;;  %v6934_v0 = vsel %vm577_vm0, %v8654_v5, %v13246_v27  ;;  %v8575_v47 = vrot.slane %v4856_v54, 9  ;;  %v4953_v11 = vsel %vm13029_vm15, %v4951_v1, %v4952_v20  ;;  %v5155_v34 = vshll.u32 %v13451_v19, 16  ;;  %v10322_v31 = vld [vmem:[#allocation2 + $0x14] sm:$0x1]  ;;  %v4857_v36 = vld [vmem:[#allocation2 + $0x3c] sm:$0xe] }
 0xef2   : > { %7511 = vmatprep.mubr.bf16.mxu1 %v6934_v0  ;;  %v7050_v14 = vsel %vm577_vm0, %v8715_v41, %v13320_v45  ;;  %v4956_v22 = vrot.slane %v13462_v51, 5  ;;  %v5086_v21 = vor.u32 %v5085_v30, %v13366_v24  ;;  %v5176_v27 = vshrl.u32 %v13466_v52, 16  ;;  %v10321_v45 = vld [vmem:[#allocation2 + $0x24] sm:$0xf]  ;;  %v5687_v59 = vld [vmem:[#allocation2 + $0xd4] sm:$0x1] }
 0xef3   : > { %v4950_v42 = vsel %vm13029_vm15, %v8575_v47, %v4949_v28  ;;  %7648 = vmatprep.mubr.bf16.mxu0 %v7050_v14  ;;  %v5089_v33 = vshll.u32 %v10320_v62, 16  ;;  %v5093_v40 = vshrl.u32 %v10320_v62, 16  ;;  %v8622_v50 = vcombine.low %v10321_v45, %v13406_v17 }
 0xef4   : > { %v13471_v26 = vpop.permute.xlu0 %6524  ;;  %v8655_v46 = vcombine.low %v4950_v42, %v4953_v11  ;;  %v6049_v56 = vshrl.u32 %v5670_v8, 16  ;;  %v6052_v24 = vshll.u32 %v5670_v8, 16  ;;  %v5099_v13 = vshll.u32 %v10322_v31, 16  ;;  %v10323_v11 = vld [vmem:[#allocation2 + $0x44] sm:$0x1] }
 0xef5   : > { %v13449_v7 = vpop.permute.xlu1 %6378  ;;  %v5091_v30 = vrot.slane %v5089_v33, 5  ;;  %v5095_v15 = vrot.slane %v5093_v40, 4  ;;  %v6058_v54 = vshll.u32 %v5671_v2, 16  ;;  %v4958_v28 = vrot.slane %v4956_v22, 4 }
 0xef6   : > { %v5087_v5 = vrot.slane %v5086_v21, 4  ;;  %v6051_v1 = vrot.slane %v6049_v56, 4  ;;  %v6054_v55 = vrot.slane %v6052_v24, 5  ;;  %v6870_v49 = vsel %vm577_vm0, %v8622_v50, %v13264_v58  ;;  %v10324_v56 = vld [vmem:[#allocation2 + $0x24] sm:$0xf] }
 0xef7   : > { %v5096_v17 = vor.u32 %v5095_v15, %v5091_v30  ;;  %v6060_v41 = vrot.slane %v6058_v54, 5  ;;  %v6062_v0 = vshrl.u32 %v5671_v2, 16  ;;  %v6938_v47 = vsel %vm577_vm0, %v8655_v46, %v13257_v38  ;;  %v13486_v38 = vld [vmem:[#allocation2 + $0x28] sm:$0xf]  ;;  %v10327_v54 = vld [vmem:[#allocation2 + $0x30] sm:$0xf] }
 0xef8   : > { %7512 = vmatmul.mubr.bf16.gmra.mrb[132].mxu1 %v6870_v49  ;;  %v4959_v8 = vrot.slane %v10323_v11, 5  ;;  %v6055_v14 = vor.u32 %v6054_v55, %v6051_v1  ;;  %v6068_v42 = vshll.u32 %v5687_v59, 16  ;;  %v8576_v21 = vrot.slane %v4857_v36, 9 }
 0xef9   : > { %v13474_v20 = vpop.permute.xlu1 %6636  ;;  %7519 = vmatprep.mubr.bf16.mxu1 %v6938_v47  ;;  %v5097_v62 = vrot.slane %v5096_v17, 4  ;;  %v5101_v33 = vrot.slane %v5099_v13, 5  ;;  %v6064_v40 = vrot.slane %v6062_v0, 4  ;;  %v5092_v2 = vsel %vm12565_vm6, %v5087_v5, %v5091_v30  ;;  %v13491_v13 = vld [vmem:[#allocation2 + $0x4c] sm:$0xf] }
 0xefa   : > { %v4960_v58 = vsel %vm13029_vm15, %v4958_v28, %v4959_v8  ;;  %v6056_v50 = vrot.slane %v6055_v14, 4  ;;  %v8716_v46 = vcombine.low %v10324_v56, %v13486_v38  ;;  %v6070_v31 = vrot.slane %v6068_v42, 5  ;;  %v10328_v17 = vld [vmem:[#allocation2 + $0x1c] sm:$0xf]  ;;  %v4858_v14 = vld [vmem:[#allocation2 + $0x48] sm:$0xe] }
 0xefb   : > { %v13480_v45 = vpop.permute.xlu0 %6782  ;;  %v5102_v24 = vsel %vm12565_vm6, %v5097_v62, %v5101_v33  ;;  %v6065_v15 = vor.u32 %v6064_v40, %v6060_v41  ;;  %v4963_v59 = vrot.slane %v13491_v13, 5  ;;  %v8623_v36 = vcombine.low %v10327_v54, %v13421_v60  ;;  %v10333_v54 = vld [vmem:[#allocation2 + $0x28] sm:$0xf] }
 0xefc   : > { %v4957_v30 = vsel %vm13029_vm15, %v8576_v21, %v4956_v22  ;;  %v8683_v28 = vcombine.low %v5092_v2, %v5102_v24  ;;  %v7054_v5 = vsel %vm577_vm0, %v8716_v46, %v13369_v44  ;;  %v6061_v55 = vsel %vm12565_vm6, %v6056_v50, %v6060_v41  ;;  %v10330_v2 = vld [vmem:[#allocation2 + $0x50] sm:$0x1] }
 0xefd   : > { %v6066_v49 = vrot.slane %v6065_v15, 4  ;;  %v5113_v0 = vshll.u32 %v10328_v17, 16  ;;  %v5117_v47 = vshrl.u32 %v10328_v17, 16  ;;  %v13505_v11 = vrot.slane %v5152_v48, 4  ;;  %v13531_v15 = vld [vmem:[#allocation2 + $0x58] sm:$0xf] }
 0xefe   : > { %v8656_v60 = vcombine.low %v4957_v30, %v4960_v58  ;;  %v6986_v22 = vsel %vm577_vm0, %v8683_v28, %v13360_v32  ;;  %v5110_v44 = vor.u32 %v13436_v10, %v13196_v43  ;;  %v6874_v8 = vsel %vm577_vm0, %v8623_v36, %v13280_v9  ;;  %v10329_v43 = vld [vmem:[#allocation2 + $0x20] sm:$0x1]  ;;  %v10334_v17 = vld [vmem:[#allocation2 + $0x30] sm:$0xf] }
 0xeff   : > { %7649 = vmatmul.mubr.bf16.vlgmr.msra.gmra.mrb[120].mxu0 %v6986_v22  ;;  %v6071_v41 = vsel %vm12565_vm6, %v6066_v49, %v6070_v31  ;;  %v4965_v42 = vrot.slane %v4963_v59, 4  ;;  %v5115_v21 = vrot.slane %v5113_v0, 5  ;;  %v13515_v62 = vpop.permute.xlu0 %6526  ;;  %v5119_v33 = vrot.slane %v5117_v47, 4  ;;  %v13541_v0 = vld [vmem:[#allocation2 + $0x34] sm:$0xf] }
 0xf00   : > { %v13499_v1 = vpop.permute.xlu1 %6380  ;;  %7520 = vmatmul.mubr.bf16.gmra.mrb[136].mxu1 %v6874_v8  ;;  %v6942_v48 = vsel %vm577_vm0, %v8656_v60, %v13271_v39  ;;  %v8746_v32 = vcombine.low %v6061_v55, %v6071_v41  ;;  %7656 = vmatprep.mubr.bf16.mxu0 %v7054_v5  ;;  %v5123_v10 = vshll.u32 %v10329_v43, 16  ;;  %v13521_v9 = vrot.slane %v5155_v34, 5  ;;  %v10332_v34 = vld [vmem:[#allocation2 + $0x3c] sm:$0xf] }
 0xf01   : > { %v13525_v40 = vrot.slane %v5176_v27, 4  ;;  %v5179_v58 = vshll.u32 %v13466_v52, 16  ;;  %7527 = vmatprep.mubr.bf16.mxu1 %v6942_v48  ;;  %v4966_v50 = vrot.slane %v10330_v2, 5  ;;  %v8577_v39 = vrot.slane %v4858_v14, 9 }
 0xf02   : > { %6806 = vrot.lane.b32.xlu0 %v8746_v32, %s10508_s17  ;;  %v5111_v46 = vrot.slane %v5110_v44, 4  ;;  %v5120_v24 = vor.u32 %v5119_v33, %v5115_v21  ;;  %v4970_v19 = vrot.slane %v13531_v15, 5  ;;  %v8624_v27 = vcombine.low %v10332_v34, %v13462_v51  ;;  %v4859_v51 = vld [vmem:[#allocation2 + $0x54] sm:$0xe]  ;;  %v10336_v44 = vld [vmem:[#allocation2 + $0x2c] sm:$0x1] }
 0xf03   : > { %v4967_v31 = vsel %vm13029_vm15, %v4965_v42, %v4966_v50  ;;  %v5137_v36 = vshll.u32 %v10333_v54, 16  ;;  %v5141_v30 = vshrl.u32 %v10333_v54, 16  ;;  %v4964_v28 = vsel %vm13029_vm15, %v8577_v39, %v4963_v59  ;;  %s8301_s17 = scalar_lea.sflag [#allocation4], %s405_s26 }
 0xf04   : > { %v13528_v56 = vpop.permute.xlu1 %6638  ;;  %v5121_v5 = vrot.slane %v5120_v24, 4  ;;  %v5125_v55 = vrot.slane %v5123_v10, 5  ;;  %v5134_v49 = vor.u32 %v13444_v16, %v13440_v18  ;;  %v8717_v47 = vcombine.low %v10334_v17, %v13541_v0 }
 0xf05   : > { %v5139_v60 = vrot.slane %v5137_v36, 5  ;;  %v5143_v22 = vrot.slane %v5141_v30, 4  ;;  %v5147_v8 = vshll.u32 %v10336_v44, 16  ;;  %v13544_v41 = vpop.permute.xlu0 %6784  ;;  %v8657_v14 = vcombine.low %v4964_v28, %v4967_v31  ;;  %v10339_v31 = vld [vmem:[#allocation2 + $0x34] sm:$0xf] }
 0xf06   : > { %v5116_v59 = vsel %vm12565_vm6, %v5111_v46, %v5115_v21  ;;  %v5126_v42 = vsel %vm12565_vm6, %v5121_v5, %v5125_v55  ;;  %v4972_v18 = vrot.slane %v4970_v19, 4  ;;  %v6878_v16 = vsel %vm577_vm0, %v8624_v27, %v13294_v53  ;;  %v10337_v21 = vld [vmem:[#allocation2 + $0x5c] sm:$0x1]  ;;  %v10338_v53 = vld [vmem:[#allocation2 + $0x48] sm:$0xf] }
 0xf07   : > { %v8684_v48 = vcombine.low %v5116_v59, %v5126_v42  ;;  %v7058_v32 = vsel %vm577_vm0, %v8717_v47, %v13424_v3  ;;  %v5144_v33 = vor.u32 %v5143_v22, %v5139_v60  ;;  %v6946_v10 = vsel %vm577_vm0, %v8657_v14, %v13286_v61  ;;  %v13567_v28 = vld [vmem:[#allocation2 + $0x40] sm:$0xf]  ;;  %v13570_v5 = vld [vmem:[#allocation2 + $0x64] sm:$0xf]  ;;  %v10343_v22 = vld [vmem:[#allocation2 + $0x38] sm:$0x1] }
 0xf08   : > { %7528 = vmatmul.mubr.bf16.gmra.mrb[140].mxu1 %v6878_v16  ;;  %v8578_v2 = vrot.slane %v4859_v51, 9  ;;  %v4973_v50 = vrot.slane %v10337_v21, 5  ;;  %v5135_v39 = vrot.slane %v5134_v49, 4  ;;  %v8625_v24 = vcombine.low %v10338_v53, %v13491_v13  ;;  %v10344_v59 = vld [vmem:[#allocation2 + $0x48] sm:$0xf] }
 0xf09   : > { %7535 = vmatprep.mubr.bf16.mxu1 %v6946_v10  ;;  %v6990_v46 = vsel %vm577_vm0, %v8684_v48, %v13409_v23  ;;  %v5145_v34 = vrot.slane %v5144_v33, 4  ;;  %v5149_v3 = vrot.slane %v5147_v8, 5  ;;  %v5161_v54 = vshll.u32 %v10339_v31, 16  ;;  %v10340_v23 = vld [vmem:[#allocation2 + $0x3c] sm:$0xf]  ;;  %v13575_v49 = vpop.permute.xlu0 %6528 }
 0xf0a   : > { %v13554_v43 = vpop.permute.xlu1 %6382  ;;  %7657 = vmatmul.mubr.bf16.gmra.mrb[124].mxu0 %v6990_v46  ;;  %v4971_v27 = vsel %vm13029_vm15, %v8578_v2, %v4970_v19  ;;  %v4974_v61 = vsel %vm13029_vm15, %v4972_v18, %v4973_v50  ;;  %v5165_v36 = vshrl.u32 %v10339_v31, 16  ;;  %v8718_v13 = vcombine.low %v10340_v23, %v13567_v28  ;;  %v4860_v10 = vld [vmem:[#allocation2 + $0x60] sm:$0xe] }
 0xf0b   : > { %7664 = vmatprep.mubr.bf16.mxu0 %v7058_v32  ;;  %v5150_v30 = vsel %vm12565_vm6, %v5145_v34, %v5149_v3  ;;  %v4977_v55 = vrot.slane %v13570_v5, 5  ;;  %v5158_v19 = vor.u32 %v13521_v9, %v13505_v11  ;;  %v5140_v17 = vsel %vm12565_vm6, %v5135_v39, %v5139_v60  ;;  %v10345_v50 = vld [vmem:[#allocation2 + $0x40] sm:$0xf] }
 0xf0c   : > { %v5163_v47 = vrot.slane %v5161_v54, 5  ;;  %v5167_v51 = vrot.slane %v5165_v36, 4  ;;  %v5171_v44 = vshll.u32 %v10343_v22, 16  ;;  %v13583_v14 = vrot.slane %v5179_v58, 5 }
 0xf0d   : > { %v5200_v42 = vshrl.u32 %v10344_v59, 16  ;;  %v8658_v18 = vcombine.low %v4971_v27, %v4974_v61  ;;  %v8685_v16 = vcombine.low %v5140_v17, %v5150_v30  ;;  %v5203_v11 = vshll.u32 %v10344_v59, 16  ;;  %v10347_v61 = vld [vmem:[#allocation2 + $0x54] sm:$0xf]  ;;  %v13608_v30 = vld [vmem:[#allocation2 + $0x70] sm:$0xf] }
 0xf0e   : > { %v13579_v8 = vpop.permute.xlu1 %6640  ;;  %v6882_v9 = vsel %vm577_vm0, %v8625_v24, %v13314_v37  ;;  %v7062_v60 = vsel %vm577_vm0, %v8718_v13, %v13480_v45  ;;  %v5168_v48 = vor.u32 %v5167_v51, %v5163_v47  ;;  %v4979_v58 = vrot.slane %v4977_v55, 4  ;;  %v10346_v45 = vld [vmem:[#allocation2 + $0x68] sm:$0x1]  ;;  %v10349_v51 = vld [vmem:[#allocation2 + $0x44] sm:$0x1] }
 0xf0f   : > { %v6950_v32 = vsel %vm577_vm0, %v8658_v18, %v13305_v57  ;;  %v6994_v52 = vsel %vm577_vm0, %v8685_v16, %v13474_v20  ;;  %v5159_v33 = vrot.slane %v5158_v19, 4  ;;  %v5173_v21 = vrot.slane %v5171_v44, 5  ;;  %v10350_v44 = vld [vmem:[#allocation2 + $0x54] sm:$0xf] }
 0xf10   : > { %7536 = vmatmul.mubr.bf16.gmra.mrb[144].mxu1 %v6882_v9  ;;  %v5169_v2 = vrot.slane %v5168_v48, 4  ;;  %v5185_v39 = vshll.u32 %v10345_v50, 16  ;;  %v5189_v46 = vshrl.u32 %v10345_v50, 16  ;;  %v13593_v37 = vrot.slane %v5200_v42, 4  ;;  %v13595_v24 = vpop.permute.xlu0 %6786  ;;  %v10351_v9 = vld [vmem:[#allocation2 + $0x48] sm:$0xf] }
 0xf11   : > { %7543 = vmatprep.mubr.bf16.mxu1 %v6950_v32  ;;  %v4980_v53 = vrot.slane %v10346_v45, 5  ;;  %v13597_v57 = vrot.slane %v5203_v11, 5  ;;  %v8626_v31 = vcombine.low %v10347_v61, %v13531_v15  ;;  %v8579_v54 = vrot.slane %v4860_v10, 9  ;;  %v4861_v48 = vld [vmem:[#allocation2 + $0x6c] sm:$0xe] }
 0xf12   : > { %7665 = vmatmul.mubr.bf16.gmra.mrb[128].mxu0 %v6994_v52  ;;  %v5174_v20 = vsel %vm12565_vm6, %v5169_v2, %v5173_v21  ;;  %v13601_v34 = vrot.slane %v5185_v39, 5  ;;  %v5191_v3 = vrot.slane %v5189_v46, 4  ;;  %v4984_v23 = vrot.slane %v13608_v30, 5 }
 0xf13   : > { %7672 = vmatprep.mubr.bf16.mxu0 %v7062_v60  ;;  %v4981_v36 = vsel %vm13029_vm15, %v4979_v58, %v4980_v53  ;;  %v5164_v13 = vsel %vm12565_vm6, %v5159_v33, %v5163_v47  ;;  %v5182_v19 = vor.u32 %v13583_v14, %v13525_v40  ;;  %v5195_v22 = vshll.u32 %v10349_v51, 16  ;;  %v13620_v47 = vld [vmem:[#allocation2 + $0x4c] sm:$0xf] }
 0xf14   : > { %v13603_v27 = vpop.permute.xlu1 %6384  ;;  %v5192_v17 = vor.u32 %v5191_v3, %v13601_v34  ;;  %v5224_v15 = vshrl.u32 %v10350_v44, 16  ;;  %v5227_v59 = vshll.u32 %v10350_v44, 16  ;;  %v4978_v42 = vsel %vm13029_vm15, %v8579_v54, %v4977_v55  ;;  %v13625_v52 = vpop.permute.xlu0 %6530  ;;  %v10353_v58 = vld [vmem:[#allocation2 + $0x4c] sm:$0xf]  ;;  %v10355_v3 = vld [vmem:[#allocation2 + $0x60] sm:$0xf] }
 0xf15   : > { %v8686_v18 = vcombine.low %v5164_v13, %v5174_v20  ;;  %v6886_v16 = vsel %vm577_vm0, %v8626_v31, %v13331_v12  ;;  %v8659_v11 = vcombine.low %v4978_v42, %v4981_v36  ;;  %v8719_v40 = vcombine.low %v10351_v9, %v13620_v47  ;;  %v13644_v54 = vld [vmem:[#allocation2 + $0x7c] sm:$0xf]  ;;  %v10358_v44 = vld [vmem:[#allocation2 + $0x50] sm:$0x1] }
 0xf16   : > { %v5193_v14 = vrot.slane %v5192_v17, 4  ;;  %v4986_v32 = vrot.slane %v4984_v23, 4  ;;  %v5209_v55 = vshll.u32 %v10353_v58, 16  ;;  %v5213_v33 = vshrl.u32 %v10353_v58, 16  ;;  %v10357_v17 = vld [vmem:[#allocation2 + $0x60] sm:$0xf] }
 0xf17   : > { %v6998_v60 = vsel %vm577_vm0, %v8686_v18, %v13528_v56  ;;  %v6954_v12 = vsel %vm577_vm0, %v8659_v11, %v13343_v29  ;;  %v7066_v10 = vsel %vm577_vm0, %v8719_v40, %v13544_v41  ;;  %v5183_v2 = vrot.slane %v5182_v19, 4  ;;  %v10354_v56 = vld [vmem:[#allocation2 + $0x74] sm:$0x1] }
 0xf18   : > { %7544 = vmatmul.mubr.bf16.gmra.mrb[148].mxu1 %v6886_v16  ;;  %v5197_v21 = vrot.slane %v5195_v22, 5  ;;  %v13631_v50 = vpop.permute.xlu1 %6642  ;;  %v13633_v39 = vrot.slane %v5224_v15, 4  ;;  %v4987_v46 = vrot.slane %v10354_v56, 5  ;;  %v13635_v45 = vrot.slane %v5209_v55, 5  ;;  %v10359_v16 = vld [vmem:[#allocation2 + $0x54] sm:$0xf] }
 0xf19   : > { %7551 = vmatprep.mubr.bf16.mxu1 %v6954_v12  ;;  %v5215_v53 = vrot.slane %v5213_v33, 4  ;;  %v13637_v20 = vrot.slane %v5227_v59, 5  ;;  %v8627_v29 = vcombine.low %v10355_v3, %v13570_v5  ;;  %v8580_v61 = vrot.slane %v4861_v48, 9  ;;  %v4862_v33 = vld [vmem:[#allocation2 + $0x78] sm:$0xe] }
 0xf1a   : > { %7673 = vmatmul.mubr.bf16.gmra.mrb[132].mxu0 %v6998_v60  ;;  %v5198_v41 = vsel %vm12565_vm6, %v5193_v14, %v5197_v21  ;;  %v4988_v31 = vsel %vm13029_vm15, %v4986_v32, %v4987_v46  ;;  %v4991_v36 = vrot.slane %v13644_v54, 5  ;;  %v5206_v13 = vor.u32 %v13597_v57, %v13593_v37  ;;  %v13657_v37 = vld [vmem:[#allocation2 + $0x58] sm:$0xf]  ;;  %v10362_v21 = vld [vmem:[#allocation2 + $0x80] sm:$0x1] }
 0xf1b   : > { %7680 = vmatprep.mubr.bf16.mxu0 %v7066_v10  ;;  %v5216_v19 = vor.u32 %v5215_v53, %v13635_v45  ;;  %v5248_v51 = vshrl.u32 %v10357_v17, 16  ;;  %v5251_v5 = vshll.u32 %v10357_v17, 16  ;;  %v5188_v22 = vsel %vm12565_vm6, %v5183_v2, %v13601_v34  ;;  %v10361_v34 = vld [vmem:[#allocation2 + $0x58] sm:$0xf]  ;;  %v13670_v46 = vld [vmem:[#allocation2 + $0x88] sm:$0xf] }
 0xf1c   : > { %v5219_v15 = vshll.u32 %v10358_v44, 16  ;;  %v6890_v59 = vsel %vm577_vm0, %v8627_v29, %v13384_v25  ;;  %v4985_v42 = vsel %vm13029_vm15, %v8580_v61, %v4984_v23  ;;  %v8687_v18 = vcombine.low %v5188_v22, %v5198_v41  ;;  %v6789_v11 = vpop.permute.xlu0 %6788  ;;  %v10364_v29 = vld [vmem:[#allocation2 + $0x6c] sm:$0xf]  ;;  %v10366_v44 = vld [vmem:[#allocation2 + $0x64] sm:$0xf] }
 0xf1d   : > { %v8720_v57 = vcombine.low %v10359_v16, %v13657_v37  ;;  %v8660_v9 = vcombine.low %v4985_v42, %v4988_v31  ;;  %v5217_v40 = vrot.slane %v5216_v19, 4  ;;  %v5233_v60 = vshll.u32 %v10361_v34, 16  ;;  %v13694_v16 = vld [vmem:[#allocation2 + $0x64] sm:$0xf] }
 0xf1e   : > { %v5237_v48 = vshrl.u32 %v10361_v34, 16  ;;  %v7002_v25 = vsel %vm577_vm0, %v8687_v18, %v13579_v8  ;;  %v4993_v32 = vrot.slane %v4991_v36, 4  ;;  %v5207_v58 = vrot.slane %v5206_v13, 4  ;;  %v10367_v18 = vld [vmem:[#allocation2 + $0x60] sm:$0xf] }
 0xf1f   : > { %v13660_v14 = vpop.permute.xlu1 %6386  ;;  %v7070_v23 = vsel %vm577_vm0, %v8720_v57, %v13595_v24  ;;  %v6958_v55 = vsel %vm577_vm0, %v8660_v9, %v13394_v4  ;;  %v5221_v12 = vrot.slane %v5219_v15, 5  ;;  %v13668_v10 = vrot.slane %v5233_v60, 5 }
 0xf20   : > { %7552 = vmatmul.mubr.bf16.gmra.mrb[152].mxu1 %v6890_v59  ;;  %v5239_v2 = vrot.slane %v5237_v48, 4  ;;  %v4994_v56 = vrot.slane %v10362_v21, 5  ;;  %v4998_v8 = vrot.slane %v13670_v46, 5  ;;  %v13673_v53 = vrot.slane %v5248_v51, 4  ;;  %v13686_v19 = vpop.permute.xlu0 %6532 }
 0xf21   : > { %7559 = vmatprep.mubr.bf16.mxu1 %v6958_v55  ;;  %v13675_v24 = vrot.slane %v5251_v5, 5  ;;  %v5222_v4 = vsel %vm12565_vm6, %v5217_v40, %v5221_v12  ;;  %v8628_v61 = vcombine.low %v10364_v29, %v13608_v30  ;;  %v8581_v41 = vrot.slane %v4862_v33, 9  ;;  %v10365_v5 = vld [vmem:[#allocation2 + $0x5c] sm:$0x1]  ;;  %v4863_v40 = vld [vmem:[#allocation2 + $0x84] sm:$0xe] }
 0xf22   : > { %7681 = vmatmul.mubr.bf16.gmra.mrb[136].mxu0 %v7002_v25  ;;  %v5240_v3 = vor.u32 %v5239_v2, %v13668_v10  ;;  %v4995_v31 = vsel %vm13029_vm15, %v4993_v32, %v4994_v56  ;;  %v5212_v13 = vsel %vm12565_vm6, %v5207_v58, %v13635_v45  ;;  %v5230_v51 = vor.u32 %v13637_v20, %v13633_v39  ;;  %v10369_v20 = vld [vmem:[#allocation2 + $0x6c] sm:$0xf] }
 0xf23   : > { %7688 = vmatprep.mubr.bf16.mxu0 %v7070_v23  ;;  %v13688_v17 = vpop.permute.xlu1 %6644  ;;  %v5243_v22 = vshll.u32 %v10365_v5, 16  ;;  %v5257_v15 = vshll.u32 %v10366_v44, 16  ;;  %v5261_v30 = vshrl.u32 %v10366_v44, 16  ;;  %v4992_v59 = vsel %vm13029_vm15, %v8581_v41, %v4991_v36  ;;  %v10370_v23 = vld [vmem:[#allocation2 + $0x8c] sm:$0x1] }
 0xf24   : > { %v8688_v42 = vcombine.low %v5212_v13, %v5222_v4  ;;  %v8721_v45 = vcombine.low %v10367_v18, %v13694_v16  ;;  %v5000_v57 = vrot.slane %v4998_v8, 4  ;;  %v8661_v9 = vcombine.low %v4992_v59, %v4995_v31  ;;  %v10375_v18 = vld [vmem:[#allocation2 + $0x6c] sm:$0xf] }
 0xf25   : > { %v5241_v34 = vrot.slane %v5240_v3, 4  ;;  %v13697_v60 = vrot.slane %v5257_v15, 5  ;;  %v5263_v39 = vrot.slane %v5261_v30, 4  ;;  %v5272_v48 = vshrl.u32 %v10369_v20, 16  ;;  %v10374_v15 = vld [vmem:[#allocation2 + $0x78] sm:$0xf] }
 0xf26   : > { %v6894_v25 = vsel %vm577_vm0, %v8628_v61, %v13449_v7  ;;  %v7006_v36 = vsel %vm577_vm0, %v8688_v42, %v13631_v50  ;;  %v5001_v32 = vrot.slane %v10370_v23, 5  ;;  %v6962_v58 = vsel %vm577_vm0, %v8661_v9, %v13471_v26  ;;  %v13708_v7 = vld [vmem:[#allocation2 + $0x94] sm:$0xf] }
 0xf27   : > { %v7074_v55 = vsel %vm577_vm0, %v8721_v45, %v6789_v11  ;;  %v5231_v33 = vrot.slane %v5230_v51, 4  ;;  %v5245_v12 = vrot.slane %v5243_v22, 5  ;;  %v8582_v2 = vrot.slane %v4863_v40, 9  ;;  %v6791_v56 = vpop.permute.xlu0 %6790  ;;  %v10372_v11 = vld [vmem:[#allocation2 + $0x70] sm:$0xf] }
 0xf28   : > { %7560 = vmatmul.mubr.bf16.gmra.mrb[156].mxu1 %v6894_v25  ;;  %v5002_v21 = vsel %vm13029_vm15, %v5000_v57, %v5001_v32  ;;  %v5005_v50 = vrot.slane %v13708_v7, 5  ;;  %v5264_v26 = vor.u32 %v5263_v39, %v13697_v60  ;;  %v5281_v29 = vshll.u32 %v10372_v11, 16  ;;  %v10373_v22 = vld [vmem:[#allocation2 + $0x68] sm:$0x1]  ;;  %v13726_v45 = vld [vmem:[#allocation2 + $0x70] sm:$0xf] }
 0xf29   : > { %7567 = vmatprep.mubr.bf16.mxu1 %v6962_v58  ;;  %v5246_v4 = vsel %vm12565_vm6, %v5241_v34, %v5245_v12  ;;  %v5285_v61 = vshrl.u32 %v10372_v11, 16  ;;  %v13716_v41 = vrot.slane %v5272_v48, 4  ;;  %v5275_v31 = vshll.u32 %v10369_v20, 16  ;;  %v10377_v25 = vld [vmem:[#allocation2 + $0x98] sm:$0x1] }
 0xf2a   : > { %7689 = vmatmul.mubr.bf16.gmra.mrb[140].mxu0 %v7006_v36  ;;  %v13713_v3 = vpop.permute.xlu1 %6388  ;;  %v4999_v13 = vsel %vm13029_vm15, %v8582_v2, %v4998_v8  ;;  %v5236_v51 = vsel %vm12565_vm6, %v5231_v33, %v13668_v10  ;;  %v5254_v5 = vor.u32 %v13675_v24, %v13673_v53  ;;  %v5267_v44 = vshll.u32 %v10373_v22, 16  ;;  %v4864_v8 = vld [vmem:[#allocation2 + $0x90] sm:$0xe]  ;;  %v10378_v33 = vld [vmem:[#allocation2 + $0x84] sm:$0xf] }
 0xf2b   : > { %7696 = vmatprep.mubr.bf16.mxu0 %v7074_v55  ;;  %v8629_v30 = vcombine.low %v10374_v15, %v13644_v54  ;;  %v8662_v59 = vcombine.low %v4999_v13, %v5002_v21  ;;  %v8689_v42 = vcombine.low %v5236_v51, %v5246_v4  ;;  %v8722_v57 = vcombine.low %v10375_v18, %v13726_v45  ;;  %v13737_v20 = vpop.permute.xlu0 %6534  ;;  %v13748_v21 = vld [vmem:[#allocation2 + $0xa0] sm:$0xf]  ;;  %v10380_v11 = vld [vmem:[#allocation2 + $0x74] sm:$0x1]  ;;  %v10382_v51 = vld [vmem:[#allocation2 + $0x78] sm:$0xf] }
 0xf2c   : > { %v5007_v9 = vrot.slane %v5005_v50, 4  ;;  %v5265_v40 = vrot.slane %v5264_v26, 4  ;;  %v13729_v34 = vrot.slane %v5281_v29, 5  ;;  %v5287_v10 = vrot.slane %v5285_v61, 4  ;;  %v10381_v61 = vld [vmem:[#allocation2 + $0x7c] sm:$0xf] }
 0xf2d   : > { %v5277_v39 = vrot.slane %v5275_v31, 5  ;;  %v6898_v53 = vsel %vm577_vm0, %v8629_v30, %v13499_v1  ;;  %v6966_v54 = vsel %vm577_vm0, %v8662_v59, %v13515_v62  ;;  %v7010_v24 = vsel %vm577_vm0, %v8689_v42, %v13688_v17  ;;  %v13759_v59 = vld [vmem:[#allocation2 + $0x7c] sm:$0xf] }
 0xf2e   : > { %v7078_v48 = vsel %vm577_vm0, %v8722_v57, %v6791_v56  ;;  %v5008_v36 = vrot.slane %v10377_v25, 5  ;;  %v6647_v23 = vpop.permute.xlu1 %6646  ;;  %v5255_v32 = vrot.slane %v5254_v5, 4  ;;  %v5269_v58 = vrot.slane %v5267_v44, 5 }
 0xf2f   : > { %v8583_v55 = vrot.slane %v4864_v8, 9  ;;  %v5288_v17 = vor.u32 %v5287_v10, %v13729_v34  ;;  %v8630_v12 = vcombine.low %v10378_v33, %v13670_v46  ;;  %v5012_v56 = vrot.slane %v13748_v21, 5  ;;  %v4865_v10 = vld [vmem:[#allocation2 + $0x9c] sm:$0xe] }
 0xf30   : > { %7568 = vmatmul.mubr.bf16.gmra.mrb[160].mxu1 %v6898_v53  ;;  %v5009_v1 = vsel %vm13029_vm15, %v5007_v9, %v5008_v36  ;;  %v5270_v62 = vsel %vm12565_vm6, %v5265_v40, %v5269_v58  ;;  %v5278_v4 = vor.u32 %v5277_v39, %v13716_v41  ;;  %v5260_v26 = vsel %vm12565_vm6, %v5255_v32, %v13697_v60  ;;  %v10383_v41 = vld [vmem:[#allocation2 + $0x78] sm:$0xf]  ;;  %v13772_v32 = vld [vmem:[#allocation2 + $0xac] sm:$0xf] }
 0xf31   : > { %7575 = vmatprep.mubr.bf16.mxu1 %v6966_v54  ;;  %v5006_v2 = vsel %vm13029_vm15, %v8583_v55, %v5005_v50  ;;  %v5291_v29 = vshll.u32 %v10380_v11, 16  ;;  %v5305_v31 = vshll.u32 %v10381_v61, 16  ;;  %v5309_v13 = vshrl.u32 %v10381_v61, 16  ;;  %v6793_v50 = vpop.permute.xlu0 %6792  ;;  %v10385_v54 = vld [vmem:[#allocation2 + $0xa4] sm:$0x1] }
 0xf32   : > { %7697 = vmatmul.mubr.bf16.gmra.mrb[144].mxu0 %v7010_v24  ;;  %v5296_v46 = vshrl.u32 %v10382_v51, 16  ;;  %v8663_v5 = vcombine.low %v5006_v2, %v5009_v1  ;;  %v8690_v22 = vcombine.low %v5260_v26, %v5270_v62  ;;  %v5299_v44 = vshll.u32 %v10382_v51, 16  ;;  %v10388_v2 = vld [vmem:[#allocation2 + $0x84] sm:$0xf]  ;;  %v10389_v26 = vld [vmem:[#allocation2 + $0x90] sm:$0xf] }
 0xf33   : > { %7704 = vmatprep.mubr.bf16.mxu0 %v7078_v48  ;;  %v6902_v15 = vsel %vm577_vm0, %v8630_v12, %v13554_v43  ;;  %v8723_v60 = vcombine.low %v10383_v41, %v13759_v59  ;;  %v5289_v42 = vrot.slane %v5288_v17, 4  ;;  %v5014_v8 = vrot.slane %v5012_v56, 4  ;;  %v10387_v17 = vld [vmem:[#allocation2 + $0x88] sm:$0xf] }
 0xf34   : > { %v6970_v18 = vsel %vm577_vm0, %v8663_v5, %v13575_v49  ;;  %v7014_v57 = vsel %vm577_vm0, %v8690_v22, %v6647_v23  ;;  %v5279_v9 = vrot.slane %v5278_v4, 4  ;;  %v5293_v43 = vrot.slane %v5291_v29, 5 }
 0xf35   : > { %v13757_v30 = vpop.permute.xlu1 %6390  ;;  %v7082_v40 = vsel %vm577_vm0, %v8723_v60, %v6793_v50  ;;  %v13766_v39 = vrot.slane %v5305_v31, 5  ;;  %v5311_v53 = vrot.slane %v5309_v13, 4  ;;  %v5015_v24 = vrot.slane %v10385_v54, 5  ;;  %v4866_v60 = vld [vmem:[#allocation2 + $0xa8] sm:$0xe] }
 0xf36   : > { %v5298_v48 = vrot.slane %v5296_v46, 4  ;;  %v5301_v25 = vrot.slane %v5299_v44, 5  ;;  %v5294_v49 = vsel %vm12565_vm6, %v5289_v42, %v5293_v43  ;;  %v8584_v36 = vrot.slane %v4865_v10, 9  ;;  %v10390_v46 = vld [vmem:[#allocation2 + $0x80] sm:$0x1] }
 0xf37   : > { %v5016_v23 = vsel %vm13029_vm15, %v5014_v8, %v5015_v24  ;;  %v5019_v58 = vrot.slane %v13772_v32, 5  ;;  %v5284_v1 = vsel %vm12565_vm6, %v5279_v9, %v13729_v34  ;;  %v5312_v62 = vor.u32 %v5311_v53, %v13766_v39  ;;  %v10391_v44 = vld [vmem:[#allocation2 + $0x84] sm:$0xf] }
 0xf38   : > { %7576 = vmatmul.mubr.bf16.gmra.mrb[164].mxu1 %v6902_v15  ;;  %v5329_v33 = vshll.u32 %v10387_v17, 16  ;;  %v5333_v12 = vshrl.u32 %v10387_v17, 16  ;;  %v5320_v4 = vshrl.u32 %v10388_v2, 16  ;;  %v8631_v11 = vcombine.low %v10389_v26, %v13708_v7  ;;  %v13785_v15 = vld [vmem:[#allocation2 + $0x88] sm:$0xf] }
 0xf39   : > { %7583 = vmatprep.mubr.bf16.mxu1 %v6970_v18  ;;  %v6649_v55 = vpop.permute.xlu1 %6648  ;;  %v5013_v29 = vsel %vm13029_vm15, %v8584_v36, %v5012_v56  ;;  %v8691_v61 = vcombine.low %v5284_v1, %v5294_v49  ;;  %v5323_v31 = vshll.u32 %v10388_v2, 16  ;;  %v5302_v51 = vor.u32 %v5301_v25, %v5298_v48  ;;  %v6795_v22 = vpop.permute.xlu0 %6794  ;;  %v13796_v48 = vld [vmem:[#allocation2 + $0xb8] sm:$0xf] }
 0xf3a   : > { %7705 = vmatmul.mubr.bf16.gmra.mrb[148].mxu0 %v7014_v57  ;;  %v8664_v13 = vcombine.low %v5013_v29, %v5016_v23  ;;  %v5315_v5 = vshll.u32 %v10390_v46, 16  ;;  %v6906_v34 = vsel %vm577_vm0, %v8631_v11, %v13603_v27  ;;  %v8724_v7 = vcombine.low %v10391_v44, %v13785_v15  ;;  %v10393_v27 = vld [vmem:[#allocation2 + $0xb0] sm:$0x1]  ;;  %v10395_v23 = vld [vmem:[#allocation2 + $0x94] sm:$0xf] }
 0xf3b   : > { %7712 = vmatprep.mubr.bf16.mxu0 %v7082_v40  ;;  %v7018_v50 = vsel %vm577_vm0, %v8691_v61, %v6649_v55  ;;  %v5021_v41 = vrot.slane %v5019_v58, 4  ;;  %v5313_v42 = vrot.slane %v5312_v62, 4  ;;  %v13790_v18 = vrot.slane %v5329_v33, 5  ;;  %v10396_v62 = vld [vmem:[#allocation2 + $0x90] sm:$0xf] }
 0xf3c   : > { %v6974_v56 = vsel %vm577_vm0, %v8664_v13, %v13625_v52  ;;  %v5335_v57 = vrot.slane %v5333_v12, 4  ;;  %v5322_v8 = vrot.slane %v5320_v4, 4  ;;  %v5022_v9 = vrot.slane %v10393_v27, 5  ;;  %v10397_v12 = vld [vmem:[#allocation2 + $0x9c] sm:$0xf] }
 0xf3d   : > { %v5325_v40 = vrot.slane %v5323_v31, 5  ;;  %v7086_v10 = vsel %vm577_vm0, %v8724_v7, %v6795_v22  ;;  %v5303_v43 = vrot.slane %v5302_v51, 4  ;;  %v5317_v53 = vrot.slane %v5315_v5, 5  ;;  %v10398_v31 = vld [vmem:[#allocation2 + $0x8c] sm:$0x1] }
 0xf3e   : > { %v6145_v54 = vrot.slane %v13486_v38, 5  ;;  %v8585_v24 = vrot.slane %v4866_v60, 9  ;;  %v5023_v52 = vsel %vm13029_vm15, %v5021_v41, %v5022_v9  ;;  %v5026_v25 = vrot.slane %v13796_v48, 5  ;;  %v13810_v22 = vld [vmem:[#allocation2 + $0x94] sm:$0xf] }
 0xf3f   : > { %v5318_v49 = vsel %vm12565_vm6, %v5313_v42, %v5317_v53  ;;  %v5336_v36 = vor.u32 %v5335_v57, %v13790_v18  ;;  %v5353_v55 = vshll.u32 %v10395_v23, 16  ;;  %v5357_v1 = vshrl.u32 %v10395_v23, 16  ;;  %v6651_v26 = vpop.permute.xlu1 %6650  ;;  %v4867_v44 = vld [vmem:[#allocation2 + $0xb4] sm:$0xe]  ;;  %v10401_v60 = vld [vmem:[#allocation2 + $0x9c] sm:$0xf] }
 0xf40   : > { %7584 = vmatmul.mubr.bf16.gmra.mrb[168].mxu1 %v6906_v34  ;;  %v5344_v17 = vshrl.u32 %v10396_v62, 16  ;;  %v5347_v33 = vshll.u32 %v10396_v62, 16  ;;  %v8632_v2 = vcombine.low %v10397_v12, %v13748_v21  ;;  %v5020_v4 = vsel %vm13029_vm15, %v8585_v24, %v5019_v58  ;;  %v6797_v51 = vpop.permute.xlu0 %6796  ;;  %v10399_v34 = vld [vmem:[#allocation2 + $0x90] sm:$0xf]  ;;  %v10402_v57 = vld [vmem:[#allocation2 + $0xbc] sm:$0x1] }
 0xf41   : > { %7591 = vmatprep.mubr.bf16.mxu1 %v6974_v56  ;;  %v8665_v11 = vcombine.low %v5020_v4, %v5023_v52  ;;  %v5308_v29 = vsel %vm12565_vm6, %v5303_v43, %v13766_v39  ;;  %v5326_v61 = vor.u32 %v5325_v40, %v5322_v8  ;;  %v5339_v13 = vshll.u32 %v10398_v31, 16  ;;  %v10404_v23 = vld [vmem:[#allocation2 + $0xa0] sm:$0xf] }
 0xf42   : > { %7713 = vmatmul.mubr.bf16.gmra.mrb[152].mxu0 %v7018_v50  ;;  %v6910_v46 = vsel %vm577_vm0, %v8632_v2, %v13660_v14  ;;  %v8692_v5 = vcombine.low %v5308_v29, %v5318_v49  ;;  %v8725_v21 = vcombine.low %v10399_v34, %v13810_v22  ;;  %v5028_v58 = vrot.slane %v5026_v25, 4  ;;  %v10406_v29 = vld [vmem:[#allocation2 + $0x98] sm:$0x1] }
 0xf43   : > { %7720 = vmatprep.mubr.bf16.mxu0 %v7086_v10  ;;  %v6978_v50 = vsel %vm577_vm0, %v8665_v11, %v13686_v19  ;;  %v5337_v39 = vrot.slane %v5336_v36, 4  ;;  %v13815_v7 = vrot.slane %v5353_v55, 5  ;;  %v5359_v41 = vrot.slane %v5357_v1, 4  ;;  %v13819_v19 = vld [vmem:[#allocation2 + $0x2c] sm:$0x1] }
 0xf44   : > { %v5346_v56 = vrot.slane %v5344_v17, 4  ;;  %v5368_v42 = vshrl.u32 %v10401_v60, 16  ;;  %v7022_v14 = vsel %vm577_vm0, %v8692_v5, %v6651_v26  ;;  %v5029_v8 = vrot.slane %v10402_v57, 5  ;;  %v13838_v5 = vld [vmem:[#allocation2 + $0xa0] sm:$0xf] }
 0xf45   : > { %v5349_v27 = vrot.slane %v5347_v33, 5  ;;  %v7090_v9 = vsel %vm577_vm0, %v8725_v21, %v6797_v51  ;;  %v5327_v40 = vrot.slane %v5326_v61, 4  ;;  %v5341_v10 = vrot.slane %v5339_v13, 5  ;;  %v10405_v33 = vld [vmem:[#allocation2 + $0xa8] sm:$0xf]  ;;  %v6653_v4 = vpop.permute.xlu1 %6652  ;;  %v6799_v31 = vpop.permute.xlu0 %6798 }
 0xf46   : > { %v6148_v43 = vrot.slane %v13819_v19, 5  ;;  %v8586_v53 = vrot.slane %v4867_v44, 9  ;;  %v5030_v24 = vsel %vm13029_vm15, %v5028_v58, %v5029_v8  ;;  %v6138_v52 = vrot.slane %v13446_v63, 5  ;;  %v6072_v21 = vld [vmem:[#allocation2 + $0x18] sm:$0xe] }
 0xf47   : > { %v5342_v49 = vsel %vm12565_vm6, %v5337_v39, %v5341_v10  ;;  %v5360_v36 = vor.u32 %v5359_v41, %v13815_v7  ;;  %v5377_v55 = vshll.u32 %v10404_v23, 16  ;;  %v5381_v1 = vshrl.u32 %v10404_v23, 16  ;;  %v10409_v44 = vld [vmem:[#allocation2 + $0xa8] sm:$0xf] }
 0xf48   : > { %7592 = vmatmul.mubr.bf16.gmra.mrb[172].mxu1 %v6910_v46  ;;  %v13828_v62 = vrot.slane %v5368_v42, 4  ;;  %v5371_v17 = vshll.u32 %v10401_v60, 16  ;;  %v8633_v12 = vcombine.low %v10405_v33, %v13772_v32  ;;  %v5027_v2 = vsel %vm13029_vm15, %v8586_v53, %v5026_v25  ;;  %v10407_v46 = vld [vmem:[#allocation2 + $0x9c] sm:$0xf] }
 0xf49   : > { %7599 = vmatprep.mubr.bf16.mxu1 %v6978_v50  ;;  %v8666_v26 = vcombine.low %v5027_v2, %v5030_v24  ;;  %v5332_v63 = vsel %vm12565_vm6, %v5327_v40, %v13790_v18  ;;  %v5350_v11 = vor.u32 %v5349_v27, %v5346_v56  ;;  %v5363_v61 = vshll.u32 %v10406_v29, 16  ;;  %v10410_v56 = vld [vmem:[#allocation2 + $0x20] sm:$0x1] }
 0xf4a   : > { %7721 = vmatmul.mubr.bf16.gmra.mrb[156].mxu0 %v7022_v14  ;;  %v6914_v13 = vsel %vm577_vm0, %v8633_v12, %v13713_v3  ;;  %v8693_v51 = vcombine.low %v5332_v63, %v5342_v49  ;;  %v8726_v32 = vcombine.low %v10407_v46, %v13838_v5  ;;  %v6140_v25 = vrot.slane %v6138_v52, 4  ;;  %v10412_v49 = vld [vmem:[#allocation2 + $0xac] sm:$0xf]  ;;  %v10414_v63 = vld [vmem:[#allocation2 + $0xa4] sm:$0x1] }
 0xf4b   : > { %7728 = vmatprep.mubr.bf16.mxu0 %v7090_v9  ;;  %v6982_v34 = vsel %vm577_vm0, %v8666_v26, %v13737_v20  ;;  %v5361_v18 = vrot.slane %v5360_v36, 4  ;;  %v13843_v58 = vrot.slane %v5377_v55, 5  ;;  %v5383_v50 = vrot.slane %v5381_v1, 4  ;;  %v10411_v20 = vld [vmem:[#allocation2 + $0xb4] sm:$0xf]  ;;  %v6655_v12 = vpop.permute.xlu1 %6654 }
 0xf4c   : > { %v5392_v39 = vshrl.u32 %v10409_v44, 16  ;;  %v5395_v41 = vshll.u32 %v10409_v44, 16  ;;  %v7026_v3 = vsel %vm577_vm0, %v8693_v51, %v6653_v4  ;;  %v6141_v60 = vrot.slane %v10410_v56, 5  ;;  %v6073_v4 = vld [vmem:[#allocation2 + $0x24] sm:$0xe]  ;;  %v6801_v29 = vpop.permute.xlu0 %6800 }
 0xf4d   : > { %v5373_v42 = vrot.slane %v5371_v17, 5  ;;  %v7094_v14 = vsel %vm577_vm0, %v8726_v32, %v6799_v31  ;;  %v5351_v57 = vrot.slane %v5350_v11, 4  ;;  %v5365_v8 = vrot.slane %v5363_v61, 5  ;;  %v10413_v17 = vld [vmem:[#allocation2 + $0xb4] sm:$0xf] }
 0xf4e   : > { %v8634_v27 = vcombine.low %v10411_v20, %v13796_v48  ;;  %v8603_v9 = vrot.slane %v6072_v21, 9  ;;  %v6142_v40 = vsel %vm13029_vm15, %v6140_v25, %v6141_v60  ;;  %v6152_v10 = vrot.slane %v13541_v0, 5  ;;  %v10415_v46 = vld [vmem:[#allocation2 + $0xa8] sm:$0xf] }
 0xf4f   : > { %v5366_v53 = vsel %vm12565_vm6, %v5361_v18, %v5365_v8  ;;  %v5384_v24 = vor.u32 %v5383_v50, %v13843_v58  ;;  %v5401_v36 = vshll.u32 %v10412_v49, 16  ;;  %v5405_v23 = vshrl.u32 %v10412_v49, 16  ;;  %v10417_v50 = vld [vmem:[#allocation2 + $0x38] sm:$0x1] }
 0xf50   : > { %7600 = vmatmul.mubr.bf16.gmra.mrb[176].mxu1 %v6914_v13  ;;  %v13854_v55 = vrot.slane %v5392_v39, 4  ;;  %v13856_v1 = vrot.slane %v5395_v41, 5  ;;  %v5416_v48 = vshrl.u32 %v10413_v17, 16  ;;  %v6918_v33 = vsel %vm577_vm0, %v8634_v27, %v13757_v30  ;;  %v6074_v30 = vld [vmem:[#allocation2 + $0x30] sm:$0xe] }
 0xf51   : > { %7607 = vmatprep.mubr.bf16.mxu1 %v6982_v34  ;;  %v6139_v0 = vsel %vm13029_vm15, %v8603_v9, %v6138_v52  ;;  %v5356_v2 = vsel %vm12565_vm6, %v5351_v57, %v13815_v7  ;;  %v5374_v26 = vor.u32 %v5373_v42, %v13828_v62  ;;  %v5387_v11 = vshll.u32 %v10414_v63, 16  ;;  %v13868_v52 = vld [vmem:[#allocation2 + $0xac] sm:$0xf]  ;;  %v10418_v27 = vld [vmem:[#allocation2 + $0xb8] sm:$0xf] }
 0xf52   : > { %7729 = vmatmul.mubr.bf16.gmra.mrb[160].mxu0 %v7026_v3  ;;  %v8747_v61 = vcombine.low %v6139_v0, %v6142_v40  ;;  %v8694_v31 = vcombine.low %v5356_v2, %v5366_v53  ;;  %v6147_v13 = vrot.slane %v6145_v54, 4  ;;  %v6154_v51 = vrot.slane %v6152_v10, 4 }
 0xf53   : > { %7736 = vmatprep.mubr.bf16.mxu0 %v7094_v14  ;;  %v8727_v32 = vcombine.low %v10415_v46, %v13868_v52  ;;  %v5385_v7 = vrot.slane %v5384_v24, 4  ;;  %v13871_v25 = vrot.slane %v5401_v36, 5  ;;  %v5407_v62 = vrot.slane %v5405_v23, 4  ;;  %v6075_v36 = vld [vmem:[#allocation2 + $0x3c] sm:$0xe] }
 0xf54   : > { %v5419_v34 = vshll.u32 %v10413_v17, 16  ;;  %v7030_v21 = vsel %vm577_vm0, %v8694_v31, %v6655_v12  ;;  %v8604_v18 = vrot.slane %v6073_v4, 9  ;;  %v6155_v44 = vrot.slane %v10417_v50, 5  ;;  %v10419_v17 = vld [vmem:[#allocation2 + $0xb0] sm:$0x1] }
 0xf55   : > { %v7098_v39 = vsel %vm577_vm0, %v8727_v32, %v6801_v29  ;;  %v8605_v41 = vrot.slane %v6074_v30, 9  ;;  %v5375_v3 = vrot.slane %v5374_v26, 4  ;;  %v5389_v56 = vrot.slane %v5387_v11, 5  ;;  %v13903_v4 = vld [vmem:[#allocation2 + $0xb8] sm:$0xf] }
 0xf56   : > { %v6149_v60 = vsel %vm13029_vm15, %v6147_v13, %v6148_v43  ;;  %v6156_v42 = vsel %vm13029_vm15, %v6154_v51, %v6155_v44  ;;  %v6159_v14 = vrot.slane %v13567_v28, 5  ;;  %v6166_v57 = vrot.slane %v13620_v47, 5  ;;  %v6657_v47 = vpop.permute.xlu1 %6656  ;;  %v10422_v29 = vld [vmem:[#allocation2 + $0x44] sm:$0x1]  ;;  %v10423_v31 = vld [vmem:[#allocation2 + $0x50] sm:$0x1] }
 0xf57   : > { %v5390_v8 = vsel %vm12565_vm6, %v5385_v7, %v5389_v56  ;;  %v5408_v20 = vor.u32 %v5407_v62, %v13871_v25  ;;  %v5425_v9 = vshll.u32 %v10418_v27, 16  ;;  %v5429_v40 = vshrl.u32 %v10418_v27, 16  ;;  %v10424_v44 = vld [vmem:[#allocation2 + $0xc4] sm:$0xf] }
 0xf58   : > { %7608 = vmatmul.mubr.bf16.gmra.mrb[180].mxu1 %v6918_v33  ;;  %v13887_v53 = vrot.slane %v5416_v48, 4  ;;  %v13889_v19 = vrot.slane %v5419_v34, 5  ;;  %v6146_v43 = vsel %vm13029_vm15, %v8604_v18, %v6145_v54  ;;  %v6153_v28 = vsel %vm13029_vm15, %v8605_v41, %v6152_v10  ;;  %v6803_v33 = vpop.permute.xlu0 %6802  ;;  %v6076_v54 = vld [vmem:[#allocation2 + $0x48] sm:$0xe]  ;;  %v10420_v10 = vld [vmem:[#allocation2 + $0xb4] sm:$0xf] }
 0xf59   : > { %9629 = vmatprep.mubr.msk.bf16.mxu1 %vm577_vm0, %v8747_v61  ;;  %v8748_v24 = vcombine.low %v6146_v43, %v6149_v60  ;;  %v5380_v49 = vsel %vm12565_vm6, %v5375_v3, %v13843_v58  ;;  %v5398_v23 = vor.u32 %v13856_v1, %v13854_v55  ;;  %v5411_v48 = vshll.u32 %v10419_v17, 16  ;;  %v10425_v3 = vld [vmem:[#allocation2 + $0xc0] sm:$0xf] }
 0xf5a   : > { %7737 = vmatmul.mubr.bf16.gmra.mrb[164].mxu0 %v7030_v21  ;;  %v8749_v38 = vcombine.low %v6153_v28, %v6156_v42  ;;  %v8695_v12 = vcombine.low %v5380_v49, %v5390_v8  ;;  %v6161_v0 = vrot.slane %v6159_v14, 4  ;;  %v6168_v2 = vrot.slane %v6166_v57, 4  ;;  %v13929_v49 = vld [vmem:[#allocation2 + $0xc4] sm:$0xf] }
 0xf5b   : > { %7744 = vmatprep.mubr.bf16.mxu0 %v7098_v39  ;;  %v8728_v26 = vcombine.low %v10420_v10, %v13903_v4  ;;  %v5409_v58 = vrot.slane %v5408_v20, 4  ;;  %v13906_v63 = vrot.slane %v5425_v9, 5  ;;  %v5431_v11 = vrot.slane %v5429_v40, 4  ;;  %v10426_v9 = vld [vmem:[#allocation2 + $0xbc] sm:$0x1] }
 0xf5c   : > { %v7034_v55 = vsel %vm577_vm0, %v8695_v12, %v6657_v47  ;;  %v8606_v1 = vrot.slane %v6075_v36, 9  ;;  %v6162_v61 = vrot.slane %v10422_v29, 5  ;;  %v6169_v13 = vrot.slane %v10423_v31, 5  ;;  %v6078_v36 = vld [vmem:[#allocation2 + $0x60] sm:$0xe] }
 0xf5d   : > { %v7102_v30 = vsel %vm577_vm0, %v8728_v26, %v6803_v33  ;;  %v8607_v51 = vrot.slane %v6076_v54, 9  ;;  %v5399_v46 = vrot.slane %v5398_v23, 4  ;;  %v5413_v32 = vrot.slane %v5411_v48, 5  ;;  %v6805_v43 = vpop.permute.xlu0 %6804  ;;  %v6077_v23 = vld [vmem:[#allocation2 + $0x54] sm:$0xe] }
 0xf5e   : > { %v6163_v7 = vsel %vm13029_vm15, %v6161_v0, %v6162_v61  ;;  %v6170_v62 = vsel %vm13029_vm15, %v6168_v2, %v6169_v13  ;;  %v6173_v34 = vrot.slane %v13657_v37, 5  ;;  %v6180_v21 = vrot.slane %v13694_v16, 5  ;;  %v6659_v37 = vpop.permute.xlu1 %6658  ;;  %v10429_v12 = vld [vmem:[#allocation2 + $0x5c] sm:$0x1]  ;;  %v10430_v2 = vld [vmem:[#allocation2 + $0x68] sm:$0x1] }
 0xf5f   : > { %v5414_v18 = vsel %vm12565_vm6, %v5409_v58, %v5413_v32  ;;  %v5432_v50 = vor.u32 %v5431_v11, %v13906_v63  ;;  %v5449_v39 = vshll.u32 %v10424_v44, 16  ;;  %v5453_v41 = vshrl.u32 %v10424_v44, 16 }
 0xf60   : > { %9630 = vmatmul.mubr.msk.bf16.vlgmr.msra.gmra.mrb[184].mxu1 %vm577_vm0, %v8748_v24  ;;  %v5440_v56 = vshrl.u32 %v10425_v3, 16  ;;  %v5443_v60 = vshll.u32 %v10425_v3, 16  ;;  %v6160_v42 = vsel %vm13029_vm15, %v8606_v1, %v6159_v14  ;;  %v6167_v8 = vsel %vm13029_vm15, %v8607_v51, %v6166_v57  ;;  %v10427_v24 = vld [vmem:[#allocation2 + $0xc0] sm:$0xf] }
 0xf61   : > { %9633 = vmatprep.mubr.msk.bf16.mxu1 %vm577_vm0, %v8749_v38  ;;  %v8750_v20 = vcombine.low %v6160_v42, %v6163_v7  ;;  %v5404_v16 = vsel %vm12565_vm6, %v5399_v46, %v13871_v25  ;;  %v5422_v27 = vor.u32 %v13889_v19, %v13887_v53  ;;  %v5435_v40 = vshll.u32 %v10426_v9, 16  ;;  %v6080_v42 = vld [vmem:[#allocation2 + $0x78] sm:$0xe] }
 0xf62   : > { %7745 = vmatmul.mubr.bf16.gmra.mrb[168].mxu0 %v7034_v55  ;;  %v8751_v28 = vcombine.low %v6167_v8, %v6170_v62  ;;  %v8696_v47 = vcombine.low %v5404_v16, %v5414_v18  ;;  %v8729_v14 = vcombine.low %v10427_v24, %v13929_v49  ;;  %v6175_v57 = vrot.slane %v6173_v34, 4  ;;  %v6661_v32 = vpop.permute.xlu1 %6660  ;;  %v10431_v18 = vld [vmem:[#allocation2 + $0xc8] sm:$0x1]  ;;  %v10433_v8 = vld [vmem:[#allocation2 + $0xcc] sm:$0xf] }
 0xf63   : > { %7752 = vmatprep.mubr.bf16.mxu0 %v7102_v30  ;;  %v6182_v17 = vrot.slane %v6180_v21, 4  ;;  %v5433_v25 = vrot.slane %v5432_v50, 4  ;;  %v13933_v48 = vrot.slane %v5449_v39, 5  ;;  %v5455_v53 = vrot.slane %v5453_v41, 4  ;;  %v6079_v41 = vld [vmem:[#allocation2 + $0x6c] sm:$0xe] }
 0xf64   : > { %v5442_v19 = vrot.slane %v5440_v56, 4  ;;  %v5445_v33 = vrot.slane %v5443_v60, 5  ;;  %v7038_v38 = vsel %vm577_vm0, %v8696_v47, %v6659_v37  ;;  %v6176_v0 = vrot.slane %v10429_v12, 5  ;;  %v10432_v56 = vld [vmem:[#allocation2 + $0x74] sm:$0x1] }
 0xf65   : > { %v7106_v54 = vsel %vm577_vm0, %v8729_v14, %v6805_v43  ;;  %v6183_v10 = vrot.slane %v10430_v2, 5  ;;  %v5423_v26 = vrot.slane %v5422_v27, 4  ;;  %v5437_v58 = vrot.slane %v5435_v40, 5  ;;  %v10435_v16 = vld [vmem:[#allocation2 + $0x80] sm:$0x1] }
 0xf66   : > { %v8608_v11 = vrot.slane %v6077_v23, 9  ;;  %v6177_v55 = vsel %vm13029_vm15, %v6175_v57, %v6176_v0  ;;  %v8609_v1 = vrot.slane %v6078_v36, 9  ;;  %v6187_v29 = vrot.slane %v13726_v45, 5 }
 0xf67   : > { %v6184_v61 = vsel %vm13029_vm15, %v6182_v17, %v6183_v10  ;;  %v5438_v31 = vsel %vm12565_vm6, %v5433_v25, %v5437_v58  ;;  %v6194_v13 = vrot.slane %v13759_v59, 5  ;;  %v5456_v30 = vor.u32 %v5455_v53, %v13933_v48  ;;  %v6663_v53 = vpop.permute.xlu1 %6662  ;;  %v10436_v10 = vld [vmem:[#allocation2 + $0x8c] sm:$0x1]  ;;  %v6082_v58 = vld [vmem:[#allocation2 + $0x90] sm:$0xe] }
 0xf68   : > { %9634 = vmatmul.mubr.msk.bf16.gmra.mrb[188].mxu1 %vm577_vm0, %v8750_v20  ;;  %v6174_v51 = vsel %vm13029_vm15, %v8608_v11, %v6173_v34  ;;  %v6181_v46 = vsel %vm13029_vm15, %v8609_v1, %v6180_v21  ;;  %v5428_v45 = vsel %vm12565_vm6, %v5423_v26, %v13906_v63  ;;  %v5446_v62 = vor.u32 %v5445_v33, %v5442_v19  ;;  %v13957_v63 = vld [vmem:[#allocation2 + $0xd0] sm:$0xf]  ;;  %v9856_v20 = vld [vmem:[%s14336_s9] sm:$0xff]   ;;  %v10437_v11 = vld [vmem:[#allocation2 + $0x98] sm:$0x1] }
 0xf69   : > { %9637 = vmatprep.mubr.msk.bf16.mxu1 %vm577_vm0, %v8751_v28  ;;  %v8752_v7 = vcombine.low %v6174_v51, %v6177_v55  ;;  %v5459_v50 = vshll.u32 %v10431_v18, 16  ;;  %v8753_v44 = vcombine.low %v6181_v46, %v6184_v61  ;;  %v8697_v39 = vcombine.low %v5428_v45, %v5438_v31  ;;  %9661 = vmatprep.subr.bf16.mxu0 %v9856_v20  ;;  %v6084_v18 = vld [vmem:[#allocation2 + $0xa8] sm:$0xe] }
 0xf6a   : > { %7753 = vmatmul.mubr.bf16.gmra.mrb[172].mxu0 %v7038_v38  ;;  %v6189_v59 = vrot.slane %v6187_v29, 4  ;;  %v6196_v3 = vrot.slane %v6194_v13, 4  ;;  %v5457_v34 = vrot.slane %v5456_v30, 4  ;;  %v6190_v60 = vrot.slane %v10432_v56, 5 }
 0xf6b   : > { %7760 = vmatprep.mubr.bf16.mxu0 %v7106_v54  ;;  %v7042_v21 = vsel %vm577_vm0, %v8697_v39, %v6661_v32  ;;  %v8730_v37 = vcombine.low %v10433_v8, %v13957_v63  ;;  %v6197_v27 = vrot.slane %v10435_v16, 5  ;;  %v5447_v9 = vrot.slane %v5446_v62, 4  ;;  %9662 = vmatpush3.bf16.msra.mxu0 %v9856_v20 }
 0xf6c   : > { %v5461_v40 = vrot.slane %v5459_v50, 5  ;;  %v8610_v43 = vrot.slane %v6079_v41, 9  ;;  %v6191_v28 = vsel %vm13029_vm15, %v6189_v59, %v6190_v60  ;;  %v6201_v47 = vrot.slane %v13785_v15, 5  ;;  %v10439_v50 = vld [vmem:[#allocation2 + $0xb0] sm:$0x1] }
 0xf6d   : > { %v8611_v14 = vrot.slane %v6080_v42, 9  ;;  %v6198_v57 = vsel %vm13029_vm15, %v6196_v3, %v6197_v27  ;;  %v6208_v23 = vrot.slane %v13810_v22, 5  ;;  %v5452_v33 = vsel %vm12565_vm6, %v5447_v9, %v13933_v48  ;;  %v6081_v22 = vld [vmem:[#allocation2 + $0x84] sm:$0xe]  ;;  %v6086_v27 = vld [vmem:[#allocation2 + $0xc0] sm:$0xe] }
 0xf6e   : > { %v5462_v36 = vsel %vm12565_vm6, %v5457_v34, %v5461_v40  ;;  %v6188_v17 = vsel %vm13029_vm15, %v8610_v43, %v6187_v29  ;;  %v6203_v0 = vrot.slane %v6201_v47, 4  ;;  %v6204_v26 = vrot.slane %v10436_v10, 5  ;;  %v10441_v9 = vld [vmem:[#allocation2 + $0xc8] sm:$0x1]  ;;  %v6087_v43 = vld [vmem:[#allocation2 + $0xcc] sm:$0xe] }
 0xf6f   : > { %v8754_v19 = vcombine.low %v6188_v17, %v6191_v28  ;;  %v6195_v15 = vsel %vm13029_vm15, %v8611_v14, %v6194_v13  ;;  %v8698_v12 = vcombine.low %v5452_v33, %v5462_v36  ;;  %v6210_v54 = vrot.slane %v6208_v23, 4  ;;  %v10442_v17 = vld [vmem:[#allocation2 + $0xd4] sm:$0x1] }
 0xf70   : > { %9638 = vmatmul.mubr.msk.bf16.gmra.mrb[192].mxu1 %vm577_vm0, %v8752_v7  ;;  %v8755_v38 = vcombine.low %v6195_v15, %v6198_v57  ;;  %v6211_v55 = vrot.slane %v10437_v11, 5  ;;  %v8612_v1 = vrot.slane %v6081_v22, 9  ;;  %v6205_v35 = vsel %vm13029_vm15, %v6203_v0, %v6204_v26  ;;  %v6083_v7 = vld [vmem:[#allocation2 + $0x9c] sm:$0xe]  ;;  %v9858_v10 = vld [vmem:[%s14336_s9 + $0x10] sm:$0xff]  }
 0xf71   : > { %9641 = vmatprep.mubr.msk.bf16.mxu1 %vm577_vm0, %v8753_v44  ;;  %v7046_v2 = vsel %vm577_vm0, %v8698_v12, %v6663_v53  ;;  %v6215_v48 = vrot.slane %v13838_v5, 5  ;;  %v8613_v29 = vrot.slane %v6082_v58, 9  ;;  %v6222_v31 = vrot.slane %v13868_v52, 5  ;;  %v10438_v5 = vld [vmem:[#allocation2 + $0xa4] sm:$0x1]  ;;  %v9859_v11 = vld [vmem:[%s14336_s9 + $0x18] sm:$0xff]  }
 0xf72   : > { %7761 = vmatmul.mubr.bf16.gmra.mrb[176].mxu0 %v7042_v21  ;;  %v6212_v61 = vsel %vm13029_vm15, %v6210_v54, %v6211_v55  ;;  %v6202_v13 = vsel %vm13029_vm15, %v8612_v1, %v6201_v47  ;;  %v6218_v62 = vrot.slane %v10438_v5, 5  ;;  %v6225_v52 = vrot.slane %v10439_v50, 5  ;;  %v14034_v50 = vld [vmem:[%s14335_s8] ss:$0 sm:$0xff] }
 0xf73   : > { %v8756_v30 = vcombine.low %v6202_v13, %v6205_v35  ;;  %v6209_v51 = vsel %vm13029_vm15, %v8613_v29, %v6208_v23  ;;  %v6217_v32 = vrot.slane %v6215_v48, 4  ;;  %v6224_v45 = vrot.slane %v6222_v31, 4 }
 0xf74   : > { %v6807_v24 = vpop.permute.xlu0 %6806  ;;  %v8757_v46 = vcombine.low %v6209_v51, %v6212_v61  ;;  %v8614_v44 = vrot.slane %v6083_v7, 9  ;;  %v6229_v59 = vrot.slane %v13903_v4, 5  ;;  %v8615_v41 = vrot.slane %v6084_v18, 9  ;;  %v10440_v4 = vld [vmem:[#allocation2 + $0xbc] sm:$0x1] }
 0xf75   : > { %v7110_v25 = vsel %vm577_vm0, %v8730_v37, %v6807_v24  ;;  %v6219_v39 = vsel %vm13029_vm15, %v6217_v32, %v6218_v62  ;;  %v6226_v3 = vsel %vm13029_vm15, %v6224_v45, %v6225_v52  ;;  %v6236_v34 = vrot.slane %v13929_v49, 5  ;;  %v6085_v37 = vld [vmem:[#allocation2 + $0xb4] sm:$0xe] }
 0xf76   : > { %7768 = vmatprep.mubr.bf16.mxu0 %v7110_v25  ;;  %v6216_v21 = vsel %vm13029_vm15, %v8614_v44, %v6215_v48  ;;  %v6223_v60 = vsel %vm13029_vm15, %v8615_v41, %v6222_v31  ;;  %v6231_v8 = vrot.slane %v6229_v59, 4  ;;  %v6232_v16 = vrot.slane %v10440_v4, 5 }
 0xf77   : > { %v8758_v56 = vcombine.low %v6216_v21, %v6219_v39  ;;  %v8759_v42 = vcombine.low %v6223_v60, %v6226_v3  ;;  %v6238_v20 = vrot.slane %v6236_v34, 4  ;;  %v6243_v49 = vrot.slane %v13957_v63, 5 }
 0xf78   : > { %9642 = vmatmul.mubr.msk.bf16.gmra.mrb[196].mxu1 %vm577_vm0, %v8754_v19  ;;  %v6239_v40 = vrot.slane %v10441_v9, 5  ;;  %v8616_v28 = vrot.slane %v6085_v37, 9  ;;  %v6233_v47 = vsel %vm13029_vm15, %v6231_v8, %v6232_v16  ;;  %v8617_v24 = vrot.slane %v6086_v27, 9 }
 0xf79   : > { %9645 = vmatprep.mubr.msk.bf16.mxu1 %vm577_vm0, %v8755_v38  ;;  %v8618_v36 = vrot.slane %v6087_v43, 9  ;;  %v6245_v23 = vrot.slane %v6243_v49, 4  ;;  %v6246_v25 = vrot.slane %v10442_v17, 5  ;;  %v9857_v38 = vld [vmem:[%s14336_s9 + $0x8] sm:$0xff]  }
 0xf7a   : > { %7769 = vmatmul.mubr.bf16.gmra.mrb[180].mxu0 %v7046_v2  ;;  %v6240_v14 = vsel %vm13029_vm15, %v6238_v20, %v6239_v40  ;;  %v6230_v57 = vsel %vm13029_vm15, %v8616_v28, %v6229_v59  ;;  %v6237_v63 = vsel %vm13029_vm15, %v8617_v24, %v6236_v34  ;;  %9663 = vmatprep.subr.bf16.mxu0 %v9857_v38 }
 0xf7b   : > { %v8760_v53 = vcombine.low %v6230_v57, %v6233_v47  ;;  %v8761_v19 = vcombine.low %v6237_v63, %v6240_v14  ;;  %v6244_v15 = vsel %vm13029_vm15, %v8618_v36, %v6243_v49  ;;  %v6247_v33 = vsel %vm13029_vm15, %v6245_v23, %v6246_v25  ;;  %9664 = vmatpush3.bf16.msra.mxu0 %v9857_v38 }
 0xf7c   : > { %v8762_v12 = vcombine.low %v6244_v15, %v6247_v33  ;;  %9665 = vmatprep.subr.bf16.mxu0 %v9858_v10 }
 0xf7f   : > { %9666 = vmatpush3.bf16.msra.mxu0 %v9858_v10 }
 0xf80   : > { %9646 = vmatmul.mubr.msk.bf16.gmra.mrb[200].mxu1 %vm577_vm0, %v8756_v30  ;;  %9667 = vmatprep.subr.bf16.mxu0 %v9859_v11 }
 0xf81   : > { %9649 = vmatprep.mubr.msk.bf16.mxu1 %vm577_vm0, %v8757_v46 }
 0xf83   : > { %9668 = vmatpush3.bf16.msra.mxu0 %v9859_v11 }
 0xf88   : > { %9650 = vmatmul.mubr.msk.bf16.gmra.mrb[204].mxu1 %vm577_vm0, %v8758_v56 }
 0xf89   : > { %9653 = vmatprep.mubr.msk.bf16.mxu1 %vm577_vm0, %v8759_v42 }
 0xf90   : > { %9654 = vmatmul.mubr.msk.bf16.gmra.mrb[208].mxu1 %vm577_vm0, %v8760_v53 }
 0xf91   : > { %9657 = vmatprep.mubr.msk.bf16.mxu1 %vm577_vm0, %v8761_v19 }
 0xf98   : > { %9658 = vmatmul.mubr.msk.bf16.gmra.mrb[212].mxu1 %vm577_vm0, %v8762_v12 }
 0xfaf   : > { %v9133_v0 = vpop.f32.mrb[120].mxu1 }
 0xfb0   : > { %v9134_v22 = vpop.f32.mrb[121].mxu1 }
 0xfb1   : > { %v9135_v54 = vadd.f32 %v9134_v22, %v9133_v0  ;;  %v9136_v2 = vpop.f32.mrb[122].mxu1 }
 0xfb2   : > { %v9137_v26 = vpop.f32.mrb[123].mxu1 }
 0xfb3   : > { %v9138_v6 = vadd.f32 %v9137_v26, %v9136_v2  ;;  %v7490_v59 = vadd.f32 %v9135_v54, %v14034_v50 }
 0xfb5   : > { %v7493_v42 = vadd.f32 %v9138_v6, %v14034_v50 }
 0xfbb   : > { %v9139_v58 = vpop.f32.mrb[124].mxu1 }
 0xfbc   : > { %v9140_v55 = vpop.f32.mrb[125].mxu1 }
 0xfbd   : > { %v9141_v1 = vadd.f32 %v9140_v55, %v9139_v58  ;;  %v9142_v35 = vpop.f32.mrb[126].mxu1 }
 0xfbe   : > { %v9143_v48 = vpop.f32.mrb[127].mxu1 }
 0xfbf   : > { %v9144_v29 = vadd.f32 %v9143_v48, %v9142_v35  ;;  %v7498_v24 = vadd.f32 %v9141_v1, %v14034_v50 }
 0xfc1   : > { %v7501_v17 = vadd.f32 %v9144_v29, %v14034_v50 }
 0xfc3   : > { %v9145_v61 = vpop.f32.mrb[128].mxu1 }
 0xfc4   : > { %v9146_v31 = vpop.f32.mrb[129].mxu1 }
 0xfc5   : > { %v9147_v13 = vadd.f32 %v9146_v31, %v9145_v61  ;;  %v9148_v30 = vpop.f32.mrb[130].mxu1 }
 0xfc6   : > { %v9149_v51 = vpop.f32.mrb[131].mxu1 }
 0xfc7   : > { %v9150_v46 = vadd.f32 %v9149_v51, %v9148_v30  ;;  %v7506_v54 = vadd.f32 %v9147_v13, %v14034_v50 }
 0xfc9   : > { %v7509_v58 = vadd.f32 %v9150_v46, %v14034_v50 }
 0xfcb   : > { %v9151_v32 = vpop.f32.mrb[132].mxu1 }
 0xfcc   : > { %v9152_v7 = vpop.f32.mrb[133].mxu1 }
 0xfcd   : > { %v9153_v45 = vadd.f32 %v9152_v7, %v9151_v32  ;;  %v9154_v5 = vpop.f32.mrb[134].mxu1 }
 0xfce   : > { %v9155_v62 = vpop.f32.mrb[135].mxu1 }
 0xfcf   : > { %v9156_v18 = vadd.f32 %v9155_v62, %v9154_v5  ;;  %v7514_v51 = vadd.f32 %v9153_v45, %v14034_v50 }
 0xfd1   : > { %v7517_v62 = vadd.f32 %v9156_v18, %v14034_v50 }
 0xfd2   : > { %v9245_v52 = vpop.f32.mrb[120].mxu0 }
 0xfd3   : > { %v9157_v44 = vpop.f32.mrb[136].mxu1  ;;  %v9246_v39 = vpop.f32.mrb[121].mxu0 }
 0xfd4   : > { %v9158_v41 = vpop.f32.mrb[137].mxu1  ;;  %v9247_v3 = vadd.f32 %v9246_v39, %v9245_v52  ;;  %v9248_v34 = vpop.f32.mrb[122].mxu0 }
 0xfd5   : > { %v14037_v21 = vadd.f32 %v9158_v41, %v9157_v44  ;;  %v9160_v56 = vpop.f32.mrb[138].mxu1  ;;  %v9249_v60 = vpop.f32.mrb[123].mxu0 }
 0xfd6   : > { %v9161_v8 = vpop.f32.mrb[139].mxu1  ;;  %v9250_v37 = vadd.f32 %v9249_v60, %v9248_v34  ;;  %v14040_v20 = vadd.f32 %v9247_v3, %v7490_v59 }
 0xfd7   : > { %v9162_v4 = vadd.f32 %v9161_v8, %v9160_v56 }
 0xfd8   : > { %v14042_v16 = vadd.f32 %v9250_v37, %v7493_v42  ;;  %v7522_v42 = vadd.f32 %v14037_v21, %v14034_v50 }
 0xfdb   : > { %v9163_v27 = vpop.f32.mrb[140].mxu1 }
 0xfdc   : > { %v9164_v49 = vpop.f32.mrb[141].mxu1 }
 0xfdd   : > { %v14044_v9 = vadd.f32 %v9164_v49, %v9163_v27  ;;  %v9166_v40 = vpop.f32.mrb[142].mxu1  ;;  %v9251_v43 = vpop.f32.mrb[124].mxu0  ;;  %v7525_v49 = vadd.f32 %v9162_v4, %v14034_v50 }
 0xfde   : > { %v9167_v28 = vpop.f32.mrb[143].mxu1  ;;  %v9252_v47 = vpop.f32.mrb[125].mxu0 }
 0xfdf   : > { %v14047_v14 = vadd.f32 %v9167_v28, %v9166_v40  ;;  %v9253_v57 = vadd.f32 %v9252_v47, %v9251_v43  ;;  %v9254_v36 = vpop.f32.mrb[126].mxu0 }
 0xfe0   : > { %v9255_v23 = vpop.f32.mrb[127].mxu0 }
 0xfe1   : > { %v9256_v25 = vadd.f32 %v9255_v23, %v9254_v36  ;;  %v14050_v53 = vadd.f32 %v9253_v57, %v7498_v24 }
 0xfe3   : > { %v9169_v63 = vpop.f32.mrb[144].mxu1  ;;  %v14052_v19 = vadd.f32 %v9256_v25, %v7501_v17  ;;  %v7530_v25 = vadd.f32 %v14044_v9, %v14034_v50 }
 0xfe4   : > { %v9170_v15 = vpop.f32.mrb[145].mxu1 }
 0xfe5   : > { %v14054_v33 = vadd.f32 %v9170_v15, %v9169_v63  ;;  %v9172_v38 = vpop.f32.mrb[146].mxu1  ;;  %v9257_v12 = vpop.f32.mrb[128].mxu0 }
 0xfe6   : > { %v9173_v0 = vpop.f32.mrb[147].mxu1  ;;  %v9258_v22 = vpop.f32.mrb[129].mxu0 }
 0xfe7   : > { %v14057_v2 = vadd.f32 %v9173_v0, %v9172_v38  ;;  %v9259_v10 = vadd.f32 %v9258_v22, %v9257_v12  ;;  %v9260_v26 = vpop.f32.mrb[130].mxu0  ;;  %v7533_v12 = vadd.f32 %v14047_v14, %v14034_v50 }
 0xfe8   : > { %v9261_v6 = vpop.f32.mrb[131].mxu0 }
 0xfe9   : > { %v9262_v11 = vadd.f32 %v9261_v6, %v9260_v26  ;;  %v14060_v55 = vadd.f32 %v9259_v10, %v7506_v54 }
 0xfeb   : > { %v9175_v1 = vpop.f32.mrb[148].mxu1  ;;  %v14062_v35 = vadd.f32 %v9262_v11, %v7509_v58 }
 0xfec   : > { %v9176_v48 = vpop.f32.mrb[149].mxu1 }
 0xfed   : > { %v14064_v29 = vadd.f32 %v9176_v48, %v9175_v1  ;;  %v9178_v61 = vpop.f32.mrb[150].mxu1  ;;  %v9263_v31 = vpop.f32.mrb[132].mxu0  ;;  %v7538_v48 = vadd.f32 %v14054_v33, %v14034_v50 }
 0xfee   : > { %v9179_v30 = vpop.f32.mrb[151].mxu1  ;;  %v9264_v13 = vpop.f32.mrb[133].mxu0 }
 0xfef   : > { %v14067_v32 = vadd.f32 %v9179_v30, %v9178_v61  ;;  %v9265_v7 = vadd.f32 %v9264_v13, %v9263_v31  ;;  %v9266_v5 = vpop.f32.mrb[134].mxu0  ;;  %v7541_v13 = vadd.f32 %v14057_v2, %v14034_v50 }
 0xff0   : > { %v9267_v46 = vpop.f32.mrb[135].mxu0 }
 0xff1   : > { %v9268_v52 = vadd.f32 %v9267_v46, %v9266_v5  ;;  %v14070_v44 = vadd.f32 %v9265_v7, %v7514_v51 }
 0xff3   : > { %v9181_v39 = vpop.f32.mrb[152].mxu1  ;;  %v14072_v59 = vadd.f32 %v9268_v52, %v7517_v62 }
 0xff4   : > { %v9182_v41 = vpop.f32.mrb[153].mxu1 }
 0xff5   : > { %v14074_v3 = vadd.f32 %v9182_v41, %v9181_v39  ;;  %v9184_v34 = vpop.f32.mrb[154].mxu1  ;;  %v9269_v56 = vpop.f32.mrb[136].mxu0 }
 0xff6   : > { %v9185_v60 = vpop.f32.mrb[155].mxu1  ;;  %v9270_v45 = vpop.f32.mrb[137].mxu0 }
 0xff7   : > { %v14078_v8 = vadd.f32 %v9185_v60, %v9184_v34  ;;  %v9271_v37 = vadd.f32 %v9270_v45, %v9269_v56  ;;  %v9272_v18 = vpop.f32.mrb[138].mxu0  ;;  %v7546_v56 = vadd.f32 %v14064_v29, %v14034_v50 }
 0xff8   : > { %v9273_v27 = vpop.f32.mrb[139].mxu0 }
 0xff9   : > { %v9274_v40 = vadd.f32 %v9273_v27, %v9272_v18  ;;  %v14081_v43 = vadd.f32 %v9271_v37, %v7522_v42  ;;  %v7549_v37 = vadd.f32 %v14067_v32, %v14034_v50 }
 0xffb   : > { %v9187_v28 = vpop.f32.mrb[156].mxu1  ;;  %v14083_v47 = vadd.f32 %v9274_v40, %v7525_v49 }
 0xffc   : > { %v9188_v24 = vpop.f32.mrb[157].mxu1 }
 0xffd   : > { %v14085_v57 = vadd.f32 %v9188_v24, %v9187_v28  ;;  %v9190_v36 = vpop.f32.mrb[158].mxu1  ;;  %v9275_v23 = vpop.f32.mrb[140].mxu0 }
 0xffe   : > { %v9191_v17 = vpop.f32.mrb[159].mxu1  ;;  %v9276_v21 = vpop.f32.mrb[141].mxu0 }
 0xfff   : > { %v14089_v63 = vadd.f32 %v9191_v17, %v9190_v36  ;;  %v9277_v15 = vadd.f32 %v9276_v21, %v9275_v23  ;;  %v9278_v4 = vpop.f32.mrb[142].mxu0  ;;  %v7554_v21 = vadd.f32 %v14074_v3, %v14034_v50 }
0x1000   : > { %v9279_v38 = vpop.f32.mrb[143].mxu0 }
0x1001   : > { %v9280_v0 = vadd.f32 %v9279_v38, %v9278_v4  ;;  %v14093_v22 = vadd.f32 %v9277_v15, %v7530_v25  ;;  %v7557_v38 = vadd.f32 %v14078_v8, %v14034_v50 }
0x1003   : > { %v9193_v54 = vpop.f32.mrb[160].mxu1  ;;  %v14095_v10 = vadd.f32 %v9280_v0, %v7533_v12 }
0x1004   : > { %v9194_v26 = vpop.f32.mrb[161].mxu1 }
0x1005   : > { %v14097_v6 = vadd.f32 %v9194_v26, %v9193_v54  ;;  %v9196_v58 = vpop.f32.mrb[162].mxu1  ;;  %v9281_v11 = vpop.f32.mrb[144].mxu0 }
0x1006   : > { %v9197_v9 = vpop.f32.mrb[163].mxu1  ;;  %v9282_v1 = vpop.f32.mrb[145].mxu0 }
0x1007   : > { %v14101_v61 = vadd.f32 %v9197_v9, %v9196_v58  ;;  %v9283_v31 = vadd.f32 %v9282_v1, %v9281_v11  ;;  %v9284_v14 = vpop.f32.mrb[146].mxu0 }
0x1008   : > { %v9285_v30 = vpop.f32.mrb[147].mxu0 }
0x1009   : > { %v9286_v51 = vadd.f32 %v9285_v30, %v9284_v14  ;;  %v14105_v7 = vadd.f32 %v9283_v31, %v7538_v48  ;;  %v7562_v31 = vadd.f32 %v14085_v57, %v14034_v50 }
0x100b   : > { %v9199_v5 = vpop.f32.mrb[164].mxu1  ;;  %v14107_v46 = vadd.f32 %v9286_v51, %v7541_v13  ;;  %v7565_v51 = vadd.f32 %v14089_v63, %v14034_v50 }
0x100c   : > { %v9200_v62 = vpop.f32.mrb[165].mxu1 }
0x100d   : > { %v14109_v52 = vadd.f32 %v9200_v62, %v9199_v5  ;;  %v9202_v39 = vpop.f32.mrb[166].mxu1  ;;  %v9287_v41 = vpop.f32.mrb[148].mxu0 }
0x100e   : > { %v9203_v33 = vpop.f32.mrb[167].mxu1  ;;  %v9288_v34 = vpop.f32.mrb[149].mxu0 }
0x100f   : > { %v14113_v60 = vadd.f32 %v9203_v33, %v9202_v39  ;;  %v9289_v45 = vadd.f32 %v9288_v34, %v9287_v41  ;;  %v9290_v2 = vpop.f32.mrb[150].mxu0 }
0x1010   : > { %v9291_v42 = vpop.f32.mrb[151].mxu0 }
0x1011   : > { %v9292_v18 = vadd.f32 %v9291_v42, %v9290_v2  ;;  %v14117_v27 = vadd.f32 %v9289_v45, %v7546_v56  ;;  %v7570_v42 = vadd.f32 %v14097_v6, %v14034_v50 }
0x1013   : > { %v9205_v49 = vpop.f32.mrb[168].mxu1  ;;  %v14119_v40 = vadd.f32 %v9292_v18, %v7549_v37 }
0x1014   : > { %v9206_v28 = vpop.f32.mrb[169].mxu1 }
0x1015   : > { %v14121_v24 = vadd.f32 %v9206_v28, %v9205_v49  ;;  %v9208_v36 = vpop.f32.mrb[170].mxu1  ;;  %v9293_v23 = vpop.f32.mrb[152].mxu0  ;;  %v7573_v28 = vadd.f32 %v14101_v61, %v14034_v50 }
0x1016   : > { %v9209_v29 = vpop.f32.mrb[171].mxu1  ;;  %v9294_v17 = vpop.f32.mrb[153].mxu0 }
0x1017   : > { %v14125_v25 = vadd.f32 %v9209_v29, %v9208_v36  ;;  %v9295_v15 = vadd.f32 %v9294_v17, %v9293_v23  ;;  %v9296_v32 = vpop.f32.mrb[154].mxu0 }
0x1018   : > { %v9297_v4 = vpop.f32.mrb[155].mxu0 }
0x1019   : > { %v9298_v12 = vadd.f32 %v9297_v4, %v9296_v32  ;;  %v14129_v0 = vadd.f32 %v9295_v15, %v7554_v21 }
0x101b   : > { %v9211_v54 = vpop.f32.mrb[172].mxu1  ;;  %v14131_v26 = vadd.f32 %v9298_v12, %v7557_v38  ;;  %v7578_v12 = vadd.f32 %v14109_v52, %v14034_v50 }
0x101c   : > { %v9212_v58 = vpop.f32.mrb[173].mxu1 }
0x101d   : > { %v14133_v11 = vadd.f32 %v9212_v58, %v9211_v54  ;;  %v9214_v9 = vpop.f32.mrb[174].mxu1  ;;  %v9299_v1 = vpop.f32.mrb[156].mxu0 }
0x101e   : > { %v9215_v3 = vpop.f32.mrb[175].mxu1  ;;  %v9300_v48 = vpop.f32.mrb[157].mxu0 }
0x101f   : > { %v14137_v14 = vadd.f32 %v9215_v3, %v9214_v9  ;;  %v9301_v30 = vadd.f32 %v9300_v48, %v9299_v1  ;;  %v9302_v8 = vpop.f32.mrb[158].mxu0  ;;  %v7581_v1 = vadd.f32 %v14113_v60, %v14034_v50  ;;  %v7586_v60 = vadd.f32 %v14121_v24, %v14034_v50 }
0x1020   : > { %v9303_v13 = vpop.f32.mrb[159].mxu0 }
0x1021   : > { %v9304_v5 = vadd.f32 %v9303_v13, %v9302_v8  ;;  %v14141_v62 = vadd.f32 %v9301_v30, %v7562_v31 }
0x1023   : > { %v9217_v39 = vpop.f32.mrb[176].mxu1  ;;  %v14143_v41 = vadd.f32 %v9304_v5, %v7565_v51 }
0x1024   : > { %v9218_v33 = vpop.f32.mrb[177].mxu1 }
0x1025   : > { %v14145_v34 = vadd.f32 %v9218_v33, %v9217_v39  ;;  %v9220_v56 = vpop.f32.mrb[178].mxu1  ;;  %v9305_v45 = vpop.f32.mrb[160].mxu0 }
0x1026   : > { %v9221_v57 = vpop.f32.mrb[179].mxu1  ;;  %v9306_v2 = vpop.f32.mrb[161].mxu0 }
0x1027   : > { %v14149_v37 = vadd.f32 %v9221_v57, %v9220_v56  ;;  %v9307_v18 = vadd.f32 %v9306_v2, %v9305_v45  ;;  %v9308_v63 = vpop.f32.mrb[162].mxu0 }
0x1028   : > { %v9309_v49 = vpop.f32.mrb[163].mxu0 }
0x1029   : > { %v9310_v36 = vadd.f32 %v9309_v49, %v9308_v63  ;;  %v14153_v23 = vadd.f32 %v9307_v18, %v7570_v42  ;;  %v7589_v42 = vadd.f32 %v14125_v25, %v14034_v50 }
0x102b   : > { %v9223_v29 = vpop.f32.mrb[180].mxu1  ;;  %v14155_v17 = vadd.f32 %v9310_v36, %v7573_v28 }
0x102c   : > { %v9224_v21 = vpop.f32.mrb[181].mxu1 }
0x102d   : > { %v14157_v15 = vadd.f32 %v9224_v21, %v9223_v29  ;;  %v9226_v32 = vpop.f32.mrb[182].mxu1  ;;  %v9311_v4 = vpop.f32.mrb[164].mxu0 }
0x102e   : > { %v9227_v6 = vpop.f32.mrb[183].mxu1  ;;  %v9312_v38 = vpop.f32.mrb[165].mxu0 }
0x102f   : > { %v14161_v54 = vadd.f32 %v9227_v6, %v9226_v32  ;;  %v9313_v58 = vadd.f32 %v9312_v38, %v9311_v4  ;;  %v9314_v61 = vpop.f32.mrb[166].mxu0 }
0x1030   : > { %v9315_v9 = vpop.f32.mrb[167].mxu0 }
0x1031   : > { %v9316_v3 = vadd.f32 %v9315_v9, %v9314_v61  ;;  %v14165_v48 = vadd.f32 %v9313_v58, %v7578_v12  ;;  %v7594_v61 = vadd.f32 %v14133_v11, %v14034_v50 }
0x1033   : > { %v9631_v31 = vpop.f32.mrb[184].mxu1  ;;  %v14167_v30 = vadd.f32 %v9316_v3, %v7581_v1 }
0x1034   : > { %v7820_v8 = vadd.f32 %v9631_v31, %v14050_v53  ;;  %v7811_v13 = vpop.f32.mrb[185].mxu1 }
0x1035   : > { %v7812_v51 = vadd.f32 %v7811_v13, %v14040_v20  ;;  %v9632_v52 = vpop.f32.mrb[186].mxu1  ;;  %v9317_v5 = vpop.f32.mrb[168].mxu0 }
0x1036   : > { %v7823_v39 = vadd.f32 %v9632_v52, %v14052_v19  ;;  %v7814_v33 = vpop.f32.mrb[187].mxu1  ;;  %v9318_v56 = vpop.f32.mrb[169].mxu0  ;;  %v7940_v53 = vmax.f32 %v7820_v8, 0.0 }
0x1037   : > { %v7815_v45 = vadd.f32 %v7814_v33, %v14042_v16  ;;  %v9319_v57 = vadd.f32 %v9318_v56, %v9317_v5  ;;  %v9320_v2 = vpop.f32.mrb[170].mxu0  ;;  %v7938_v20 = vmax.f32 %v7812_v51, 0.0 }
0x1038   : > { %v7941_v18 = vmax.f32 %v7823_v39, 0.0  ;;  %v9321_v63 = vpop.f32.mrb[171].mxu0 }
0x1039   : > { %v7939_v49 = vmax.f32 %v7815_v45, 0.0  ;;  %v9322_v28 = vadd.f32 %v9321_v63, %v9320_v2  ;;  %v14177_v36 = vadd.f32 %v9319_v57, %v7586_v60 }
0x103a   : > { %v7971_v19 = vpack.c.bf16 %v7941_v18, %v7940_v53  ;;  %v7602_v53 = vadd.f32 %v14145_v34, %v14034_v50 }
0x103b   : > { %v7970_v29 = vpack.c.bf16 %v7939_v49, %v7938_v20  ;;  %v9635_v21 = vpop.f32.mrb[188].mxu1  ;;  %v14179_v32 = vadd.f32 %v9322_v28, %v7589_v42 }
0x103c   : > { %v7836_v16 = vadd.f32 %v9635_v21, %v14070_v44  ;;  %v7827_v24 = vpop.f32.mrb[189].mxu1 }
0x103d   : > { %v7828_v4 = vadd.f32 %v7827_v24, %v14060_v55  ;;  %v9636_v6 = vpop.f32.mrb[190].mxu1  ;;  %9669 = vmatprep.mubr.msk.bf16.mxu0 %vm577_vm0, %v7970_v29  ;;  %v9323_v25 = vpop.f32.mrb[172].mxu0  ;;  %v7597_v55 = vadd.f32 %v14137_v14, %v14034_v50 }
0x103e   : > { %v7839_v38 = vadd.f32 %v9636_v6, %v14072_v59  ;;  %v7830_v12 = vpop.f32.mrb[191].mxu1  ;;  %9670 = vmatmul.mubr.msk.bf16.vlgmr.msra.gmra.mrb[184].mxu0 %vm577_vm0, %v7971_v19  ;;  %v9324_v58 = vpop.f32.mrb[173].mxu0  ;;  %v7944_v3 = vmax.f32 %v7836_v16, 0.0 }
0x103f   : > { %v7831_v9 = vadd.f32 %v7830_v12, %v14062_v35  ;;  %v9325_v1 = vadd.f32 %v9324_v58, %v9323_v25  ;;  %v9326_v44 = vpop.f32.mrb[174].mxu0  ;;  %v7942_v13 = vmax.f32 %v7828_v4, 0.0 }
0x1040   : > { %v7945_v31 = vmax.f32 %v7839_v38, 0.0  ;;  %v9327_v8 = vpop.f32.mrb[175].mxu0 }
0x1041   : > { %v7943_v51 = vmax.f32 %v7831_v9, 0.0  ;;  %v9328_v59 = vadd.f32 %v9327_v8, %v9326_v44  ;;  %v14191_v52 = vadd.f32 %v9325_v1, %v7594_v61  ;;  %v7610_v9 = vadd.f32 %v14157_v15, %v14034_v50 }
0x1042   : > { %v7973_v5 = vpack.c.bf16 %v7945_v31, %v7944_v3 }
0x1043   : > { %v7972_v39 = vpack.c.bf16 %v7943_v51, %v7942_v13  ;;  %v9639_v33 = vpop.f32.mrb[192].mxu1  ;;  %v14193_v56 = vadd.f32 %v9328_v59, %v7597_v55 }
0x1044   : > { %v7852_v35 = vadd.f32 %v9639_v33, %v14093_v22  ;;  %v7843_v11 = vpop.f32.mrb[193].mxu1 }
0x1045   : > { %v7844_v60 = vadd.f32 %v7843_v11, %v14081_v43  ;;  %v9640_v45 = vpop.f32.mrb[194].mxu1  ;;  %9673 = vmatprep.mubr.msk.bf16.mxu0 %vm577_vm0, %v7972_v39  ;;  %v9329_v14 = vpop.f32.mrb[176].mxu0  ;;  %v7605_v43 = vadd.f32 %v14149_v37, %v14034_v50 }
0x1046   : > { %v7855_v57 = vadd.f32 %v9640_v45, %v14095_v10  ;;  %v7846_v2 = vpop.f32.mrb[195].mxu1  ;;  %9674 = vmatmul.mubr.msk.bf16.gmra.mrb[188].mxu0 %vm577_vm0, %v7973_v5  ;;  %v9330_v42 = vpop.f32.mrb[177].mxu0  ;;  %v7948_v20 = vmax.f32 %v7852_v35, 0.0 }
0x1047   : > { %v7847_v18 = vadd.f32 %v7846_v2, %v14083_v47  ;;  %v9331_v63 = vadd.f32 %v9330_v42, %v9329_v14  ;;  %v9332_v22 = vpop.f32.mrb[178].mxu0  ;;  %v7946_v19 = vmax.f32 %v7844_v60, 0.0 }
0x1048   : > { %v7949_v49 = vmax.f32 %v7855_v57, 0.0  ;;  %v9333_v28 = vpop.f32.mrb[179].mxu0 }
0x1049   : > { %v7947_v29 = vmax.f32 %v7847_v18, 0.0  ;;  %v9334_v10 = vadd.f32 %v9333_v28, %v9332_v22  ;;  %v14205_v21 = vadd.f32 %v9331_v63, %v7602_v53 }
0x104a   : > { %v7975_v16 = vpack.c.bf16 %v7949_v49, %v7948_v20 }
0x104b   : > { %v7974_v24 = vpack.c.bf16 %v7947_v29, %v7946_v19  ;;  %v9643_v4 = vpop.f32.mrb[196].mxu1  ;;  %v14207_v6 = vadd.f32 %v9334_v10, %v7605_v43 }
0x104c   : > { %v7868_v47 = vadd.f32 %v9643_v4, %v14117_v27  ;;  %v7859_v34 = vpop.f32.mrb[197].mxu1 }
0x104d   : > { %v7860_v25 = vadd.f32 %v7859_v34, %v14105_v7  ;;  %v9644_v38 = vpop.f32.mrb[198].mxu1  ;;  %9677 = vmatprep.mubr.msk.bf16.mxu0 %vm577_vm0, %v7974_v24  ;;  %v9335_v37 = vpop.f32.mrb[180].mxu0  ;;  %v7613_v7 = vadd.f32 %v14161_v54, %v14034_v50 }
0x104e   : > { %v7871_v12 = vadd.f32 %v9644_v38, %v14119_v40  ;;  %v7862_v58 = vpop.f32.mrb[199].mxu1  ;;  %9678 = vmatmul.mubr.msk.bf16.gmra.mrb[192].mxu0 %vm577_vm0, %v7975_v16  ;;  %v9336_v61 = vpop.f32.mrb[181].mxu0  ;;  %v7952_v55 = vmax.f32 %v7868_v47, 0.0 }
0x104f   : > { %v7863_v1 = vadd.f32 %v7862_v58, %v14107_v46  ;;  %v9337_v44 = vadd.f32 %v9336_v61, %v9335_v37  ;;  %v9338_v27 = vpop.f32.mrb[182].mxu0  ;;  %v7950_v8 = vmax.f32 %v7860_v25, 0.0 }
0x1050   : > { %v7953_v3 = vmax.f32 %v7871_v12, 0.0  ;;  %v9339_v31 = vpop.f32.mrb[183].mxu0 }
0x1051   : > { %v7951_v13 = vmax.f32 %v7863_v1, 0.0  ;;  %v9340_v40 = vadd.f32 %v9339_v31, %v9338_v27  ;;  %v7771_v51 = vadd.f32 %v9337_v44, %v7610_v9 }
0x1052   : > { %v7977_v59 = vpack.c.bf16 %v7953_v3, %v7952_v55 }
0x1053   : > { %v7976_v5 = vpack.c.bf16 %v7951_v13, %v7950_v8  ;;  %v9647_v39 = vpop.f32.mrb[200].mxu1  ;;  %v7774_v33 = vadd.f32 %v9340_v40, %v7613_v7 }
0x1054   : > { %v7884_v15 = vadd.f32 %v9647_v39, %v14141_v62  ;;  %v7875_v35 = vpop.f32.mrb[201].mxu1 }
0x1055   : > { %v7876_v46 = vadd.f32 %v7875_v35, %v14129_v0  ;;  %v9648_v11 = vpop.f32.mrb[202].mxu1  ;;  %9681 = vmatprep.mubr.msk.bf16.mxu0 %vm577_vm0, %v7976_v5 }
0x1056   : > { %v7887_v50 = vadd.f32 %v9648_v11, %v14143_v41  ;;  %v7878_v54 = vpop.f32.mrb[203].mxu1  ;;  %9682 = vmatmul.mubr.msk.bf16.gmra.mrb[196].mxu0 %vm577_vm0, %v7977_v59  ;;  %v7956_v45 = vmax.f32 %v7884_v15, 0.0 }
0x1057   : > { %v7879_v60 = vadd.f32 %v7878_v54, %v14131_v26  ;;  %v7954_v57 = vmax.f32 %v7876_v46, 0.0 }
0x1058   : > { %v7957_v14 = vmax.f32 %v7887_v50, 0.0 }
0x1059   : > { %v7955_v2 = vmax.f32 %v7879_v60, 0.0 }
0x105a   : > { %v7979_v42 = vpack.c.bf16 %v7957_v14, %v7956_v45 }
0x105b   : > { %v7978_v53 = vpack.c.bf16 %v7955_v2, %v7954_v57  ;;  %v9651_v62 = vpop.f32.mrb[204].mxu1 }
0x105c   : > { %v7900_v18 = vadd.f32 %v9651_v62, %v14165_v48  ;;  %v7891_v0 = vpop.f32.mrb[205].mxu1 }
0x105d   : > { %v7892_v63 = vadd.f32 %v7891_v0, %v14153_v23  ;;  %v9652_v22 = vpop.f32.mrb[206].mxu1  ;;  %9685 = vmatprep.mubr.msk.bf16.mxu0 %vm577_vm0, %v7978_v53 }
0x105e   : > { %v7903_v41 = vadd.f32 %v9652_v22, %v14167_v30  ;;  %v7894_v43 = vpop.f32.mrb[207].mxu1  ;;  %9686 = vmatmul.mubr.msk.bf16.gmra.mrb[200].mxu0 %vm577_vm0, %v7979_v42  ;;  %v7960_v20 = vmax.f32 %v7900_v18, 0.0 }
0x105f   : > { %v7895_v26 = vadd.f32 %v7894_v43, %v14155_v17  ;;  %v7958_v28 = vmax.f32 %v7892_v63, 0.0 }
0x1060   : > { %v7961_v49 = vmax.f32 %v7903_v41, 0.0 }
0x1061   : > { %v7959_v19 = vmax.f32 %v7895_v26, 0.0 }
0x1062   : > { %v7981_v29 = vpack.c.bf16 %v7961_v49, %v7960_v20 }
0x1063   : > { %v7980_v10 = vpack.c.bf16 %v7959_v19, %v7958_v28  ;;  %v9655_v48 = vpop.f32.mrb[208].mxu1 }
0x1064   : > { %v7916_v16 = vadd.f32 %v9655_v48, %v14191_v52  ;;  %v7907_v23 = vpop.f32.mrb[209].mxu1 }
0x1065   : > { %v7908_v24 = vadd.f32 %v7907_v23, %v14177_v36  ;;  %v9656_v4 = vpop.f32.mrb[210].mxu1  ;;  %9689 = vmatprep.mubr.msk.bf16.mxu0 %vm577_vm0, %v7980_v10 }
0x1066   : > { %v7919_v30 = vadd.f32 %v9656_v4, %v14193_v56  ;;  %v7910_v47 = vpop.f32.mrb[211].mxu1  ;;  %9690 = vmatmul.mubr.msk.bf16.gmra.mrb[204].mxu0 %vm577_vm0, %v7981_v29  ;;  %v7964_v34 = vmax.f32 %v7916_v16, 0.0 }
0x1067   : > { %v7911_v17 = vadd.f32 %v7910_v47, %v14179_v32  ;;  %v7962_v38 = vmax.f32 %v7908_v24, 0.0 }
0x1068   : > { %v7965_v25 = vmax.f32 %v7919_v30, 0.0 }
0x1069   : > { %v7963_v37 = vmax.f32 %v7911_v17, 0.0 }
0x106a   : > { %v7983_v12 = vpack.c.bf16 %v7965_v25, %v7964_v34 }
0x106b   : > { %v7982_v58 = vpack.c.bf16 %v7963_v37, %v7962_v38  ;;  %v9659_v52 = vpop.f32.mrb[212].mxu1 }
0x106c   : > { %v7932_v61 = vadd.f32 %v9659_v52, %v7771_v51  ;;  %v7923_v9 = vpop.f32.mrb[213].mxu1 }
0x106d   : > { %v7924_v36 = vadd.f32 %v7923_v9, %v14205_v21  ;;  %v9660_v1 = vpop.f32.mrb[214].mxu1  ;;  %9693 = vmatprep.mubr.msk.bf16.mxu0 %vm577_vm0, %v7982_v58  ;;  %v14246_v21 = vld [vmem:[%s14337_s10] ss:$0 sm:$0xff] }
0x106e   : > { %v7935_v56 = vadd.f32 %v9660_v1, %v7774_v33  ;;  %v7926_v44 = vpop.f32.mrb[215].mxu1  ;;  %9694 = vmatmul.mubr.msk.bf16.gmra.mrb[208].mxu0 %vm577_vm0, %v7983_v12  ;;  %v7968_v27 = vmax.f32 %v7932_v61, 0.0 }
0x106f   : > { %v7927_v32 = vadd.f32 %v7926_v44, %v14207_v6  ;;  %v7966_v55 = vmax.f32 %v7924_v36, 0.0 }
0x1070   : > { %v7969_v7 = vmax.f32 %v7935_v56, 0.0 }
0x1071   : > { %v7967_v3 = vmax.f32 %v7927_v32, 0.0 }
0x1072   : > { %v7985_v31 = vpack.c.bf16 %v7969_v7, %v7968_v27 }
0x1073   : > { %v7984_v8 = vpack.c.bf16 %v7967_v3, %v7966_v55 }
0x1075   : > { %9697 = vmatprep.mubr.msk.bf16.mxu0 %vm577_vm0, %v7984_v8 }
0x1076   : > { %9698 = vmatmul.mubr.msk.bf16.gmra.mrb[212].mxu0 %vm577_vm0, %v7985_v31 }
0x1111   : > { %v9671_v13 = vpop.f32.mrb[184].mxu0 }
0x1112   : > { %v8107_v40 = vpop.f32.mrb[185].mxu0  ;;  %v8116_v15 = vadd.f32 %v9671_v13, %v14246_v21 }
0x1113   : > { %v8108_v51 = vadd.f32 %v14246_v21, %v8107_v40  ;;  %v9672_v6 = vpop.f32.mrb[186].mxu0 }
0x1114   : > { %v8110_v59 = vpop.f32.mrb[187].mxu0  ;;  %v8119_v11 = vadd.f32 %v9672_v6, %v14246_v21 }
0x1115   : > { %8234 = vxpose.xlu0.b32.start [1/16] (narrow) %v8108_v51, 8  ;;  %v8111_v5 = vadd.f32 %v14246_v21, %v8110_v59 }
0x1119   : > { %v9675_v39 = vpop.f32.mrb[188].mxu0  ;;  %8235 = vxpose.xlu0.b32.cont [2/16] (narrow) %v8111_v5, 8 }
0x111a   : > { %v8123_v33 = vpop.f32.mrb[189].mxu0  ;;  %v8132_v53 = vadd.f32 %v9675_v39, %v14246_v21 }
0x111b   : > { %v9676_v35 = vpop.f32.mrb[190].mxu0  ;;  %v8124_v60 = vadd.f32 %v14246_v21, %v8123_v33 }
0x111c   : > { %v8126_v46 = vpop.f32.mrb[191].mxu0  ;;  %v8135_v0 = vadd.f32 %v9676_v35, %v14246_v21 }
0x111d   : > { %8236 = vxpose.xlu0.b32.cont [3/16] (narrow) %v8116_v15, 8  ;;  %v8127_v57 = vadd.f32 %v14246_v21, %v8126_v46 }
0x1121   : > { %v9679_v50 = vpop.f32.mrb[192].mxu0  ;;  %8237 = vxpose.xlu0.b32.cont [4/16] (narrow) %v8119_v11, 8 }
0x1122   : > { %v8139_v54 = vpop.f32.mrb[193].mxu0  ;;  %v8148_v10 = vadd.f32 %v9679_v50, %v14246_v21 }
0x1123   : > { %v9680_v45 = vpop.f32.mrb[194].mxu0  ;;  %v8140_v41 = vadd.f32 %v14246_v21, %v8139_v54 }
0x1124   : > { %v8142_v14 = vpop.f32.mrb[195].mxu0  ;;  %v8151_v24 = vadd.f32 %v9680_v45, %v14246_v21 }
0x1125   : > { %8238 = vxpose.xlu0.b32.cont [5/16] (narrow) %v8124_v60, 8  ;;  %v8143_v49 = vadd.f32 %v14246_v21, %v8142_v14 }
0x1129   : > { %v9683_v2 = vpop.f32.mrb[196].mxu0  ;;  %8239 = vxpose.xlu0.b32.cont [6/16] (narrow) %v8127_v57, 8 }
0x112a   : > { %v8155_v42 = vpop.f32.mrb[197].mxu0  ;;  %v8164_v44 = vadd.f32 %v9683_v2, %v14246_v21 }
0x112b   : > { %v9684_v62 = vpop.f32.mrb[198].mxu0  ;;  %v8156_v34 = vadd.f32 %v14246_v21, %v8155_v42 }
0x112c   : > { %v8158_v18 = vpop.f32.mrb[199].mxu0  ;;  %v8167_v8 = vadd.f32 %v9684_v62, %v14246_v21 }
0x112d   : > { %8240 = vxpose.xlu0.b32.cont [7/16] (narrow) %v8132_v53, 8  ;;  %v8159_v61 = vadd.f32 %v14246_v21, %v8158_v18 }
0x1131   : > { %v9687_v63 = vpop.f32.mrb[200].mxu0  ;;  %8241 = vxpose.xlu0.b32.cont [8/16] (narrow) %v8135_v0, 8 }
0x1132   : > { %v8171_v22 = vpop.f32.mrb[201].mxu0  ;;  %v8180_v48 = vadd.f32 %v9687_v63, %v14246_v21 }
0x1133   : > { %v8172_v43 = vadd.f32 %v14246_v21, %v8171_v22  ;;  %v9688_v26 = vpop.f32.mrb[202].mxu0 }
0x1134   : > { %v8174_v20 = vpop.f32.mrb[203].mxu0  ;;  %v8183_v4 = vadd.f32 %v9688_v26, %v14246_v21 }
0x1135   : > { %8266 = vxpose.xlu1.b32.start [1/16] (narrow) %v8172_v43, 8  ;;  %8242 = vxpose.xlu0.b32.cont [9/16] (narrow) %v8140_v41, 8  ;;  %v8175_v28 = vadd.f32 %v14246_v21, %v8174_v20 }
0x1139   : > { %v9691_v19 = vpop.f32.mrb[204].mxu0  ;;  %8267 = vxpose.xlu1.b32.cont [2/16] (narrow) %v8175_v28, 8  ;;  %8243 = vxpose.xlu0.b32.cont [10/16] (narrow) %v8143_v49, 8 }
0x113a   : > { %v8187_v29 = vpop.f32.mrb[205].mxu0  ;;  %v8196_v32 = vadd.f32 %v9691_v19, %v14246_v21 }
0x113b   : > { %v9692_v16 = vpop.f32.mrb[206].mxu0  ;;  %v8188_v25 = vadd.f32 %v14246_v21, %v8187_v29 }
0x113c   : > { %v8190_v23 = vpop.f32.mrb[207].mxu0  ;;  %v8199_v13 = vadd.f32 %v9692_v16, %v14246_v21 }
0x113d   : > { %8268 = vxpose.xlu1.b32.cont [3/16] (narrow) %v8180_v48, 8  ;;  %8244 = vxpose.xlu0.b32.cont [11/16] (narrow) %v8148_v10, 8  ;;  %v8191_v9 = vadd.f32 %v14246_v21, %v8190_v23 }
0x1141   : > { %v9695_v30 = vpop.f32.mrb[208].mxu0  ;;  %8269 = vxpose.xlu1.b32.cont [4/16] (narrow) %v8183_v4, 8  ;;  %8245 = vxpose.xlu0.b32.cont [12/16] (narrow) %v8151_v24, 8 }
0x1142   : > { %v8212_v47 = vadd.f32 %v9695_v30, %v14246_v21  ;;  %v8203_v17 = vpop.f32.mrb[209].mxu0 }
0x1143   : > { %v8204_v38 = vadd.f32 %v14246_v21, %v8203_v17  ;;  %v9696_v37 = vpop.f32.mrb[210].mxu0 }
0x1144   : > { %v8215_v12 = vadd.f32 %v9696_v37, %v14246_v21  ;;  %v8206_v58 = vpop.f32.mrb[211].mxu0 }
0x1145   : > { %v8207_v52 = vadd.f32 %v14246_v21, %v8206_v58  ;;  %8270 = vxpose.xlu1.b32.cont [5/16] (narrow) %v8188_v25, 8  ;;  %8246 = vxpose.xlu0.b32.cont [13/16] (narrow) %v8156_v34, 8 }
0x1149   : > { %8271 = vxpose.xlu1.b32.cont [6/16] (narrow) %v8191_v9, 8  ;;  %8247 = vxpose.xlu0.b32.cont [14/16] (narrow) %v8159_v61, 8  ;;  %v9699_v36 = vpop.f32.mrb[212].mxu0 }
0x114a   : > { %v8228_v1 = vadd.f32 %v9699_v36, %v14246_v21  ;;  %v8219_v56 = vpop.f32.mrb[213].mxu0 }
0x114b   : > { %v8220_v27 = vadd.f32 %v14246_v21, %v8219_v56  ;;  %v9700_v7 = vpop.f32.mrb[214].mxu0 }
0x114c   : > { %v8231_v55 = vadd.f32 %v9700_v7, %v14246_v21  ;;  %v8222_v3 = vpop.f32.mrb[215].mxu0 }
0x114d   : > { %v8223_v31 = vadd.f32 %v14246_v21, %v8222_v3  ;;  %8272 = vxpose.xlu1.b32.cont [7/16] (narrow) %v8196_v32, 8  ;;  %8248 = vxpose.xlu0.b32.cont [15/16] (narrow) %v8164_v44, 8 }
0x1151   : > { %8273 = vxpose.xlu1.b32.cont [8/16] (narrow) %v8199_v13, 8  ;;  %8249 = vxpose.xlu0.b32.end [16/16] (narrow) %v8167_v8, 8 }
0x1155   : > { %8274 = vxpose.xlu1.b32.cont [9/16] (narrow) %v8204_v38, 8 }
0x1159   : > { %8275 = vxpose.xlu1.b32.cont [10/16] (narrow) %v8207_v52, 8 }
0x115d   : > { %8276 = vxpose.xlu1.b32.cont [11/16] (narrow) %v8212_v47, 8 }
0x1161   : > { %8277 = vxpose.xlu1.b32.cont [12/16] (narrow) %v8215_v12, 8 }
0x1165   : > { %8278 = vxpose.xlu1.b32.cont [13/16] (narrow) %v8220_v27, 8 }
0x1169   : > { %8279 = vxpose.xlu1.b32.cont [14/16] (narrow) %v8223_v31, 8 }
0x116d   : > { %8280 = vxpose.xlu1.b32.cont [15/16] (narrow) %v8228_v1, 8 }
0x1171   : > { %8281 = vxpose.xlu1.b32.end [16/16] (narrow) %v8231_v55, 8 }
0x1195   : > { %v8250_v40 = vpop.trf.xlu0 }
0x1196   : > { %8298 = vst [vmem:[%s407_s19] sm:$0xff] %v8250_v40 }
0x11b5   : > { %v8282_v21 = vpop.trf.xlu1 }
0x11b6   : > { %8299 = vst [vmem:[%s407_s19 + $0x8] sm:$0xff] %v8282_v21 }
0x11b7   : > { %10456 = shalt.err (!%p10453_p3)
}
0x11b8   : > { %s10457_s26 = scalar_lea.hbm %s14287_s18, 256  ;;  %s10461_s15 = scalar_lea.hbm %s14338_s11, 512 }
0x11b9   : > { %p10458_p4 = scmp.ne.s32.totalorder %s14287_s18, %s10457_s26  ;;  %p10462_p9 = scmp.lt.u32.totalorder %s14287_s18, %s14338_s11 }
0x11ba   : > { %p10463_p10 = scmp.lt.u32.totalorder %s10461_s15, %s10457_s26  ;;  %p10465_p12 = scmp.lt.u32.totalorder %s10457_s26, %s14287_s18 }
0x11bb   : > { %p10459_p7 = pnand %p10458_p4, %p10613_p5 }
0x11bc   : > { %p10464_p11 = por %p10463_p10, %p10462_p9 }
0x11bd   : > { %p10460_p8 = pneg %p10459_p7 }
0x11be   : > { %p10466_p13 = por %p10465_p12, %p10464_p11 }
0x11c0   : > { %p10467_p0 = pnand %p10466_p13, %p10460_p8 }
0x11c2   : > { %10470 = shalt.err (!%p10467_p0)
}
0x11c3   : > { %9713 = dma.vmem_to_hbm [thread:$0]  (%p10613_p5), %s14282_s0, 256, %s14287_s18, %s8301_s17  }
0x11c4 PF: > { %p9719_p1 = scmp.ge.s32.totalorder %s10505_s24, 2  ;;  %s8335_s1 = sand.u32 1, %s10493_s21  }
0x11c5   : > { %s8336_s20 = scalar_lea.sflag [#allocation4], %s8335_s1 }
0x11c6   : > { %p9716_p2 = pnand %p9719_p1, %p10617_p6 }
0x11c8   : > { %10488 = dma.done.wait (!%p9716_p2), %s8336_s20, 256  }
0x11c9   : > { %10490 = vsyncadd (!%p9716_p2), %s8336_s20, 4294967040  ;;  %p23_p3 = scmp.ge.s32.totalorder %s10600_s27, 4   ;;  %s14383_s21 = smov %s10497_s22 }
0x11ca   : > { %s14384_s22 = smov %s10501_s23  ;;  %s14385_s23 = smov %s10611_s30 }
0x11cb   : > { %s14386_s24 = smov %s10600_s27  ;;  %25 = sbr.rel (!%p23_p3) target bundleno = 6 (0x6), region = 113 }
0x11d2   :  { %8349 = vsyncpa [#allocation4], 1 }
0x11d3   :  { %8351 = vsyncpa [#allocation4 + $0x1], 1 }

</bundles_post_ra>
